<compile_context>
chip_gen: v6e
topology: v6e:2x2x1
jax: 0.10.0
libtpu: 0.0.40
codegen_flags: <defaults>
</compile_context>

<pallas_src>
import jax
import jax.numpy as jnp
from jax import lax
from jax.experimental import pallas as pl
from jax.experimental.pallas import tpu as pltpu


_VMEM_LIMIT = 32 * 1024 * 1024  # well under v7x's 64 MiB physical VMEM


# ---------------------------------------------------------------------------
# Kernel 1: fused conv (matmul over im2col patches) + folded BN + ReLU + 2x2 maxpool
# ---------------------------------------------------------------------------
def conv_bn_relu_pool_kernel(p_ref, w_ref, shift_ref, o_ref):
    # p_ref     : (K, 4*TP) bf16 im2col patches; lane index = q*TP + p, where q in
    #             {0..3} is the corner of the 2x2 pooling window, p the pooled index.
    # w_ref     : (Cout, K) bf16 conv weight with the BN scale already folded in;
    #             K ordered (cin, kh, kw) like torch weight.reshape(Cout, Cin*9).
    # shift_ref : (Cout, 1) f32 folded BatchNorm (+conv bias) shift.
    # o_ref     : (Cout, TP) bf16 pooled output tile (lane-dense, TP % 128 == 0).
    y = jnp.dot(w_ref[...], p_ref[...], preferred_element_type=jnp.float32)
    y = y + shift_ref[...]
    y = jnp.maximum(y, 0.0)
    tp = o_ref.shape[1]
    # 2x2 maxpool: the 4 window corners live in 4 lane-aligned column blocks.
    pooled = jnp.maximum(
        jnp.maximum(y[:, 0 * tp:1 * tp], y[:, 1 * tp:2 * tp]),
        jnp.maximum(y[:, 2 * tp:3 * tp], y[:, 3 * tp:4 * tp]),
    )
    o_ref[...] = pooled.astype(o_ref.dtype)  # keep math f32, cast only at the store


def _im2col_pool_order(x_nchw, tp):
    """NCHW (B, Cin, H, W) -> bf16 patches (B*nPT, 9*Cin, 4*tp) for a 3x3 'same' conv.

    Leading index = b*nPT + pt (pt = contiguous chunk of the row-major pooled grid),
    K index      = cin*9 + kh*3 + kw  (matches torch weight.reshape(Cout, Cin*9)),
    lane index   = q*tp + p_in with q = dy*2 + dx the 2x2 pool-window corner.
    """
    x = x_nchw.astype(jnp.bfloat16)  # no-op after layer 1 (conv outputs are bf16)
    B, Cin, H, W = x.shape
    Hp, Wp = H // 2, W // 2
    P = Hp * Wp
    npt = P // tp
    K = 9 * Cin
    xp = jnp.pad(x, ((0, 0), (0, 0), (1, 1), (1, 1)))
    taps = jnp.stack(
        [xp[:, :, kh:kh + H, kw:kw + W] for kh in range(3) for kw in range(3)],
        axis=2,
    )                                                  # (B, Cin, 9, H, W)
    pats = taps.reshape(B, K, Hp, 2, Wp, 2)            # (b, k, hp, dy, wp, dx)
    pats = pats.transpose(0, 1, 3, 5, 2, 4)            # (b, k, dy, dx, hp, wp)
    pats = pats.reshape(B, K, 4, npt, tp)              # (b, k, q, pt, p_in)
    pats = pats.transpose(0, 3, 1, 2, 4)               # (b, pt, k, q, p_in)
    return pats.reshape(B * npt, K, 4 * tp)


def conv_block(x_nchw, wmat, shift, *, tp):
    """conv2d(3x3, pad=1) -> folded BatchNorm (eval) -> ReLU -> MaxPool(2,2).

    x_nchw : (B, Cin, H, W); wmat : (Cout, 9*Cin) bf16 (BN scale folded in);
    shift  : (Cout, 1) f32.  Returns (B, Cout, H//2, W//2) bf16 in NCHW order.
    """
    B, Cin, H, W = x_nchw.shape
    Cout, K = wmat.shape
    assert K == 9 * Cin
    Hp, Wp = H // 2, W // 2
    P = Hp * Wp
    assert P % tp == 0 and tp % 128 == 0
    npt = P // tp

    patches = _im2col_pool_order(x_nchw, tp)                  # (B*npt, K, 4*tp) bf16

    out = pl.pallas_call(
        conv_bn_relu_pool_kernel,
        out_shape=jax.ShapeDtypeStruct((B * npt, Cout, tp), jnp.bfloat16),
        grid=(B * npt,),
        in_specs=[
            pl.BlockSpec((None, K, 4 * tp), lambda i: (i, 0, 0)),
            pl.BlockSpec((Cout, K), lambda i: (0, 0)),
            pl.BlockSpec((Cout, 1), lambda i: (0, 0)),
        ],
        out_specs=pl.BlockSpec((None, Cout, tp), lambda i: (i, 0, 0)),
        compiler_params=pltpu.CompilerParams(
            dimension_semantics=("parallel",),        # >=2 steps -> dual-TC on v7x
            vmem_limit_bytes=_VMEM_LIMIT,
        ),
    )(patches, wmat, shift)

    if npt == 1:
        # tp == full pooled grid: lane index p = hp*Wp + wp, so this is exactly NCHW.
        return out.reshape(B, Cout, Hp, Wp)
    out = out.reshape(B, npt, Cout, tp).transpose(0, 2, 1, 3)
    return out.reshape(B, Cout, Hp, Wp)


# ---------------------------------------------------------------------------
# Kernel 2: K-tiled fc1 (+bias+ReLU) then fc2, with an f32 VMEM accumulator.
# w1 is consumed UNTRANSPOSED as (H1, D); the contraction on its 2nd axis is an
# NT matmul handled natively by the MXU (no per-forward transpose+cast in HBM).
# ---------------------------------------------------------------------------
def fc_kernel(x_ref, w1_ref, b1_ref, w2_ref, b2_ref, o_ref, acc_ref):
    k = pl.program_id(0)

    @pl.when(k == 0)
    def _():
        acc_ref[...] = jnp.zeros_like(acc_ref)

    acc_ref[...] += lax.dot_general(
        x_ref[...], w1_ref[...],
        dimension_numbers=(((1,), (1,)), ((), ())),   # (B,tk) x (H1,tk)^T -> (B,H1)
        preferred_element_type=jnp.float32)

    @pl.when(k == pl.num_programs(0) - 1)
    def _():
        h = jnp.maximum(acc_ref[...] + b1_ref[...], 0.0)      # fc1 bias + ReLU
        o_ref[...] = (jnp.dot(h, w2_ref[...], preferred_element_type=jnp.float32)
                      + b2_ref[...])                           # fc2


def fc_head(xf, w1, b1, w2, b2, *, tk=8192):
    """xf: (B, D) bf16 in torch (C,H,W) flatten order; w1: (H1, D) bf16 untransposed;
    b1: (1, H1) f32; w2: (H1, 1) f32; b2: (1, 1) f32."""
    B, D = xf.shape
    H1 = w1.shape[0]
    assert D % tk == 0
    nk = D // tk
    return pl.pallas_call(
        fc_kernel,
        out_shape=jax.ShapeDtypeStruct((B, 1), jnp.float32),
        grid=(nk,),
        in_specs=[
            pl.BlockSpec((B, tk), lambda k: (0, k)),
            pl.BlockSpec((H1, tk), lambda k: (0, k)),
            pl.BlockSpec((1, H1), lambda k: (0, 0)),
            pl.BlockSpec((H1, 1), lambda k: (0, 0)),
            pl.BlockSpec((1, 1), lambda k: (0, 0)),
        ],
        out_specs=pl.BlockSpec((B, 1), lambda k: (0, 0)),
        scratch_shapes=[pltpu.VMEM((B, H1), jnp.float32)],
        compiler_params=pltpu.CompilerParams(
            dimension_semantics=("arbitrary",),      # K is a reduction axis
            vmem_limit_bytes=_VMEM_LIMIT,
        ),
    )(xf.astype(jnp.bfloat16), w1, b1, w2, b2)


# ---------------------------------------------------------------------------
# Parameters (deterministic, synthetic), one-time prep, and full forward
# ---------------------------------------------------------------------------
def init_params(key):
    ks = jax.random.split(key, 12)
    p = {}
    # conv1: 3 -> 32
    p["w1"] = 0.05 * jax.random.normal(ks[0], (32, 3, 3, 3), jnp.float32)
    p["cb1"] = 0.05 * jax.random.normal(ks[1], (32,), jnp.float32)
    p["g1"] = 1.0 + 0.1 * jax.random.normal(ks[2], (32,), jnp.float32)
    p["be1"] = 0.1 * jax.random.normal(ks[3], (32,), jnp.float32)
    p["m1"] = 0.1 * jax.random.normal(ks[4], (32,), jnp.float32)
    p["v1"] = 1.0 + 0.1 * jnp.abs(jax.random.normal(ks[5], (32,), jnp.float32))
    # conv2: 32 -> 64
    p["w2"] = 0.05 * jax.random.normal(ks[6], (64, 32, 3, 3), jnp.float32)
    p["cb2"] = 0.05 * jax.random.normal(ks[7], (64,), jnp.float32)
    p["g2"] = 1.0 + 0.1 * jax.random.normal(ks[8], (64,), jnp.float32)
    p["be2"] = 0.1 * jax.random.normal(ks[9], (64,), jnp.float32)
    p["m2"] = 0.1 * jax.random.normal(ks[10], (64,), jnp.float32)
    p["v2"] = 1.0 + 0.1 * jnp.abs(jax.random.normal(ks[11], (64,), jnp.float32))
    # fc layers
    kf = jax.random.split(jax.random.fold_in(key, 99), 4)
    p["fw1"] = 0.02 * jax.random.normal(kf[0], (128, 64 * 16 * 16), jnp.float32)
    p["fb1"] = 0.02 * jax.random.normal(kf[1], (128,), jnp.float32)
    p["fw2"] = 0.02 * jax.random.normal(kf[2], (1, 128), jnp.float32)
    p["fb2"] = 0.02 * jax.random.normal(kf[3], (1,), jnp.float32)
    return p


def prepare_params(p, eps=1e-5):
    """One-time (outside the per-forward path): fold BN scale into the conv
    weights, reshape to matmul form, and pre-cast matmul operands to bf16."""
    q = {}
    s1 = p["g1"] / jnp.sqrt(p["v1"] + eps)
    q["cw1"] = (p["w1"].reshape(32, 3 * 9) * s1[:, None]).astype(jnp.bfloat16)
    q["cs1"] = (p["be1"] + (p["cb1"] - p["m1"]) * s1).reshape(32, 1).astype(jnp.float32)
    s2 = p["g2"] / jnp.sqrt(p["v2"] + eps)
    q["cw2"] = (p["w2"].reshape(64, 32 * 9) * s2[:, None]).astype(jnp.bfloat16)
    q["cs2"] = (p["be2"] + (p["cb2"] - p["m2"]) * s2).reshape(64, 1).astype(jnp.float32)
    q["fw1"] = p["fw1"].astype(jnp.bfloat16)                 # (128, 16384), untransposed
    q["fb1"] = p["fb1"].reshape(1, 128).astype(jnp.float32)
    q["fw2"] = jnp.transpose(p["fw2"]).astype(jnp.float32)   # (128, 1)
    q["fb2"] = p["fb2"].reshape(1, 1).astype(jnp.float32)
    return q


@jax.jit
def cnn_forward(x_nchw, q):
    x = x_nchw.astype(jnp.bfloat16)                             # (B, 3, 64, 64)
    x = conv_block(x, q["cw1"], q["cs1"], tp=1024)              # (B, 32, 32, 32) bf16
    x = conv_block(x, q["cw2"], q["cs2"], tp=256)               # (B, 64, 16, 16) bf16
    # dropout_conv: identity in eval mode
    B = x.shape[0]
    # Conv output is already NCHW, so this reshape is exactly torch's
    # x.view(-1, 64*16*16) with no per-forward transpose.
    xf = x.reshape(B, 64 * 16 * 16)
    # dropout: identity in eval mode
    return fc_head(xf, q["fw1"], q["fb1"], q["fw2"], q["fb2"], tk=8192)   # (B, 1)


if __name__ == "__main__":
    key = jax.random.PRNGKey(0)
    params = init_params(key)
    prepared = prepare_params(params)   # one-time weight prep, outside the forward
    # fc1 expects 64*16*16 features after two 2x-pools -> input spatial must be 64x64.
    x = jax.random.normal(jax.random.fold_in(key, 7), (2, 3, 64, 64), jnp.float32)
    out = cnn_forward(x, prepared)
    jax.block_until_ready(out)
    assert out.shape == (2, 1), out.shape
    print("KERNEL_OK")
</pallas_src>

<mosaic_0001>
module attributes {stable_mosaic.version = 11 : i64} {
  func.func @conv_bn_relu_pool_kernel(%arg0: i32, %arg1: memref<1x27x4096xbf16, #tpu.memory_space<vmem>>, %arg2: memref<32x27xbf16, #tpu.memory_space<vmem>>, %arg3: memref<32x1xf32, #tpu.memory_space<vmem>>, %arg4: memref<1x32x1024xbf16, #tpu.memory_space<vmem>>) attributes {dimension_semantics = [#tpu.dimension_semantics<parallel>], iteration_bounds = array<i64: 2>, scalar_prefetch = 0 : i64, scratch_operands = 0 : i64, tpu.core_type = #tpu.core_type<tc>, window_params = [{transform_indices = @transform_0, window_bounds = array<i64: 1, 27, 4096>}, {pipeline_mode = #tpu.pipeline_mode<synchronous>, transform_indices = @transform_1, window_bounds = array<i64: 32, 27>}, {pipeline_mode = #tpu.pipeline_mode<synchronous>, transform_indices = @transform_2, window_bounds = array<i64: 32, 1>}, {transform_indices = @transform_3, window_bounds = array<i64: 1, 32, 1024>}]} {
    %c0 = arith.constant 0 : index
    %c0_0 = arith.constant 0 : index
    %0 = vector.load %arg2[%c0, %c0_0] : memref<32x27xbf16, #tpu.memory_space<vmem>>, vector<32x27xbf16>
    %c0_1 = arith.constant 0 : index
    %c0_2 = arith.constant 0 : index
    %c0_3 = arith.constant 0 : index
    %1 = vector.load %arg1[%c0_1, %c0_2, %c0_3] : memref<1x27x4096xbf16, #tpu.memory_space<vmem>>, vector<1x27x4096xbf16>
    %2 = vector.shape_cast %1 : vector<1x27x4096xbf16> to vector<27x4096xbf16>
    %cst = arith.constant dense<0.000000e+00> : vector<32x4096xf32>
    %3 = tpu.matmul %0, %2, %cst {dimension_numbers = #tpu.dot_dimension_numbers<[1], [0], [0], [1], [0, 0, 1, 1], [], []>} : vector<32x27xbf16>, vector<27x4096xbf16>, vector<32x4096xf32> -> vector<32x4096xf32>
    %c0_4 = arith.constant 0 : index
    %c0_5 = arith.constant 0 : index
    %4 = vector.load %arg3[%c0_4, %c0_5] : memref<32x1xf32, #tpu.memory_space<vmem>>, vector<32x1xf32>
    %5 = vector.broadcast %4 : vector<32x1xf32> to vector<32x4096xf32>
    %6 = arith.addf %3, %5 : vector<32x4096xf32>
    %cst_6 = arith.constant 0.000000e+00 : f32
    %7 = vector.broadcast %cst_6 : f32 to vector<32x4096xf32>
    %8 = arith.maximumf %6, %7 : vector<32x4096xf32>
    %9 = vector.extract_strided_slice %8 {offsets = [0, 0], sizes = [32, 1024], strides = [1, 1]} : vector<32x4096xf32> to vector<32x1024xf32>
    %10 = vector.extract_strided_slice %8 {offsets = [0, 1024], sizes = [32, 1024], strides = [1, 1]} : vector<32x4096xf32> to vector<32x1024xf32>
    %11 = arith.maximumf %9, %10 : vector<32x1024xf32>
    %12 = vector.extract_strided_slice %8 {offsets = [0, 2048], sizes = [32, 1024], strides = [1, 1]} : vector<32x4096xf32> to vector<32x1024xf32>
    %13 = vector.extract_strided_slice %8 {offsets = [0, 3072], sizes = [32, 1024], strides = [1, 1]} : vector<32x4096xf32> to vector<32x1024xf32>
    %14 = arith.maximumf %12, %13 : vector<32x1024xf32>
    %15 = arith.maximumf %11, %14 : vector<32x1024xf32>
    %16 = arith.truncf %15 : vector<32x1024xf32> to vector<32x1024xbf16>
    %c0_7 = arith.constant 0 : index
    %c0_8 = arith.constant 0 : index
    %c0_9 = arith.constant 0 : index
    %17 = vector.load %arg4[%c0_7, %c0_8, %c0_9] : memref<1x32x1024xbf16, #tpu.memory_space<vmem>>, vector<1x32x1024xbf16>
    %18 = vector.shape_cast %17 : vector<1x32x1024xbf16> to vector<32x1024xbf16>
    %19 = vector.shape_cast %16 : vector<32x1024xbf16> to vector<1x32x1024xbf16>
    tpu.vector_store %arg4[%c0_7, %c0_8, %c0_9], %19 {strides = array<i32>} : memref<1x32x1024xbf16, #tpu.memory_space<vmem>>, vector<1x32x1024xbf16>,
    return
  }
  func.func @transform_0(%arg0: i32) -> (i32, i32, i32) {
    %c0_i32 = arith.constant 0 : i32
    %c0_i32_0 = arith.constant 0 : i32
    %c0_i32_1 = arith.constant 0 : i32
    return %arg0, %c0_i32, %c0_i32_0 : i32, i32, i32
  }
  func.func @transform_1(%arg0: i32) -> (i32, i32) {
    %c0_i32 = arith.constant 0 : i32
    %c0_i32_0 = arith.constant 0 : i32
    %c0_i32_1 = arith.constant 0 : i32
    return %c0_i32, %c0_i32_0 : i32, i32
  }
  func.func @transform_2(%arg0: i32) -> (i32, i32) {
    %c0_i32 = arith.constant 0 : i32
    %c0_i32_0 = arith.constant 0 : i32
    %c0_i32_1 = arith.constant 0 : i32
    return %c0_i32, %c0_i32_0 : i32, i32
  }
  func.func @transform_3(%arg0: i32) -> (i32, i32, i32) {
    %c0_i32 = arith.constant 0 : i32
    %c0_i32_0 = arith.constant 0 : i32
    %c0_i32_1 = arith.constant 0 : i32
    return %arg0, %c0_i32, %c0_i32_0 : i32, i32, i32
  }
}

module attributes {stable_mosaic.version = 11 : i64} {
  func.func @conv_bn_relu_pool_kernel(%arg0: i32, %arg1: memref<1x288x1024xbf16, #tpu.memory_space<vmem>>, %arg2: memref<64x288xbf16, #tpu.memory_space<vmem>>, %arg3: memref<64x1xf32, #tpu.memory_space<vmem>>, %arg4: memref<1x64x256xbf16, #tpu.memory_space<vmem>>) attributes {dimension_semantics = [#tpu.dimension_semantics<parallel>], iteration_bounds = array<i64: 2>, scalar_prefetch = 0 : i64, scratch_operands = 0 : i64, tpu.core_type = #tpu.core_type<tc>, window_params = [{transform_indices = @transform_0, window_bounds = array<i64: 1, 288, 1024>}, {pipeline_mode = #tpu.pipeline_mode<synchronous>, transform_indices = @transform_1, window_bounds = array<i64: 64, 288>}, {pipeline_mode = #tpu.pipeline_mode<synchronous>, transform_indices = @transform_2, window_bounds = array<i64: 64, 1>}, {transform_indices = @transform_3, window_bounds = array<i64: 1, 64, 256>}]} {
    %c0 = arith.constant 0 : index
    %c0_0 = arith.constant 0 : index
    %0 = vector.load %arg2[%c0, %c0_0] : memref<64x288xbf16, #tpu.memory_space<vmem>>, vector<64x288xbf16>
    %c0_1 = arith.constant 0 : index
    %c0_2 = arith.constant 0 : index
    %c0_3 = arith.constant 0 : index
    %1 = vector.load %arg1[%c0_1, %c0_2, %c0_3] : memref<1x288x1024xbf16, #tpu.memory_space<vmem>>, vector<1x288x1024xbf16>
    %2 = vector.shape_cast %1 : vector<1x288x1024xbf16> to vector<288x1024xbf16>
    %cst = arith.constant dense<0.000000e+00> : vector<64x1024xf32>
    %3 = tpu.matmul %0, %2, %cst {dimension_numbers = #tpu.dot_dimension_numbers<[1], [0], [0], [1], [0, 0, 1, 1], [], []>} : vector<64x288xbf16>, vector<288x1024xbf16>, vector<64x1024xf32> -> vector<64x1024xf32>
    %c0_4 = arith.constant 0 : index
    %c0_5 = arith.constant 0 : index
    %4 = vector.load %arg3[%c0_4, %c0_5] : memref<64x1xf32, #tpu.memory_space<vmem>>, vector<64x1xf32>
    %5 = vector.broadcast %4 : vector<64x1xf32> to vector<64x1024xf32>
    %6 = arith.addf %3, %5 : vector<64x1024xf32>
    %cst_6 = arith.constant 0.000000e+00 : f32
    %7 = vector.broadcast %cst_6 : f32 to vector<64x1024xf32>
    %8 = arith.maximumf %6, %7 : vector<64x1024xf32>
    %9 = vector.extract_strided_slice %8 {offsets = [0, 0], sizes = [64, 256], strides = [1, 1]} : vector<64x1024xf32> to vector<64x256xf32>
    %10 = vector.extract_strided_slice %8 {offsets = [0, 256], sizes = [64, 256], strides = [1, 1]} : vector<64x1024xf32> to vector<64x256xf32>
    %11 = arith.maximumf %9, %10 : vector<64x256xf32>
    %12 = vector.extract_strided_slice %8 {offsets = [0, 512], sizes = [64, 256], strides = [1, 1]} : vector<64x1024xf32> to vector<64x256xf32>
    %13 = vector.extract_strided_slice %8 {offsets = [0, 768], sizes = [64, 256], strides = [1, 1]} : vector<64x1024xf32> to vector<64x256xf32>
    %14 = arith.maximumf %12, %13 : vector<64x256xf32>
    %15 = arith.maximumf %11, %14 : vector<64x256xf32>
    %16 = arith.truncf %15 : vector<64x256xf32> to vector<64x256xbf16>
    %c0_7 = arith.constant 0 : index
    %c0_8 = arith.constant 0 : index
    %c0_9 = arith.constant 0 : index
    %17 = vector.load %arg4[%c0_7, %c0_8, %c0_9] : memref<1x64x256xbf16, #tpu.memory_space<vmem>>, vector<1x64x256xbf16>
    %18 = vector.shape_cast %17 : vector<1x64x256xbf16> to vector<64x256xbf16>
    %19 = vector.shape_cast %16 : vector<64x256xbf16> to vector<1x64x256xbf16>
    tpu.vector_store %arg4[%c0_7, %c0_8, %c0_9], %19 {strides = array<i32>} : memref<1x64x256xbf16, #tpu.memory_space<vmem>>, vector<1x64x256xbf16>,
    return
  }
  func.func @transform_0(%arg0: i32) -> (i32, i32, i32) {
    %c0_i32 = arith.constant 0 : i32
    %c0_i32_0 = arith.constant 0 : i32
    %c0_i32_1 = arith.constant 0 : i32
    return %arg0, %c0_i32, %c0_i32_0 : i32, i32, i32
  }
  func.func @transform_1(%arg0: i32) -> (i32, i32) {
    %c0_i32 = arith.constant 0 : i32
    %c0_i32_0 = arith.constant 0 : i32
    %c0_i32_1 = arith.constant 0 : i32
    return %c0_i32, %c0_i32_0 : i32, i32
  }
  func.func @transform_2(%arg0: i32) -> (i32, i32) {
    %c0_i32 = arith.constant 0 : i32
    %c0_i32_0 = arith.constant 0 : i32
    %c0_i32_1 = arith.constant 0 : i32
    return %c0_i32, %c0_i32_0 : i32, i32
  }
  func.func @transform_3(%arg0: i32) -> (i32, i32, i32) {
    %c0_i32 = arith.constant 0 : i32
    %c0_i32_0 = arith.constant 0 : i32
    %c0_i32_1 = arith.constant 0 : i32
    return %arg0, %c0_i32, %c0_i32_0 : i32, i32, i32
  }
}

module attributes {stable_mosaic.version = 11 : i64} {
  func.func @fc_kernel(%arg0: i32, %arg1: memref<2x8192xbf16, #tpu.memory_space<vmem>>, %arg2: memref<128x8192xbf16, #tpu.memory_space<vmem>>, %arg3: memref<1x128xf32, #tpu.memory_space<vmem>>, %arg4: memref<128x1xf32, #tpu.memory_space<vmem>>, %arg5: memref<1x1xf32, #tpu.memory_space<vmem>>, %arg6: memref<2x1xf32, #tpu.memory_space<vmem>>, %arg7: memref<2x128xf32, #tpu.memory_space<vmem>>) attributes {dimension_semantics = [#tpu.dimension_semantics<arbitrary>], iteration_bounds = array<i64: 2>, scalar_prefetch = 0 : i64, scratch_operands = 1 : i64, tpu.core_type = #tpu.core_type<tc>, window_params = [{transform_indices = @transform_0, window_bounds = array<i64: 2, 8192>}, {transform_indices = @transform_1, window_bounds = array<i64: 128, 8192>}, {pipeline_mode = #tpu.pipeline_mode<synchronous>, transform_indices = @transform_2, window_bounds = array<i64: 1, 128>}, {pipeline_mode = #tpu.pipeline_mode<synchronous>, transform_indices = @transform_3, window_bounds = array<i64: 128, 1>}, {pipeline_mode = #tpu.pipeline_mode<synchronous>, transform_indices = @transform_4, window_bounds = array<i64: 1, 1>}, {pipeline_mode = #tpu.pipeline_mode<synchronous>, transform_indices = @transform_5, window_bounds = array<i64: 2, 1>}]} {
    %c0_i32 = arith.constant 0 : i32
    %0 = arith.cmpi eq, %arg0, %c0_i32 : i32
    %1 = arith.extui %0 : i1 to i32
    %c0_i32_0 = arith.constant 0 : i32
    %2 = arith.cmpi ne, %1, %c0_i32_0 : i32
    scf.if %2 {
      %cst_9 = arith.constant 0.000000e+00 : f32
      %12 = vector.broadcast %cst_9 : f32 to vector<2x128xf32>
      %c0_10 = arith.constant 0 : index
      %c0_11 = arith.constant 0 : index
      %13 = vector.load %arg7[%c0_10, %c0_11] : memref<2x128xf32, #tpu.memory_space<vmem>>, vector<2x128xf32>
      tpu.vector_store %arg7[%c0_10, %c0_11], %12 {strides = array<i32>} : memref<2x128xf32, #tpu.memory_space<vmem>>, vector<2x128xf32>,
    } else {
    }
    %c0 = arith.constant 0 : index
    %c0_1 = arith.constant 0 : index
    %3 = vector.load %arg7[%c0, %c0_1] : memref<2x128xf32, #tpu.memory_space<vmem>>, vector<2x128xf32>
    %c0_2 = arith.constant 0 : index
    %c0_3 = arith.constant 0 : index
    %4 = vector.load %arg1[%c0_2, %c0_3] : memref<2x8192xbf16, #tpu.memory_space<vmem>>, vector<2x8192xbf16>
    %c0_4 = arith.constant 0 : index
    %c0_5 = arith.constant 0 : index
    %5 = vector.load %arg2[%c0_4, %c0_5] : memref<128x8192xbf16, #tpu.memory_space<vmem>>, vector<128x8192xbf16>
    %cst = arith.constant dense<0.000000e+00> : vector<2x128xf32>
    %6 = tpu.matmul %4, %5, %cst {dimension_numbers = #tpu.dot_dimension_numbers<[1], [1], [0], [0], [0, 0, 1, 0], [], []>} : vector<2x8192xbf16>, vector<128x8192xbf16>, vector<2x128xf32> -> vector<2x128xf32>
    %7 = arith.addf %3, %6 : vector<2x128xf32>
    %c0_6 = arith.constant 0 : index
    %c0_7 = arith.constant 0 : index
    %8 = vector.load %arg7[%c0_6, %c0_7] : memref<2x128xf32, #tpu.memory_space<vmem>>, vector<2x128xf32>
    tpu.vector_store %arg7[%c0_6, %c0_7], %7 {strides = array<i32>} : memref<2x128xf32, #tpu.memory_space<vmem>>, vector<2x128xf32>,
    %c1_i32 = arith.constant 1 : i32
    %9 = arith.cmpi eq, %arg0, %c1_i32 : i32
    %10 = arith.extui %9 : i1 to i32
    %c0_i32_8 = arith.constant 0 : i32
    %11 = arith.cmpi ne, %10, %c0_i32_8 : i32
    scf.if %11 {
      %c0_9 = arith.constant 0 : index
      %c0_10 = arith.constant 0 : index
      %12 = vector.load %arg7[%c0_9, %c0_10] : memref<2x128xf32, #tpu.memory_space<vmem>>, vector<2x128xf32>
      %c0_11 = arith.constant 0 : index
      %c0_12 = arith.constant 0 : index
      %13 = vector.load %arg3[%c0_11, %c0_12] : memref<1x128xf32, #tpu.memory_space<vmem>>, vector<1x128xf32>
      %14 = vector.broadcast %13 : vector<1x128xf32> to vector<2x128xf32>
      %15 = arith.addf %12, %14 : vector<2x128xf32>
      %cst_13 = arith.constant 0.000000e+00 : f32
      %16 = vector.broadcast %cst_13 : f32 to vector<2x128xf32>
      %17 = arith.maximumf %15, %16 : vector<2x128xf32>
      %c0_14 = arith.constant 0 : index
      %c0_15 = arith.constant 0 : index
      %18 = vector.load %arg4[%c0_14, %c0_15] : memref<128x1xf32, #tpu.memory_space<vmem>>, vector<128x1xf32>
      %cst_16 = arith.constant dense<0.000000e+00> : vector<2x1xf32>
      %19 = tpu.matmul %17, %18, %cst_16 {dimension_numbers = #tpu.dot_dimension_numbers<[1], [0], [0], [1], [0, 0, 1, 1], [], []>} : vector<2x128xf32>, vector<128x1xf32>, vector<2x1xf32> -> vector<2x1xf32>
      %c0_17 = arith.constant 0 : index
      %c0_18 = arith.constant 0 : index
      %20 = vector.load %arg5[%c0_17, %c0_18] : memref<1x1xf32, #tpu.memory_space<vmem>>, vector<1x1xf32>
      %21 = vector.broadcast %20 : vector<1x1xf32> to vector<2x1xf32>
      %22 = arith.addf %19, %21 : vector<2x1xf32>
      %c0_19 = arith.constant 0 : index
      %c0_20 = arith.constant 0 : index
      %23 = vector.load %arg6[%c0_19, %c0_20] : memref<2x1xf32, #tpu.memory_space<vmem>>, vector<2x1xf32>
      tpu.vector_store %arg6[%c0_19, %c0_20], %22 {strides = array<i32>} : memref<2x1xf32, #tpu.memory_space<vmem>>, vector<2x1xf32>,
    } else {
    }
    return
  }
  func.func @transform_0(%arg0: i32) -> (i32, i32) {
    %c0_i32 = arith.constant 0 : i32
    %c0_i32_0 = arith.constant 0 : i32
    return %c0_i32, %arg0 : i32, i32
  }
  func.func @transform_1(%arg0: i32) -> (i32, i32) {
    %c0_i32 = arith.constant 0 : i32
    %c0_i32_0 = arith.constant 0 : i32
    return %c0_i32, %arg0 : i32, i32
  }
  func.func @transform_2(%arg0: i32) -> (i32, i32) {
    %c0_i32 = arith.constant 0 : i32
    %c0_i32_0 = arith.constant 0 : i32
    %c0_i32_1 = arith.constant 0 : i32
    return %c0_i32, %c0_i32_0 : i32, i32
  }
  func.func @transform_3(%arg0: i32) -> (i32, i32) {
    %c0_i32 = arith.constant 0 : i32
    %c0_i32_0 = arith.constant 0 : i32
    %c0_i32_1 = arith.constant 0 : i32
    return %c0_i32, %c0_i32_0 : i32, i32
  }
  func.func @transform_4(%arg0: i32) -> (i32, i32) {
    %c0_i32 = arith.constant 0 : i32
    %c0_i32_0 = arith.constant 0 : i32
    %c0_i32_1 = arith.constant 0 : i32
    return %c0_i32, %c0_i32_0 : i32, i32
  }
  func.func @transform_5(%arg0: i32) -> (i32, i32) {
    %c0_i32 = arith.constant 0 : i32
    %c0_i32_0 = arith.constant 0 : i32
    %c0_i32_1 = arith.constant 0 : i32
    return %c0_i32, %c0_i32_0 : i32, i32
  }
}

</mosaic_0001>

<bundles_post_ra>
// kernel: cnn_forward.3
= control target key start
LH: loop header
LB: loop body
LE: loop exit
PB: predicated region body
PF: predicated region fallthrough
CT: control target
= control target key end

     0   :  { %s2095_s12 = smov 0   ;;  %s2906_s0 = inlined_call_operand.vmem [shape: bf16[2,27,4096], index: 0, kind: input, shape index: {}]   ;;  %s2907_s1 = inlined_call_operand.vmem [shape: bf16[32,27], index: 1, kind: input, shape index: {}]   ;;  %s2908_s2 = inlined_call_operand.vmem [shape: f32[32,1], index: 2, kind: input, shape index: {}]   ;;  %s2909_s3 = inlined_call_operand.vmem [shape: bf16[2,32,1024], index: 3, kind: output, shape index: {}]  }
   0x1 LB: > { %s1908_s13 = sadd.s32 4294967295, %s2071_s12   ;;  %p1912_p0 = scmp.ge.s32.totalorder %s2071_s12, 1  ;;  %s2071_s12 = sphi %s2095_s12, %s13_s12  }
   0x2   : > { %p137_p1 = scmp.lt.s32.totalorder %s2071_s12, 3 }
   0x4   : > { %p138_p2 = pnand %p1912_p0, %p137_p1 }
   0x6   : > { %141 = sbr.rel (%p138_p2) target bundleno = 370 (0x172), region = 32 }
   0xb   : > { %p161_p3 = scmp.lt.s32.totalorder %s1908_s13, 1  ;;  %vm569_vm0 = vcmask 1044480   ;;  %v2073_v0 = vmov 0   ;;  %vm570_vm1 = vcmask 1045504   ;;  %v2074_v1 = vmov 65535   ;;  %v240_v3 = vld [vmem:[%s2908_s2] sm:$0xff] }
   0xc   : > { %701 = vmatprep.mubr.bf16.mxu0 %v2073_v0  ;;  %754 = vmatprep.mubr.bf16.mxu1 %v2073_v0  ;;  %v571_v2 = vsel %vm569_vm0, 4294967295, %v2074_v1  ;;  %v242_v4 = vld [vmem:[%s2908_s2 + $0x10] sm:$0xff]  ;;  %v241_v5 = vld [vmem:[%s2908_s2 + $0x8] sm:$0xff]  ;;  %v243_v6 = vld [vmem:[%s2908_s2 + $0x18] sm:$0xff]  ;;  %vm562_vm2 = vcmask 220160  }
   0xd   : > { %s2992_s13 = smov (!%p161_p3, %s1908_s13), 1  ;;  %2061 = vset.pattern.permute.xlu0 %v2073_v0  ;;  %2062 = vset.pattern.permute.xlu1 %v2073_v0  ;;  %v2129_v9 = vsel %vm570_vm1, %v571_v2, 0  ;;  %v2148_v35 = vld [vmem:[%s2907_s1] sm:$0xff]   ;;  %v2185_v57 = vld [vmem:[%s2907_s1 + $0x8] sm:$0xff]  }
   0xe   : > { %s2033_s16 = sshll.u32 %s2992_s13, 9  ;;  %246 = vperm.xlu0 %2061, %v240_v3   ;;  %256 = vperm.xlu1 %2062, %v242_v4   ;;  %s2034_s30 = sshll.u32 %s2992_s13, 7 }
   0xf   : > { %s2119_s21 = scalar_lea.vmem %s2906_s0, %s2033_s16  ;;  %s2781_s6 = scalar_lea.vmem %s2909_s3, %s2034_s30 }
  0x10   : > { %v208_v7 = vld [vmem:[%s2119_s21 + $0x100] sm:$0xff]  ;;  %v209_v10 = vld [vmem:[%s2119_s21 + $0x108] sm:$0xff]  ;;  %v210_v20 = vld [vmem:[%s2119_s21 + $0x110] sm:$0xff] }
  0x11   : > { %v224_v8 = vld [vmem:[%s2119_s21 + $0x180] sm:$0x33]  ;;  %v225_v12 = vld [vmem:[%s2119_s21 + $0x188] sm:$0x33]  ;;  %v226_v24 = vld [vmem:[%s2119_s21 + $0x190] sm:$0x33] }
  0x12   : > { %v1952_v11 = vcombine.high %v208_v7, %v224_v8  ;;  %v1951_v13 = vcombine.low %v208_v7, %v224_v8  ;;  %v176_v14 = vld [vmem:[%s2119_s21] sm:$0xff]  ;;  %v1954_v16 = vcombine.high %v209_v10, %v225_v12  ;;  %v1953_v17 = vcombine.low %v209_v10, %v225_v12  ;;  %v177_v18 = vld [vmem:[%s2119_s21 + $0x8] sm:$0xff]  ;;  %251 = vperm.xlu0 %2061, %v241_v5   ;;  %v211_v25 = vld [vmem:[%s2119_s21 + $0x118] sm:$0xff] }
  0x13   : > { %v192_v15 = vld [vmem:[%s2119_s21 + $0x80] sm:$0xff]  ;;  %v193_v19 = vld [vmem:[%s2119_s21 + $0x88] sm:$0xff]  ;;  %v227_v26 = vld [vmem:[%s2119_s21 + $0x198] sm:$0x33]  ;;  %261 = vperm.xlu1 %2062, %v243_v6   ;;  %v1956_v30 = vcombine.high %v210_v20, %v226_v24  ;;  %v1955_v33 = vcombine.low %v210_v20, %v226_v24 }
  0x14   : > { %v577_v21 = vand.u32 %v1952_v11, %v2129_v9  ;;  %v574_v22 = vand.u32 %v1951_v13, %v2129_v9  ;;  %v1920_v23 = vcombine.high %v176_v14, %v192_v15  ;;  %v583_v27 = vand.u32 %v1954_v16, %v2129_v9  ;;  %v178_v39 = vld [vmem:[%s2119_s21 + $0x10] sm:$0xff]  ;;  %v2154_v40 = vld [vmem:[%s2119_s21 + $0x120] sm:$0xff]  ;;  %v2161_v43 = vld [vmem:[%s2119_s21 + $0x128] sm:$0xff] }
  0x15   : > { %v580_v28 = vand.u32 %v1953_v17, %v2129_v9  ;;  %v1922_v29 = vcombine.high %v177_v18, %v193_v19  ;;  %v1958_v31 = vcombine.high %v211_v25, %v227_v26  ;;  %v1919_v32 = vcombine.low %v176_v14, %v192_v15  ;;  %v2157_v41 = vld [vmem:[%s2119_s21 + $0x1a0] sm:$0x33]  ;;  %v194_v42 = vld [vmem:[%s2119_s21 + $0x90] sm:$0xff]  ;;  %v2164_v44 = vld [vmem:[%s2119_s21 + $0x1a8] sm:$0x33] }
  0x16   : > { %681 = vmatprep.subr.bf16.mxu0 %v577_v21  ;;  %734 = vmatprep.subr.bf16.mxu1 %v583_v27  ;;  %v1921_v34 = vcombine.low %v177_v18, %v193_v19  ;;  %v589_v36 = vand.u32 %v1956_v30, %v2129_v9  ;;  %v1957_v37 = vcombine.low %v211_v25, %v227_v26  ;;  %v179_v46 = vld [vmem:[%s2119_s21 + $0x18] sm:$0xff]  ;;  %v220_v58 = vld [vmem:[%s2119_s21 + $0x160] sm:$0xff]  ;;  %v221_v60 = vld [vmem:[%s2119_s21 + $0x168] sm:$0xff] }
  0x17   : > { %682 = vmatpush1.bf16.msra.mxu0 %v574_v22  ;;  %735 = vmatpush1.bf16.msra.mxu1 %v580_v28  ;;  %v595_v38 = vand.u32 %v1958_v31, %v2129_v9  ;;  %v586_v45 = vand.u32 %v1955_v33, %v2129_v9  ;;  %v195_v47 = vld [vmem:[%s2119_s21 + $0x98] sm:$0xff]  ;;  %v1960_v49 = vcombine.high %v2154_v40, %v2157_v41  ;;  %v236_v59 = vld [vmem:[%s2119_s21 + $0x1e0] sm:$0x33]  ;;  %v237_v61 = vld [vmem:[%s2119_s21 + $0x1e8] sm:$0x33] }
  0x18   : > { %683 = vmatprep.subr.bf16.mxu0 %v1920_v23  ;;  %736 = vmatprep.subr.bf16.mxu1 %v1922_v29  ;;  %v592_v48 = vand.u32 %v1957_v37, %v2129_v9  ;;  %v1924_v50 = vcombine.high %v178_v39, %v194_v42  ;;  %v1962_v51 = vcombine.high %v2161_v43, %v2164_v44  ;;  %v222_v2 = vld [vmem:[%s2119_s21 + $0x170] sm:$0xff]  ;;  %v223_v6 = vld [vmem:[%s2119_s21 + $0x178] sm:$0xff]  ;;  %v180_v13 = vld [vmem:[%s2119_s21 + $0x20] sm:$0xff] }
  0x19   : > { %v1926_v52 = vcombine.high %v179_v46, %v195_v47  ;;  %v1923_v53 = vcombine.low %v178_v39, %v194_v42  ;;  %v1925_v54 = vcombine.low %v179_v46, %v195_v47  ;;  %v601_v55 = vand.u32 %v1960_v49, %v2129_v9  ;;  %v238_v3 = vld [vmem:[%s2119_s21 + $0x1f0] sm:$0x33]  ;;  %v239_v7 = vld [vmem:[%s2119_s21 + $0x1f8] sm:$0x33]  ;;  %v196_v19 = vld [vmem:[%s2119_s21 + $0xa0] sm:$0xff] }
  0x1a   : > { %v607_v56 = vand.u32 %v1962_v51, %v2129_v9  ;;  %v1975_v62 = vcombine.low %v220_v58, %v236_v59  ;;  %v1976_v63 = vcombine.high %v220_v58, %v236_v59  ;;  %v1977_v1 = vcombine.low %v221_v60, %v237_v61  ;;  %v214_v14 = vld [vmem:[%s2119_s21 + $0x130] sm:$0xff]  ;;  %v215_v20 = vld [vmem:[%s2119_s21 + $0x138] sm:$0xff]  ;;  %v181_v25 = vld [vmem:[%s2119_s21 + $0x28] sm:$0xff] }
  0x1b   : > { %684 = vmatpush1.bf16.msra.mxu0 %v1919_v32  ;;  %737 = vmatpush1.bf16.msra.mxu1 %v1921_v34  ;;  %v1959_v4 = vcombine.low %v2154_v40, %v2157_v41  ;;  %v1978_v5 = vcombine.high %v221_v60, %v237_v61  ;;  %v1961_v8 = vcombine.low %v2161_v43, %v2164_v44  ;;  %v230_v15 = vld [vmem:[%s2119_s21 + $0x1b0] sm:$0x33]  ;;  %v231_v21 = vld [vmem:[%s2119_s21 + $0x1b8] sm:$0x33]  ;;  %v197_v26 = vld [vmem:[%s2119_s21 + $0xa8] sm:$0xff] }
  0x1c   : > { %787 = vmatprep.subr.bf16.mxu0 %v589_v36  ;;  %840 = vmatprep.subr.bf16.mxu1 %v595_v38  ;;  %v2206_v10 = vand.u32 %v1976_v63, %v2129_v9  ;;  %v2209_v11 = vand.u32 %v1975_v62, %v2129_v9  ;;  %v2212_v12 = vand.u32 %v1977_v1, %v2129_v9  ;;  %v182_v43 = vld [vmem:[%s2119_s21 + $0x30] sm:$0xff]  ;;  %v216_v44 = vld [vmem:[%s2119_s21 + $0x140] sm:$0xff]  ;;  %v217_v47 = vld [vmem:[%s2119_s21 + $0x148] sm:$0xff] }
  0x1d   : > { %v2218_v16 = vand.u32 %v1978_v5, %v2129_v9  ;;  %v1979_v17 = vcombine.low %v222_v2, %v238_v3  ;;  %v1980_v18 = vcombine.high %v222_v2, %v238_v3  ;;  %v1981_v22 = vcombine.low %v223_v6, %v239_v7  ;;  %v198_v46 = vld [vmem:[%s2119_s21 + $0xb0] sm:$0xff]  ;;  %v199_v51 = vld [vmem:[%s2119_s21 + $0xb8] sm:$0xff]  ;;  %v184_v1 = vld [vmem:[%s2119_s21 + $0x40] sm:$0xff] }
  0x1e   : > { %1983 = vmatmul.mubr.msk.bf16.vlgmr.msra.gmra.mxu0 %vm562_vm2, %v2148_v35  ;;  %1985 = vmatmul.mubr.msk.bf16.vlgmr.msra.gmra.mxu1 %vm562_vm2, %v2148_v35  ;;  %v1982_v23 = vcombine.high %v223_v6, %v239_v7  ;;  %v598_v24 = vand.u32 %v1959_v4, %v2129_v9  ;;  %v604_v29 = vand.u32 %v1961_v8, %v2129_v9  ;;  %v218_v2 = vld [vmem:[%s2119_s21 + $0x150] sm:$0xff]  ;;  %v200_v4 = vld [vmem:[%s2119_s21 + $0xc0] sm:$0xff]  ;;  %v219_v5 = vld [vmem:[%s2119_s21 + $0x158] sm:$0xff] }
  0x1f   : > { %788 = vmatpush1.bf16.msra.mxu0 %v586_v45  ;;  %841 = vmatpush1.bf16.msra.mxu1 %v592_v48  ;;  %v2227_v27 = vand.u32 %v1980_v18, %v2129_v9  ;;  %v2230_v28 = vand.u32 %v1979_v17, %v2129_v9  ;;  %v1964_v30 = vcombine.high %v214_v14, %v230_v15  ;;  %v232_v45 = vld [vmem:[%s2119_s21 + $0x1c0] sm:$0x33]  ;;  %v233_v48 = vld [vmem:[%s2119_s21 + $0x1c8] sm:$0x33]  ;;  %v234_v3 = vld [vmem:[%s2119_s21 + $0x1d0] sm:$0x33] }
  0x20   : > { %711 = vmatprep.mubr.bf16.mxu0 %v2073_v0  ;;  %764 = vmatprep.mubr.bf16.mxu1 %v2073_v0  ;;  %v2234_v31 = vand.u32 %v1982_v23, %v2129_v9  ;;  %v2237_v32 = vand.u32 %v1981_v22, %v2129_v9  ;;  %v1928_v33 = vcombine.high %v180_v13, %v196_v19  ;;  %v235_v6 = vld [vmem:[%s2119_s21 + $0x1d8] sm:$0x33]  ;;  %v185_v8 = vld [vmem:[%s2119_s21 + $0x48] sm:$0xff] }
  0x21   : > { %789 = vmatprep.subr.bf16.mxu0 %v1924_v50  ;;  %842 = vmatprep.subr.bf16.mxu1 %v1926_v52  ;;  %v1966_v34 = vcombine.high %v215_v20, %v231_v21  ;;  %v1930_v36 = vcombine.high %v181_v25, %v197_v26  ;;  %v1927_v37 = vcombine.low %v180_v13, %v196_v19  ;;  %v183_v50 = vld [vmem:[%s2119_s21 + $0x38] sm:$0xff]  ;;  %v201_v13 = vld [vmem:[%s2119_s21 + $0xc8] sm:$0xff] }
  0x22   : > { %v1929_v38 = vcombine.low %v181_v25, %v197_v26  ;;  %v613_v39 = vand.u32 %v1964_v30, %v2129_v9  ;;  %v1963_v41 = vcombine.low %v214_v14, %v230_v15  ;;  %v1965_v42 = vcombine.low %v215_v20, %v231_v21  ;;  %v186_v26 = vld [vmem:[%s2119_s21 + $0x50] sm:$0xff] }
  0x23   : > { %790 = vmatpush1.bf16.msra.mxu0 %v1923_v53  ;;  %843 = vmatpush1.bf16.msra.mxu1 %v1925_v54  ;;  %v619_v40 = vand.u32 %v1966_v34, %v2129_v9  ;;  %v1968_v53 = vcombine.high %v216_v44, %v232_v45  ;;  %v1932_v54 = vcombine.high %v182_v43, %v198_v46  ;;  %v203_v34 = vld [vmem:[%s2119_s21 + $0xd8] sm:$0xff] }
  0x24   : > { %893 = vmatprep.subr.bf16.mxu0 %v601_v55  ;;  %946 = vmatprep.subr.bf16.mxu1 %v607_v56  ;;  %v610_v49 = vand.u32 %v1963_v41, %v2129_v9  ;;  %v616_v52 = vand.u32 %v1965_v42, %v2129_v9  ;;  %v1970_v55 = vcombine.high %v217_v47, %v233_v48  ;;  %v204_v41 = vld [vmem:[%s2119_s21 + $0xe0] sm:$0xff]  ;;  %v189_v42 = vld [vmem:[%s2119_s21 + $0x68] sm:$0xff] }
  0x25   : > { %v1934_v56 = vcombine.high %v183_v50, %v199_v51  ;;  %v1931_v58 = vcombine.low %v182_v43, %v198_v46  ;;  %v1933_v59 = vcombine.low %v183_v50, %v199_v51  ;;  %v625_v60 = vand.u32 %v1968_v53, %v2129_v9  ;;  %v205_v43 = vld [vmem:[%s2119_s21 + $0xe8] sm:$0xff]  ;;  %v191_v46 = vld [vmem:[%s2119_s21 + $0x78] sm:$0xff] }
  0x26   : > { %1984 = vmatmul.mubr.msk.bf16.gmra.mxu0 %vm562_vm2, %v2185_v57  ;;  %1986 = vmatmul.mubr.msk.bf16.gmra.mxu1 %vm562_vm2, %v2185_v57  ;;  %v631_v61 = vand.u32 %v1970_v55, %v2129_v9  ;;  %v1967_v62 = vcombine.low %v216_v44, %v232_v45  ;;  %v1969_v63 = vcombine.low %v217_v47, %v233_v48  ;;  %v207_v47 = vld [vmem:[%s2119_s21 + $0xf8] sm:$0xff] }
  0x27   : > { %807 = vmatprep.mubr.bf16.mxu0 %v2073_v0  ;;  %860 = vmatprep.mubr.bf16.mxu1 %v2073_v0  ;;  %v1972_v15 = vcombine.high %v218_v2, %v234_v3  ;;  %v1936_v17 = vcombine.high %v184_v1, %v200_v4  ;;  %v1974_v18 = vcombine.high %v219_v5, %v235_v6 }
  0x28   : > { %v622_v7 = vand.u32 %v1967_v62, %v2129_v9  ;;  %v628_v14 = vand.u32 %v1969_v63, %v2129_v9  ;;  %v1938_v19 = vcombine.high %v185_v8, %v201_v13  ;;  %v1935_v20 = vcombine.low %v184_v1, %v200_v4 }
  0x29   : > { %v1937_v21 = vcombine.low %v185_v8, %v201_v13  ;;  %v637_v22 = vand.u32 %v1972_v15, %v2129_v9  ;;  %v643_v23 = vand.u32 %v1974_v18, %v2129_v9  ;;  %v1973_v25 = vcombine.low %v219_v5, %v235_v6 }
  0x2a   : > { %v1945_v45 = vcombine.low %v189_v42, %v205_v43 }
  0x2e   : > { %1987 = vmatmul.mubr.msk.bf16.vlgmr.msra.gmra.mxu0 %vm562_vm2, %v2148_v35  ;;  %1989 = vmatmul.mubr.msk.bf16.vlgmr.msra.gmra.mxu1 %vm562_vm2, %v2148_v35 }
  0x2f   : > { %894 = vmatpush1.bf16.msra.mxu0 %v598_v24  ;;  %947 = vmatpush1.bf16.msra.mxu1 %v604_v29  ;;  %v1971_v24 = vcombine.low %v218_v2, %v234_v3  ;;  %v202_v29 = vld [vmem:[%s2119_s21 + $0xd0] sm:$0xff] }
  0x30   : > { %817 = vmatprep.mubr.bf16.mxu0 %v2073_v0  ;;  %870 = vmatprep.mubr.bf16.mxu1 %v2073_v0 }
  0x31   : > { %895 = vmatprep.subr.bf16.mxu0 %v1928_v33  ;;  %948 = vmatprep.subr.bf16.mxu1 %v1930_v36  ;;  %v634_v30 = vand.u32 %v1971_v24, %v2129_v9  ;;  %v187_v33 = vld [vmem:[%s2119_s21 + $0x58] sm:$0xff]  ;;  %v640_v36 = vand.u32 %v1973_v25, %v2129_v9  ;;  %v188_v9 = vld [vmem:[%s2119_s21 + $0x60] sm:$0xff] }
  0x32   : > { %v1944_v44 = vcombine.high %v188_v9, %v204_v41 }
  0x33   : > { %896 = vmatpush1.bf16.msra.mxu0 %v1927_v37  ;;  %949 = vmatpush1.bf16.msra.mxu1 %v1929_v38  ;;  %v1940_v37 = vcombine.high %v186_v26, %v202_v29  ;;  %v1942_v38 = vcombine.high %v187_v33, %v203_v34 }
  0x34   : > { %999 = vmatprep.subr.bf16.mxu0 %v613_v39  ;;  %1052 = vmatprep.subr.bf16.mxu1 %v619_v40  ;;  %v1939_v39 = vcombine.low %v186_v26, %v202_v29  ;;  %v1941_v40 = vcombine.low %v187_v33, %v203_v34 }
  0x36   : > { %1988 = vmatmul.mubr.msk.bf16.gmra.mxu0 %vm562_vm2, %v2185_v57  ;;  %1990 = vmatmul.mubr.msk.bf16.gmra.mxu1 %vm562_vm2, %v2185_v57 }
  0x37   : > { %913 = vmatprep.mubr.bf16.mxu0 %v2073_v0  ;;  %966 = vmatprep.mubr.bf16.mxu1 %v2073_v0 }
  0x3e   : > { %1991 = vmatmul.mubr.msk.bf16.vlgmr.msra.gmra.mxu0 %vm562_vm2, %v2148_v35  ;;  %1993 = vmatmul.mubr.msk.bf16.vlgmr.msra.gmra.mxu1 %vm562_vm2, %v2148_v35 }
  0x3f   : > { %1000 = vmatpush1.bf16.msra.mxu0 %v610_v49  ;;  %1053 = vmatpush1.bf16.msra.mxu1 %v616_v52  ;;  %v1949_v49 = vcombine.low %v191_v46, %v207_v47 }
  0x40   : > { %923 = vmatprep.mubr.bf16.mxu0 %v2073_v0  ;;  %976 = vmatprep.mubr.bf16.mxu1 %v2073_v0 }
  0x41   : > { %1001 = vmatprep.subr.bf16.mxu0 %v1932_v54  ;;  %1054 = vmatprep.subr.bf16.mxu1 %v1934_v56 }
  0x43   : > { %1002 = vmatpush1.bf16.msra.mxu0 %v1931_v58  ;;  %1055 = vmatpush1.bf16.msra.mxu1 %v1933_v59 }
  0x44   : > { %1105 = vmatprep.subr.bf16.mxu0 %v625_v60  ;;  %1158 = vmatprep.subr.bf16.mxu1 %v631_v61 }
  0x46   : > { %1992 = vmatmul.mubr.msk.bf16.gmra.mxu0 %vm562_vm2, %v2185_v57  ;;  %1994 = vmatmul.mubr.msk.bf16.gmra.mxu1 %vm562_vm2, %v2185_v57 }
  0x47   : > { %1019 = vmatprep.mubr.bf16.mxu0 %v2073_v0  ;;  %1072 = vmatprep.mubr.bf16.mxu1 %v2073_v0 }
  0x4e   : > { %1995 = vmatmul.mubr.msk.bf16.vlgmr.msra.gmra.mxu0 %vm562_vm2, %v2148_v35  ;;  %1997 = vmatmul.mubr.msk.bf16.vlgmr.msra.gmra.mxu1 %vm562_vm2, %v2148_v35 }
  0x4f   : > { %1106 = vmatpush1.bf16.msra.mxu0 %v622_v7  ;;  %1159 = vmatpush1.bf16.msra.mxu1 %v628_v14 }
  0x50   : > { %1029 = vmatprep.mubr.bf16.mxu0 %v2073_v0  ;;  %1082 = vmatprep.mubr.bf16.mxu1 %v2073_v0 }
  0x51   : > { %1107 = vmatprep.subr.bf16.mxu0 %v1936_v17  ;;  %1160 = vmatprep.subr.bf16.mxu1 %v1938_v19 }
  0x53   : > { %1108 = vmatpush1.bf16.msra.mxu0 %v1935_v20  ;;  %1161 = vmatpush1.bf16.msra.mxu1 %v1937_v21 }
  0x54   : > { %1211 = vmatprep.subr.bf16.mxu0 %v637_v22  ;;  %1264 = vmatprep.subr.bf16.mxu1 %v643_v23 }
  0x56   : > { %1996 = vmatmul.mubr.msk.bf16.gmra.mxu0 %vm562_vm2, %v2185_v57  ;;  %1998 = vmatmul.mubr.msk.bf16.gmra.mxu1 %vm562_vm2, %v2185_v57 }
  0x57   : > { %1125 = vmatprep.mubr.bf16.mxu0 %v2073_v0  ;;  %1178 = vmatprep.mubr.bf16.mxu1 %v2073_v0 }
  0x5e   : > { %1999 = vmatmul.mubr.msk.bf16.vlgmr.msra.gmra.mxu0 %vm562_vm2, %v2148_v35  ;;  %2001 = vmatmul.mubr.msk.bf16.vlgmr.msra.gmra.mxu1 %vm562_vm2, %v2148_v35 }
  0x5f   : > { %1212 = vmatpush1.bf16.msra.mxu0 %v634_v30  ;;  %1265 = vmatpush1.bf16.msra.mxu1 %v640_v36 }
  0x60   : > { %1135 = vmatprep.mubr.bf16.mxu0 %v2073_v0  ;;  %1188 = vmatprep.mubr.bf16.mxu1 %v2073_v0 }
  0x61   : > { %1213 = vmatprep.subr.bf16.mxu0 %v1940_v37  ;;  %1266 = vmatprep.subr.bf16.mxu1 %v1942_v38 }
  0x63   : > { %1214 = vmatpush1.bf16.msra.mxu0 %v1939_v39  ;;  %1267 = vmatpush1.bf16.msra.mxu1 %v1941_v40 }
  0x64   : > { %1317 = vmatprep.subr.bf16.mxu0 %v2206_v10  ;;  %1370 = vmatprep.subr.bf16.mxu1 %v2218_v16  ;;  %v1946_v10 = vcombine.high %v189_v42, %v205_v43  ;;  %v1943_v16 = vcombine.low %v188_v9, %v204_v41 }
  0x66   : > { %2000 = vmatmul.mubr.msk.bf16.gmra.mxu0 %vm562_vm2, %v2185_v57  ;;  %2002 = vmatmul.mubr.msk.bf16.gmra.mxu1 %vm562_vm2, %v2185_v57 }
  0x67   : > { %1231 = vmatprep.mubr.bf16.mxu0 %v2073_v0  ;;  %1284 = vmatprep.mubr.bf16.mxu1 %v2073_v0 }
  0x6e   : > { %2003 = vmatmul.mubr.msk.bf16.vlgmr.msra.gmra.mxu0 %vm562_vm2, %v2148_v35  ;;  %2005 = vmatmul.mubr.msk.bf16.vlgmr.msra.gmra.mxu1 %vm562_vm2, %v2148_v35 }
  0x6f   : > { %1318 = vmatpush1.bf16.msra.mxu0 %v2209_v11  ;;  %1371 = vmatpush1.bf16.msra.mxu1 %v2212_v12  ;;  %v190_v11 = vld [vmem:[%s2119_s21 + $0x70] sm:$0xff] }
  0x70   : > { %1241 = vmatprep.mubr.bf16.mxu0 %v2073_v0  ;;  %1294 = vmatprep.mubr.bf16.mxu1 %v2073_v0  ;;  %v206_v12 = vld [vmem:[%s2119_s21 + $0xf0] sm:$0xff] }
  0x71   : > { %1319 = vmatprep.subr.bf16.mxu0 %v1944_v44  ;;  %1372 = vmatprep.subr.bf16.mxu1 %v1946_v10  ;;  %v1948_v48 = vcombine.high %v190_v11, %v206_v12 }
  0x73   : > { %1320 = vmatpush1.bf16.msra.mxu0 %v1943_v16  ;;  %1373 = vmatpush1.bf16.msra.mxu1 %v1945_v45 }
  0x74   : > { %1423 = vmatprep.subr.bf16.mxu0 %v2227_v27  ;;  %1476 = vmatprep.subr.bf16.mxu1 %v2234_v31  ;;  %v1950_v27 = vcombine.high %v191_v46, %v207_v47  ;;  %v1947_v31 = vcombine.low %v190_v11, %v206_v12 }
  0x76   : > { %2004 = vmatmul.mubr.msk.bf16.gmra.mxu0 %vm562_vm2, %v2185_v57  ;;  %2006 = vmatmul.mubr.msk.bf16.gmra.mxu1 %vm562_vm2, %v2185_v57 }
  0x77   : > { %1337 = vmatprep.mubr.bf16.mxu0 %v2073_v0  ;;  %1390 = vmatprep.mubr.bf16.mxu1 %v2073_v0 }
  0x7e   : > { %2007 = vmatmul.mubr.msk.bf16.vlgmr.msra.gmra.mxu0 %vm562_vm2, %v2148_v35  ;;  %2009 = vmatmul.mubr.msk.bf16.vlgmr.msra.gmra.mxu1 %vm562_vm2, %v2148_v35 }
  0x7f   : > { %1424 = vmatpush1.bf16.msra.mxu0 %v2230_v28  ;;  %1477 = vmatpush1.bf16.msra.mxu1 %v2237_v32 }
  0x80   : > { %1347 = vmatprep.mubr.bf16.mxu0 %v2073_v0  ;;  %1400 = vmatprep.mubr.bf16.mxu1 %v2073_v0 }
  0x81   : > { %1425 = vmatprep.subr.bf16.mxu0 %v1948_v48  ;;  %1478 = vmatprep.subr.bf16.mxu1 %v1950_v27 }
  0x83   : > { %1426 = vmatpush1.bf16.msra.mxu0 %v1947_v31  ;;  %1479 = vmatpush1.bf16.msra.mxu1 %v1949_v49 }
  0x86   : > { %2008 = vmatmul.mubr.msk.bf16.gmra.mxu0 %vm562_vm2, %v2185_v57  ;;  %2010 = vmatmul.mubr.msk.bf16.gmra.mxu1 %vm562_vm2, %v2185_v57 }
  0x87   : > { %1443 = vmatprep.mubr.bf16.mxu0 %v2073_v0  ;;  %1496 = vmatprep.mubr.bf16.mxu1 %v2073_v0 }
  0x89   : > { %v2369_v2 = vpop.permute.xlu0 %246  ;;  %v2375_v5 = vpop.permute.xlu1 %256 }
  0x8d   : > { %v2383_v13 = vpop.permute.xlu0 %251 }
  0x8e   : > { %2011 = vmatmul.mubr.msk.bf16.vlgmr.msra.gmra.mxu0 %vm562_vm2, %v2148_v35  ;;  %2013 = vmatmul.mubr.msk.bf16.vlgmr.msra.gmra.mxu1 %vm562_vm2, %v2148_v35  ;;  %v2400_v23 = vpop.permute.xlu1 %261 }
  0x8f   : > { %1453 = vmatprep.mubr.bf16.mxu0 %v2073_v0  ;;  %1506 = vmatprep.mubr.bf16.mxu1 %v2073_v0 }
  0x96   : > { %2012 = vmatmul.mubr.msk.bf16.gmra.mxu0 %vm562_vm2, %v2185_v57  ;;  %2014 = vmatmul.mubr.msk.bf16.gmra.mxu1 %vm562_vm2, %v2185_v57 }
  0xde   : > { %v703_v28 = vpop.f32.mrf.mxu0  ;;  %v756_v32 = vpop.f32.mrf.mxu1 }
  0xdf   : > { %v704_v15 = vadd.f32 %v703_v28, %v2369_v2  ;;  %v757_v18 = vadd.f32 %v756_v32, %v2369_v2 }
  0xe0   : > { %v705_v50 = vpop.f32.mrf.mxu0  ;;  %v758_v51 = vpop.f32.mrf.mxu1 }
  0xe1   : > { %v706_v19 = vadd.f32 %v705_v50, %v2369_v2  ;;  %v2395_v21 = vadd.f32 %v758_v51, %v2369_v2  ;;  %v1517_v33 = vmax.f32 %v704_v15, 0.0  ;;  %v1519_v39 = vmax.f32 %v757_v18, 0.0 }
  0xe2   : > { %v707_v52 = vpop.f32.mrf.mxu0  ;;  %v760_v53 = vpop.f32.mrf.mxu1 }
  0xe3   : > { %v2398_v22 = vadd.f32 %v707_v52, %v2383_v13  ;;  %v2405_v25 = vadd.f32 %v760_v53, %v2383_v13  ;;  %v1518_v40 = vmax.f32 %v706_v19, 0.0  ;;  %v1520_v43 = vmax.f32 %v2395_v21, 0.0 }
  0xe4   : > { %v709_v54 = vpop.f32.mrf.mxu0  ;;  %v762_v55 = vpop.f32.mrf.mxu1 }
  0xe5   : > { %v2408_v26 = vadd.f32 %v709_v54, %v2383_v13  ;;  %v2411_v29 = vadd.f32 %v762_v55, %v2383_v13  ;;  %v1549_v44 = vmax.f32 %v2398_v22, 0.0  ;;  %v1551_v11 = vmax.f32 %v2405_v25, 0.0 }
  0xe6   : > { %v713_v56 = vpop.f32.mrf.mxu0  ;;  %v766_v35 = vpop.f32.mrf.mxu1 }
  0xe7   : > { %v2416_v34 = vadd.f32 %v713_v56, %v2375_v5  ;;  %v2419_v36 = vadd.f32 %v766_v35, %v2375_v5  ;;  %v1550_v12 = vmax.f32 %v2408_v26, 0.0  ;;  %v1552_v46 = vmax.f32 %v2411_v29, 0.0 }
  0xe8   : > { %v715_v58 = vpop.f32.mrf.mxu0  ;;  %v768_v59 = vpop.f32.mrf.mxu1 }
  0xe9   : > { %v2422_v37 = vadd.f32 %v715_v58, %v2375_v5  ;;  %v2427_v9 = vadd.f32 %v768_v59, %v2375_v5  ;;  %v1581_v27 = vmax.f32 %v2416_v34, 0.0  ;;  %v1583_v31 = vmax.f32 %v2419_v36, 0.0 }
  0xea   : > { %v717_v60 = vpop.f32.mrf.mxu0  ;;  %v770_v0 = vpop.f32.mrf.mxu1 }
  0xeb   : > { %v2430_v41 = vadd.f32 %v717_v60, %v2400_v23  ;;  %v2437_v10 = vadd.f32 %v770_v0, %v2400_v23  ;;  %v1582_v49 = vmax.f32 %v2422_v37, 0.0  ;;  %v1584_v50 = vmax.f32 %v2427_v9, 0.0 }
  0xec   : > { %v719_v61 = vpop.f32.mrf.mxu0  ;;  %v772_v62 = vpop.f32.mrf.mxu1 }
  0xed   : > { %v2440_v16 = vadd.f32 %v719_v61, %v2400_v23  ;;  %v2448_v47 = vadd.f32 %v772_v62, %v2400_v23  ;;  %v1613_v51 = vmax.f32 %v2430_v41, 0.0  ;;  %v1615_v55 = vmax.f32 %v2437_v10, 0.0 }
  0xee   : > { %v809_v63 = vpop.f32.mrf.mxu0  ;;  %v862_v1 = vpop.f32.mrf.mxu1 }
  0xef   : > { %v2457_v52 = vadd.f32 %v809_v63, %v2369_v2  ;;  %v1614_v56 = vmax.f32 %v2440_v16, 0.0  ;;  %v1616_v60 = vmax.f32 %v2448_v47, 0.0  ;;  %v2465_v0 = vadd.f32 %v862_v1, %v2369_v2 }
  0xf0   : > { %v811_v57 = vpop.f32.mrf.mxu0  ;;  %v2371_v3 = vpop.f32.mrf.mxu1 }
  0xf1   : > { %v2469_v15 = vadd.f32 %v811_v57, %v2369_v2  ;;  %v1521_v25 = vmax.f32 %v2457_v52, 0.0 }
  0xf2   : > { %v2373_v4 = vpop.f32.mrf.mxu0  ;;  %v2377_v6 = vpop.f32.mrf.mxu1 }
  0xf4   : > { %v2379_v7 = vpop.f32.mrf.mxu0  ;;  %v2381_v8 = vpop.f32.mrf.mxu1 }
  0xf6   : > { %v2385_v14 = vpop.f32.mrf.mxu0  ;;  %v2388_v17 = vpop.f32.mrf.mxu1 }
  0xf8   : > { %v2392_v20 = vpop.f32.mrf.mxu0  ;;  %v2402_v24 = vpop.f32.mrf.mxu1 }
  0xf9   : > { %v822_v16 = vadd.f32 %v2392_v20, %v2375_v5  ;;  %v875_v20 = vadd.f32 %v2402_v24, %v2375_v5 }
  0xfa   : > { %v2413_v30 = vpop.f32.mrf.mxu0  ;;  %v2424_v38 = vpop.f32.mrf.mxu1 }
  0xfc   : > { %v2432_v42 = vpop.f32.mrf.mxu0  ;;  %v2442_v45 = vpop.f32.mrf.mxu1 }
  0xfe   : > { %v915_v48 = vpop.f32.mrf.mxu0  ;;  %v968_v32 = vpop.f32.mrf.mxu1 }
  0xff   : > { %v916_v28 = vadd.f32 %v915_v48, %v2369_v2  ;;  %v969_v53 = vadd.f32 %v968_v32, %v2369_v2  ;;  %v2480_v48 = vadd.f32 %v2371_v3, %v2369_v2 }
 0x100   : > { %v917_v54 = vpop.f32.mrf.mxu0  ;;  %v970_v59 = vpop.f32.mrf.mxu1 }
 0x101   : > { %v1525_v35 = vmax.f32 %v916_v28, 0.0  ;;  %v918_v58 = vadd.f32 %v917_v54, %v2369_v2  ;;  %v1527_v61 = vmax.f32 %v969_v53, 0.0  ;;  %v971_v62 = vadd.f32 %v970_v59, %v2369_v2 }
 0x102   : > { %v919_v63 = vpop.f32.mrf.mxu0  ;;  %v972_v22 = vpop.f32.mrf.mxu1  ;;  %v1523_v53 = vmax.f32 %v2465_v0, 0.0  ;;  %v1522_v59 = vmax.f32 %v2469_v15, 0.0 }
 0x103   : > { %v2471_v18 = vmax.f32 %v1517_v33, %v1525_v35  ;;  %v1526_v19 = vmax.f32 %v918_v58, 0.0  ;;  %v920_v21 = vadd.f32 %v919_v63, %v2383_v13  ;;  %v2475_v26 = vmax.f32 %v1519_v39, %v1527_v61 }
 0x104   : > { %v1528_v29 = vmax.f32 %v971_v62, 0.0  ;;  %v973_v1 = vadd.f32 %v972_v22, %v2383_v13  ;;  %v921_v34 = vpop.f32.mrf.mxu0  ;;  %v974_v32 = vpop.f32.mrf.mxu1  ;;  %v2495_v63 = vadd.f32 %v2373_v4, %v2383_v13 }
 0x105   : > { %v2482_v57 = vmax.f32 %v1518_v40, %v1526_v19  ;;  %v1557_v33 = vmax.f32 %v920_v21, 0.0  ;;  %v922_v28 = vadd.f32 %v921_v34, %v2383_v13  ;;  %v975_v35 = vadd.f32 %v974_v32, %v2383_v13 }
 0x106   : > { %v2486_v54 = vmax.f32 %v1520_v43, %v1528_v29  ;;  %v1559_v39 = vmax.f32 %v973_v1, 0.0  ;;  %v925_v58 = vpop.f32.mrf.mxu0  ;;  %v978_v62 = vpop.f32.mrf.mxu1  ;;  %v1524_v29 = vmax.f32 %v2480_v48, 0.0 }
 0x107   : > { %v2490_v61 = vmax.f32 %v1549_v44, %v1557_v33  ;;  %v1558_v3 = vmax.f32 %v922_v28, 0.0  ;;  %v926_v40 = vadd.f32 %v925_v58, %v2375_v5  ;;  %v1560_v43 = vmax.f32 %v975_v35, 0.0 }
 0x108   : > { %v2497_v19 = vmax.f32 %v1551_v11, %v1559_v39  ;;  %v979_v21 = vadd.f32 %v978_v62, %v2375_v5  ;;  %v927_v22 = vpop.f32.mrf.mxu0  ;;  %v980_v33 = vpop.f32.mrf.mxu1  ;;  %v2506_v28 = vadd.f32 %v2377_v6, %v2383_v13  ;;  %v2513_v35 = vadd.f32 %v2379_v7, %v2383_v13 }
 0x109   : > { %v2501_v1 = vmax.f32 %v1550_v12, %v1558_v3  ;;  %v1589_v44 = vmax.f32 %v926_v40, 0.0  ;;  %v928_v34 = vadd.f32 %v927_v22, %v2375_v5  ;;  %v2508_v4 = vmax.f32 %v1552_v46, %v1560_v43 }
 0x10a   : > { %v1591_v11 = vmax.f32 %v979_v21, 0.0  ;;  %v981_v32 = vadd.f32 %v980_v33, %v2375_v5  ;;  %v929_v39 = vpop.f32.mrf.mxu0  ;;  %v982_v40 = vpop.f32.mrf.mxu1  ;;  %v1553_v62 = vmax.f32 %v2495_v63, 0.0  ;;  %v2526_v7 = vadd.f32 %v2381_v8, %v2383_v13 }
 0x10b   : > { %v2515_v12 = vmax.f32 %v1581_v27, %v1589_v44  ;;  %v1590_v58 = vmax.f32 %v928_v34, 0.0  ;;  %v930_v3 = vadd.f32 %v929_v39, %v2400_v23  ;;  %v983_v43 = vadd.f32 %v982_v40, %v2400_v23 }
 0x10c   : > { %v2521_v6 = vmax.f32 %v1583_v31, %v1591_v11  ;;  %v1592_v46 = vmax.f32 %v981_v32, 0.0  ;;  %v931_v21 = vpop.f32.mrf.mxu0  ;;  %v984_v63 = vpop.f32.mrf.mxu1  ;;  %v1555_v36 = vmax.f32 %v2506_v28, 0.0  ;;  %v1554_v8 = vmax.f32 %v2513_v35, 0.0 }
 0x10d   : > { %v2530_v27 = vmax.f32 %v1582_v49, %v1590_v58  ;;  %v1621_v22 = vmax.f32 %v930_v3, 0.0  ;;  %v932_v44 = vadd.f32 %v931_v21, %v2400_v23  ;;  %v1623_v34 = vmax.f32 %v983_v43, 0.0 }
 0x10e   : > { %v2536_v31 = vmax.f32 %v1584_v50, %v1592_v46  ;;  %v985_v33 = vadd.f32 %v984_v63, %v2400_v23  ;;  %v1021_v11 = vpop.f32.mrf.mxu0  ;;  %v1074_v39 = vpop.f32.mrf.mxu1  ;;  %v820_v28 = vadd.f32 %v2385_v14, %v2375_v5  ;;  %v1556_v35 = vmax.f32 %v2526_v7, 0.0 }
 0x10f   : > { %v2542_v37 = vmax.f32 %v1613_v51, %v1621_v22  ;;  %v1622_v49 = vmax.f32 %v932_v44, 0.0  ;;  %v1022_v32 = vadd.f32 %v1021_v11, %v2369_v2  ;;  %v2549_v9 = vmax.f32 %v1615_v55, %v1623_v34 }
 0x110   : > { %v1624_v50 = vmax.f32 %v985_v33, 0.0  ;;  %v1075_v58 = vadd.f32 %v1074_v39, %v2369_v2  ;;  %v1023_v3 = vpop.f32.mrf.mxu0  ;;  %v1076_v46 = vpop.f32.mrf.mxu1  ;;  %v873_v14 = vadd.f32 %v2388_v17, %v2375_v5  ;;  %v1585_v17 = vmax.f32 %v820_v28, 0.0 }
 0x111   : > { %v2555_v41 = vmax.f32 %v1614_v56, %v1622_v49  ;;  %v1529_v51 = vmax.f32 %v1022_v32, 0.0  ;;  %v1024_v40 = vadd.f32 %v1023_v3, %v2369_v2  ;;  %v1077_v43 = vadd.f32 %v1076_v46, %v2369_v2 }
 0x112   : > { %v2562_v10 = vmax.f32 %v1616_v60, %v1624_v50  ;;  %v1531_v55 = vmax.f32 %v1075_v58, 0.0  ;;  %v1025_v21 = vpop.f32.mrf.mxu0  ;;  %v1078_v44 = vpop.f32.mrf.mxu1  ;;  %v1587_v49 = vmax.f32 %v873_v14, 0.0  ;;  %v1586_v28 = vmax.f32 %v822_v16, 0.0 }
 0x113   : > { %v2569_v56 = vmax.f32 %v1521_v25, %v1529_v51  ;;  %v1530_v7 = vmax.f32 %v1024_v40, 0.0  ;;  %v1026_v22 = vadd.f32 %v1025_v21, %v2383_v13  ;;  %v1532_v60 = vmax.f32 %v1077_v43, 0.0 }
 0x114   : > { %v2574_v47 = vmax.f32 %v1523_v53, %v1531_v55  ;;  %v1079_v63 = vadd.f32 %v1078_v44, %v2383_v13  ;;  %v1027_v34 = vpop.f32.mrf.mxu0  ;;  %v1080_v11 = vpop.f32.mrf.mxu1  ;;  %v824_v58 = vadd.f32 %v2413_v30, %v2400_v23  ;;  %v1588_v40 = vmax.f32 %v875_v20, 0.0 }
 0x115   : > { %v2581_v52 = vmax.f32 %v1522_v59, %v1530_v7  ;;  %v1561_v25 = vmax.f32 %v1026_v22, 0.0  ;;  %v1028_v33 = vadd.f32 %v1027_v34, %v2383_v13  ;;  %v2586_v0 = vmax.f32 %v1524_v29, %v1532_v60 }
 0x116   : > { %v1563_v53 = vmax.f32 %v1079_v63, 0.0  ;;  %v1081_v32 = vadd.f32 %v1080_v11, %v2383_v13  ;;  %v1031_v39 = vpop.f32.mrf.mxu0  ;;  %v1084_v59 = vpop.f32.mrf.mxu1  ;;  %v877_v43 = vadd.f32 %v2424_v38, %v2400_v23  ;;  %v826_v7 = vadd.f32 %v2432_v42, %v2400_v23 }
 0x117   : > { %2917 = vst [vmem:[#allocation2_spill] sm:$0xff] %v2581_v52  ;;  %2918 = vst [vmem:[#allocation3_spill] sm:$0xff] %v2586_v0  ;;  %v2589_v50 = vmax.f32 %v1553_v62, %v1561_v25  ;;  %v1562_v24 = vmax.f32 %v1028_v33, 0.0  ;;  %v1032_v15 = vadd.f32 %v1031_v39, %v2375_v5  ;;  %v1085_v48 = vadd.f32 %v1084_v59, %v2375_v5 }
 0x118   : > { %v2594_v3 = vmax.f32 %v1555_v36, %v1563_v53  ;;  %v1564_v51 = vmax.f32 %v1081_v32, 0.0  ;;  %v1033_v29 = vpop.f32.mrf.mxu0  ;;  %v1086_v55 = vpop.f32.mrf.mxu1  ;;  %v879_v63 = vadd.f32 %v2442_v45, %v2400_v23  ;;  %v1617_v25 = vmax.f32 %v824_v58, 0.0 }
 0x119   : > { %2919 = vst [vmem:[#allocation4_spill] sm:$0xff] %v2589_v50  ;;  %v2597_v46 = vmax.f32 %v1554_v8, %v1562_v24  ;;  %v1593_v14 = vmax.f32 %v1032_v15, 0.0  ;;  %v1034_v62 = vadd.f32 %v1033_v29, %v2375_v5  ;;  %v1595_v16 = vmax.f32 %v1085_v48, 0.0 }
 0x11a   : > { %2920 = vst [vmem:[#allocation5_spill] sm:$0xff] %v2594_v3  ;;  %v2602_v21 = vmax.f32 %v1556_v35, %v1564_v51  ;;  %v1087_v30 = vadd.f32 %v1086_v55, %v2375_v5  ;;  %v1035_v36 = vpop.f32.mrf.mxu0  ;;  %v1088_v60 = vpop.f32.mrf.mxu1  ;;  %v1619_v53 = vmax.f32 %v877_v43, 0.0  ;;  %v1620_v48 = vmax.f32 %v879_v63, 0.0 }
 0x11b   : > { %2921 = vst [vmem:[#allocation6_spill] sm:$0xff] %v2597_v46  ;;  %v2607_v22 = vmax.f32 %v1585_v17, %v1593_v14  ;;  %v1594_v8 = vmax.f32 %v1034_v62, 0.0  ;;  %v1036_v44 = vadd.f32 %v1035_v36, %v2400_v23  ;;  %v2612_v34 = vmax.f32 %v1587_v49, %v1595_v16 }
 0x11c   : > { %2922 = vst [vmem:[#allocation7_spill] sm:$0xff] %v2602_v21  ;;  %v1596_v38 = vmax.f32 %v1087_v30, 0.0  ;;  %v1089_v35 = vadd.f32 %v1088_v60, %v2400_v23  ;;  %v1037_v20 = vpop.f32.mrf.mxu0  ;;  %v1090_v17 = vpop.f32.mrf.mxu1  ;;  %v1618_v49 = vmax.f32 %v826_v7, 0.0 }
 0x11d   : > { %2923 = vst [vmem:[#allocation8_spill] sm:$0xff] %v2607_v22  ;;  %2924 = vst [vmem:[#allocation9_spill] sm:$0xff] %v2612_v34  ;;  %v2615_v33 = vmax.f32 %v1586_v28, %v1594_v8  ;;  %v1625_v11 = vmax.f32 %v1036_v44, 0.0  ;;  %v1038_v42 = vadd.f32 %v1037_v20, %v2400_v23  ;;  %v1091_v24 = vadd.f32 %v1090_v17, %v2400_v23 }
 0x11e   : > { %v2618_v32 = vmax.f32 %v1588_v40, %v1596_v38  ;;  %v1627_v39 = vmax.f32 %v1089_v35, 0.0  ;;  %v1127_v45 = vpop.f32.mrf.mxu0  ;;  %v1180_v51 = vpop.f32.mrf.mxu1 }
 0x11f   : > { %2925 = vst [vmem:[#allocation10_spill] sm:$0xff] %v2615_v33  ;;  %v2621_v15 = vmax.f32 %v1617_v25, %v1625_v11  ;;  %v1626_v59 = vmax.f32 %v1038_v42, 0.0  ;;  %v1628_v28 = vmax.f32 %v1091_v24, 0.0  ;;  %v2630_v42 = vadd.f32 %v1127_v45, %v2369_v2 }
 0x120   : > { %2926 = vst [vmem:[#allocation11_spill] sm:$0xff] %v2618_v32  ;;  %v2623_v58 = vmax.f32 %v1619_v53, %v1627_v39  ;;  %v1129_v29 = vpop.f32.mrf.mxu0  ;;  %v1182_v62 = vpop.f32.mrf.mxu1  ;;  %v2633_v17 = vadd.f32 %v1180_v51, %v2369_v2 }
 0x121   : > { %2927 = vst [vmem:[#allocation12_spill] sm:$0xff] %v2621_v15  ;;  %v2625_v14 = vmax.f32 %v1618_v49, %v1626_v59  ;;  %v2627_v55 = vmax.f32 %v1620_v48, %v1628_v28  ;;  %v2636_v39 = vadd.f32 %v1129_v29, %v2369_v2  ;;  %v2639_v24 = vadd.f32 %v1182_v62, %v2369_v2 }
 0x122   : > { %2928 = vst [vmem:[#allocation13_spill] sm:$0xff] %v2623_v58  ;;  %v1131_v40 = vpop.f32.mrf.mxu0  ;;  %v1184_v43 = vpop.f32.mrf.mxu1 }
 0x123   : > { %2929 = vst [vmem:[#allocation14_spill] sm:$0xff] %v2625_v14  ;;  %2930 = vst [vmem:[#allocation15_spill] sm:$0xff] %v2627_v55  ;;  %v2642_v49 = vadd.f32 %v1131_v40, %v2383_v13  ;;  %v2645_v48 = vadd.f32 %v1184_v43, %v2383_v13 }
 0x124   : > { %v1133_v16 = vpop.f32.mrf.mxu0  ;;  %v1186_v30 = vpop.f32.mrf.mxu1 }
 0x125   : > { %v2648_v45 = vadd.f32 %v1133_v16, %v2383_v13  ;;  %v2651_v51 = vadd.f32 %v1186_v30, %v2383_v13 }
 0x126   : > { %v1137_v36 = vpop.f32.mrf.mxu0  ;;  %v1190_v7 = vpop.f32.mrf.mxu1 }
 0x127   : > { %v2654_v29 = vadd.f32 %v1137_v36, %v2375_v5  ;;  %v2657_v62 = vadd.f32 %v1190_v7, %v2375_v5 }
 0x128   : > { %v1139_v8 = vpop.f32.mrf.mxu0  ;;  %v1192_v44 = vpop.f32.mrf.mxu1 }
 0x129   : > { %v2662_v43 = vadd.f32 %v1139_v8, %v2375_v5  ;;  %v2665_v16 = vadd.f32 %v1192_v44, %v2375_v5 }
 0x12a   : > { %v1141_v60 = vpop.f32.mrf.mxu0  ;;  %v1194_v38 = vpop.f32.mrf.mxu1 }
 0x12b   : > { %v2671_v7 = vadd.f32 %v1141_v60, %v2400_v23  ;;  %v2676_v8 = vadd.f32 %v1194_v38, %v2400_v23 }
 0x12c   : > { %v1143_v63 = vpop.f32.mrf.mxu0  ;;  %v1196_v35 = vpop.f32.mrf.mxu1 }
 0x12d   : > { %v2679_v44 = vadd.f32 %v1143_v63, %v2400_v23  ;;  %v2685_v60 = vadd.f32 %v1196_v35, %v2400_v23 }
 0x12e   : > { %v1233_v20 = vpop.f32.mrf.mxu0  ;;  %v1286_v25 = vpop.f32.mrf.mxu1 }
 0x12f   : > { %v2690_v38 = vadd.f32 %v1233_v20, %v2369_v2  ;;  %v2693_v63 = vadd.f32 %v1286_v25, %v2369_v2 }
 0x130   : > { %v1235_v11 = vpop.f32.mrf.mxu0  ;;  %v1288_v53 = vpop.f32.mrf.mxu1 }
 0x131   : > { %v2697_v36 = vadd.f32 %v1235_v11, %v2369_v2  ;;  %v2700_v35 = vadd.f32 %v1288_v53, %v2369_v2 }
 0x132   : > { %v1237_v59 = vpop.f32.mrf.mxu0  ;;  %v1290_v28 = vpop.f32.mrf.mxu1 }
 0x133   : > { %2931 = vst [vmem:[#allocation16_spill] sm:$0xff] %v2700_v35  ;;  %v2703_v15 = vadd.f32 %v1237_v59, %v2383_v13  ;;  %v2708_v25 = vadd.f32 %v1290_v28, %v2383_v13  ;;  %v2939_v35 = vmax.f32 %v2630_v42, 0.0  ;;  %v2941_v42 = vmax.f32 %v2636_v39, 0.0 }
 0x134   : > { %v1239_v55 = vpop.f32.mrf.mxu0  ;;  %v1292_v58 = vpop.f32.mrf.mxu1 }
 0x135   : > { %2932 = vst [vmem:[#allocation17_spill] sm:$0xff] %v2703_v15  ;;  %v2711_v21 = vadd.f32 %v1239_v55, %v2383_v13  ;;  %v2715_v53 = vadd.f32 %v1292_v58, %v2383_v13 }
 0x136   : > { %v1243_v32 = vpop.f32.mrf.mxu0  ;;  %v1296_v33 = vpop.f32.mrf.mxu1 }
 0x137   : > { %2933 = vst [vmem:[#allocation18_spill] sm:$0xff] %v2711_v21  ;;  %v2718_v59 = vadd.f32 %v1243_v32, %v2375_v5  ;;  %v2721_v46 = vadd.f32 %v1296_v33, %v2375_v5 }
 0x138   : > { %v1245_v34 = vpop.f32.mrf.mxu0  ;;  %v1298_v22 = vpop.f32.mrf.mxu1 }
 0x139   : > { %2934 = vst [vmem:[#allocation19_spill] sm:$0xff] %v2721_v46  ;;  %v2726_v55 = vadd.f32 %v1245_v34, %v2375_v5  ;;  %v2729_v3 = vadd.f32 %v1298_v22, %v2375_v5 }
 0x13a   : > { %v1247_v40 = vpop.f32.mrf.mxu0  ;;  %v1300_v30 = vpop.f32.mrf.mxu1 }
 0x13b   : > { %2935 = vst [vmem:[#allocation20_spill] sm:$0xff] %v2726_v55  ;;  %2936 = vst [vmem:[#allocation21_spill] sm:$0xff] %v2729_v3  ;;  %v2735_v33 = vadd.f32 %v1247_v40, %v2400_v23  ;;  %v2740_v34 = vadd.f32 %v1300_v30, %v2400_v23 }
 0x13c   : > { %v1249_v14 = vpop.f32.mrf.mxu0  ;;  %v1302_v11 = vpop.f32.mrf.mxu1 }
 0x13d   : > { %2937 = vst [vmem:[#allocation22_spill] sm:$0xff] %v2735_v33  ;;  %v2752_v58 = vadd.f32 %v1249_v14, %v2400_v23  ;;  %v2760_v3 = vadd.f32 %v1302_v11, %v2400_v23 }
 0x13e   : > { %v1339_v0 = vpop.f32.mrf.mxu0  ;;  %v1392_v52 = vpop.f32.mrf.mxu1 }
 0x13f   : > { %v1340_v22 = vadd.f32 %v1339_v0, %v2369_v2  ;;  %v1393_v40 = vadd.f32 %v1392_v52, %v2369_v2  ;;  %2938 = vst [vmem:[#allocation23_spill] sm:$0xff] %v2752_v58  ;;  %v2940_v0 = vmax.f32 %v2633_v17, 0.0  ;;  %v2942_v52 = vmax.f32 %v2639_v24, 0.0 }
 0x140   : > { %v1341_v15 = vpop.f32.mrf.mxu0  ;;  %v1394_v21 = vpop.f32.mrf.mxu1  ;;  %v2944_v24 = vmax.f32 %v2645_v48, 0.0 }
 0x141   : > { %v1541_v28 = vmax.f32 %v1340_v22, 0.0  ;;  %v1342_v30 = vadd.f32 %v1341_v15, %v2369_v2  ;;  %v1543_v32 = vmax.f32 %v1393_v40, 0.0  ;;  %v1395_v50 = vadd.f32 %v1394_v21, %v2369_v2 }
 0x142   : > { %v1343_v46 = vpop.f32.mrf.mxu0  ;;  %v1396_v15 = vpop.f32.mrf.mxu1 }
 0x143   : > { %v1677_v55 = vmax.f32 %v2939_v35, %v1541_v28  ;;  %v1542_v20 = vmax.f32 %v1342_v30, 0.0  ;;  %v1344_v22 = vadd.f32 %v1343_v46, %v2383_v13  ;;  %v1679_v14 = vmax.f32 %v2940_v0, %v1543_v32 }
 0x144   : > { %v1544_v33 = vmax.f32 %v1395_v50, 0.0  ;;  %v1397_v40 = vadd.f32 %v1396_v15, %v2383_v13  ;;  %v1345_v21 = vpop.f32.mrf.mxu0  ;;  %v1398_v30 = vpop.f32.mrf.mxu1 }
 0x145   : > { %v1709_v58 = vmax.f32 %v2471_v18, %v1677_v55  ;;  %v1678_v35 = vmax.f32 %v2941_v42, %v1542_v20  ;;  %v1573_v28 = vmax.f32 %v1344_v22, 0.0  ;;  %v1346_v46 = vadd.f32 %v1345_v21, %v2383_v13 }
 0x146   : > { %v1711_v11 = vmax.f32 %v2475_v26, %v1679_v14  ;;  %v1680_v17 = vmax.f32 %v2942_v52, %v1544_v33  ;;  %v1575_v32 = vmax.f32 %v1397_v40, 0.0  ;;  %v1399_v50 = vadd.f32 %v1398_v30, %v2383_v13  ;;  %v1349_v0 = vpop.f32.mrf.mxu0  ;;  %v1402_v22 = vpop.f32.mrf.mxu1 }
 0x147   : > { %v1710_v15 = vmax.f32 %v2482_v57, %v1678_v35  ;;  %v2943_v18 = vmax.f32 %v2642_v49, 0.0  ;;  %v1574_v39 = vmax.f32 %v1346_v46, 0.0  ;;  %v1350_v20 = vadd.f32 %v1349_v0, %v2375_v5 }
 0x148   : > { %v1712_v26 = vmax.f32 %v2486_v54, %v1680_v17  ;;  %v1687_v33 = vmax.f32 %v2944_v24, %v1575_v32  ;;  %v1576_v52 = vmax.f32 %v1399_v50, 0.0  ;;  %v1403_v57 = vadd.f32 %v1402_v22, %v2375_v5  ;;  %v1351_v49 = vpop.f32.mrf.mxu0 }
 0x149   : > { %v1685_v55 = vmax.f32 %v2943_v18, %v1573_v28  ;;  %v2035_v14 = vpack.c.bf16 %v1710_v15, %v1709_v58  ;;  %v2945_v21 = vmax.f32 %v2648_v45, 0.0  ;;  %v1605_v35 = vmax.f32 %v1350_v20, 0.0  ;;  %v1404_v28 = vpop.f32.mrf.mxu1 }
 0x14a   : > { %v2036_v46 = vpack.c.bf16 %v1712_v26, %v1711_v11  ;;  %v1719_v30 = vmax.f32 %v2497_v19, %v1687_v33  ;;  %v2946_v54 = vmax.f32 %v2651_v51, 0.0  ;;  %v1607_v17 = vmax.f32 %v1403_v57, 0.0  ;;  %v1353_v32 = vpop.f32.mrf.mxu0 }
 0x14b   : > { %v1717_v40 = vmax.f32 %v2490_v61, %v1685_v55  ;;  %v1686_v42 = vmax.f32 %v2945_v21, %v1574_v39  ;;  %1837 = vst [vmem:[%s2781_s6] sm:$0xff] %v2035_v14  ;;  %v2947_v58 = vmax.f32 %v2654_v29, 0.0  ;;  %v1352_v61 = vadd.f32 %v1351_v49, %v2375_v5  ;;  %v1406_v15 = vpop.f32.mrf.mxu1 }
 0x14c   : > { %v1688_v48 = vmax.f32 %v2946_v54, %v1576_v52  ;;  %v1405_v45 = vadd.f32 %v1404_v28, %v2375_v5  ;;  %1838 = vst [vmem:[%s2781_s6 + $0x8] sm:$0xff] %v2036_v46  ;;  %v2948_v51 = vmax.f32 %v2657_v62, 0.0  ;;  %v1354_v18 = vadd.f32 %v1353_v32, %v2400_v23 }
 0x14d   : > { %v1718_v50 = vmax.f32 %v2501_v1, %v1686_v42  ;;  %v1693_v0 = vmax.f32 %v2947_v58, %v1605_v35  ;;  %v1407_v55 = vadd.f32 %v1406_v15, %v2400_v23  ;;  %v1355_v1 = vpop.f32.mrf.mxu0  ;;  %v1606_v20 = vmax.f32 %v1352_v61, 0.0  ;;  %v1408_v26 = vpop.f32.mrf.mxu1 }
 0x14e   : > { %v1720_v19 = vmax.f32 %v2508_v4, %v1688_v48  ;;  %v1695_v11 = vmax.f32 %v2948_v51, %v1607_v17  ;;  %v1608_v22 = vmax.f32 %v1405_v45, 0.0  ;;  %v1637_v52 = vmax.f32 %v1354_v18, 0.0 }
 0x14f   : > { %v2039_v39 = vpack.c.bf16 %v1718_v50, %v1717_v40  ;;  %v1725_v29 = vmax.f32 %v2515_v12, %v1693_v0  ;;  %v1639_v4 = vmax.f32 %v1407_v55, 0.0  ;;  %v1445_v57 = vpop.f32.mrf.mxu0  ;;  %v2949_v62 = vmax.f32 %v2662_v43, 0.0  ;;  %v1498_v42 = vpop.f32.mrf.mxu1 }
 0x150   : > { %v2040_v24 = vpack.c.bf16 %v1720_v19, %v1719_v30  ;;  %v1727_v33 = vmax.f32 %v2521_v6, %v1695_v11  ;;  %v2950_v14 = vmax.f32 %v2665_v16, 0.0  ;;  %v1356_v40 = vadd.f32 %v1355_v1, %v2400_v23 }
 0x151   : > { %1841 = vst [vmem:[%s2781_s6 + $0x20] sm:$0xff] %v2039_v39  ;;  %v1694_v49 = vmax.f32 %v2949_v62, %v1606_v20  ;;  %v1409_v12 = vadd.f32 %v1408_v26, %v2400_v23  ;;  %v2951_v35 = vmax.f32 %v2671_v7, 0.0  ;;  %v2952_v6 = vmax.f32 %v2676_v8, 0.0  ;;  %v1447_v54 = vpop.f32.mrf.mxu0  ;;  %v1500_v50 = vpop.f32.mrf.mxu1 }
 0x152   : > { %v1696_v21 = vmax.f32 %v2950_v14, %v1608_v22  ;;  %1842 = vst [vmem:[%s2781_s6 + $0x28] sm:$0xff] %v2040_v24  ;;  %v1446_v30 = vadd.f32 %v1445_v57, %v2369_v2  ;;  %v1499_v43 = vadd.f32 %v1498_v42, %v2369_v2  ;;  %v1638_v17 = vmax.f32 %v1356_v40, 0.0  ;;  %v2958_v14 = vld [vmem:[#allocation16_spill] sm:$0xff] }
 0x153   : > { %v1701_v28 = vmax.f32 %v2951_v35, %v1637_v52  ;;  %v1703_v46 = vmax.f32 %v2952_v6, %v1639_v4  ;;  %v1726_v16 = vmax.f32 %v2530_v27, %v1694_v49  ;;  %v1640_v32 = vmax.f32 %v1409_v12, 0.0  ;;  %v1449_v61 = vpop.f32.mrf.mxu0  ;;  %v1502_v11 = vpop.f32.mrf.mxu1 }
 0x154   : > { %v1728_v48 = vmax.f32 %v2536_v31, %v1696_v21  ;;  %v1545_v8 = vmax.f32 %v1446_v30, 0.0  ;;  %v1547_v0 = vmax.f32 %v1499_v43, 0.0  ;;  %v2953_v19 = vmax.f32 %v2679_v44, 0.0 }
 0x155   : > { %v1733_v58 = vmax.f32 %v2542_v37, %v1701_v28  ;;  %v1735_v7 = vmax.f32 %v2549_v9, %v1703_v46  ;;  %v2043_v45 = vpack.c.bf16 %v1726_v16, %v1725_v29  ;;  %v2954_v27 = vmax.f32 %v2685_v60, 0.0  ;;  %v1451_v20 = vpop.f32.mrf.mxu0 }
 0x156   : > { %v2044_v15 = vpack.c.bf16 %v1728_v48, %v1727_v33  ;;  %v1702_v51 = vmax.f32 %v2953_v19, %v1638_v17  ;;  %v2955_v18 = vmax.f32 %v2690_v38, 0.0  ;;  %v2956_v37 = vmax.f32 %v2693_v63, 0.0  ;;  %v1504_v38 = vpop.f32.mrf.mxu1  ;;  %v2964_v48 = vld [vmem:[#allocation3_spill] sm:$0xff] }
 0x157   : > { %v1704_v31 = vmax.f32 %v2954_v27, %v1640_v32  ;;  %v1448_v9 = vadd.f32 %v1447_v54, %v2369_v2  ;;  %v1501_v39 = vadd.f32 %v1500_v50, %v2369_v2  ;;  %1845 = vst [vmem:[%s2781_s6 + $0x40] sm:$0xff] %v2043_v45  ;;  %v1450_v60 = vadd.f32 %v1449_v61, %v2383_v13  ;;  %v1455_v33 = vpop.f32.mrf.mxu0  ;;  %v2963_v54 = vld [vmem:[#allocation2_spill] sm:$0xff] }
 0x158   : > { %v1681_v55 = vmax.f32 %v2955_v18, %v1545_v8  ;;  %v1683_v1 = vmax.f32 %v2956_v37, %v1547_v0  ;;  %1846 = vst [vmem:[%s2781_s6 + $0x48] sm:$0xff] %v2044_v15  ;;  %v1734_v44 = vmax.f32 %v2555_v41, %v1702_v51  ;;  %v1503_v22 = vadd.f32 %v1502_v11, %v2383_v13  ;;  %v1508_v62 = vpop.f32.mrf.mxu1  ;;  %v2966_v8 = vld [vmem:[#allocation5_spill] sm:$0xff]  ;;  %v2967_v51 = vld [vmem:[#allocation18_spill] sm:$0xff] }
 0x159   : > { %v1736_v29 = vmax.f32 %v2562_v10, %v1704_v31  ;;  %v1546_v24 = vmax.f32 %v1448_v9, 0.0  ;;  %v1548_v2 = vmax.f32 %v1501_v39, 0.0  ;;  %v1577_v57 = vmax.f32 %v1450_v60, 0.0  ;;  %v1457_v42 = vpop.f32.mrf.mxu0 }
 0x15a   : > { %v1713_v63 = vmax.f32 %v2569_v56, %v1681_v55  ;;  %v1715_v26 = vmax.f32 %v2574_v47, %v1683_v1  ;;  %v2047_v52 = vpack.c.bf16 %v1734_v44, %v1733_v58  ;;  %v1579_v41 = vmax.f32 %v1503_v22, 0.0  ;;  %v2960_v47 = vld [vmem:[#allocation17_spill] sm:$0xff]  ;;  %v1510_v43 = vpop.f32.mrf.mxu1  ;;  %v2965_v58 = vld [vmem:[#allocation4_spill] sm:$0xff]  ;;  %v2971_v1 = vld [vmem:[#allocation19_spill] sm:$0xff] }
 0x15b   : > { %v2048_v4 = vpack.c.bf16 %v1736_v29, %v1735_v7  ;;  %v2957_v10 = vmax.f32 %v2697_v36, 0.0  ;;  %v2959_v21 = vmax.f32 %v2958_v14, 0.0  ;;  %v1452_v12 = vadd.f32 %v1451_v20, %v2383_v13  ;;  %v1459_v50 = vpop.f32.mrf.mxu0  ;;  %v2973_v29 = vld [vmem:[#allocation6_spill] sm:$0xff]  ;;  %v2974_v22 = vld [vmem:[#allocation7_spill] sm:$0xff] }
 0x15c   : > { %v1505_v56 = vadd.f32 %v1504_v38, %v2383_v13  ;;  %1849 = vst [vmem:[%s2781_s6 + $0x60] sm:$0xff] %v2047_v52  ;;  %v2961_v35 = vmax.f32 %v2960_v47, 0.0  ;;  %v2962_v6 = vmax.f32 %v2708_v25, 0.0  ;;  %v1456_v30 = vadd.f32 %v1455_v33, %v2375_v5  ;;  %v1512_v45 = vpop.f32.mrf.mxu1 }
 0x15d   : > { %v1682_v49 = vmax.f32 %v2957_v10, %v1546_v24  ;;  %v1684_v40 = vmax.f32 %v2959_v21, %v1548_v2  ;;  %1850 = vst [vmem:[%s2781_s6 + $0x68] sm:$0xff] %v2048_v4  ;;  %v1509_v36 = vadd.f32 %v1508_v62, %v2375_v5  ;;  %v1578_v32 = vmax.f32 %v1452_v12, 0.0  ;;  %v2975_v24 = vld [vmem:[#allocation23_spill] sm:$0xff]  ;;  %v2976_v10 = vld [vmem:[#allocation20_spill] sm:$0xff]  ;;  %v2978_v21 = vld [vmem:[#allocation21_spill] sm:$0xff] }
 0x15e   : > { %v1689_v28 = vmax.f32 %v2961_v35, %v1577_v57  ;;  %v1691_v46 = vmax.f32 %v2962_v6, %v1579_v41  ;;  %v1580_v13 = vmax.f32 %v1505_v56, 0.0  ;;  %v1609_v25 = vmax.f32 %v1456_v30, 0.0  ;;  %v2981_v35 = vld [vmem:[#allocation9_spill] sm:$0xff]  ;;  %v2982_v6 = vld [vmem:[#allocation22_spill] sm:$0xff] }
 0x15f   : > { %v1714_v16 = vmax.f32 %v2963_v54, %v1682_v49  ;;  %v1716_v17 = vmax.f32 %v2964_v48, %v1684_v40  ;;  %v1611_v61 = vmax.f32 %v1509_v36, 0.0  ;;  %v2968_v27 = vmax.f32 %v2967_v51, 0.0  ;;  %v2985_v54 = vld [vmem:[#allocation10_spill] sm:$0xff]  ;;  %v2986_v48 = vld [vmem:[#allocation11_spill] sm:$0xff] }
 0x160   : > { %v1721_v7 = vmax.f32 %v2965_v58, %v1689_v28  ;;  %v1723_v0 = vmax.f32 %v2966_v8, %v1691_v46  ;;  %v2969_v11 = vmax.f32 %v2715_v53, 0.0  ;;  %v2970_v55 = vmax.f32 %v2718_v59, 0.0  ;;  %v1461_v59 = vpop.f32.mrf.mxu0  ;;  %v2987_v8 = vld [vmem:[#allocation12_spill] sm:$0xff] }
 0x161   : > { %v2037_v15 = vpack.c.bf16 %v1714_v16, %v1713_v63  ;;  %v2038_v19 = vpack.c.bf16 %v1716_v17, %v1715_v26  ;;  %v1690_v31 = vmax.f32 %v2968_v27, %v1578_v32  ;;  %v2972_v9 = vmax.f32 %v2971_v1, 0.0  ;;  %v1514_v26 = vpop.f32.mrf.mxu1 }
 0x162   : > { %v1692_v18 = vmax.f32 %v2969_v11, %v1580_v13  ;;  %v1697_v37 = vmax.f32 %v2970_v55, %v1609_v25  ;;  %v1458_v20 = vadd.f32 %v1457_v42, %v2375_v5  ;;  %v1511_v44 = vadd.f32 %v1510_v43, %v2375_v5  ;;  %v2988_v25 = vld [vmem:[#allocation13_spill] sm:$0xff] }
 0x163   : > { %v1699_v39 = vmax.f32 %v2972_v9, %v1611_v61  ;;  %1839 = vst [vmem:[%s2781_s6 + $0x10] sm:$0xff] %v2037_v15  ;;  %1840 = vst [vmem:[%s2781_s6 + $0x18] sm:$0xff] %v2038_v19  ;;  %v1722_v60 = vmax.f32 %v2973_v29, %v1690_v31  ;;  %v1460_v63 = vadd.f32 %v1459_v50, %v2400_v23  ;;  %v1634_v2 = vmax.f32 %v2975_v24, 0.0  ;;  %v2990_v15 = vld [vmem:[#allocation15_spill] sm:$0xff] }
 0x164   : > { %v1724_v38 = vmax.f32 %v2974_v22, %v1692_v18  ;;  %v1513_v53 = vadd.f32 %v1512_v45, %v2400_v23  ;;  %v1636_v33 = vmax.f32 %v2760_v3, 0.0  ;;  %v1610_v52 = vmax.f32 %v1458_v20, 0.0  ;;  %v2980_v3 = vld [vmem:[#allocation8_spill] sm:$0xff] }
 0x165   : > { %v1612_v5 = vmax.f32 %v1511_v44, 0.0  ;;  %v2041_v4 = vpack.c.bf16 %v1722_v60, %v1721_v7  ;;  %v1641_v41 = vmax.f32 %v1460_v63, 0.0  ;;  %v2977_v49 = vmax.f32 %v2976_v10, 0.0 }
 0x166   : > { %v2042_v57 = vpack.c.bf16 %v1724_v38, %v1723_v0  ;;  %v1643_v62 = vmax.f32 %v1513_v53, 0.0  ;;  %v2979_v40 = vmax.f32 %v2978_v21, 0.0  ;;  %v1462_v56 = vadd.f32 %v1461_v59, %v2400_v23 }
 0x167   : > { %v1698_v14 = vmax.f32 %v2977_v49, %v1610_v52  ;;  %v1515_v42 = vadd.f32 %v1514_v26, %v2400_v23  ;;  %1843 = vst [vmem:[%s2781_s6 + $0x30] sm:$0xff] %v2041_v4  ;;  %v1729_v47 = vmax.f32 %v2980_v3, %v1697_v37  ;;  %v1731_v28 = vmax.f32 %v2981_v35, %v1699_v39 }
 0x168   : > { %v1700_v12 = vmax.f32 %v2979_v40, %v1612_v5  ;;  %1844 = vst [vmem:[%s2781_s6 + $0x38] sm:$0xff] %v2042_v57  ;;  %v2983_v46 = vmax.f32 %v2982_v6, 0.0  ;;  %v2984_v36 = vmax.f32 %v2740_v34, 0.0  ;;  %v1642_v23 = vmax.f32 %v1462_v56, 0.0  ;;  %v2989_v34 = vld [vmem:[#allocation14_spill] sm:$0xff] }
 0x169   : > { %v1730_v16 = vmax.f32 %v2985_v54, %v1698_v14  ;;  %v1644_v32 = vmax.f32 %v1515_v42, 0.0 }
 0x16a   : > { %v1705_v30 = vmax.f32 %v2983_v46, %v1641_v41  ;;  %v1707_v43 = vmax.f32 %v2984_v36, %v1643_v62  ;;  %v1732_v17 = vmax.f32 %v2986_v48, %v1700_v12  ;;  %v1706_v58 = vmax.f32 %v1634_v2, %v1642_v23 }
 0x16b   : > { %v2045_v13 = vpack.c.bf16 %v1730_v16, %v1729_v47  ;;  %v1708_v7 = vmax.f32 %v1636_v33, %v1644_v32 }
 0x16c   : > { %v2046_v50 = vpack.c.bf16 %v1732_v17, %v1731_v28  ;;  %v1737_v0 = vmax.f32 %v2987_v8, %v1705_v30  ;;  %v1739_v61 = vmax.f32 %v2988_v25, %v1707_v43  ;;  %v1738_v45 = vmax.f32 %v2989_v34, %v1706_v58 }
 0x16d   : > { %1847 = vst [vmem:[%s2781_s6 + $0x50] sm:$0xff] %v2045_v13  ;;  %v1740_v19 = vmax.f32 %v2990_v15, %v1708_v7 }
 0x16e   : > { %1848 = vst [vmem:[%s2781_s6 + $0x58] sm:$0xff] %v2046_v50  ;;  %v2049_v51 = vpack.c.bf16 %v1738_v45, %v1737_v0 }
 0x16f   : > { %v2050_v27 = vpack.c.bf16 %v1740_v19, %v1739_v61 }
 0x170   : > { %1851 = vst [vmem:[%s2781_s6 + $0x70] sm:$0xff] %v2049_v51 }
 0x171   : > { %1852 = vst [vmem:[%s2781_s6 + $0x78] sm:$0xff] %v2050_v27 }
 0x172 PF: > { %s13_s12 = sadd.s32 1, %s2071_s12  }
 0x173   : > { %p10_p4 = scmp.ge.s32.totalorder %s13_s12, 4  }
 0x175   :  { %12 = sbr.rel (!%p10_p4) target bundleno = 1 (0x1), region = 62 }

// kernel: cnn_forward.4
= control target key start
LH: loop header
LB: loop body
LE: loop exit
PB: predicated region body
PF: predicated region fallthrough
CT: control target
= control target key end

     0   :  { %s2236_s12 = smov 0   ;;  %s2837_s0 = inlined_call_operand.vmem [shape: bf16[2,288,1024], index: 0, kind: input, shape index: {}]   ;;  %s2838_s1 = inlined_call_operand.vmem [shape: bf16[64,288], index: 1, kind: input, shape index: {}]   ;;  %s2839_s2 = inlined_call_operand.vmem [shape: f32[64,1], index: 2, kind: input, shape index: {}]   ;;  %s2840_s3 = inlined_call_operand.vmem [shape: bf16[2,64,256], index: 3, kind: output, shape index: {}]  }
   0x1 LB: > { %s1980_s13 = sadd.s32 4294967295, %s2213_s12   ;;  %p1984_p0 = scmp.ge.s32.totalorder %s2213_s12, 1  ;;  %s2213_s12 = sphi %s2236_s12, %s13_s12  }
   0x2   : > { %p137_p1 = scmp.lt.s32.totalorder %s2213_s12, 3 }
   0x4   : > { %p138_p2 = pnand %p1984_p0, %p137_p1 }
   0x6   : > { %141 = sbr.rel (%p138_p2) target bundleno = 449 (0x1c1), region = 32 }
   0xb   : > { %p161_p3 = scmp.lt.s32.totalorder %s1980_s13, 1  ;;  %v2215_v0 = vmov 0   ;;  %v2253_v1 = vld [vmem:[%s2838_s1 + $0x4] ss:$12 sps:$4 sm:$0xff]   ;;  %v2280_v29 = vld [vmem:[%s2838_s1 + $0x8] ss:$12 sps:$4 sm:$0xff]  }
   0xc   : > { %1278 = vmatprep.mubr.bf16.mxu1 %v2215_v0  ;;  %2189 = vset.pattern.permute.xlu0 %v2215_v0  ;;  %vm1160_vm0 = vcmask 261120   ;;  %v2296_v46 = vld [vmem:[%s2838_s1 + $0x20] ss:$12 sps:$4 sm:$0xff]   ;;  %v2312_v63 = vld [vmem:[%s2838_s1 + $0x38] ss:$12 sps:$4 sm:$0xff]  }
   0xd   : > { %s2876_s13 = smov (!%p161_p3, %s1980_s13), 1  ;;  %2190 = vset.pattern.permute.xlu1 %v2215_v0  ;;  %1205 = vmatprep.mubr.bf16.mxu0 %v2253_v1 }
   0xe   : > { %s2179_s14 = smul.u32 1152, %s2876_s13 }
  0x10   : > { %s2258_s19 = scalar_lea.vmem %s2837_s0, %s2179_s14 }
  0x11   : > { %v244_v2 = vld [vmem:[%s2258_s19 + $0x1c0] sm:$0xff]  ;;  %v245_v18 = vld [vmem:[%s2258_s19 + $0x1c8] sm:$0xff] }
  0x12   : > { %v248_v3 = vld [vmem:[%s2258_s19 + $0x1e0] sm:$0xff]  ;;  %v249_v19 = vld [vmem:[%s2258_s19 + $0x1e8] sm:$0xff] }
  0x13   : > { %v324_v4 = vld [vmem:[%s2258_s19 + $0x440] sm:$0xff]  ;;  %v2057_v5 = vcombine.high %v244_v2, %v248_v3  ;;  %v2056_v7 = vcombine.low %v244_v2, %v248_v3  ;;  %v2059_v23 = vcombine.high %v245_v18, %v249_v19  ;;  %v237_v26 = vld [vmem:[%s2258_s19 + $0x188] sm:$0xff]  ;;  %v2058_v30 = vcombine.low %v245_v18, %v249_v19  ;;  %v2328_v18 = vld [vmem:[%s2838_s1 + $0x50] ss:$12 sps:$4 sm:$0xff]  }
  0x14   : > { %v328_v6 = vld [vmem:[%s2258_s19 + $0x460] sm:$0xff]  ;;  %v241_v27 = vld [vmem:[%s2258_s19 + $0x1a8] sm:$0xff] }
  0x15   : > { %v236_v8 = vld [vmem:[%s2258_s19 + $0x180] sm:$0xff]  ;;  %v2137_v10 = vcombine.high %v324_v4, %v328_v6  ;;  %v2136_v11 = vcombine.low %v324_v4, %v328_v6  ;;  %1173 = vmatprep.subr.bf16.mxu0 %v2057_v5  ;;  %v2051_v32 = vcombine.high %v237_v26, %v241_v27  ;;  %v229_v35 = vld [vmem:[%s2258_s19 + $0x148] sm:$0xff]  ;;  %v2050_v38 = vcombine.low %v237_v26, %v241_v27 }
  0x16   : > { %v240_v9 = vld [vmem:[%s2258_s19 + $0x1a0] sm:$0xff]  ;;  %1174 = vmatpush1.bf16.msra.mxu0 %v2056_v7  ;;  %v233_v36 = vld [vmem:[%s2258_s19 + $0x168] sm:$0xff] }
  0x17   : > { %v2049_v12 = vcombine.high %v236_v8, %v240_v9  ;;  %v316_v13 = vld [vmem:[%s2258_s19 + $0x400] sm:$0xff]  ;;  %1258 = vmatprep.subr.bf16.mxu1 %v2137_v10  ;;  %v2048_v20 = vcombine.low %v236_v8, %v240_v9  ;;  %v2043_v40 = vcombine.high %v229_v35, %v233_v36  ;;  %v221_v43 = vld [vmem:[%s2258_s19 + $0x108] sm:$0xff]  ;;  %v2042_v47 = vcombine.low %v229_v35, %v233_v36 }
  0x18   : > { %v320_v14 = vld [vmem:[%s2258_s19 + $0x420] sm:$0xff]  ;;  %1259 = vmatpush1.bf16.msra.mxu1 %v2136_v11  ;;  %v225_v44 = vld [vmem:[%s2258_s19 + $0x128] sm:$0xff] }
  0x19   : > { %v228_v15 = vld [vmem:[%s2258_s19 + $0x140] sm:$0xff]  ;;  %v2129_v16 = vcombine.high %v316_v13, %v320_v14  ;;  %1175 = vmatprep.subr.bf16.mxu0 %v2049_v12  ;;  %v2128_v21 = vcombine.low %v316_v13, %v320_v14  ;;  %v2035_v49 = vcombine.high %v221_v43, %v225_v44  ;;  %v213_v52 = vld [vmem:[%s2258_s19 + $0xc8] sm:$0xff]  ;;  %v2034_v55 = vcombine.low %v221_v43, %v225_v44 }
  0x1a   : > { %v232_v17 = vld [vmem:[%s2258_s19 + $0x160] sm:$0xff]  ;;  %1176 = vmatpush1.bf16.msra.mxu0 %v2048_v20  ;;  %v217_v53 = vld [vmem:[%s2258_s19 + $0xe8] sm:$0xff] }
  0x1b   : > { %v2041_v22 = vcombine.high %v228_v15, %v232_v17  ;;  %1260 = vmatprep.subr.bf16.mxu1 %v2129_v16  ;;  %v220_v24 = vld [vmem:[%s2258_s19 + $0x100] sm:$0xff]  ;;  %v2040_v28 = vcombine.low %v228_v15, %v232_v17  ;;  %v2027_v57 = vcombine.high %v213_v52, %v217_v53  ;;  %v205_v60 = vld [vmem:[%s2258_s19 + $0x88] sm:$0xff]  ;;  %v2026_v2 = vcombine.low %v213_v52, %v217_v53 }
  0x1c   : > { %v224_v25 = vld [vmem:[%s2258_s19 + $0x120] sm:$0xff]  ;;  %1261 = vmatpush1.bf16.msra.mxu1 %v2128_v21  ;;  %v209_v61 = vld [vmem:[%s2258_s19 + $0xa8] sm:$0xff] }
  0x1d   : > { %1177 = vmatprep.subr.bf16.mxu0 %v2041_v22  ;;  %v2033_v31 = vcombine.high %v220_v24, %v224_v25  ;;  %1319 = vmatprep.subr.bf16.mxu1 %v2059_v23  ;;  %v212_v33 = vld [vmem:[%s2258_s19 + $0xc0] sm:$0xff]  ;;  %v2032_v37 = vcombine.low %v220_v24, %v224_v25  ;;  %v2019_v4 = vcombine.high %v205_v60, %v209_v61  ;;  %v197_v7 = vld [vmem:[%s2258_s19 + $0x48] sm:$0xff] }
  0x1e   : > { %v216_v34 = vld [vmem:[%s2258_s19 + $0xe0] sm:$0xff]  ;;  %1178 = vmatpush1.bf16.msra.mxu0 %v2040_v28  ;;  %v201_v8 = vld [vmem:[%s2258_s19 + $0x68] sm:$0xff]  ;;  %v2018_v10 = vcombine.low %v205_v60, %v209_v61 }
  0x1f   : > { %2144 = vmatmul.mubr.msk.bf16.vlgmr.msra.gmra.mxu1 %vm1160_vm0, %v2280_v29  ;;  %1179 = vmatprep.subr.bf16.mxu0 %v2033_v31  ;;  %v2025_v39 = vcombine.high %v212_v33, %v216_v34  ;;  %v204_v41 = vld [vmem:[%s2258_s19 + $0x80] sm:$0xff]  ;;  %v2024_v45 = vcombine.low %v212_v33, %v216_v34  ;;  %v2011_v12 = vcombine.high %v197_v7, %v201_v8  ;;  %v189_v15 = vld [vmem:[%s2258_s19 + $0x8] sm:$0xff] }
  0x20   : > { %1320 = vmatpush1.bf16.msra.mxu1 %v2058_v30  ;;  %v208_v42 = vld [vmem:[%s2258_s19 + $0xa0] sm:$0xff]  ;;  %1288 = vmatprep.mubr.bf16.mxu1 %v2215_v0  ;;  %v193_v16 = vld [vmem:[%s2258_s19 + $0x28] sm:$0xff]  ;;  %v2010_v19 = vcombine.low %v197_v7, %v201_v8  ;;  %v339_v7 = vld [vmem:[%s2839_s2 + $0x38] sm:$0xff] }
  0x21   : > { %1321 = vmatprep.subr.bf16.mxu1 %v2051_v32  ;;  %v2017_v48 = vcombine.high %v204_v41, %v208_v42  ;;  %v196_v50 = vld [vmem:[%s2258_s19 + $0x40] sm:$0xff]  ;;  %v2016_v54 = vcombine.low %v204_v41, %v208_v42  ;;  %v2003_v21 = vcombine.high %v189_v15, %v193_v16  ;;  %v309_v24 = vld [vmem:[%s2258_s19 + $0x3c8] sm:$0xff]  ;;  %v2002_v27 = vcombine.low %v189_v15, %v193_v16  ;;  %v334_v42 = vld [vmem:[%s2839_s2 + $0x10] sm:$0xff] }
  0x22   : > { %1180 = vmatpush1.bf16.msra.mxu0 %v2032_v37  ;;  %v200_v51 = vld [vmem:[%s2258_s19 + $0x60] sm:$0xff]  ;;  %v313_v25 = vld [vmem:[%s2258_s19 + $0x3e8] sm:$0xff]  ;;  %352 = vperm.xlu1 %2190, %v334_v42   ;;  %v250_v42 = vld [vmem:[%s2258_s19 + $0x1f0] sm:$0xff] }
  0x23   : > { %1181 = vmatprep.subr.bf16.mxu0 %v2025_v39  ;;  %v2009_v56 = vcombine.high %v196_v50, %v200_v51  ;;  %v188_v58 = vld [vmem:[%s2258_s19] sm:$0xff]  ;;  %v2008_v62 = vcombine.low %v196_v50, %v200_v51  ;;  %v2123_v30 = vcombine.high %v309_v24, %v313_v25  ;;  %v301_v33 = vld [vmem:[%s2258_s19 + $0x388] sm:$0xff]  ;;  %v2122_v37 = vcombine.low %v309_v24, %v313_v25 }
  0x24   : > { %1322 = vmatpush1.bf16.msra.mxu1 %v2050_v38  ;;  %v192_v59 = vld [vmem:[%s2258_s19 + $0x20] sm:$0xff]  ;;  %v305_v34 = vld [vmem:[%s2258_s19 + $0x3a8] sm:$0xff] }
  0x25   : > { %1323 = vmatprep.subr.bf16.mxu1 %v2043_v40  ;;  %v2001_v3 = vcombine.high %v188_v58, %v192_v59  ;;  %v308_v5 = vld [vmem:[%s2258_s19 + $0x3c0] sm:$0xff]  ;;  %v2000_v9 = vcombine.low %v188_v58, %v192_v59  ;;  %v2115_v39 = vcombine.high %v301_v33, %v305_v34  ;;  %v293_v43 = vld [vmem:[%s2258_s19 + $0x348] sm:$0xff] }
  0x26   : > { %1182 = vmatpush1.bf16.msra.mxu0 %v2024_v45  ;;  %v312_v6 = vld [vmem:[%s2258_s19 + $0x3e0] sm:$0xff]  ;;  %v297_v44 = vld [vmem:[%s2258_s19 + $0x368] sm:$0xff] }
  0x27   : > { %2145 = vmatmul.mubr.msk.bf16.gmra.mxu1 %vm1160_vm0, %v2296_v46  ;;  %1183 = vmatprep.subr.bf16.mxu0 %v2017_v48  ;;  %v2121_v11 = vcombine.high %v308_v5, %v312_v6  ;;  %v300_v13 = vld [vmem:[%s2258_s19 + $0x380] sm:$0xff]  ;;  %v2120_v17 = vcombine.low %v308_v5, %v312_v6  ;;  %v333_v45 = vld [vmem:[%s2839_s2 + $0x8] sm:$0xff]  ;;  %v335_v48 = vld [vmem:[%s2839_s2 + $0x18] sm:$0xff]  ;;  %v2107_v51 = vcombine.high %v293_v43, %v297_v44 }
  0x28   : > { %1324 = vmatpush1.bf16.msra.mxu1 %v2042_v47  ;;  %1298 = vmatprep.mubr.bf16.mxu1 %v2215_v0  ;;  %v304_v14 = vld [vmem:[%s2258_s19 + $0x3a0] sm:$0xff]  ;;  %v337_v58 = vld [vmem:[%s2839_s2 + $0x28] sm:$0xff]  ;;  %v2106_v59 = vcombine.low %v293_v43, %v297_v44  ;;  %v338_v5 = vld [vmem:[%s2839_s2 + $0x30] sm:$0xff] }
  0x29   : > { %1325 = vmatprep.subr.bf16.mxu1 %v2035_v49  ;;  %v2113_v20 = vcombine.high %v300_v13, %v304_v14  ;;  %v292_v22 = vld [vmem:[%s2258_s19 + $0x340] sm:$0xff]  ;;  %v2112_v26 = vcombine.low %v300_v13, %v304_v14  ;;  %v2114_v49 = vcombine.low %v301_v33, %v305_v34  ;;  %357 = vperm.xlu1 %2190, %v335_v48   ;;  %v269_v13 = vld [vmem:[%s2258_s19 + $0x288] sm:$0xff] }
  0x2a   : > { %1184 = vmatpush1.bf16.msra.mxu0 %v2016_v54  ;;  %v296_v23 = vld [vmem:[%s2258_s19 + $0x360] sm:$0xff]  ;;  %v285_v54 = vld [vmem:[%s2258_s19 + $0x308] sm:$0xff] }
  0x2b   : > { %1185 = vmatprep.subr.bf16.mxu0 %v2009_v56  ;;  %v2105_v28 = vcombine.high %v292_v22, %v296_v23  ;;  %v284_v31 = vld [vmem:[%s2258_s19 + $0x300] sm:$0xff]  ;;  %v2104_v35 = vcombine.low %v292_v22, %v296_v23  ;;  %v273_v14 = vld [vmem:[%s2258_s19 + $0x2a8] sm:$0xff] }
  0x2c   : > { %1326 = vmatpush1.bf16.msra.mxu1 %v2034_v55  ;;  %v288_v32 = vld [vmem:[%s2258_s19 + $0x320] sm:$0xff]  ;;  %v289_v55 = vld [vmem:[%s2258_s19 + $0x328] sm:$0xff]  ;;  %v2082_v25 = vcombine.low %v269_v13, %v273_v14 }
  0x2d   : > { %1327 = vmatprep.subr.bf16.mxu1 %v2027_v57  ;;  %v332_v36 = vld [vmem:[%s2839_s2] sm:$0xff]  ;;  %v2097_v38 = vcombine.high %v284_v31, %v288_v32  ;;  %v2096_v47 = vcombine.low %v284_v31, %v288_v32  ;;  %v2099_v61 = vcombine.high %v285_v54, %v289_v55  ;;  %367 = vperm.xlu1 %2190, %v337_v58   ;;  %v261_v22 = vld [vmem:[%s2258_s19 + $0x248] sm:$0xff]  ;;  %v2432_v58 = vld [vmem:[%s2838_s1 + $0x30] ss:$12 sps:$4 sm:$0xff]  }
  0x2e   : > { %1186 = vmatpush1.bf16.msra.mxu0 %v2008_v62  ;;  %v276_v40 = vld [vmem:[%s2258_s19 + $0x2c0] sm:$0xff]  ;;  %342 = vperm.xlu0 %2189, %v332_v36   ;;  %v2098_v8 = vcombine.low %v285_v54, %v289_v55  ;;  %v265_v23 = vld [vmem:[%s2258_s19 + $0x268] sm:$0xff]  ;;  %v230_v54 = vld [vmem:[%s2258_s19 + $0x150] sm:$0xff] }
  0x2f   : > { %2146 = vmatmul.mubr.msk.bf16.gmra.mxu1 %vm1160_vm0, %v2312_v63  ;;  %1187 = vmatprep.subr.bf16.mxu0 %v2001_v3  ;;  %v280_v41 = vld [vmem:[%s2258_s19 + $0x2e0] sm:$0xff]  ;;  %v277_v3 = vld [vmem:[%s2258_s19 + $0x2c8] sm:$0xff]  ;;  %v2074_v36 = vcombine.low %v261_v22, %v265_v23  ;;  %v234_v55 = vld [vmem:[%s2258_s19 + $0x170] sm:$0xff] }
  0x30   : > { %1328 = vmatpush1.bf16.msra.mxu1 %v2026_v2  ;;  %1308 = vmatprep.mubr.bf16.mxu1 %v2215_v0  ;;  %v2089_v50 = vcombine.high %v276_v40, %v280_v41  ;;  %v268_v52 = vld [vmem:[%s2258_s19 + $0x280] sm:$0xff]  ;;  %v2088_v57 = vcombine.low %v276_v40, %v280_v41  ;;  %v253_v32 = vld [vmem:[%s2258_s19 + $0x208] sm:$0xff]  ;;  %v2403_v40 = vld [vmem:[%s2258_s19 + $0x470] sm:$0xff] }
  0x31   : > { %1329 = vmatprep.subr.bf16.mxu1 %v2019_v4  ;;  %v272_v53 = vld [vmem:[%s2258_s19 + $0x2a0] sm:$0xff]  ;;  %v281_v4 = vld [vmem:[%s2258_s19 + $0x2e8] sm:$0xff]  ;;  %377 = vperm.xlu1 %2190, %v339_v7   ;;  %v246_v41 = vld [vmem:[%s2258_s19 + $0x1d0] sm:$0xff] }
  0x32   : > { %1188 = vmatpush1.bf16.msra.mxu0 %v2000_v9  ;;  %347 = vperm.xlu0 %2189, %v333_v45   ;;  %v336_v56 = vld [vmem:[%s2839_s2 + $0x20] sm:$0xff]  ;;  %v2081_v60 = vcombine.high %v268_v52, %v272_v53  ;;  %v2080_v6 = vcombine.low %v268_v52, %v272_v53  ;;  %v2090_v16 = vcombine.low %v277_v3, %v281_v4  ;;  %v257_v33 = vld [vmem:[%s2258_s19 + $0x228] sm:$0xff] }
  0x33   : > { %1189 = vmatprep.subr.bf16.mxu0 %v2121_v11  ;;  %v260_v62 = vld [vmem:[%s2258_s19 + $0x240] sm:$0xff]  ;;  %v2066_v44 = vcombine.low %v253_v32, %v257_v33  ;;  %v2060_v52 = vcombine.low %v246_v41, %v250_v42  ;;  %v2450_v7 = vld [vmem:[%s2838_s1 + $0x48] ss:$12 sps:$4 sm:$0xff]  }
  0x34   : > { %1330 = vmatpush1.bf16.msra.mxu1 %v2018_v10  ;;  %v264_v2 = vld [vmem:[%s2258_s19 + $0x260] sm:$0xff]  ;;  %v2091_v10 = vcombine.high %v277_v3, %v281_v4  ;;  %v214_v3 = vld [vmem:[%s2258_s19 + $0xd0] sm:$0xff] }
  0x35   : > { %1331 = vmatprep.subr.bf16.mxu1 %v2011_v12  ;;  %v2073_v9 = vcombine.high %v260_v62, %v264_v2  ;;  %v252_v11 = vld [vmem:[%s2258_s19 + $0x200] sm:$0xff]  ;;  %v2072_v15 = vcombine.low %v260_v62, %v264_v2  ;;  %v2044_v62 = vcombine.low %v230_v54, %v234_v55  ;;  %v218_v4 = vld [vmem:[%s2258_s19 + $0xf0] sm:$0xff] }
  0x36   : > { %1190 = vmatpush2.bf16.msra.mxu0 %v2120_v17  ;;  %362 = vperm.xlu0 %2189, %v336_v56   ;;  %v256_v12 = vld [vmem:[%s2258_s19 + $0x220] sm:$0xff] }
  0x37   : > { %2147 = vmatmul.mubr.msk.bf16.gmra.mxu1 %vm1160_vm0, %v2328_v18  ;;  %1191 = vmatprep.subr.bf16.mxu0 %v2113_v20  ;;  %v2065_v17 = vcombine.high %v252_v11, %v256_v12  ;;  %v325_v20 = vld [vmem:[%s2258_s19 + $0x448] sm:$0xff]  ;;  %v2064_v24 = vcombine.low %v252_v11, %v256_v12  ;;  %v2414_v48 = vld [vmem:[%s2838_s1 + $0x18] ss:$12 sps:$4 sm:$0xff]   ;;  %v198_v12 = vld [vmem:[%s2258_s19 + $0x50] sm:$0xff] }
  0x38   : > { %1332 = vmatpush1.bf16.msra.mxu1 %v2010_v19  ;;  %1351 = vmatprep.mubr.bf16.mxu1 %v2253_v1  ;;  %v2083_v19 = vcombine.high %v269_v13, %v273_v14  ;;  %v2390_v31 = vld [vmem:[%s2838_s1] ss:$12 sps:$4 sm:$0xff]   ;;  %v202_v13 = vld [vmem:[%s2258_s19 + $0x70] sm:$0xff] }
  0x39   : > { %1333 = vmatprep.subr.bf16.mxu1 %v2003_v21  ;;  %v329_v21 = vld [vmem:[%s2258_s19 + $0x468] sm:$0xff] }
  0x3a   : > { %1192 = vmatpush2.bf16.msra.mxu0 %v2112_v26  ;;  %372 = vperm.xlu0 %2189, %v338_v5   ;;  %v2139_v26 = vcombine.high %v325_v20, %v329_v21  ;;  %v2138_v34 = vcombine.low %v325_v20, %v329_v21  ;;  %v194_v20 = vld [vmem:[%s2258_s19 + $0x30] sm:$0xff] }
  0x3b   : > { %1193 = vmatprep.subr.bf16.mxu0 %v2105_v28  ;;  %v317_v28 = vld [vmem:[%s2258_s19 + $0x408] sm:$0xff] }
  0x3c   : > { %1334 = vmatpush1.bf16.msra.mxu1 %v2002_v27  ;;  %v2075_v27 = vcombine.high %v261_v22, %v265_v23  ;;  %v2012_v22 = vcombine.low %v198_v12, %v202_v13 }
  0x3d   : > { %1335 = vmatprep.subr.bf16.mxu1 %v2123_v30  ;;  %v321_v30 = vld [vmem:[%s2258_s19 + $0x428] sm:$0xff] }
  0x3e   : > { %1194 = vmatpush2.bf16.msra.mxu0 %v2104_v35  ;;  %v2397_v35 = vld [vmem:[%s2838_s1 + $0x1c] ss:$12 sps:$4 sm:$0xff]   ;;  %v2130_v43 = vcombine.low %v317_v28, %v321_v30 }
  0x3f   : > { %1195 = vmatprep.subr.bf16.mxu0 %v2097_v38  ;;  %v2067_v38 = vcombine.high %v253_v32, %v257_v33 }
  0x40   : > { %1336 = vmatpush2.bf16.msra.mxu1 %v2122_v37  ;;  %v2131_v37 = vcombine.high %v317_v28, %v321_v30  ;;  %v314_v28 = vld [vmem:[%s2258_s19 + $0x3f0] sm:$0xff] }
  0x41   : > { %1337 = vmatprep.subr.bf16.mxu1 %v2115_v39  ;;  %v2400_v39 = vld [vmem:[%s2258_s19 + $0x450] sm:$0xff] }
  0x42   : > { %1196 = vmatpush2.bf16.msra.mxu0 %v2096_v47  ;;  %v2141_v45 = vcombine.high %v2400_v39, %v2403_v40  ;;  %v2061_v47 = vcombine.high %v246_v41, %v250_v42  ;;  %v2140_v21 = vcombine.low %v2400_v39, %v2403_v40  ;;  %v294_v40 = vld [vmem:[%s2258_s19 + $0x350] sm:$0xff] }
  0x43   : > { %1197 = vmatprep.subr.bf16.mxu0 %v2089_v50  ;;  %v242_v50 = vld [vmem:[%s2258_s19 + $0x1b0] sm:$0xff] }
  0x44   : > { %1338 = vmatpush2.bf16.msra.mxu1 %v2114_v49  ;;  %v238_v49 = vld [vmem:[%s2258_s19 + $0x190] sm:$0xff] }
  0x45   : > { %1339 = vmatprep.subr.bf16.mxu1 %v2107_v51  ;;  %v2421_v51 = vld [vmem:[%s2838_s1 + $0x34] ss:$12 sps:$4 sm:$0xff]   ;;  %v2053_v53 = vcombine.high %v238_v49, %v242_v50  ;;  %v2052_v56 = vcombine.low %v238_v49, %v242_v50 }
  0x46   : > { %1198 = vmatpush2.bf16.msra.mxu0 %v2088_v57  ;;  %v2045_v57 = vcombine.high %v230_v54, %v234_v55  ;;  %v298_v41 = vld [vmem:[%s2258_s19 + $0x370] sm:$0xff] }
  0x47   : > { %1199 = vmatprep.subr.bf16.mxu0 %v2081_v60  ;;  %v226_v60 = vld [vmem:[%s2258_s19 + $0x130] sm:$0xff] }
  0x48   : > { %1340 = vmatpush2.bf16.msra.mxu1 %v2106_v59  ;;  %v222_v59 = vld [vmem:[%s2258_s19 + $0x110] sm:$0xff] }
  0x49   : > { %1341 = vmatprep.subr.bf16.mxu1 %v2099_v61  ;;  %v2439_v61 = vld [vmem:[%s2838_s1 + $0x4c] ss:$12 sps:$4 sm:$0xff]   ;;  %v2037_v2 = vcombine.high %v222_v59, %v226_v60  ;;  %v2036_v5 = vcombine.low %v222_v59, %v226_v60  ;;  %v278_v50 = vld [vmem:[%s2258_s19 + $0x2d0] sm:$0xff] }
  0x4a   : > { %1200 = vmatpush2.bf16.msra.mxu0 %v2080_v6  ;;  %v2029_v6 = vcombine.high %v214_v3, %v218_v4  ;;  %v270_v55 = vld [vmem:[%s2258_s19 + $0x290] sm:$0xff] }
  0x4b   : > { %1201 = vmatprep.subr.bf16.mxu0 %v2073_v9  ;;  %v210_v9 = vld [vmem:[%s2258_s19 + $0xb0] sm:$0xff] }
  0x4c   : > { %1342 = vmatpush2.bf16.msra.mxu1 %v2098_v8  ;;  %v206_v8 = vld [vmem:[%s2258_s19 + $0x90] sm:$0xff] }
  0x4d   : > { %1343 = vmatprep.subr.bf16.mxu1 %v2091_v10  ;;  %v2028_v10 = vcombine.low %v214_v3, %v218_v4  ;;  %v2021_v11 = vcombine.high %v206_v8, %v210_v9  ;;  %v2020_v14 = vcombine.low %v206_v8, %v210_v9  ;;  %v262_v60 = vld [vmem:[%s2258_s19 + $0x250] sm:$0xff]  ;;  %v239_v4 = vld [vmem:[%s2258_s19 + $0x198] sm:$0xff] }
  0x4e   : > { %1202 = vmatpush2.bf16.msra.mxu0 %v2072_v15  ;;  %v2013_v15 = vcombine.high %v198_v12, %v202_v13  ;;  %v258_v8 = vld [vmem:[%s2258_s19 + $0x230] sm:$0xff]  ;;  %v231_v13 = vld [vmem:[%s2258_s19 + $0x158] sm:$0xff] }
  0x4f   : > { %1203 = vmatprep.subr.bf16.mxu0 %v2065_v17  ;;  %v322_v17 = vld [vmem:[%s2258_s19 + $0x430] sm:$0xff] }
  0x50   : > { %1344 = vmatpush2.bf16.msra.mxu1 %v2090_v16  ;;  %v318_v16 = vld [vmem:[%s2258_s19 + $0x410] sm:$0xff] }
  0x51   : > { %1345 = vmatprep.subr.bf16.mxu1 %v2083_v19  ;;  %v190_v19 = vld [vmem:[%s2258_s19 + $0x10] sm:$0xff]  ;;  %v2133_v23 = vcombine.high %v318_v16, %v322_v17  ;;  %v2132_v30 = vcombine.low %v318_v16, %v322_v17  ;;  %v331_v16 = vld [vmem:[%s2258_s19 + $0x478] sm:$0xff] }
  0x52   : > { %1204 = vmatpush2.bf16.msra.mxu0 %v2064_v24  ;;  %v2005_v24 = vcombine.high %v190_v19, %v194_v20  ;;  %v2004_v32 = vcombine.low %v190_v19, %v194_v20 }
  0x53   : > { %1404 = vmatprep.subr.bf16.mxu0 %v2139_v26  ;;  %v2470_v26 = vld [vmem:[%s2258_s19 + $0x1f8] sm:$0xff] }
  0x54   : > { %1346 = vmatpush2.bf16.msra.mxu1 %v2082_v25  ;;  %v2467_v25 = vld [vmem:[%s2258_s19 + $0x1d8] sm:$0xff] }
  0x55   : > { %1347 = vmatprep.subr.bf16.mxu1 %v2075_v27  ;;  %1206 = vmatmul.mubr.bf16.vlgmr.msra.gmra.mxu0 %v2390_v31  ;;  %v310_v27 = vld [vmem:[%s2258_s19 + $0x3d0] sm:$0xff]  ;;  %v2063_v33 = vcombine.high %v2467_v25, %v2470_v26  ;;  %v2062_v9 = vcombine.low %v2467_v25, %v2470_v26  ;;  %v319_v25 = vld [vmem:[%s2258_s19 + $0x418] sm:$0xff] }
  0x56   : > { %1405 = vmatpush1.bf16.msra.mxu0 %v2138_v34  ;;  %1215 = vmatprep.mubr.bf16.mxu0 %v2397_v35  ;;  %v2125_v34 = vcombine.high %v310_v27, %v314_v28  ;;  %v323_v26 = vld [vmem:[%s2258_s19 + $0x438] sm:$0xff] }
  0x57   : > { %1406 = vmatprep.subr.bf16.mxu0 %v2131_v37  ;;  %v306_v37 = vld [vmem:[%s2258_s19 + $0x3b0] sm:$0xff] }
  0x58   : > { %1348 = vmatpush2.bf16.msra.mxu1 %v2074_v36  ;;  %v302_v36 = vld [vmem:[%s2258_s19 + $0x390] sm:$0xff] }
  0x59   : > { %1349 = vmatprep.subr.bf16.mxu1 %v2067_v38  ;;  %v2124_v38 = vcombine.low %v310_v27, %v314_v28  ;;  %v2117_v39 = vcombine.high %v302_v36, %v306_v37  ;;  %v2116_v42 = vcombine.low %v302_v36, %v306_v37  ;;  %v215_v28 = vld [vmem:[%s2258_s19 + $0xd8] sm:$0xff] }
  0x5a   : > { %1407 = vmatpush1.bf16.msra.mxu0 %v2130_v43  ;;  %v2109_v43 = vcombine.high %v294_v40, %v298_v41  ;;  %v207_v37 = vld [vmem:[%s2258_s19 + $0x98] sm:$0xff] }
  0x5b   : > { %1550 = vmatprep.subr.bf16.mxu0 %v2141_v45  ;;  %v290_v45 = vld [vmem:[%s2258_s19 + $0x330] sm:$0xff] }
  0x5c   : > { %1350 = vmatpush2.bf16.msra.mxu1 %v2066_v44  ;;  %v286_v44 = vld [vmem:[%s2258_s19 + $0x310] sm:$0xff] }
  0x5d   : > { %1465 = vmatprep.subr.bf16.mxu1 %v2061_v47  ;;  %1216 = vmatmul.mubr.bf16.gmra.mxu0 %v2414_v48  ;;  %v2108_v47 = vcombine.low %v294_v40, %v298_v41  ;;  %v2101_v49 = vcombine.high %v286_v44, %v290_v45 }
  0x5e   : > { %1225 = vmatprep.mubr.bf16.mxu0 %v2421_v51 }
  0x5f   : > { %1352 = vmatmul.mubr.bf16.vlgmr.msra.gmra.mxu1 %v2390_v31 }
  0x60   : > { %1466 = vmatpush1.bf16.msra.mxu1 %v2060_v52  ;;  %1361 = vmatprep.mubr.bf16.mxu1 %v2397_v35  ;;  %v282_v52 = vld [vmem:[%s2258_s19 + $0x2f0] sm:$0xff] }
  0x61   : > { %1467 = vmatprep.subr.bf16.mxu1 %v2053_v53  ;;  %v2100_v53 = vcombine.low %v286_v44, %v290_v45  ;;  %v2093_v54 = vcombine.high %v278_v50, %v282_v52 }
  0x64   : > { %1468 = vmatpush1.bf16.msra.mxu1 %v2052_v56  ;;  %v274_v56 = vld [vmem:[%s2258_s19 + $0x2b0] sm:$0xff] }
  0x65   : > { %1469 = vmatprep.subr.bf16.mxu1 %v2045_v57  ;;  %1226 = vmatmul.mubr.bf16.gmra.mxu0 %v2432_v58  ;;  %v2092_v57 = vcombine.low %v278_v50, %v282_v52  ;;  %v2085_v59 = vcombine.high %v270_v55, %v274_v56 }
  0x66   : > { %1235 = vmatprep.mubr.bf16.mxu0 %v2439_v61 }
  0x67   : > { %1362 = vmatmul.mubr.bf16.gmra.mxu1 %v2414_v48 }
  0x68   : > { %1470 = vmatpush1.bf16.msra.mxu1 %v2044_v62  ;;  %1371 = vmatprep.mubr.bf16.mxu1 %v2421_v51  ;;  %v266_v62 = vld [vmem:[%s2258_s19 + $0x270] sm:$0xff] }
  0x69   : > { %1471 = vmatprep.subr.bf16.mxu1 %v2037_v2  ;;  %v2084_v2 = vcombine.low %v270_v55, %v274_v56  ;;  %v2077_v3 = vcombine.high %v262_v60, %v266_v62 }
  0x6c   : > { %1472 = vmatpush1.bf16.msra.mxu1 %v2036_v5  ;;  %v243_v5 = vld [vmem:[%s2258_s19 + $0x1b8] sm:$0xff] }
  0x6d   : > { %1473 = vmatprep.subr.bf16.mxu1 %v2029_v6  ;;  %1236 = vmatmul.mubr.bf16.gmra.mxu0 %v2450_v7  ;;  %v254_v6 = vld [vmem:[%s2258_s19 + $0x210] sm:$0xff]  ;;  %v2054_v17 = vcombine.low %v239_v4, %v243_v5 }
  0x6e   : > { %1424 = vmatprep.mubr.bf16.mxu0 %v2215_v0  ;;  %v2069_v12 = vcombine.high %v254_v6, %v258_v8  ;;  %v2068_v19 = vcombine.low %v254_v6, %v258_v8  ;;  %v287_v6 = vld [vmem:[%s2258_s19 + $0x318] sm:$0xff] }
  0x6f   : > { %1372 = vmatmul.mubr.bf16.gmra.mxu1 %v2432_v58 }
  0x70   : > { %1474 = vmatpush1.bf16.msra.mxu1 %v2028_v10  ;;  %1381 = vmatprep.mubr.bf16.mxu1 %v2439_v61  ;;  %v2076_v10 = vcombine.low %v262_v60, %v266_v62 }
  0x71   : > { %1475 = vmatprep.subr.bf16.mxu1 %v2021_v11  ;;  %v2055_v11 = vcombine.high %v239_v4, %v243_v5 }
  0x74   : > { %1476 = vmatpush1.bf16.msra.mxu1 %v2020_v14  ;;  %v235_v14 = vld [vmem:[%s2258_s19 + $0x178] sm:$0xff] }
  0x75   : > { %1477 = vmatprep.subr.bf16.mxu1 %v2013_v15  ;;  %2148 = vmatmul.mubr.msk.bf16.vlgmr.msra.gmra.mxu0 %vm1160_vm0, %v2280_v29  ;;  %v327_v15 = vld [vmem:[%s2258_s19 + $0x458] sm:$0xff]  ;;  %v2047_v20 = vcombine.high %v231_v13, %v235_v14 }
  0x76   : > { %1551 = vmatpush1.bf16.msra.mxu0 %v2140_v21  ;;  %1434 = vmatprep.mubr.bf16.mxu0 %v2215_v0  ;;  %v223_v21 = vld [vmem:[%s2258_s19 + $0x118] sm:$0xff] }
  0x77   : > { %1552 = vmatprep.subr.bf16.mxu0 %v2133_v23  ;;  %1382 = vmatmul.mubr.bf16.gmra.mxu1 %v2450_v7  ;;  %v2143_v23 = vcombine.high %v327_v15, %v331_v16 }
  0x78   : > { %1478 = vmatpush1.bf16.msra.mxu1 %v2012_v22  ;;  %1497 = vmatprep.mubr.bf16.mxu1 %v2253_v1  ;;  %v227_v22 = vld [vmem:[%s2258_s19 + $0x138] sm:$0xff] }
  0x79   : > { %1479 = vmatprep.subr.bf16.mxu1 %v2005_v24  ;;  %v2046_v24 = vcombine.low %v231_v13, %v235_v14  ;;  %v2039_v27 = vcombine.high %v223_v21, %v227_v22  ;;  %v271_v14 = vld [vmem:[%s2258_s19 + $0x298] sm:$0xff] }
  0x7a   : > { %1553 = vmatpush1.bf16.msra.mxu0 %v2132_v30  ;;  %v219_v30 = vld [vmem:[%s2258_s19 + $0xf8] sm:$0xff] }
  0x7b   : > { %1611 = vmatprep.subr.bf16.mxu0 %v2063_v33  ;;  %v2135_v33 = vcombine.high %v319_v25, %v323_v26  ;;  %v2031_v36 = vcombine.high %v215_v28, %v219_v30  ;;  %v2030_v40 = vcombine.low %v215_v28, %v219_v30 }
  0x7c   : > { %1480 = vmatpush1.bf16.msra.mxu1 %v2004_v32  ;;  %v2142_v32 = vcombine.low %v327_v15, %v331_v16  ;;  %v275_v15 = vld [vmem:[%s2258_s19 + $0x2b8] sm:$0xff] }
  0x7d   : > { %1481 = vmatprep.subr.bf16.mxu1 %v2125_v34  ;;  %2149 = vmatmul.mubr.msk.bf16.gmra.mxu0 %vm1160_vm0, %v2296_v46  ;;  %v2038_v34 = vcombine.low %v223_v21, %v227_v22  ;;  %v2086_v21 = vcombine.low %v271_v14, %v275_v15  ;;  %v255_v22 = vld [vmem:[%s2258_s19 + $0x218] sm:$0xff] }
  0x7e   : > { %1444 = vmatprep.mubr.bf16.mxu0 %v2215_v0 }
  0x80   : > { %1482 = vmatpush2.bf16.msra.mxu1 %v2124_v38  ;;  %v211_v38 = vld [vmem:[%s2258_s19 + $0xb8] sm:$0xff] }
  0x81   : > { %1483 = vmatprep.subr.bf16.mxu1 %v2117_v39  ;;  %v2134_v39 = vcombine.low %v319_v25, %v323_v26  ;;  %v2023_v41 = vcombine.high %v207_v37, %v211_v38  ;;  %v2022_v44 = vcombine.low %v207_v37, %v211_v38 }
  0x84   : > { %1484 = vmatpush2.bf16.msra.mxu1 %v2116_v42  ;;  %v199_v42 = vld [vmem:[%s2258_s19 + $0x58] sm:$0xff] }
  0x85   : > { %1485 = vmatprep.subr.bf16.mxu1 %v2109_v43  ;;  %2150 = vmatmul.mubr.msk.bf16.gmra.mxu0 %vm1160_vm0, %v2312_v63  ;;  %v203_v43 = vld [vmem:[%s2258_s19 + $0x78] sm:$0xff] }
  0x86   : > { %1454 = vmatprep.mubr.bf16.mxu0 %v2215_v0  ;;  %v2015_v45 = vcombine.high %v199_v42, %v203_v43  ;;  %v2014_v50 = vcombine.low %v199_v42, %v203_v43 }
  0x88   : > { %1486 = vmatpush2.bf16.msra.mxu1 %v2108_v47  ;;  %v191_v47 = vld [vmem:[%s2258_s19 + $0x18] sm:$0xff] }
  0x89   : > { %1487 = vmatprep.subr.bf16.mxu1 %v2101_v49  ;;  %v195_v49 = vld [vmem:[%s2258_s19 + $0x38] sm:$0xff] }
  0x8a   : > { %v2007_v52 = vcombine.high %v191_v47, %v195_v49  ;;  %v2006_v55 = vcombine.low %v191_v47, %v195_v49 }
  0x8c   : > { %1488 = vmatpush2.bf16.msra.mxu1 %v2100_v53  ;;  %v311_v53 = vld [vmem:[%s2258_s19 + $0x3d8] sm:$0xff] }
  0x8d   : > { %1489 = vmatprep.subr.bf16.mxu1 %v2093_v54  ;;  %2151 = vmatmul.mubr.msk.bf16.gmra.mxu0 %vm1160_vm0, %v2328_v18  ;;  %v315_v54 = vld [vmem:[%s2258_s19 + $0x3f8] sm:$0xff] }
  0x8e   : > { %1570 = vmatprep.mubr.bf16.mxu0 %v2215_v0  ;;  %v2127_v56 = vcombine.high %v311_v53, %v315_v54  ;;  %v2126_v60 = vcombine.low %v311_v53, %v315_v54 }
  0x90   : > { %1490 = vmatpush2.bf16.msra.mxu1 %v2092_v57  ;;  %v303_v57 = vld [vmem:[%s2258_s19 + $0x398] sm:$0xff] }
  0x91   : > { %1491 = vmatprep.subr.bf16.mxu1 %v2085_v59  ;;  %v307_v59 = vld [vmem:[%s2258_s19 + $0x3b8] sm:$0xff] }
  0x92   : > { %v2119_v62 = vcombine.high %v303_v57, %v307_v59  ;;  %v2118_v4 = vcombine.low %v303_v57, %v307_v59 }
  0x94   : > { %1492 = vmatpush2.bf16.msra.mxu1 %v2084_v2  ;;  %v295_v2 = vld [vmem:[%s2258_s19 + $0x358] sm:$0xff] }
  0x95   : > { %1493 = vmatprep.subr.bf16.mxu1 %v2077_v3  ;;  %2152 = vmatmul.mubr.msk.bf16.vlgmr.msra.gmra.mxu0 %vm1160_vm0, %v2280_v29  ;;  %v299_v3 = vld [vmem:[%s2258_s19 + $0x378] sm:$0xff] }
  0x96   : > { %1612 = vmatpush1.bf16.msra.mxu0 %v2062_v9  ;;  %1580 = vmatprep.mubr.bf16.mxu0 %v2215_v0  ;;  %v2111_v5 = vcombine.high %v295_v2, %v299_v3  ;;  %v2110_v8 = vcombine.low %v295_v2, %v299_v3 }
  0x97   : > { %1613 = vmatprep.subr.bf16.mxu0 %v2055_v11  ;;  %v283_v11 = vld [vmem:[%s2258_s19 + $0x2f8] sm:$0xff] }
  0x98   : > { %1494 = vmatpush2.bf16.msra.mxu1 %v2076_v10  ;;  %v279_v10 = vld [vmem:[%s2258_s19 + $0x2d8] sm:$0xff] }
  0x99   : > { %1495 = vmatprep.subr.bf16.mxu1 %v2069_v12  ;;  %v2095_v13 = vcombine.high %v279_v10, %v283_v11  ;;  %v2094_v16 = vcombine.low %v279_v10, %v283_v11 }
  0x9a   : > { %1614 = vmatpush1.bf16.msra.mxu0 %v2054_v17  ;;  %v2087_v17 = vcombine.high %v271_v14, %v275_v15 }
  0x9b   : > { %1615 = vmatprep.subr.bf16.mxu0 %v2047_v20  ;;  %v267_v20 = vld [vmem:[%s2258_s19 + $0x278] sm:$0xff] }
  0x9c   : > { %1496 = vmatpush2.bf16.msra.mxu1 %v2068_v19  ;;  %v263_v19 = vld [vmem:[%s2258_s19 + $0x258] sm:$0xff] }
  0x9d   : > { %1696 = vmatprep.subr.bf16.mxu1 %v2143_v23  ;;  %2153 = vmatmul.mubr.msk.bf16.gmra.mxu0 %vm1160_vm0, %v2296_v46  ;;  %v259_v23 = vld [vmem:[%s2258_s19 + $0x238] sm:$0xff]  ;;  %v2586_v42 = vpop.permute.xlu1 %352 }
  0x9e   : > { %1616 = vmatpush1.bf16.msra.mxu0 %v2046_v24  ;;  %1590 = vmatprep.mubr.bf16.mxu0 %v2215_v0  ;;  %v2078_v24 = vcombine.low %v263_v19, %v267_v20  ;;  %v2071_v25 = vcombine.high %v255_v22, %v259_v23  ;;  %v2070_v26 = vcombine.low %v255_v22, %v259_v23 }
  0x9f   : > { %1498 = vmatmul.mubr.bf16.vlgmr.msra.gmra.mxu1 %v2390_v31  ;;  %1617 = vmatprep.subr.bf16.mxu0 %v2039_v27 }
  0xa0   : > { %1507 = vmatprep.mubr.bf16.mxu1 %v2397_v35  ;;  %1697 = vmatpush1.bf16.msra.mxu1 %v2142_v32 }
  0xa1   : > { %1698 = vmatprep.subr.bf16.mxu1 %v2135_v33 }
  0xa2   : > { %1618 = vmatpush1.bf16.msra.mxu0 %v2038_v34 }
  0xa3   : > { %1619 = vmatprep.subr.bf16.mxu0 %v2031_v36 }
  0xa4   : > { %1699 = vmatpush1.bf16.msra.mxu1 %v2134_v39  ;;  %v2597_v57 = vpop.permute.xlu1 %357 }
  0xa5   : > { %2154 = vmatmul.mubr.msk.bf16.gmra.mxu0 %vm1160_vm0, %v2312_v63 }
  0xa6   : > { %1620 = vmatpush1.bf16.msra.mxu0 %v2030_v40  ;;  %1600 = vmatprep.mubr.bf16.mxu0 %v2215_v0 }
  0xa7   : > { %1508 = vmatmul.mubr.bf16.gmra.mxu1 %v2414_v48  ;;  %1621 = vmatprep.subr.bf16.mxu0 %v2023_v41 }
  0xa8   : > { %1517 = vmatprep.mubr.bf16.mxu1 %v2421_v51 }
  0xaa   : > { %1622 = vmatpush1.bf16.msra.mxu0 %v2022_v44 }
  0xab   : > { %1623 = vmatprep.subr.bf16.mxu0 %v2015_v45 }
  0xad   : > { %2155 = vmatmul.mubr.msk.bf16.gmra.mxu0 %vm1160_vm0, %v2328_v18 }
  0xae   : > { %1624 = vmatpush1.bf16.msra.mxu0 %v2014_v50  ;;  %1643 = vmatprep.mubr.bf16.mxu0 %v2253_v1  ;;  %v291_v1 = vld [vmem:[%s2258_s19 + $0x338] sm:$0xff]  ;;  %s2170_s19 = sshll.u32 %s2876_s13, 6 }
  0xaf   : > { %1518 = vmatmul.mubr.bf16.gmra.mxu1 %v2432_v58  ;;  %1625 = vmatprep.subr.bf16.mxu0 %v2007_v52  ;;  %v2103_v9 = vcombine.high %v287_v6, %v291_v1  ;;  %v2102_v12 = vcombine.low %v287_v6, %v291_v1  ;;  %s2772_s8 = scalar_lea.vmem %s2840_s3, %s2170_s19 }
  0xb0   : > { %1527 = vmatprep.mubr.bf16.mxu1 %v2439_v61 }
  0xb2   : > { %1626 = vmatpush1.bf16.msra.mxu0 %v2006_v55 }
  0xb3   : > { %1627 = vmatprep.subr.bf16.mxu0 %v2127_v56 }
  0xb6   : > { %1628 = vmatpush2.bf16.msra.mxu0 %v2126_v60 }
  0xb7   : > { %1528 = vmatmul.mubr.bf16.gmra.mxu1 %v2450_v7  ;;  %1629 = vmatprep.subr.bf16.mxu0 %v2119_v62 }
  0xb8   : > { %1716 = vmatprep.mubr.bf16.mxu1 %v2215_v0 }
  0xba   : > { %1630 = vmatpush2.bf16.msra.mxu0 %v2118_v4 }
  0xbb   : > { %1631 = vmatprep.subr.bf16.mxu0 %v2111_v5 }
  0xbe   : > { %1632 = vmatpush2.bf16.msra.mxu0 %v2110_v8 }
  0xbf   : > { %2156 = vmatmul.mubr.msk.bf16.vlgmr.msra.gmra.mxu1 %vm1160_vm0, %v2280_v29  ;;  %1633 = vmatprep.subr.bf16.mxu0 %v2103_v9  ;;  %v2079_v29 = vcombine.high %v263_v19, %v267_v20 }
  0xc0   : > { %1726 = vmatprep.mubr.bf16.mxu1 %v2215_v0 }
  0xc2   : > { %1634 = vmatpush2.bf16.msra.mxu0 %v2102_v12 }
  0xc3   : > { %1635 = vmatprep.subr.bf16.mxu0 %v2095_v13 }
  0xc6   : > { %1636 = vmatpush2.bf16.msra.mxu0 %v2094_v16  ;;  %v2613_v16 = vpop.permute.xlu1 %367 }
  0xc7   : > { %2157 = vmatmul.mubr.msk.bf16.gmra.mxu1 %vm1160_vm0, %v2296_v46  ;;  %1637 = vmatprep.subr.bf16.mxu0 %v2087_v17 }
  0xc8   : > { %1736 = vmatprep.mubr.bf16.mxu1 %v2215_v0 }
  0xca   : > { %1638 = vmatpush2.bf16.msra.mxu0 %v2086_v21 }
  0xcb   : > { %1639 = vmatprep.subr.bf16.mxu0 %v2079_v29 }
  0xce   : > { %1640 = vmatpush2.bf16.msra.mxu0 %v2078_v24 }
  0xcf   : > { %2158 = vmatmul.mubr.msk.bf16.gmra.mxu1 %vm1160_vm0, %v2312_v63  ;;  %1641 = vmatprep.subr.bf16.mxu0 %v2071_v25 }
  0xd0   : > { %1746 = vmatprep.mubr.bf16.mxu1 %v2215_v0 }
  0xd2   : > { %1642 = vmatpush2.bf16.msra.mxu0 %v2070_v26 }
  0xd5   : > { %1644 = vmatmul.mubr.bf16.vlgmr.msra.gmra.mxu0 %v2390_v31 }
  0xd6   : > { %1653 = vmatprep.mubr.bf16.mxu0 %v2397_v35 }
  0xd7   : > { %2159 = vmatmul.mubr.msk.bf16.gmra.mxu1 %vm1160_vm0, %v2328_v18 }
  0xdd   : > { %1654 = vmatmul.mubr.bf16.gmra.mxu0 %v2414_v48 }
  0xde   : > { %1663 = vmatprep.mubr.bf16.mxu0 %v2421_v51  ;;  %v2578_v51 = vpop.permute.xlu0 %342 }
  0xdf   : > { %v1280_v46 = vpop.f32.mrf.mxu1 }
  0xe1   : > { %v1282_v27 = vpop.f32.mrf.mxu1 }
  0xe2   : > { %v2581_v39 = vpop.permute.xlu0 %347 }
  0xe3   : > { %v1284_v63 = vpop.f32.mrf.mxu1 }
  0xe5   : > { %1664 = vmatmul.mubr.bf16.gmra.mxu0 %v2432_v58  ;;  %v1286_v0 = vpop.f32.mrf.mxu1 }
  0xe6   : > { %1673 = vmatprep.mubr.bf16.mxu0 %v2439_v61  ;;  %v2605_v1 = vpop.permute.xlu0 %362 }
  0xe7   : > { %v1290_v31 = vpop.f32.mrf.mxu1 }
  0xe9   : > { %v1292_v28 = vpop.f32.mrf.mxu1 }
  0xea   : > { %v2621_v25 = vpop.permute.xlu0 %372 }
  0xeb   : > { %v1294_v35 = vpop.f32.mrf.mxu1 }
  0xed   : > { %1674 = vmatmul.mubr.bf16.gmra.mxu0 %v2450_v7  ;;  %v1296_v30 = vpop.f32.mrf.mxu1 }
  0xef   : > { %v1300_v32 = vpop.f32.mrf.mxu1 }
  0xf1   : > { %v1302_v18 = vpop.f32.mrf.mxu1 }
  0xf3   : > { %v1304_v33 = vpop.f32.mrf.mxu1 }
  0xf5   : > { %v1306_v48 = vpop.f32.mrf.mxu1 }
  0xf7   : > { %v1310_v34 = vpop.f32.mrf.mxu1 }
  0xf9   : > { %v1312_v36 = vpop.f32.mrf.mxu1 }
  0xfb   : > { %v1314_v61 = vpop.f32.mrf.mxu1 }
  0xfd   : > { %v1316_v45 = vpop.f32.mrf.mxu1 }
 0x115   : > { %v1207_v37 = vpop.f32.mrf.mxu0 }
 0x116   : > { %v1208_v58 = vadd.f32 %v1207_v37, %v2578_v51 }
 0x117   : > { %v1209_v38 = vpop.f32.mrf.mxu0 }
 0x118   : > { %v2583_v7 = vadd.f32 %v1280_v46, %v1208_v58  ;;  %v1210_v40 = vadd.f32 %v1209_v38, %v2578_v51 }
 0x119   : > { %v1211_v41 = vpop.f32.mrf.mxu0 }
 0x11a   : > { %v2588_v43 = vadd.f32 %v1282_v27, %v1210_v40  ;;  %v1212_v44 = vadd.f32 %v1211_v41, %v2581_v39 }
 0x11b   : > { %v1213_v47 = vpop.f32.mrf.mxu0 }
 0x11c   : > { %v2591_v49 = vadd.f32 %v1284_v63, %v1212_v44  ;;  %v1214_v50 = vadd.f32 %v1213_v47, %v2581_v39 }
 0x11d   : > { %v1217_v52 = vpop.f32.mrf.mxu0 }
 0x11e   : > { %v2594_v53 = vadd.f32 %v1286_v0, %v1214_v50  ;;  %v1218_v54 = vadd.f32 %v1217_v52, %v2586_v42 }
 0x11f   : > { %v1353_v55 = vpop.f32.mrf.mxu1  ;;  %v1219_v56 = vpop.f32.mrf.mxu0 }
 0x120   : > { %v2599_v59 = vadd.f32 %v1290_v31, %v1218_v54  ;;  %v1220_v60 = vadd.f32 %v1219_v56, %v2586_v42  ;;  %v1354_v38 = vadd.f32 %v1353_v55, %v2578_v51  ;;  %v1757_v56 = vmax.f32 %v2583_v7, 0.0 }
 0x121   : > { %v1355_v62 = vpop.f32.mrf.mxu1  ;;  %v1221_v2 = vpop.f32.mrf.mxu0  ;;  %v1758_v55 = vmax.f32 %v2588_v43, 0.0  ;;  %v1766_v43 = vmax.f32 %v2594_v53, 0.0 }
 0x122   : > { %v2602_v3 = vadd.f32 %v1292_v28, %v1220_v60  ;;  %v1222_v4 = vadd.f32 %v1221_v2, %v2597_v57  ;;  %v1356_v44 = vadd.f32 %v1355_v62, %v2578_v51 }
 0x123   : > { %v1357_v5 = vpop.f32.mrf.mxu1  ;;  %v1223_v6 = vpop.f32.mrf.mxu0 }
 0x124   : > { %v2607_v8 = vadd.f32 %v1294_v35, %v1222_v4  ;;  %v1224_v9 = vadd.f32 %v1223_v6, %v2597_v57  ;;  %v2629_v35 = vpop.permute.xlu1 %377  ;;  %v1358_v52 = vadd.f32 %v1357_v5, %v2581_v39  ;;  %v1765_v5 = vmax.f32 %v2591_v49, 0.0 }
 0x125   : > { %v1359_v10 = vpop.f32.mrf.mxu1  ;;  %v1227_v11 = vpop.f32.mrf.mxu0  ;;  %2843 = vst [vmem:[#allocation2_spill] sm:$0xff] %v2629_v35 }
 0x126   : > { %v2610_v12 = vadd.f32 %v1296_v30, %v1224_v9  ;;  %v1228_v13 = vadd.f32 %v1227_v11, %v2605_v1 }
 0x127   : > { %v1363_v14 = vpop.f32.mrf.mxu1  ;;  %v1229_v15 = vpop.f32.mrf.mxu0 }
 0x128   : > { %v2615_v17 = vadd.f32 %v1300_v32, %v1228_v13  ;;  %v1230_v19 = vadd.f32 %v1229_v15, %v2605_v1 }
 0x129   : > { %v1365_v20 = vpop.f32.mrf.mxu1  ;;  %v1231_v21 = vpop.f32.mrf.mxu0 }
 0x12a   : > { %v2618_v29 = vadd.f32 %v1302_v18, %v1230_v19  ;;  %v1232_v22 = vadd.f32 %v1231_v21, %v2613_v16  ;;  %v1366_v21 = vadd.f32 %v1365_v20, %v2586_v42  ;;  %v1774_v20 = vmax.f32 %v2602_v3, 0.0 }
 0x12b   : > { %v1367_v23 = vpop.f32.mrf.mxu1  ;;  %v1233_v24 = vpop.f32.mrf.mxu0 }
 0x12c   : > { %v2623_v26 = vadd.f32 %v1304_v33, %v1232_v22  ;;  %v1234_v46 = vadd.f32 %v1233_v24, %v2613_v16 }
 0x12d   : > { %v1237_v27 = vpop.f32.mrf.mxu0  ;;  %v1369_v63 = vpop.f32.mrf.mxu1 }
 0x12e   : > { %v2626_v0 = vadd.f32 %v1306_v48, %v1234_v46  ;;  %v1238_v31 = vadd.f32 %v1237_v27, %v2621_v25 }
 0x12f   : > { %v1239_v28 = vpop.f32.mrf.mxu0  ;;  %v1373_v37 = vpop.f32.mrf.mxu1 }
 0x130   : > { %v2631_v30 = vadd.f32 %v1310_v34, %v1238_v31  ;;  %v1240_v32 = vadd.f32 %v1239_v28, %v2621_v25  ;;  %v1368_v31 = vadd.f32 %v1367_v23, %v2597_v57  ;;  %v1781_v23 = vmax.f32 %v2607_v8, 0.0 }
 0x131   : > { %v1241_v18 = vpop.f32.mrf.mxu0  ;;  %v1375_v34 = vpop.f32.mrf.mxu1 }
 0x132   : > { %v2634_v58 = vadd.f32 %v1312_v36, %v1240_v32  ;;  %v1242_v33 = vadd.f32 %v1241_v18, %v2629_v35 }
 0x133   : > { %v1243_v40 = vpop.f32.mrf.mxu0  ;;  %v1377_v6 = vpop.f32.mrf.mxu1 }
 0x134   : > { %v2638_v48 = vadd.f32 %v1314_v61, %v1242_v33  ;;  %v1244_v41 = vadd.f32 %v1243_v40, %v2629_v35  ;;  %v1360_v61 = vadd.f32 %v1359_v10, %v2581_v39  ;;  %v1370_v33 = vadd.f32 %v1369_v63, %v2597_v57 }
 0x135   : > { %v1426_v47 = vpop.f32.mrf.mxu0  ;;  %v1379_v22 = vpop.f32.mrf.mxu1  ;;  %v1782_v63 = vmax.f32 %v2610_v12, 0.0 }
 0x136   : > { %v2642_v50 = vadd.f32 %v1316_v45, %v1244_v41  ;;  %v1427_v54 = vadd.f32 %v1426_v47, %v1354_v38  ;;  %v1364_v45 = vadd.f32 %v1363_v14, %v2586_v42  ;;  %v1773_v14 = vmax.f32 %v2599_v59, 0.0 }
 0x137   : > { %v1428_v36 = vpop.f32.mrf.mxu0  ;;  %v1383_v38 = vpop.f32.mrf.mxu1  ;;  %v1374_v47 = vadd.f32 %v1373_v37, %v2605_v1  ;;  %v1789_v37 = vmax.f32 %v2615_v17, 0.0 }
 0x138   : > { %v1759_v60 = vmax.f32 %v1427_v54, 0.0  ;;  %v1429_v2 = vadd.f32 %v1428_v36, %v1356_v44 }
 0x139   : > { %v1430_v4 = vpop.f32.mrf.mxu0 }
 0x13a   : > { %v2648_v9 = vmax.f32 %v1757_v56, %v1759_v60  ;;  %v1760_v62 = vmax.f32 %v1429_v2, 0.0  ;;  %v1431_v11 = vadd.f32 %v1430_v4, %v1358_v52  ;;  %v1376_v56 = vadd.f32 %v1375_v34, %v2605_v1  ;;  %v1385_v60 = vpop.f32.mrf.mxu1 }
 0x13b   : > { %v1432_v13 = vpop.f32.mrf.mxu0  ;;  %v1378_v4 = vadd.f32 %v1377_v6, %v2613_v16  ;;  %v1790_v34 = vmax.f32 %v2618_v29, 0.0  ;;  %v1797_v6 = vmax.f32 %v2623_v26, 0.0 }
 0x13c   : > { %v2652_v15 = vmax.f32 %v1758_v55, %v1760_v62  ;;  %v1767_v7 = vmax.f32 %v1431_v11, 0.0  ;;  %v1433_v19 = vadd.f32 %v1432_v13, %v1360_v61  ;;  %v1387_v13 = vpop.f32.mrf.mxu1 }
 0x13d   : > { %v1436_v10 = vpop.f32.mrf.mxu0 }
 0x13e   : > { %v2656_v24 = vmax.f32 %v1765_v5, %v1767_v7  ;;  %v1768_v46 = vmax.f32 %v1433_v19, 0.0  ;;  %v1437_v27 = vadd.f32 %v1436_v10, %v1364_v45  ;;  %v1380_v5 = vadd.f32 %v1379_v22, %v2613_v16 }
 0x13f   : > { %v1438_v49 = vpop.f32.mrf.mxu0  ;;  %v1798_v22 = vmax.f32 %v2626_v0, 0.0  ;;  %v1806_v0 = vmax.f32 %v2634_v58, 0.0 }
 0x140   : > { %v2660_v28 = vmax.f32 %v1766_v43, %v1768_v46  ;;  %v1775_v32 = vmax.f32 %v1437_v27, 0.0  ;;  %v1439_v18 = vadd.f32 %v1438_v49, %v1366_v21  ;;  %v1384_v43 = vadd.f32 %v1383_v38, %v2621_v25 }
 0x141   : > { %v1440_v53 = vpop.f32.mrf.mxu0 }
 0x142   : > { %v2664_v40 = vmax.f32 %v1773_v14, %v1775_v32  ;;  %v1776_v41 = vmax.f32 %v1439_v18, 0.0  ;;  %v1441_v44 = vadd.f32 %v1440_v53, %v1368_v31  ;;  %v1386_v31 = vadd.f32 %v1385_v60, %v2621_v25  ;;  %v1389_v14 = vpop.f32.mrf.mxu1 }
 0x143   : > { %v1442_v59 = vpop.f32.mrf.mxu0  ;;  %v1814_v60 = vmax.f32 %v2642_v50, 0.0 }
 0x144   : > { %v2668_v52 = vmax.f32 %v1774_v20, %v1776_v41  ;;  %v1783_v54 = vmax.f32 %v1441_v44, 0.0  ;;  %v1443_v36 = vadd.f32 %v1442_v59, %v1370_v33  ;;  %v1388_v33 = vadd.f32 %v1387_v13, %v2629_v35 }
 0x145   : > { %v1446_v3 = vpop.f32.mrf.mxu0  ;;  %v1805_v20 = vmax.f32 %v2631_v30, 0.0  ;;  %v1390_v44 = vadd.f32 %v1389_v14, %v2629_v35 }
 0x146   : > { %v2672_v2 = vmax.f32 %v1781_v23, %v1783_v54  ;;  %v1784_v55 = vmax.f32 %v1443_v36, 0.0  ;;  %v1447_v61 = vadd.f32 %v1446_v3, %v1374_v47 }
 0x147   : > { %v1448_v8 = vpop.f32.mrf.mxu0 }
 0x148   : > { %v2676_v62 = vmax.f32 %v1782_v63, %v1784_v55  ;;  %v1791_v11 = vmax.f32 %v1447_v61, 0.0  ;;  %v1449_v45 = vadd.f32 %v1448_v8, %v1376_v56  ;;  %v1813_v56 = vmax.f32 %v2638_v48, 0.0 }
 0x149   : > { %v1450_v12 = vpop.f32.mrf.mxu0 }
 0x14a   : > { %2844 = vst [vmem:[#allocation3_spill] sm:$0xff] %v2676_v62  ;;  %v2680_v7 = vmax.f32 %v1789_v37, %v1791_v11  ;;  %v1792_v19 = vmax.f32 %v1449_v45, 0.0  ;;  %v1451_v21 = vadd.f32 %v1450_v12, %v1378_v4 }
 0x14b   : > { %v1452_v17 = vpop.f32.mrf.mxu0 }
 0x14c   : > { %2845 = vst [vmem:[#allocation4_spill] sm:$0xff] %v2680_v7  ;;  %v2684_v10 = vmax.f32 %v1790_v34, %v1792_v19  ;;  %v1799_v46 = vmax.f32 %v1451_v21, 0.0  ;;  %v1453_v27 = vadd.f32 %v1452_v17, %v1380_v5 }
 0x14d   : > { %v1456_v29 = vpop.f32.mrf.mxu0 }
 0x14e   : > { %2846 = vst [vmem:[#allocation5_spill] sm:$0xff] %v2684_v10  ;;  %v2688_v49 = vmax.f32 %v1797_v6, %v1799_v46  ;;  %v1800_v32 = vmax.f32 %v1453_v27, 0.0  ;;  %v1457_v18 = vadd.f32 %v1456_v29, %v1384_v43 }
 0x14f   : > { %v1458_v26 = vpop.f32.mrf.mxu0 }
 0x150   : > { %2847 = vst [vmem:[#allocation6_spill] sm:$0xff] %v2688_v49  ;;  %v2692_v53 = vmax.f32 %v1798_v22, %v1800_v32  ;;  %v1807_v38 = vmax.f32 %v1457_v18, 0.0  ;;  %v1459_v41 = vadd.f32 %v1458_v26, %v1386_v31 }
 0x151   : > { %v1460_v47 = vpop.f32.mrf.mxu0 }
 0x152   : > { %2848 = vst [vmem:[#allocation7_spill] sm:$0xff] %v2692_v53  ;;  %v2696_v23 = vmax.f32 %v1805_v20, %v1807_v38  ;;  %v1808_v59 = vmax.f32 %v1459_v41, 0.0  ;;  %v1461_v54 = vadd.f32 %v1460_v47, %v1388_v33 }
 0x153   : > { %v1462_v36 = vpop.f32.mrf.mxu0 }
 0x154   : > { %2849 = vst [vmem:[#allocation8_spill] sm:$0xff] %v2696_v23  ;;  %v2699_v63 = vmax.f32 %v1806_v0, %v1808_v59  ;;  %v1815_v30 = vmax.f32 %v1461_v54, 0.0  ;;  %v1463_v3 = vadd.f32 %v1462_v36, %v1390_v44 }
 0x155   : > { %v1572_v37 = vpop.f32.mrf.mxu0 }
 0x156   : > { %2850 = vst [vmem:[#allocation9_spill] sm:$0xff] %v2699_v63  ;;  %v2702_v55 = vmax.f32 %v1813_v56, %v1815_v30  ;;  %v1816_v61 = vmax.f32 %v1463_v3, 0.0 }
 0x157   : > { %v1574_v58 = vpop.f32.mrf.mxu0 }
 0x158   : > { %2851 = vst [vmem:[#allocation10_spill] sm:$0xff] %v2702_v55  ;;  %v2704_v4 = vmax.f32 %v1814_v60, %v1816_v61 }
 0x159   : > { %v1576_v45 = vpop.f32.mrf.mxu0 }
 0x15a   : > { %2852 = vst [vmem:[#allocation11_spill] sm:$0xff] %v2704_v4 }
 0x15b   : > { %v1578_v12 = vpop.f32.mrf.mxu0 }
 0x15d   : > { %v1582_v13 = vpop.f32.mrf.mxu0 }
 0x15f   : > { %v1499_v8 = vpop.f32.mrf.mxu1  ;;  %v1584_v43 = vpop.f32.mrf.mxu0 }
 0x160   : > { %v1500_v3 = vadd.f32 %v1499_v8, %v2578_v51 }
 0x161   : > { %v1501_v11 = vpop.f32.mrf.mxu1  ;;  %v1586_v17 = vpop.f32.mrf.mxu0 }
 0x162   : > { %v1502_v61 = vadd.f32 %v1501_v11, %v2578_v51  ;;  %v1573_v55 = vadd.f32 %v1572_v37, %v1500_v3 }
 0x163   : > { %v1503_v5 = vpop.f32.mrf.mxu1  ;;  %v1588_v31 = vpop.f32.mrf.mxu0 }
 0x164   : > { %v1504_v63 = vadd.f32 %v1503_v5, %v2581_v39  ;;  %v1575_v10 = vadd.f32 %v1574_v58, %v1502_v61 }
 0x165   : > { %v1505_v34 = vpop.f32.mrf.mxu1  ;;  %v2716_v14 = vpop.f32.mrf.mxu0 }
 0x166   : > { %v1506_v7 = vadd.f32 %v1505_v34, %v2581_v39 }
 0x167   : > { %v1509_v48 = vpop.f32.mrf.mxu1  ;;  %v2722_v33 = vpop.f32.mrf.mxu0 }
 0x168   : > { %v1510_v11 = vadd.f32 %v1509_v48, %v2586_v42  ;;  %v1579_v34 = vadd.f32 %v1578_v12, %v1506_v7 }
 0x169   : > { %v1511_v19 = vpop.f32.mrf.mxu1  ;;  %v2726_v38 = vpop.f32.mrf.mxu0 }
 0x16a   : > { %v1512_v37 = vadd.f32 %v1511_v19, %v2586_v42  ;;  %v1770_v7 = vmax.f32 %v1579_v34, 0.0 }
 0x16b   : > { %v1513_v21 = vpop.f32.mrf.mxu1  ;;  %v2728_v47 = vpop.f32.mrf.mxu0 }
 0x16c   : > { %v1514_v5 = vadd.f32 %v1513_v21, %v2597_v57  ;;  %v1583_v21 = vadd.f32 %v1582_v13, %v1510_v11 }
 0x16d   : > { %v1515_v6 = vpop.f32.mrf.mxu1  ;;  %v2730_v59 = vpop.f32.mrf.mxu0 }
 0x16e   : > { %2855 = vst [vmem:[#allocation14_spill] sm:$0xff] %v2730_v59  ;;  %v1587_v35 = vadd.f32 %v1586_v17, %v1514_v5 }
 0x16f   : > { %v2706_v50 = vpop.f32.mrf.mxu1  ;;  %v2732_v36 = vpop.f32.mrf.mxu0 }
 0x170   : > { %2856 = vst [vmem:[#allocation15_spill] sm:$0xff] %v2732_v36  ;;  %v1520_v12 = vadd.f32 %v2706_v50, %v2605_v1  ;;  %v1785_v11 = vmax.f32 %v1587_v35, 0.0 }
 0x171   : > { %v2708_v46 = vpop.f32.mrf.mxu1  ;;  %v2736_v30 = vpop.f32.mrf.mxu0 }
 0x172   : > { %2857 = vst [vmem:[#allocation16_spill] sm:$0xff] %v2736_v30  ;;  %v1593_v35 = vadd.f32 %v2716_v14, %v1520_v12 }
 0x173   : > { %v2710_v27 = vpop.f32.mrf.mxu1  ;;  %v2742_v4 = vpop.f32.mrf.mxu0 }
 0x174   : > { %2858 = vst [vmem:[#allocation17_spill] sm:$0xff] %v2742_v4 }
 0x175   : > { %v2712_v22 = vpop.f32.mrf.mxu1 }
 0x177   : > { %v2714_v29 = vpop.f32.mrf.mxu1 }
 0x179   : > { %v2718_v32 = vpop.f32.mrf.mxu1 }
 0x17b   : > { %v2720_v18 = vpop.f32.mrf.mxu1 }
 0x17c   : > { %2853 = vst [vmem:[#allocation12_spill] sm:$0xff] %v2720_v18  ;;  %v1577_v18 = vadd.f32 %v1576_v45, %v1504_v63 }
 0x17d   : > { %v2724_v20 = vpop.f32.mrf.mxu1 }
 0x17e   : > { %2854 = vst [vmem:[#allocation13_spill] sm:$0xff] %v2724_v20  ;;  %v1761_v20 = vmax.f32 %v1573_v55, 0.0 }
 0x17f   : > { %v1718_v26 = vpop.f32.mrf.mxu1 }
 0x181   : > { %v1720_v41 = vpop.f32.mrf.mxu1 }
 0x183   : > { %v1722_v44 = vpop.f32.mrf.mxu1 }
 0x185   : > { %v1724_v0 = vpop.f32.mrf.mxu1 }
 0x187   : > { %v1728_v54 = vpop.f32.mrf.mxu1 }
 0x189   : > { %v2734_v56 = vpop.f32.mrf.mxu1 }
 0x18b   : > { %v2739_v60 = vpop.f32.mrf.mxu1 }
 0x18d   : > { %v2745_v53 = vpop.f32.mrf.mxu1 }
 0x18f   : > { %v2753_v4 = vpop.f32.mrf.mxu1 }
 0x191   : > { %v2758_v62 = vpop.f32.mrf.mxu1 }
 0x195   : > { %v1645_v23 = vpop.f32.mrf.mxu0 }
 0x196   : > { %v1646_v49 = vadd.f32 %v1645_v23, %v2578_v51  ;;  %v1516_v23 = vadd.f32 %v1515_v6, %v2597_v57 }
 0x197   : > { %v1647_v30 = vpop.f32.mrf.mxu0 }
 0x198   : > { %v1719_v8 = vadd.f32 %v1718_v26, %v1646_v49  ;;  %v1648_v36 = vadd.f32 %v1647_v30, %v2578_v51  ;;  %v1762_v49 = vmax.f32 %v1575_v10, 0.0  ;;  %v1769_v26 = vmax.f32 %v1577_v18, 0.0 }
 0x199   : > { %v1649_v3 = vpop.f32.mrf.mxu0  ;;  %v1585_v30 = vadd.f32 %v1584_v43, %v1512_v37  ;;  %v2760_v6 = vadd.f32 %v1588_v31, %v1516_v23 }
 0x19a   : > { %v1763_v58 = vmax.f32 %v1719_v8, 0.0  ;;  %v1721_v61 = vadd.f32 %v1720_v41, %v1648_v36  ;;  %v1650_v55 = vadd.f32 %v1649_v3, %v2581_v39 }
 0x19b   : > { %v1651_v51 = vpop.f32.mrf.mxu0  ;;  %v1778_v8 = vmax.f32 %v1585_v30, 0.0 }
 0x19c   : > { %v1837_v63 = vmax.f32 %v1761_v20, %v1763_v58  ;;  %v1764_v45 = vmax.f32 %v1721_v61, 0.0  ;;  %v1723_v48 = vadd.f32 %v1722_v44, %v1650_v55  ;;  %v1652_v19 = vadd.f32 %v1651_v51, %v2581_v39 }
 0x19d   : > { %v1655_v59 = vpop.f32.mrf.mxu0  ;;  %v1777_v44 = vmax.f32 %v1583_v21, 0.0 }
 0x19e   : > { %v1838_v41 = vmax.f32 %v1762_v49, %v1764_v45  ;;  %v1771_v36 = vmax.f32 %v1723_v48, 0.0  ;;  %v1725_v10 = vadd.f32 %v1724_v0, %v1652_v19  ;;  %v1853_v20 = vmax.f32 %v2648_v9, %v1837_v63  ;;  %v1742_v0 = vpop.f32.mrf.mxu1 }
 0x19f   : > { %v1656_v39 = vadd.f32 %v1655_v59, %v2586_v42  ;;  %v1657_v13 = vpop.f32.mrf.mxu0  ;;  %v1786_v59 = vmax.f32 %v2760_v6, 0.0  ;;  %v1793_v19 = vmax.f32 %v1593_v35, 0.0 }
 0x1a0   : > { %v1854_v43 = vmax.f32 %v2652_v15, %v1838_v41  ;;  %v1839_v17 = vmax.f32 %v1769_v26, %v1771_v36  ;;  %v1772_v18 = vmax.f32 %v1725_v10, 0.0  ;;  %v1658_v31 = vadd.f32 %v1657_v13, %v2586_v42  ;;  %v1744_v63 = vpop.f32.mrf.mxu1 }
 0x1a1   : > { %v1729_v50 = vadd.f32 %v1728_v54, %v1656_v39  ;;  %v1659_v9 = vpop.f32.mrf.mxu0  ;;  %v1522_v42 = vadd.f32 %v2708_v46, %v2605_v1  ;;  %v1526_v46 = vadd.f32 %v2712_v22, %v2613_v16  ;;  %v1530_v41 = vadd.f32 %v2714_v29, %v2621_v25  ;;  %v2859_v29 = vld [vmem:[#allocation3_spill] sm:$0xff] }
 0x1a2   : > { %v2171_v37 = vpack.c.bf16 %v1854_v43, %v1853_v20  ;;  %v1840_v15 = vmax.f32 %v1770_v7, %v1772_v18  ;;  %v1731_v5 = vadd.f32 %v2734_v56, %v1658_v31  ;;  %v1660_v23 = vadd.f32 %v1659_v9, %v2597_v57  ;;  %v1748_v10 = vpop.f32.mrf.mxu1 }
 0x1a3   : > { %v1779_v3 = vmax.f32 %v1729_v50, 0.0  ;;  %v1661_v58 = vpop.f32.mrf.mxu0  ;;  %v1855_v54 = vmax.f32 %v2656_v24, %v1839_v17  ;;  %v1524_v56 = vadd.f32 %v2710_v27, %v2613_v16 }
 0x1a4   : > { %1917 = vst [vmem:[%s2772_s8] sm:$0xff] %v2171_v37  ;;  %v1856_v61 = vmax.f32 %v2660_v28, %v1840_v15  ;;  %v1780_v55 = vmax.f32 %v1731_v5, 0.0  ;;  %v1662_v49 = vadd.f32 %v1661_v58, %v2597_v57  ;;  %v1733_v34 = vadd.f32 %v2739_v60, %v1660_v23  ;;  %v1750_v9 = vpop.f32.mrf.mxu1 }
 0x1a5   : > { %v1841_v14 = vmax.f32 %v1777_v44, %v1779_v3  ;;  %v1665_v51 = vpop.f32.mrf.mxu0  ;;  %v1595_v57 = vadd.f32 %v2722_v33, %v1522_v42  ;;  %v1599_v33 = vadd.f32 %v2728_v47, %v1526_v46  ;;  %v2860_v44 = vld [vmem:[#allocation14_spill] sm:$0xff]  ;;  %v2863_v42 = vld [vmem:[#allocation15_spill] sm:$0xff]  ;;  %v2864_v3 = vld [vmem:[#allocation13_spill] sm:$0xff] }
 0x1a6   : > { %v2172_v45 = vpack.c.bf16 %v1856_v61, %v1855_v54  ;;  %v1842_v48 = vmax.f32 %v1778_v8, %v1780_v55  ;;  %v1735_v24 = vadd.f32 %v2745_v53, %v1662_v49  ;;  %v1666_v28 = vadd.f32 %v1665_v51, %v2605_v1  ;;  %v2861_v8 = vld [vmem:[#allocation2_spill] sm:$0xff]  ;;  %v2865_v61 = vld [vmem:[#allocation4_spill] sm:$0xff]  ;;  %v2866_v49 = vld [vmem:[#allocation5_spill] sm:$0xff] }
 0x1a7   : > { %v1857_v26 = vmax.f32 %v2664_v40, %v1841_v14  ;;  %v1787_v27 = vmax.f32 %v1733_v34, 0.0  ;;  %v1667_v21 = vpop.f32.mrf.mxu0  ;;  %v1597_v53 = vadd.f32 %v2726_v38, %v1524_v56  ;;  %v1794_v39 = vmax.f32 %v1595_v57, 0.0  ;;  %v2867_v34 = vld [vmem:[#allocation16_spill] sm:$0xff] }
 0x1a8   : > { %1918 = vst [vmem:[%s2772_s8 + $0x8] sm:$0xff] %v2172_v45  ;;  %v1858_v22 = vmax.f32 %v2668_v52, %v1842_v48  ;;  %v1788_v30 = vmax.f32 %v1735_v24, 0.0  ;;  %v1739_v60 = vadd.f32 %v2753_v4, %v1666_v28  ;;  %v1668_v6 = vadd.f32 %v1667_v21, %v2605_v1  ;;  %v1752_v48 = vpop.f32.mrf.mxu1  ;;  %v2868_v21 = vld [vmem:[#allocation17_spill] sm:$0xff] }
 0x1a9   : > { %v1843_v36 = vmax.f32 %v1785_v11, %v1787_v27  ;;  %v1669_v40 = vpop.f32.mrf.mxu0  ;;  %v1532_v1 = vadd.f32 %v2718_v32, %v2621_v25  ;;  %v1801_v31 = vmax.f32 %v1597_v53, 0.0  ;;  %v2862_v11 = vld [vmem:[#allocation12_spill] sm:$0xff]  ;;  %v1536_v23 = vadd.f32 %v2864_v3, %v2861_v8  ;;  %v2870_v53 = vld [vmem:[#allocation7_spill] sm:$0xff] }
 0x1aa   : > { %v2173_v7 = vpack.c.bf16 %v1858_v22, %v1857_v26  ;;  %v1844_v12 = vmax.f32 %v1786_v59, %v1788_v30  ;;  %v1795_v20 = vmax.f32 %v1739_v60, 0.0  ;;  %v1741_v52 = vadd.f32 %v2758_v62, %v1668_v6  ;;  %v2869_v30 = vld [vmem:[#allocation6_spill] sm:$0xff] }
 0x1ab   : > { %v1859_v4 = vmax.f32 %v2672_v2, %v1843_v36  ;;  %v1670_v38 = vadd.f32 %v1669_v40, %v2613_v16  ;;  %v1671_v13 = vpop.f32.mrf.mxu0  ;;  %v1603_v62 = vadd.f32 %v2860_v44, %v1530_v41  ;;  %v1534_v50 = vadd.f32 %v2862_v11, %v2861_v8  ;;  %v2873_v44 = vld [vmem:[#allocation10_spill] sm:$0xff] }
 0x1ac   : > { %1919 = vst [vmem:[%s2772_s8 + $0x10] sm:$0xff] %v2173_v7  ;;  %v1860_v47 = vmax.f32 %v2859_v29, %v1844_v12  ;;  %v1845_v43 = vmax.f32 %v1793_v19, %v1795_v20  ;;  %v1796_v17 = vmax.f32 %v1741_v52, 0.0  ;;  %v1672_v18 = vadd.f32 %v1671_v13, %v2613_v16  ;;  %v1754_v12 = vpop.f32.mrf.mxu1  ;;  %v2872_v29 = vld [vmem:[#allocation9_spill] sm:$0xff] }
 0x1ad   : > { %v1743_v32 = vadd.f32 %v1742_v0, %v1670_v38  ;;  %v1675_v2 = vpop.f32.mrf.mxu0  ;;  %v1802_v59 = vmax.f32 %v1599_v33, 0.0  ;;  %v1605_v35 = vadd.f32 %v2863_v42, %v1532_v1  ;;  %v1809_v14 = vmax.f32 %v1603_v62, 0.0  ;;  %v2871_v38 = vld [vmem:[#allocation8_spill] sm:$0xff] }
 0x1ae   : > { %v2174_v37 = vpack.c.bf16 %v1860_v47, %v1859_v4  ;;  %v1846_v15 = vmax.f32 %v1794_v39, %v1796_v17  ;;  %v1745_v5 = vadd.f32 %v1744_v63, %v1672_v18  ;;  %v1676_v58 = vadd.f32 %v1675_v2, %v2621_v25 }
 0x1af   : > { %v1803_v16 = vmax.f32 %v1743_v32, 0.0  ;;  %v1677_v54 = vpop.f32.mrf.mxu0  ;;  %v1861_v55 = vmax.f32 %v2865_v61, %v1845_v43  ;;  %v1607_v51 = vadd.f32 %v2867_v34, %v1534_v50  ;;  %v1810_v27 = vmax.f32 %v1605_v35, 0.0 }
 0x1b0   : > { %1920 = vst [vmem:[%s2772_s8 + $0x18] sm:$0xff] %v2174_v37  ;;  %v1862_v0 = vmax.f32 %v2866_v49, %v1846_v15  ;;  %v1804_v56 = vmax.f32 %v1745_v5, 0.0  ;;  %v1678_v46 = vadd.f32 %v1677_v54, %v2621_v25  ;;  %v1749_v45 = vadd.f32 %v1748_v10, %v1676_v58 }
 0x1b1   : > { %v1847_v63 = vmax.f32 %v1801_v31, %v1803_v16  ;;  %v1679_v24 = vpop.f32.mrf.mxu0  ;;  %v1609_v22 = vadd.f32 %v2868_v21, %v1536_v23  ;;  %v1817_v10 = vmax.f32 %v1607_v51, 0.0 }
 0x1b2   : > { %v2175_v28 = vpack.c.bf16 %v1862_v0, %v1861_v55  ;;  %v1848_v19 = vmax.f32 %v1802_v59, %v1804_v56  ;;  %v1751_v57 = vadd.f32 %v1750_v9, %v1678_v46  ;;  %v1680_v26 = vadd.f32 %v1679_v24, %v2861_v8 }
 0x1b3   : > { %v1863_v60 = vmax.f32 %v2869_v30, %v1847_v63  ;;  %v1811_v25 = vmax.f32 %v1749_v45, 0.0  ;;  %v1681_v6 = vpop.f32.mrf.mxu0  ;;  %v1818_v4 = vmax.f32 %v1609_v22, 0.0 }
 0x1b4   : > { %1921 = vst [vmem:[%s2772_s8 + $0x20] sm:$0xff] %v2175_v28  ;;  %v1864_v41 = vmax.f32 %v2870_v53, %v1848_v19  ;;  %v1812_v33 = vmax.f32 %v1751_v57, 0.0  ;;  %v1753_v36 = vadd.f32 %v1752_v48, %v1680_v26  ;;  %v1682_v40 = vadd.f32 %v1681_v6, %v2861_v8  ;;  %v2874_v8 = vld [vmem:[#allocation11_spill] sm:$0xff] }
 0x1b5   : > { %v1849_v7 = vmax.f32 %v1809_v14, %v1811_v25 }
 0x1b6   : > { %v2176_v20 = vpack.c.bf16 %v1864_v41, %v1863_v60  ;;  %v1850_v52 = vmax.f32 %v1810_v27, %v1812_v33  ;;  %v1819_v39 = vmax.f32 %v1753_v36, 0.0  ;;  %v1755_v1 = vadd.f32 %v1754_v12, %v1682_v40 }
 0x1b7   : > { %v1865_v13 = vmax.f32 %v2871_v38, %v1849_v7 }
 0x1b8   : > { %1922 = vst [vmem:[%s2772_s8 + $0x28] sm:$0xff] %v2176_v20  ;;  %v1866_v47 = vmax.f32 %v2872_v29, %v1850_v52  ;;  %v1851_v43 = vmax.f32 %v1817_v10, %v1819_v39  ;;  %v1820_v17 = vmax.f32 %v1755_v1, 0.0 }
 0x1ba   : > { %v2177_v18 = vpack.c.bf16 %v1866_v47, %v1865_v13  ;;  %v1852_v31 = vmax.f32 %v1818_v4, %v1820_v17  ;;  %v1867_v62 = vmax.f32 %v2873_v44, %v1851_v43 }
 0x1bc   : > { %1923 = vst [vmem:[%s2772_s8 + $0x30] sm:$0xff] %v2177_v18  ;;  %v1868_v11 = vmax.f32 %v2874_v8, %v1852_v31 }
 0x1be   : > { %v2178_v50 = vpack.c.bf16 %v1868_v11, %v1867_v62 }
 0x1c0   : > { %1924 = vst [vmem:[%s2772_s8 + $0x38] sm:$0xff] %v2178_v50 }
 0x1c1 PF: > { %s13_s12 = sadd.s32 1, %s2213_s12  }
 0x1c2   : > { %p10_p4 = scmp.ge.s32.totalorder %s13_s12, 4  }
 0x1c4   :  { %12 = sbr.rel (!%p10_p4) target bundleno = 1 (0x1), region = 62 }

// kernel: cnn_forward.5
= control target key start
LH: loop header
LB: loop body
LE: loop exit
PB: predicated region body
PF: predicated region fallthrough
CT: control target
= control target key end

     0   :  { %s8803_s0 = inlined_call_operand.vmem [shape: bf16[2,16384], index: 0, kind: input, shape index: {}]   ;;  %s8804_s1 = inlined_call_operand.vmem [shape: bf16[128,16384], index: 1, kind: input, shape index: {}]   ;;  %s8805_s2 = inlined_call_operand.vmem [shape: f32[1,128], index: 2, kind: input, shape index: {}]   ;;  %s8806_s3 = inlined_call_operand.vmem [shape: f32[128,1], index: 3, kind: input, shape index: {}]   ;;  %s8807_s4 = inlined_call_operand.<no memory space> [shape: f32[1,1], index: 4, kind: input, shape index: {}]   ;;  %s8808_s5 = inlined_call_operand.vmem [shape: f32[2,1], index: 5, kind: output, shape index: {}]  }
   0x1   :  { %v10_v0 = vstv %s8807_s4 }
   0x2   :  { %11 = vst [vmem:[#allocation3] sm:$0x1] %v10_v0 }
   0x3   :  { %s6936_s20 = smov 0   ;;  %s6938_s21 = smov 0  }
   0x4   :  { %s6940_s22 = smov 0  }
   0x5 LB: > { %s6952_s4 = sadd.s32 4294967295, %s6897_s22   ;;  %s6955_s23 = sadd.s32 1, %s6897_s22   ;;  %s6897_s22 = sphi %s6940_s22, %s8811_s22   ;;  %s6893_s21 = sphi %s6938_s21, %s8810_s21   ;;  %s6889_s20 = sphi %s6936_s20, %s8809_s20  }
   0x6   : > { %s47_s24 = ssub.s32 %s6897_s22, %s6955_s23  ;;  %s50_s25 = sadd.s32 1, %s6893_s21 }
   0x7   : > { %p48_p0 = scmp.eq.s32.totalorder %s47_s24, 0  ;;  %p57_p1 = scmp.ne.s32.totalorder %s6893_s21, %s6889_s20 }
   0x8   : > { %p58_p2 = scmp.eq.s32.totalorder %s6897_s22, 0  ;;  %p6261_p4 = scmp.ge.s32.totalorder %s6897_s22, 2 }
   0x9   : > { %s6964_s26 = scalar_select %p48_p0, %s6893_s21, %s50_s25  }
   0xa   : > { %p59_p3 = por %p58_p2, %p57_p1  ;;  %176 = sbr.rel (%p6261_p4) target bundleno = 275 (0x113), region = 28 }
   0xf   : > { %187 = sbr.rel (!%p59_p3) target bundleno = 275 (0x113), region = 36  ;;  %s189_s27 = sand.u32 (%p59_p3), 1, %s6893_s21  }
  0x10   : > { %s6786_s28 = sshll.u32 (%p59_p3), %s6897_s22, 8  ;;  %s6262_s29 = sshll.u32 (%p59_p3), %s189_s27, 12 }
  0x11   : > { %s6972_s7 = scalar_lea.vmem (%p59_p3), %s8804_s1, %s6786_s28  ;;  %s6977_s8 = scalar_lea.vmem (%p59_p3), [#allocation4], %s6262_s29 }
  0x12   : > { %v207_v1 = vld [vmem:[%s6972_s7] sm:$0xff] (%p59_p3)  ;;  %v209_v2 = vld [vmem:[%s6972_s7 + $0x8] sm:$0xff] (%p59_p3)  ;;  %v211_v3 = vld [vmem:[%s6972_s7 + $0x10] sm:$0xff] (%p59_p3) }
  0x13   : > { %208 = vst [vmem:[%s6977_s8] sm:$0xff] (%p59_p3), %v207_v1  ;;  %210 = vst [vmem:[%s6977_s8 + $0x8] sm:$0xff] (%p59_p3), %v209_v2  ;;  %v213_v4 = vld [vmem:[%s6972_s7 + $0x18] sm:$0xff] (%p59_p3)  ;;  %v215_v5 = vld [vmem:[%s6972_s7 + $0x20] sm:$0xff] (%p59_p3) }
  0x14   : > { %212 = vst [vmem:[%s6977_s8 + $0x10] sm:$0xff] %v211_v3  ;;  %v217_v6 = vld [vmem:[%s6972_s7 + $0x28] sm:$0xff]  ;;  %214 = vst [vmem:[%s6977_s8 + $0x18] sm:$0xff] %v213_v4  ;;  %v219_v7 = vld [vmem:[%s6972_s7 + $0x30] sm:$0xff] }
  0x15   : > { %216 = vst [vmem:[%s6977_s8 + $0x20] sm:$0xff] %v215_v5  ;;  %218 = vst [vmem:[%s6977_s8 + $0x28] sm:$0xff] %v217_v6  ;;  %v221_v8 = vld [vmem:[%s6972_s7 + $0x38] sm:$0xff]  ;;  %v223_v9 = vld [vmem:[%s6972_s7 + $0x40] sm:$0xff] }
  0x16   : > { %220 = vst [vmem:[%s6977_s8 + $0x30] sm:$0xff] %v219_v7  ;;  %222 = vst [vmem:[%s6977_s8 + $0x38] sm:$0xff] %v221_v8  ;;  %v225_v10 = vld [vmem:[%s6972_s7 + $0x48] sm:$0xff]  ;;  %v227_v11 = vld [vmem:[%s6972_s7 + $0x50] sm:$0xff] }
  0x17   : > { %224 = vst [vmem:[%s6977_s8 + $0x40] sm:$0xff] %v223_v9  ;;  %v229_v12 = vld [vmem:[%s6972_s7 + $0x58] sm:$0xff]  ;;  %226 = vst [vmem:[%s6977_s8 + $0x48] sm:$0xff] %v225_v10  ;;  %v231_v13 = vld [vmem:[%s6972_s7 + $0x60] sm:$0xff] }
  0x18   : > { %228 = vst [vmem:[%s6977_s8 + $0x50] sm:$0xff] %v227_v11  ;;  %230 = vst [vmem:[%s6977_s8 + $0x58] sm:$0xff] %v229_v12  ;;  %v233_v14 = vld [vmem:[%s6972_s7 + $0x68] sm:$0xff]  ;;  %v235_v15 = vld [vmem:[%s6972_s7 + $0x70] sm:$0xff] }
  0x19   : > { %232 = vst [vmem:[%s6977_s8 + $0x60] sm:$0xff] %v231_v13  ;;  %234 = vst [vmem:[%s6977_s8 + $0x68] sm:$0xff] %v233_v14  ;;  %v237_v16 = vld [vmem:[%s6972_s7 + $0x78] sm:$0xff]  ;;  %v239_v17 = vld [vmem:[%s6972_s7 + $0x80] sm:$0xff] }
  0x1a   : > { %236 = vst [vmem:[%s6977_s8 + $0x70] sm:$0xff] %v235_v15  ;;  %v241_v18 = vld [vmem:[%s6972_s7 + $0x88] sm:$0xff]  ;;  %238 = vst [vmem:[%s6977_s8 + $0x78] sm:$0xff] %v237_v16  ;;  %v243_v19 = vld [vmem:[%s6972_s7 + $0x90] sm:$0xff] }
  0x1b   : > { %240 = vst [vmem:[%s6977_s8 + $0x80] sm:$0xff] %v239_v17  ;;  %242 = vst [vmem:[%s6977_s8 + $0x88] sm:$0xff] %v241_v18  ;;  %v245_v20 = vld [vmem:[%s6972_s7 + $0x98] sm:$0xff]  ;;  %v247_v21 = vld [vmem:[%s6972_s7 + $0xa0] sm:$0xff] }
  0x1c   : > { %244 = vst [vmem:[%s6977_s8 + $0x90] sm:$0xff] %v243_v19  ;;  %246 = vst [vmem:[%s6977_s8 + $0x98] sm:$0xff] %v245_v20  ;;  %v249_v22 = vld [vmem:[%s6972_s7 + $0xa8] sm:$0xff]  ;;  %v251_v23 = vld [vmem:[%s6972_s7 + $0xb0] sm:$0xff] }
  0x1d   : > { %248 = vst [vmem:[%s6977_s8 + $0xa0] sm:$0xff] %v247_v21  ;;  %v253_v24 = vld [vmem:[%s6972_s7 + $0xb8] sm:$0xff]  ;;  %250 = vst [vmem:[%s6977_s8 + $0xa8] sm:$0xff] %v249_v22  ;;  %v255_v25 = vld [vmem:[%s6972_s7 + $0xc0] sm:$0xff] }
  0x1e   : > { %252 = vst [vmem:[%s6977_s8 + $0xb0] sm:$0xff] %v251_v23  ;;  %254 = vst [vmem:[%s6977_s8 + $0xb8] sm:$0xff] %v253_v24  ;;  %v257_v26 = vld [vmem:[%s6972_s7 + $0xc8] sm:$0xff]  ;;  %v259_v27 = vld [vmem:[%s6972_s7 + $0xd0] sm:$0xff] }
  0x1f   : > { %256 = vst [vmem:[%s6977_s8 + $0xc0] sm:$0xff] %v255_v25  ;;  %258 = vst [vmem:[%s6977_s8 + $0xc8] sm:$0xff] %v257_v26  ;;  %v261_v28 = vld [vmem:[%s6972_s7 + $0xd8] sm:$0xff]  ;;  %v263_v29 = vld [vmem:[%s6972_s7 + $0xe0] sm:$0xff] }
  0x20   : > { %260 = vst [vmem:[%s6977_s8 + $0xd0] sm:$0xff] %v259_v27  ;;  %v265_v30 = vld [vmem:[%s6972_s7 + $0xe8] sm:$0xff]  ;;  %262 = vst [vmem:[%s6977_s8 + $0xd8] sm:$0xff] %v261_v28  ;;  %v267_v31 = vld [vmem:[%s6972_s7 + $0xf0] sm:$0xff] }
  0x21   : > { %264 = vst [vmem:[%s6977_s8 + $0xe0] sm:$0xff] %v263_v29  ;;  %266 = vst [vmem:[%s6977_s8 + $0xe8] sm:$0xff] %v265_v30  ;;  %v269_v32 = vld [vmem:[%s6972_s7 + $0xf8] sm:$0xff]  ;;  %v271_v33 = vld [vmem:[%s6972_s7 + $0x200] sm:$0xff] }
  0x22   : > { %268 = vst [vmem:[%s6977_s8 + $0xf0] sm:$0xff] %v267_v31  ;;  %270 = vst [vmem:[%s6977_s8 + $0xf8] sm:$0xff] %v269_v32  ;;  %v273_v34 = vld [vmem:[%s6972_s7 + $0x208] sm:$0xff]  ;;  %v275_v35 = vld [vmem:[%s6972_s7 + $0x210] sm:$0xff] }
  0x23   : > { %272 = vst [vmem:[%s6977_s8 + $0x100] sm:$0xff] %v271_v33  ;;  %v277_v36 = vld [vmem:[%s6972_s7 + $0x218] sm:$0xff]  ;;  %274 = vst [vmem:[%s6977_s8 + $0x108] sm:$0xff] %v273_v34  ;;  %v279_v37 = vld [vmem:[%s6972_s7 + $0x220] sm:$0xff] }
  0x24   : > { %276 = vst [vmem:[%s6977_s8 + $0x110] sm:$0xff] %v275_v35  ;;  %278 = vst [vmem:[%s6977_s8 + $0x118] sm:$0xff] %v277_v36  ;;  %v281_v38 = vld [vmem:[%s6972_s7 + $0x228] sm:$0xff]  ;;  %v283_v39 = vld [vmem:[%s6972_s7 + $0x230] sm:$0xff] }
  0x25   : > { %280 = vst [vmem:[%s6977_s8 + $0x120] sm:$0xff] %v279_v37  ;;  %282 = vst [vmem:[%s6977_s8 + $0x128] sm:$0xff] %v281_v38  ;;  %v285_v40 = vld [vmem:[%s6972_s7 + $0x238] sm:$0xff]  ;;  %v287_v41 = vld [vmem:[%s6972_s7 + $0x240] sm:$0xff] }
  0x26   : > { %284 = vst [vmem:[%s6977_s8 + $0x130] sm:$0xff] %v283_v39  ;;  %v289_v42 = vld [vmem:[%s6972_s7 + $0x248] sm:$0xff]  ;;  %286 = vst [vmem:[%s6977_s8 + $0x138] sm:$0xff] %v285_v40  ;;  %v291_v43 = vld [vmem:[%s6972_s7 + $0x250] sm:$0xff] }
  0x27   : > { %288 = vst [vmem:[%s6977_s8 + $0x140] sm:$0xff] %v287_v41  ;;  %290 = vst [vmem:[%s6977_s8 + $0x148] sm:$0xff] %v289_v42  ;;  %v293_v44 = vld [vmem:[%s6972_s7 + $0x258] sm:$0xff]  ;;  %v295_v45 = vld [vmem:[%s6972_s7 + $0x260] sm:$0xff] }
  0x28   : > { %292 = vst [vmem:[%s6977_s8 + $0x150] sm:$0xff] %v291_v43  ;;  %294 = vst [vmem:[%s6977_s8 + $0x158] sm:$0xff] %v293_v44  ;;  %v297_v46 = vld [vmem:[%s6972_s7 + $0x268] sm:$0xff]  ;;  %v299_v47 = vld [vmem:[%s6972_s7 + $0x270] sm:$0xff] }
  0x29   : > { %296 = vst [vmem:[%s6977_s8 + $0x160] sm:$0xff] %v295_v45  ;;  %v301_v48 = vld [vmem:[%s6972_s7 + $0x278] sm:$0xff]  ;;  %298 = vst [vmem:[%s6977_s8 + $0x168] sm:$0xff] %v297_v46  ;;  %v303_v49 = vld [vmem:[%s6972_s7 + $0x280] sm:$0xff] }
  0x2a   : > { %300 = vst [vmem:[%s6977_s8 + $0x170] sm:$0xff] %v299_v47  ;;  %302 = vst [vmem:[%s6977_s8 + $0x178] sm:$0xff] %v301_v48  ;;  %v305_v50 = vld [vmem:[%s6972_s7 + $0x288] sm:$0xff]  ;;  %v307_v51 = vld [vmem:[%s6972_s7 + $0x290] sm:$0xff] }
  0x2b   : > { %304 = vst [vmem:[%s6977_s8 + $0x180] sm:$0xff] %v303_v49  ;;  %306 = vst [vmem:[%s6977_s8 + $0x188] sm:$0xff] %v305_v50  ;;  %v309_v52 = vld [vmem:[%s6972_s7 + $0x298] sm:$0xff]  ;;  %v311_v53 = vld [vmem:[%s6972_s7 + $0x2a0] sm:$0xff] }
  0x2c   : > { %308 = vst [vmem:[%s6977_s8 + $0x190] sm:$0xff] %v307_v51  ;;  %v313_v54 = vld [vmem:[%s6972_s7 + $0x2a8] sm:$0xff]  ;;  %310 = vst [vmem:[%s6977_s8 + $0x198] sm:$0xff] %v309_v52  ;;  %v315_v55 = vld [vmem:[%s6972_s7 + $0x2b0] sm:$0xff] }
  0x2d   : > { %312 = vst [vmem:[%s6977_s8 + $0x1a0] sm:$0xff] %v311_v53  ;;  %314 = vst [vmem:[%s6977_s8 + $0x1a8] sm:$0xff] %v313_v54  ;;  %v317_v56 = vld [vmem:[%s6972_s7 + $0x2b8] sm:$0xff]  ;;  %v319_v57 = vld [vmem:[%s6972_s7 + $0x2c0] sm:$0xff] }
  0x2e   : > { %316 = vst [vmem:[%s6977_s8 + $0x1b0] sm:$0xff] %v315_v55  ;;  %318 = vst [vmem:[%s6977_s8 + $0x1b8] sm:$0xff] %v317_v56  ;;  %v321_v58 = vld [vmem:[%s6972_s7 + $0x2c8] sm:$0xff]  ;;  %v323_v59 = vld [vmem:[%s6972_s7 + $0x2d0] sm:$0xff] }
  0x2f   : > { %320 = vst [vmem:[%s6977_s8 + $0x1c0] sm:$0xff] %v319_v57  ;;  %v325_v60 = vld [vmem:[%s6972_s7 + $0x2d8] sm:$0xff]  ;;  %322 = vst [vmem:[%s6977_s8 + $0x1c8] sm:$0xff] %v321_v58  ;;  %v327_v61 = vld [vmem:[%s6972_s7 + $0x2e0] sm:$0xff] }
  0x30   : > { %324 = vst [vmem:[%s6977_s8 + $0x1d0] sm:$0xff] %v323_v59  ;;  %326 = vst [vmem:[%s6977_s8 + $0x1d8] sm:$0xff] %v325_v60  ;;  %v329_v62 = vld [vmem:[%s6972_s7 + $0x2e8] sm:$0xff]  ;;  %v331_v63 = vld [vmem:[%s6972_s7 + $0x2f0] sm:$0xff] }
  0x31   : > { %328 = vst [vmem:[%s6977_s8 + $0x1e0] sm:$0xff] %v327_v61  ;;  %330 = vst [vmem:[%s6977_s8 + $0x1e8] sm:$0xff] %v329_v62  ;;  %v333_v0 = vld [vmem:[%s6972_s7 + $0x2f8] sm:$0xff]  ;;  %v335_v1 = vld [vmem:[%s6972_s7 + $0x400] sm:$0xff] }
  0x32   : > { %332 = vst [vmem:[%s6977_s8 + $0x1f0] sm:$0xff] %v331_v63  ;;  %v337_v2 = vld [vmem:[%s6972_s7 + $0x408] sm:$0xff]  ;;  %334 = vst [vmem:[%s6977_s8 + $0x1f8] sm:$0xff] %v333_v0  ;;  %v339_v3 = vld [vmem:[%s6972_s7 + $0x410] sm:$0xff] }
  0x33   : > { %336 = vst [vmem:[%s6977_s8 + $0x200] sm:$0xff] %v335_v1  ;;  %338 = vst [vmem:[%s6977_s8 + $0x208] sm:$0xff] %v337_v2  ;;  %v341_v4 = vld [vmem:[%s6972_s7 + $0x418] sm:$0xff]  ;;  %v343_v5 = vld [vmem:[%s6972_s7 + $0x420] sm:$0xff] }
  0x34   : > { %340 = vst [vmem:[%s6977_s8 + $0x210] sm:$0xff] %v339_v3  ;;  %342 = vst [vmem:[%s6977_s8 + $0x218] sm:$0xff] %v341_v4  ;;  %v345_v6 = vld [vmem:[%s6972_s7 + $0x428] sm:$0xff]  ;;  %v347_v7 = vld [vmem:[%s6972_s7 + $0x430] sm:$0xff] }
  0x35   : > { %344 = vst [vmem:[%s6977_s8 + $0x220] sm:$0xff] %v343_v5  ;;  %v349_v8 = vld [vmem:[%s6972_s7 + $0x438] sm:$0xff]  ;;  %346 = vst [vmem:[%s6977_s8 + $0x228] sm:$0xff] %v345_v6  ;;  %v351_v9 = vld [vmem:[%s6972_s7 + $0x440] sm:$0xff] }
  0x36   : > { %348 = vst [vmem:[%s6977_s8 + $0x230] sm:$0xff] %v347_v7  ;;  %350 = vst [vmem:[%s6977_s8 + $0x238] sm:$0xff] %v349_v8  ;;  %v353_v10 = vld [vmem:[%s6972_s7 + $0x448] sm:$0xff]  ;;  %v355_v11 = vld [vmem:[%s6972_s7 + $0x450] sm:$0xff] }
  0x37   : > { %352 = vst [vmem:[%s6977_s8 + $0x240] sm:$0xff] %v351_v9  ;;  %354 = vst [vmem:[%s6977_s8 + $0x248] sm:$0xff] %v353_v10  ;;  %v357_v12 = vld [vmem:[%s6972_s7 + $0x458] sm:$0xff]  ;;  %v359_v13 = vld [vmem:[%s6972_s7 + $0x460] sm:$0xff] }
  0x38   : > { %356 = vst [vmem:[%s6977_s8 + $0x250] sm:$0xff] %v355_v11  ;;  %v361_v14 = vld [vmem:[%s6972_s7 + $0x468] sm:$0xff]  ;;  %358 = vst [vmem:[%s6977_s8 + $0x258] sm:$0xff] %v357_v12  ;;  %v363_v15 = vld [vmem:[%s6972_s7 + $0x470] sm:$0xff] }
  0x39   : > { %360 = vst [vmem:[%s6977_s8 + $0x260] sm:$0xff] %v359_v13  ;;  %362 = vst [vmem:[%s6977_s8 + $0x268] sm:$0xff] %v361_v14  ;;  %v365_v16 = vld [vmem:[%s6972_s7 + $0x478] sm:$0xff]  ;;  %v367_v17 = vld [vmem:[%s6972_s7 + $0x480] sm:$0xff] }
  0x3a   : > { %364 = vst [vmem:[%s6977_s8 + $0x270] sm:$0xff] %v363_v15  ;;  %366 = vst [vmem:[%s6977_s8 + $0x278] sm:$0xff] %v365_v16  ;;  %v369_v18 = vld [vmem:[%s6972_s7 + $0x488] sm:$0xff]  ;;  %v371_v19 = vld [vmem:[%s6972_s7 + $0x490] sm:$0xff] }
  0x3b   : > { %368 = vst [vmem:[%s6977_s8 + $0x280] sm:$0xff] %v367_v17  ;;  %v373_v20 = vld [vmem:[%s6972_s7 + $0x498] sm:$0xff]  ;;  %370 = vst [vmem:[%s6977_s8 + $0x288] sm:$0xff] %v369_v18  ;;  %v375_v21 = vld [vmem:[%s6972_s7 + $0x4a0] sm:$0xff] }
  0x3c   : > { %372 = vst [vmem:[%s6977_s8 + $0x290] sm:$0xff] %v371_v19  ;;  %374 = vst [vmem:[%s6977_s8 + $0x298] sm:$0xff] %v373_v20  ;;  %v377_v22 = vld [vmem:[%s6972_s7 + $0x4a8] sm:$0xff]  ;;  %v379_v23 = vld [vmem:[%s6972_s7 + $0x4b0] sm:$0xff] }
  0x3d   : > { %376 = vst [vmem:[%s6977_s8 + $0x2a0] sm:$0xff] %v375_v21  ;;  %378 = vst [vmem:[%s6977_s8 + $0x2a8] sm:$0xff] %v377_v22  ;;  %v381_v24 = vld [vmem:[%s6972_s7 + $0x4b8] sm:$0xff]  ;;  %v383_v25 = vld [vmem:[%s6972_s7 + $0x4c0] sm:$0xff] }
  0x3e   : > { %380 = vst [vmem:[%s6977_s8 + $0x2b0] sm:$0xff] %v379_v23  ;;  %v385_v26 = vld [vmem:[%s6972_s7 + $0x4c8] sm:$0xff]  ;;  %382 = vst [vmem:[%s6977_s8 + $0x2b8] sm:$0xff] %v381_v24  ;;  %v387_v27 = vld [vmem:[%s6972_s7 + $0x4d0] sm:$0xff] }
  0x3f   : > { %384 = vst [vmem:[%s6977_s8 + $0x2c0] sm:$0xff] %v383_v25  ;;  %386 = vst [vmem:[%s6977_s8 + $0x2c8] sm:$0xff] %v385_v26  ;;  %v389_v28 = vld [vmem:[%s6972_s7 + $0x4d8] sm:$0xff]  ;;  %v391_v29 = vld [vmem:[%s6972_s7 + $0x4e0] sm:$0xff] }
  0x40   : > { %388 = vst [vmem:[%s6977_s8 + $0x2d0] sm:$0xff] %v387_v27  ;;  %390 = vst [vmem:[%s6977_s8 + $0x2d8] sm:$0xff] %v389_v28  ;;  %v393_v30 = vld [vmem:[%s6972_s7 + $0x4e8] sm:$0xff]  ;;  %v395_v31 = vld [vmem:[%s6972_s7 + $0x4f0] sm:$0xff] }
  0x41   : > { %392 = vst [vmem:[%s6977_s8 + $0x2e0] sm:$0xff] %v391_v29  ;;  %v397_v32 = vld [vmem:[%s6972_s7 + $0x4f8] sm:$0xff]  ;;  %394 = vst [vmem:[%s6977_s8 + $0x2e8] sm:$0xff] %v393_v30  ;;  %v399_v33 = vld [vmem:[%s6972_s7 + $0x600] sm:$0xff] }
  0x42   : > { %396 = vst [vmem:[%s6977_s8 + $0x2f0] sm:$0xff] %v395_v31  ;;  %398 = vst [vmem:[%s6977_s8 + $0x2f8] sm:$0xff] %v397_v32  ;;  %v401_v34 = vld [vmem:[%s6972_s7 + $0x608] sm:$0xff]  ;;  %v403_v35 = vld [vmem:[%s6972_s7 + $0x610] sm:$0xff] }
  0x43   : > { %400 = vst [vmem:[%s6977_s8 + $0x300] sm:$0xff] %v399_v33  ;;  %402 = vst [vmem:[%s6977_s8 + $0x308] sm:$0xff] %v401_v34  ;;  %v405_v36 = vld [vmem:[%s6972_s7 + $0x618] sm:$0xff]  ;;  %v407_v37 = vld [vmem:[%s6972_s7 + $0x620] sm:$0xff] }
  0x44   : > { %404 = vst [vmem:[%s6977_s8 + $0x310] sm:$0xff] %v403_v35  ;;  %v409_v38 = vld [vmem:[%s6972_s7 + $0x628] sm:$0xff]  ;;  %406 = vst [vmem:[%s6977_s8 + $0x318] sm:$0xff] %v405_v36  ;;  %v411_v39 = vld [vmem:[%s6972_s7 + $0x630] sm:$0xff] }
  0x45   : > { %408 = vst [vmem:[%s6977_s8 + $0x320] sm:$0xff] %v407_v37  ;;  %410 = vst [vmem:[%s6977_s8 + $0x328] sm:$0xff] %v409_v38  ;;  %v413_v40 = vld [vmem:[%s6972_s7 + $0x638] sm:$0xff]  ;;  %v415_v41 = vld [vmem:[%s6972_s7 + $0x640] sm:$0xff] }
  0x46   : > { %412 = vst [vmem:[%s6977_s8 + $0x330] sm:$0xff] %v411_v39  ;;  %414 = vst [vmem:[%s6977_s8 + $0x338] sm:$0xff] %v413_v40  ;;  %v417_v42 = vld [vmem:[%s6972_s7 + $0x648] sm:$0xff]  ;;  %v419_v43 = vld [vmem:[%s6972_s7 + $0x650] sm:$0xff] }
  0x47   : > { %416 = vst [vmem:[%s6977_s8 + $0x340] sm:$0xff] %v415_v41  ;;  %v421_v44 = vld [vmem:[%s6972_s7 + $0x658] sm:$0xff]  ;;  %418 = vst [vmem:[%s6977_s8 + $0x348] sm:$0xff] %v417_v42  ;;  %v423_v45 = vld [vmem:[%s6972_s7 + $0x660] sm:$0xff] }
  0x48   : > { %420 = vst [vmem:[%s6977_s8 + $0x350] sm:$0xff] %v419_v43  ;;  %422 = vst [vmem:[%s6977_s8 + $0x358] sm:$0xff] %v421_v44  ;;  %v425_v46 = vld [vmem:[%s6972_s7 + $0x668] sm:$0xff]  ;;  %v427_v47 = vld [vmem:[%s6972_s7 + $0x670] sm:$0xff] }
  0x49   : > { %424 = vst [vmem:[%s6977_s8 + $0x360] sm:$0xff] %v423_v45  ;;  %426 = vst [vmem:[%s6977_s8 + $0x368] sm:$0xff] %v425_v46  ;;  %v429_v48 = vld [vmem:[%s6972_s7 + $0x678] sm:$0xff]  ;;  %v431_v49 = vld [vmem:[%s6972_s7 + $0x680] sm:$0xff] }
  0x4a   : > { %428 = vst [vmem:[%s6977_s8 + $0x370] sm:$0xff] %v427_v47  ;;  %v433_v50 = vld [vmem:[%s6972_s7 + $0x688] sm:$0xff]  ;;  %430 = vst [vmem:[%s6977_s8 + $0x378] sm:$0xff] %v429_v48  ;;  %v435_v51 = vld [vmem:[%s6972_s7 + $0x690] sm:$0xff] }
  0x4b   : > { %432 = vst [vmem:[%s6977_s8 + $0x380] sm:$0xff] %v431_v49  ;;  %434 = vst [vmem:[%s6977_s8 + $0x388] sm:$0xff] %v433_v50  ;;  %v437_v52 = vld [vmem:[%s6972_s7 + $0x698] sm:$0xff]  ;;  %v439_v53 = vld [vmem:[%s6972_s7 + $0x6a0] sm:$0xff] }
  0x4c   : > { %436 = vst [vmem:[%s6977_s8 + $0x390] sm:$0xff] %v435_v51  ;;  %438 = vst [vmem:[%s6977_s8 + $0x398] sm:$0xff] %v437_v52  ;;  %v441_v54 = vld [vmem:[%s6972_s7 + $0x6a8] sm:$0xff]  ;;  %v443_v55 = vld [vmem:[%s6972_s7 + $0x6b0] sm:$0xff] }
  0x4d   : > { %440 = vst [vmem:[%s6977_s8 + $0x3a0] sm:$0xff] %v439_v53  ;;  %v445_v56 = vld [vmem:[%s6972_s7 + $0x6b8] sm:$0xff]  ;;  %442 = vst [vmem:[%s6977_s8 + $0x3a8] sm:$0xff] %v441_v54  ;;  %v447_v57 = vld [vmem:[%s6972_s7 + $0x6c0] sm:$0xff] }
  0x4e   : > { %444 = vst [vmem:[%s6977_s8 + $0x3b0] sm:$0xff] %v443_v55  ;;  %446 = vst [vmem:[%s6977_s8 + $0x3b8] sm:$0xff] %v445_v56  ;;  %v449_v58 = vld [vmem:[%s6972_s7 + $0x6c8] sm:$0xff]  ;;  %v451_v59 = vld [vmem:[%s6972_s7 + $0x6d0] sm:$0xff] }
  0x4f   : > { %448 = vst [vmem:[%s6977_s8 + $0x3c0] sm:$0xff] %v447_v57  ;;  %450 = vst [vmem:[%s6977_s8 + $0x3c8] sm:$0xff] %v449_v58  ;;  %v453_v60 = vld [vmem:[%s6972_s7 + $0x6d8] sm:$0xff]  ;;  %v455_v61 = vld [vmem:[%s6972_s7 + $0x6e0] sm:$0xff] }
  0x50   : > { %452 = vst [vmem:[%s6977_s8 + $0x3d0] sm:$0xff] %v451_v59  ;;  %v457_v62 = vld [vmem:[%s6972_s7 + $0x6e8] sm:$0xff]  ;;  %454 = vst [vmem:[%s6977_s8 + $0x3d8] sm:$0xff] %v453_v60  ;;  %v459_v63 = vld [vmem:[%s6972_s7 + $0x6f0] sm:$0xff] }
  0x51   : > { %456 = vst [vmem:[%s6977_s8 + $0x3e0] sm:$0xff] %v455_v61  ;;  %458 = vst [vmem:[%s6977_s8 + $0x3e8] sm:$0xff] %v457_v62  ;;  %v461_v0 = vld [vmem:[%s6972_s7 + $0x6f8] sm:$0xff]  ;;  %v463_v1 = vld [vmem:[%s6972_s7 + $0x800] sm:$0xff] }
  0x52   : > { %460 = vst [vmem:[%s6977_s8 + $0x3f0] sm:$0xff] %v459_v63  ;;  %462 = vst [vmem:[%s6977_s8 + $0x3f8] sm:$0xff] %v461_v0  ;;  %v465_v2 = vld [vmem:[%s6972_s7 + $0x808] sm:$0xff]  ;;  %v467_v3 = vld [vmem:[%s6972_s7 + $0x810] sm:$0xff] }
  0x53   : > { %464 = vst [vmem:[%s6977_s8 + $0x400] sm:$0xff] %v463_v1  ;;  %v469_v4 = vld [vmem:[%s6972_s7 + $0x818] sm:$0xff]  ;;  %466 = vst [vmem:[%s6977_s8 + $0x408] sm:$0xff] %v465_v2  ;;  %v471_v5 = vld [vmem:[%s6972_s7 + $0x820] sm:$0xff] }
  0x54   : > { %468 = vst [vmem:[%s6977_s8 + $0x410] sm:$0xff] %v467_v3  ;;  %470 = vst [vmem:[%s6977_s8 + $0x418] sm:$0xff] %v469_v4  ;;  %v473_v6 = vld [vmem:[%s6972_s7 + $0x828] sm:$0xff]  ;;  %v475_v7 = vld [vmem:[%s6972_s7 + $0x830] sm:$0xff] }
  0x55   : > { %472 = vst [vmem:[%s6977_s8 + $0x420] sm:$0xff] %v471_v5  ;;  %474 = vst [vmem:[%s6977_s8 + $0x428] sm:$0xff] %v473_v6  ;;  %v477_v8 = vld [vmem:[%s6972_s7 + $0x838] sm:$0xff]  ;;  %v479_v9 = vld [vmem:[%s6972_s7 + $0x840] sm:$0xff] }
  0x56   : > { %476 = vst [vmem:[%s6977_s8 + $0x430] sm:$0xff] %v475_v7  ;;  %v481_v10 = vld [vmem:[%s6972_s7 + $0x848] sm:$0xff]  ;;  %478 = vst [vmem:[%s6977_s8 + $0x438] sm:$0xff] %v477_v8  ;;  %v483_v11 = vld [vmem:[%s6972_s7 + $0x850] sm:$0xff] }
  0x57   : > { %480 = vst [vmem:[%s6977_s8 + $0x440] sm:$0xff] %v479_v9  ;;  %482 = vst [vmem:[%s6977_s8 + $0x448] sm:$0xff] %v481_v10  ;;  %v485_v12 = vld [vmem:[%s6972_s7 + $0x858] sm:$0xff]  ;;  %v487_v13 = vld [vmem:[%s6972_s7 + $0x860] sm:$0xff] }
  0x58   : > { %484 = vst [vmem:[%s6977_s8 + $0x450] sm:$0xff] %v483_v11  ;;  %486 = vst [vmem:[%s6977_s8 + $0x458] sm:$0xff] %v485_v12  ;;  %v489_v14 = vld [vmem:[%s6972_s7 + $0x868] sm:$0xff]  ;;  %v491_v15 = vld [vmem:[%s6972_s7 + $0x870] sm:$0xff] }
  0x59   : > { %488 = vst [vmem:[%s6977_s8 + $0x460] sm:$0xff] %v487_v13  ;;  %v493_v16 = vld [vmem:[%s6972_s7 + $0x878] sm:$0xff]  ;;  %490 = vst [vmem:[%s6977_s8 + $0x468] sm:$0xff] %v489_v14  ;;  %v495_v17 = vld [vmem:[%s6972_s7 + $0x880] sm:$0xff] }
  0x5a   : > { %492 = vst [vmem:[%s6977_s8 + $0x470] sm:$0xff] %v491_v15  ;;  %494 = vst [vmem:[%s6977_s8 + $0x478] sm:$0xff] %v493_v16  ;;  %v497_v18 = vld [vmem:[%s6972_s7 + $0x888] sm:$0xff]  ;;  %v499_v19 = vld [vmem:[%s6972_s7 + $0x890] sm:$0xff] }
  0x5b   : > { %496 = vst [vmem:[%s6977_s8 + $0x480] sm:$0xff] %v495_v17  ;;  %498 = vst [vmem:[%s6977_s8 + $0x488] sm:$0xff] %v497_v18  ;;  %v501_v20 = vld [vmem:[%s6972_s7 + $0x898] sm:$0xff]  ;;  %v503_v21 = vld [vmem:[%s6972_s7 + $0x8a0] sm:$0xff] }
  0x5c   : > { %500 = vst [vmem:[%s6977_s8 + $0x490] sm:$0xff] %v499_v19  ;;  %v505_v22 = vld [vmem:[%s6972_s7 + $0x8a8] sm:$0xff]  ;;  %502 = vst [vmem:[%s6977_s8 + $0x498] sm:$0xff] %v501_v20  ;;  %v507_v23 = vld [vmem:[%s6972_s7 + $0x8b0] sm:$0xff] }
  0x5d   : > { %504 = vst [vmem:[%s6977_s8 + $0x4a0] sm:$0xff] %v503_v21  ;;  %506 = vst [vmem:[%s6977_s8 + $0x4a8] sm:$0xff] %v505_v22  ;;  %v509_v24 = vld [vmem:[%s6972_s7 + $0x8b8] sm:$0xff]  ;;  %v511_v25 = vld [vmem:[%s6972_s7 + $0x8c0] sm:$0xff] }
  0x5e   : > { %508 = vst [vmem:[%s6977_s8 + $0x4b0] sm:$0xff] %v507_v23  ;;  %510 = vst [vmem:[%s6977_s8 + $0x4b8] sm:$0xff] %v509_v24  ;;  %v513_v26 = vld [vmem:[%s6972_s7 + $0x8c8] sm:$0xff]  ;;  %v515_v27 = vld [vmem:[%s6972_s7 + $0x8d0] sm:$0xff] }
  0x5f   : > { %512 = vst [vmem:[%s6977_s8 + $0x4c0] sm:$0xff] %v511_v25  ;;  %v517_v28 = vld [vmem:[%s6972_s7 + $0x8d8] sm:$0xff]  ;;  %514 = vst [vmem:[%s6977_s8 + $0x4c8] sm:$0xff] %v513_v26  ;;  %v519_v29 = vld [vmem:[%s6972_s7 + $0x8e0] sm:$0xff] }
  0x60   : > { %516 = vst [vmem:[%s6977_s8 + $0x4d0] sm:$0xff] %v515_v27  ;;  %518 = vst [vmem:[%s6977_s8 + $0x4d8] sm:$0xff] %v517_v28  ;;  %v521_v30 = vld [vmem:[%s6972_s7 + $0x8e8] sm:$0xff]  ;;  %v523_v31 = vld [vmem:[%s6972_s7 + $0x8f0] sm:$0xff] }
  0x61   : > { %520 = vst [vmem:[%s6977_s8 + $0x4e0] sm:$0xff] %v519_v29  ;;  %522 = vst [vmem:[%s6977_s8 + $0x4e8] sm:$0xff] %v521_v30  ;;  %v525_v32 = vld [vmem:[%s6972_s7 + $0x8f8] sm:$0xff]  ;;  %v527_v33 = vld [vmem:[%s6972_s7 + $0xa00] sm:$0xff] }
  0x62   : > { %524 = vst [vmem:[%s6977_s8 + $0x4f0] sm:$0xff] %v523_v31  ;;  %v529_v34 = vld [vmem:[%s6972_s7 + $0xa08] sm:$0xff]  ;;  %526 = vst [vmem:[%s6977_s8 + $0x4f8] sm:$0xff] %v525_v32  ;;  %v531_v35 = vld [vmem:[%s6972_s7 + $0xa10] sm:$0xff] }
  0x63   : > { %528 = vst [vmem:[%s6977_s8 + $0x500] sm:$0xff] %v527_v33  ;;  %530 = vst [vmem:[%s6977_s8 + $0x508] sm:$0xff] %v529_v34  ;;  %v533_v36 = vld [vmem:[%s6972_s7 + $0xa18] sm:$0xff]  ;;  %v535_v37 = vld [vmem:[%s6972_s7 + $0xa20] sm:$0xff] }
  0x64   : > { %532 = vst [vmem:[%s6977_s8 + $0x510] sm:$0xff] %v531_v35  ;;  %534 = vst [vmem:[%s6977_s8 + $0x518] sm:$0xff] %v533_v36  ;;  %v537_v38 = vld [vmem:[%s6972_s7 + $0xa28] sm:$0xff]  ;;  %v539_v39 = vld [vmem:[%s6972_s7 + $0xa30] sm:$0xff] }
  0x65   : > { %536 = vst [vmem:[%s6977_s8 + $0x520] sm:$0xff] %v535_v37  ;;  %v541_v40 = vld [vmem:[%s6972_s7 + $0xa38] sm:$0xff]  ;;  %538 = vst [vmem:[%s6977_s8 + $0x528] sm:$0xff] %v537_v38  ;;  %v543_v41 = vld [vmem:[%s6972_s7 + $0xa40] sm:$0xff] }
  0x66   : > { %540 = vst [vmem:[%s6977_s8 + $0x530] sm:$0xff] %v539_v39  ;;  %542 = vst [vmem:[%s6977_s8 + $0x538] sm:$0xff] %v541_v40  ;;  %v545_v42 = vld [vmem:[%s6972_s7 + $0xa48] sm:$0xff]  ;;  %v547_v43 = vld [vmem:[%s6972_s7 + $0xa50] sm:$0xff] }
  0x67   : > { %544 = vst [vmem:[%s6977_s8 + $0x540] sm:$0xff] %v543_v41  ;;  %546 = vst [vmem:[%s6977_s8 + $0x548] sm:$0xff] %v545_v42  ;;  %v549_v44 = vld [vmem:[%s6972_s7 + $0xa58] sm:$0xff]  ;;  %v551_v45 = vld [vmem:[%s6972_s7 + $0xa60] sm:$0xff] }
  0x68   : > { %548 = vst [vmem:[%s6977_s8 + $0x550] sm:$0xff] %v547_v43  ;;  %v553_v46 = vld [vmem:[%s6972_s7 + $0xa68] sm:$0xff]  ;;  %550 = vst [vmem:[%s6977_s8 + $0x558] sm:$0xff] %v549_v44  ;;  %v555_v47 = vld [vmem:[%s6972_s7 + $0xa70] sm:$0xff] }
  0x69   : > { %552 = vst [vmem:[%s6977_s8 + $0x560] sm:$0xff] %v551_v45  ;;  %554 = vst [vmem:[%s6977_s8 + $0x568] sm:$0xff] %v553_v46  ;;  %v557_v48 = vld [vmem:[%s6972_s7 + $0xa78] sm:$0xff]  ;;  %v559_v49 = vld [vmem:[%s6972_s7 + $0xa80] sm:$0xff] }
  0x6a   : > { %556 = vst [vmem:[%s6977_s8 + $0x570] sm:$0xff] %v555_v47  ;;  %558 = vst [vmem:[%s6977_s8 + $0x578] sm:$0xff] %v557_v48  ;;  %v561_v50 = vld [vmem:[%s6972_s7 + $0xa88] sm:$0xff]  ;;  %v563_v51 = vld [vmem:[%s6972_s7 + $0xa90] sm:$0xff] }
  0x6b   : > { %560 = vst [vmem:[%s6977_s8 + $0x580] sm:$0xff] %v559_v49  ;;  %v565_v52 = vld [vmem:[%s6972_s7 + $0xa98] sm:$0xff]  ;;  %562 = vst [vmem:[%s6977_s8 + $0x588] sm:$0xff] %v561_v50  ;;  %v567_v53 = vld [vmem:[%s6972_s7 + $0xaa0] sm:$0xff] }
  0x6c   : > { %564 = vst [vmem:[%s6977_s8 + $0x590] sm:$0xff] %v563_v51  ;;  %566 = vst [vmem:[%s6977_s8 + $0x598] sm:$0xff] %v565_v52  ;;  %v569_v54 = vld [vmem:[%s6972_s7 + $0xaa8] sm:$0xff]  ;;  %v571_v55 = vld [vmem:[%s6972_s7 + $0xab0] sm:$0xff] }
  0x6d   : > { %568 = vst [vmem:[%s6977_s8 + $0x5a0] sm:$0xff] %v567_v53  ;;  %570 = vst [vmem:[%s6977_s8 + $0x5a8] sm:$0xff] %v569_v54  ;;  %v573_v56 = vld [vmem:[%s6972_s7 + $0xab8] sm:$0xff]  ;;  %v575_v57 = vld [vmem:[%s6972_s7 + $0xac0] sm:$0xff] }
  0x6e   : > { %572 = vst [vmem:[%s6977_s8 + $0x5b0] sm:$0xff] %v571_v55  ;;  %v577_v58 = vld [vmem:[%s6972_s7 + $0xac8] sm:$0xff]  ;;  %574 = vst [vmem:[%s6977_s8 + $0x5b8] sm:$0xff] %v573_v56  ;;  %v579_v59 = vld [vmem:[%s6972_s7 + $0xad0] sm:$0xff] }
  0x6f   : > { %576 = vst [vmem:[%s6977_s8 + $0x5c0] sm:$0xff] %v575_v57  ;;  %578 = vst [vmem:[%s6977_s8 + $0x5c8] sm:$0xff] %v577_v58  ;;  %v581_v60 = vld [vmem:[%s6972_s7 + $0xad8] sm:$0xff]  ;;  %v583_v61 = vld [vmem:[%s6972_s7 + $0xae0] sm:$0xff] }
  0x70   : > { %580 = vst [vmem:[%s6977_s8 + $0x5d0] sm:$0xff] %v579_v59  ;;  %582 = vst [vmem:[%s6977_s8 + $0x5d8] sm:$0xff] %v581_v60  ;;  %v585_v62 = vld [vmem:[%s6972_s7 + $0xae8] sm:$0xff]  ;;  %v587_v63 = vld [vmem:[%s6972_s7 + $0xaf0] sm:$0xff] }
  0x71   : > { %584 = vst [vmem:[%s6977_s8 + $0x5e0] sm:$0xff] %v583_v61  ;;  %v589_v0 = vld [vmem:[%s6972_s7 + $0xaf8] sm:$0xff]  ;;  %586 = vst [vmem:[%s6977_s8 + $0x5e8] sm:$0xff] %v585_v62  ;;  %v591_v1 = vld [vmem:[%s6972_s7 + $0xc00] sm:$0xff] }
  0x72   : > { %588 = vst [vmem:[%s6977_s8 + $0x5f0] sm:$0xff] %v587_v63  ;;  %590 = vst [vmem:[%s6977_s8 + $0x5f8] sm:$0xff] %v589_v0  ;;  %v593_v2 = vld [vmem:[%s6972_s7 + $0xc08] sm:$0xff]  ;;  %v595_v3 = vld [vmem:[%s6972_s7 + $0xc10] sm:$0xff] }
  0x73   : > { %592 = vst [vmem:[%s6977_s8 + $0x600] sm:$0xff] %v591_v1  ;;  %594 = vst [vmem:[%s6977_s8 + $0x608] sm:$0xff] %v593_v2  ;;  %v597_v4 = vld [vmem:[%s6972_s7 + $0xc18] sm:$0xff]  ;;  %v599_v5 = vld [vmem:[%s6972_s7 + $0xc20] sm:$0xff] }
  0x74   : > { %596 = vst [vmem:[%s6977_s8 + $0x610] sm:$0xff] %v595_v3  ;;  %v601_v6 = vld [vmem:[%s6972_s7 + $0xc28] sm:$0xff]  ;;  %598 = vst [vmem:[%s6977_s8 + $0x618] sm:$0xff] %v597_v4  ;;  %v603_v7 = vld [vmem:[%s6972_s7 + $0xc30] sm:$0xff] }
  0x75   : > { %600 = vst [vmem:[%s6977_s8 + $0x620] sm:$0xff] %v599_v5  ;;  %602 = vst [vmem:[%s6977_s8 + $0x628] sm:$0xff] %v601_v6  ;;  %v605_v8 = vld [vmem:[%s6972_s7 + $0xc38] sm:$0xff]  ;;  %v607_v9 = vld [vmem:[%s6972_s7 + $0xc40] sm:$0xff] }
  0x76   : > { %604 = vst [vmem:[%s6977_s8 + $0x630] sm:$0xff] %v603_v7  ;;  %606 = vst [vmem:[%s6977_s8 + $0x638] sm:$0xff] %v605_v8  ;;  %v609_v10 = vld [vmem:[%s6972_s7 + $0xc48] sm:$0xff]  ;;  %v611_v11 = vld [vmem:[%s6972_s7 + $0xc50] sm:$0xff] }
  0x77   : > { %608 = vst [vmem:[%s6977_s8 + $0x640] sm:$0xff] %v607_v9  ;;  %v613_v12 = vld [vmem:[%s6972_s7 + $0xc58] sm:$0xff]  ;;  %610 = vst [vmem:[%s6977_s8 + $0x648] sm:$0xff] %v609_v10  ;;  %v615_v13 = vld [vmem:[%s6972_s7 + $0xc60] sm:$0xff] }
  0x78   : > { %612 = vst [vmem:[%s6977_s8 + $0x650] sm:$0xff] %v611_v11  ;;  %614 = vst [vmem:[%s6977_s8 + $0x658] sm:$0xff] %v613_v12  ;;  %v617_v14 = vld [vmem:[%s6972_s7 + $0xc68] sm:$0xff]  ;;  %v619_v15 = vld [vmem:[%s6972_s7 + $0xc70] sm:$0xff] }
  0x79   : > { %616 = vst [vmem:[%s6977_s8 + $0x660] sm:$0xff] %v615_v13  ;;  %618 = vst [vmem:[%s6977_s8 + $0x668] sm:$0xff] %v617_v14  ;;  %v621_v16 = vld [vmem:[%s6972_s7 + $0xc78] sm:$0xff]  ;;  %v623_v17 = vld [vmem:[%s6972_s7 + $0xc80] sm:$0xff] }
  0x7a   : > { %620 = vst [vmem:[%s6977_s8 + $0x670] sm:$0xff] %v619_v15  ;;  %v625_v18 = vld [vmem:[%s6972_s7 + $0xc88] sm:$0xff]  ;;  %622 = vst [vmem:[%s6977_s8 + $0x678] sm:$0xff] %v621_v16  ;;  %v627_v19 = vld [vmem:[%s6972_s7 + $0xc90] sm:$0xff] }
  0x7b   : > { %624 = vst [vmem:[%s6977_s8 + $0x680] sm:$0xff] %v623_v17  ;;  %626 = vst [vmem:[%s6977_s8 + $0x688] sm:$0xff] %v625_v18  ;;  %v629_v20 = vld [vmem:[%s6972_s7 + $0xc98] sm:$0xff]  ;;  %v631_v21 = vld [vmem:[%s6972_s7 + $0xca0] sm:$0xff] }
  0x7c   : > { %628 = vst [vmem:[%s6977_s8 + $0x690] sm:$0xff] %v627_v19  ;;  %630 = vst [vmem:[%s6977_s8 + $0x698] sm:$0xff] %v629_v20  ;;  %v633_v22 = vld [vmem:[%s6972_s7 + $0xca8] sm:$0xff]  ;;  %v635_v23 = vld [vmem:[%s6972_s7 + $0xcb0] sm:$0xff] }
  0x7d   : > { %632 = vst [vmem:[%s6977_s8 + $0x6a0] sm:$0xff] %v631_v21  ;;  %v637_v24 = vld [vmem:[%s6972_s7 + $0xcb8] sm:$0xff]  ;;  %634 = vst [vmem:[%s6977_s8 + $0x6a8] sm:$0xff] %v633_v22  ;;  %v639_v25 = vld [vmem:[%s6972_s7 + $0xcc0] sm:$0xff] }
  0x7e   : > { %636 = vst [vmem:[%s6977_s8 + $0x6b0] sm:$0xff] %v635_v23  ;;  %638 = vst [vmem:[%s6977_s8 + $0x6b8] sm:$0xff] %v637_v24  ;;  %v641_v26 = vld [vmem:[%s6972_s7 + $0xcc8] sm:$0xff]  ;;  %v643_v27 = vld [vmem:[%s6972_s7 + $0xcd0] sm:$0xff] }
  0x7f   : > { %640 = vst [vmem:[%s6977_s8 + $0x6c0] sm:$0xff] %v639_v25  ;;  %642 = vst [vmem:[%s6977_s8 + $0x6c8] sm:$0xff] %v641_v26  ;;  %v645_v28 = vld [vmem:[%s6972_s7 + $0xcd8] sm:$0xff]  ;;  %v647_v29 = vld [vmem:[%s6972_s7 + $0xce0] sm:$0xff] }
  0x80   : > { %644 = vst [vmem:[%s6977_s8 + $0x6d0] sm:$0xff] %v643_v27  ;;  %v649_v30 = vld [vmem:[%s6972_s7 + $0xce8] sm:$0xff]  ;;  %646 = vst [vmem:[%s6977_s8 + $0x6d8] sm:$0xff] %v645_v28  ;;  %v651_v31 = vld [vmem:[%s6972_s7 + $0xcf0] sm:$0xff] }
  0x81   : > { %648 = vst [vmem:[%s6977_s8 + $0x6e0] sm:$0xff] %v647_v29  ;;  %650 = vst [vmem:[%s6977_s8 + $0x6e8] sm:$0xff] %v649_v30  ;;  %v653_v32 = vld [vmem:[%s6972_s7 + $0xcf8] sm:$0xff]  ;;  %v655_v33 = vld [vmem:[%s6972_s7 + $0xe00] sm:$0xff] }
  0x82   : > { %652 = vst [vmem:[%s6977_s8 + $0x6f0] sm:$0xff] %v651_v31  ;;  %654 = vst [vmem:[%s6977_s8 + $0x6f8] sm:$0xff] %v653_v32  ;;  %v657_v34 = vld [vmem:[%s6972_s7 + $0xe08] sm:$0xff]  ;;  %v659_v35 = vld [vmem:[%s6972_s7 + $0xe10] sm:$0xff] }
  0x83   : > { %656 = vst [vmem:[%s6977_s8 + $0x700] sm:$0xff] %v655_v33  ;;  %v661_v36 = vld [vmem:[%s6972_s7 + $0xe18] sm:$0xff]  ;;  %658 = vst [vmem:[%s6977_s8 + $0x708] sm:$0xff] %v657_v34  ;;  %v663_v37 = vld [vmem:[%s6972_s7 + $0xe20] sm:$0xff] }
  0x84   : > { %660 = vst [vmem:[%s6977_s8 + $0x710] sm:$0xff] %v659_v35  ;;  %662 = vst [vmem:[%s6977_s8 + $0x718] sm:$0xff] %v661_v36  ;;  %v665_v38 = vld [vmem:[%s6972_s7 + $0xe28] sm:$0xff]  ;;  %v667_v39 = vld [vmem:[%s6972_s7 + $0xe30] sm:$0xff] }
  0x85   : > { %664 = vst [vmem:[%s6977_s8 + $0x720] sm:$0xff] %v663_v37  ;;  %666 = vst [vmem:[%s6977_s8 + $0x728] sm:$0xff] %v665_v38  ;;  %v669_v40 = vld [vmem:[%s6972_s7 + $0xe38] sm:$0xff]  ;;  %v671_v41 = vld [vmem:[%s6972_s7 + $0xe40] sm:$0xff] }
  0x86   : > { %668 = vst [vmem:[%s6977_s8 + $0x730] sm:$0xff] %v667_v39  ;;  %v673_v42 = vld [vmem:[%s6972_s7 + $0xe48] sm:$0xff]  ;;  %670 = vst [vmem:[%s6977_s8 + $0x738] sm:$0xff] %v669_v40  ;;  %v675_v43 = vld [vmem:[%s6972_s7 + $0xe50] sm:$0xff] }
  0x87   : > { %672 = vst [vmem:[%s6977_s8 + $0x740] sm:$0xff] %v671_v41  ;;  %674 = vst [vmem:[%s6977_s8 + $0x748] sm:$0xff] %v673_v42  ;;  %v677_v44 = vld [vmem:[%s6972_s7 + $0xe58] sm:$0xff]  ;;  %v679_v45 = vld [vmem:[%s6972_s7 + $0xe60] sm:$0xff] }
  0x88   : > { %676 = vst [vmem:[%s6977_s8 + $0x750] sm:$0xff] %v675_v43  ;;  %678 = vst [vmem:[%s6977_s8 + $0x758] sm:$0xff] %v677_v44  ;;  %v681_v46 = vld [vmem:[%s6972_s7 + $0xe68] sm:$0xff]  ;;  %v683_v47 = vld [vmem:[%s6972_s7 + $0xe70] sm:$0xff] }
  0x89   : > { %680 = vst [vmem:[%s6977_s8 + $0x760] sm:$0xff] %v679_v45  ;;  %v685_v48 = vld [vmem:[%s6972_s7 + $0xe78] sm:$0xff]  ;;  %682 = vst [vmem:[%s6977_s8 + $0x768] sm:$0xff] %v681_v46  ;;  %v687_v49 = vld [vmem:[%s6972_s7 + $0xe80] sm:$0xff] }
  0x8a   : > { %684 = vst [vmem:[%s6977_s8 + $0x770] sm:$0xff] %v683_v47  ;;  %686 = vst [vmem:[%s6977_s8 + $0x778] sm:$0xff] %v685_v48  ;;  %v689_v50 = vld [vmem:[%s6972_s7 + $0xe88] sm:$0xff]  ;;  %v691_v51 = vld [vmem:[%s6972_s7 + $0xe90] sm:$0xff] }
  0x8b   : > { %688 = vst [vmem:[%s6977_s8 + $0x780] sm:$0xff] %v687_v49  ;;  %690 = vst [vmem:[%s6977_s8 + $0x788] sm:$0xff] %v689_v50  ;;  %v693_v52 = vld [vmem:[%s6972_s7 + $0xe98] sm:$0xff]  ;;  %v695_v53 = vld [vmem:[%s6972_s7 + $0xea0] sm:$0xff] }
  0x8c   : > { %692 = vst [vmem:[%s6977_s8 + $0x790] sm:$0xff] %v691_v51  ;;  %v697_v54 = vld [vmem:[%s6972_s7 + $0xea8] sm:$0xff]  ;;  %694 = vst [vmem:[%s6977_s8 + $0x798] sm:$0xff] %v693_v52  ;;  %v699_v55 = vld [vmem:[%s6972_s7 + $0xeb0] sm:$0xff] }
  0x8d   : > { %696 = vst [vmem:[%s6977_s8 + $0x7a0] sm:$0xff] %v695_v53  ;;  %698 = vst [vmem:[%s6977_s8 + $0x7a8] sm:$0xff] %v697_v54  ;;  %v701_v56 = vld [vmem:[%s6972_s7 + $0xeb8] sm:$0xff]  ;;  %v703_v57 = vld [vmem:[%s6972_s7 + $0xec0] sm:$0xff] }
  0x8e   : > { %700 = vst [vmem:[%s6977_s8 + $0x7b0] sm:$0xff] %v699_v55  ;;  %702 = vst [vmem:[%s6977_s8 + $0x7b8] sm:$0xff] %v701_v56  ;;  %v705_v58 = vld [vmem:[%s6972_s7 + $0xec8] sm:$0xff]  ;;  %v707_v59 = vld [vmem:[%s6972_s7 + $0xed0] sm:$0xff] }
  0x8f   : > { %704 = vst [vmem:[%s6977_s8 + $0x7c0] sm:$0xff] %v703_v57  ;;  %v709_v60 = vld [vmem:[%s6972_s7 + $0xed8] sm:$0xff]  ;;  %706 = vst [vmem:[%s6977_s8 + $0x7c8] sm:$0xff] %v705_v58  ;;  %v711_v61 = vld [vmem:[%s6972_s7 + $0xee0] sm:$0xff] }
  0x90   : > { %708 = vst [vmem:[%s6977_s8 + $0x7d0] sm:$0xff] %v707_v59  ;;  %710 = vst [vmem:[%s6977_s8 + $0x7d8] sm:$0xff] %v709_v60  ;;  %v713_v62 = vld [vmem:[%s6972_s7 + $0xee8] sm:$0xff]  ;;  %v715_v63 = vld [vmem:[%s6972_s7 + $0xef0] sm:$0xff] }
  0x91   : > { %712 = vst [vmem:[%s6977_s8 + $0x7e0] sm:$0xff] %v711_v61  ;;  %714 = vst [vmem:[%s6977_s8 + $0x7e8] sm:$0xff] %v713_v62  ;;  %v717_v0 = vld [vmem:[%s6972_s7 + $0xef8] sm:$0xff]  ;;  %v719_v1 = vld [vmem:[%s6972_s7 + $0x1000] sm:$0xff] }
  0x92   : > { %716 = vst [vmem:[%s6977_s8 + $0x7f0] sm:$0xff] %v715_v63  ;;  %v721_v2 = vld [vmem:[%s6972_s7 + $0x1008] sm:$0xff]  ;;  %718 = vst [vmem:[%s6977_s8 + $0x7f8] sm:$0xff] %v717_v0  ;;  %v723_v3 = vld [vmem:[%s6972_s7 + $0x1010] sm:$0xff] }
  0x93   : > { %720 = vst [vmem:[%s6977_s8 + $0x800] sm:$0xff] %v719_v1  ;;  %722 = vst [vmem:[%s6977_s8 + $0x808] sm:$0xff] %v721_v2  ;;  %v725_v4 = vld [vmem:[%s6972_s7 + $0x1018] sm:$0xff]  ;;  %v727_v5 = vld [vmem:[%s6972_s7 + $0x1020] sm:$0xff] }
  0x94   : > { %724 = vst [vmem:[%s6977_s8 + $0x810] sm:$0xff] %v723_v3  ;;  %726 = vst [vmem:[%s6977_s8 + $0x818] sm:$0xff] %v725_v4  ;;  %v729_v6 = vld [vmem:[%s6972_s7 + $0x1028] sm:$0xff]  ;;  %v731_v7 = vld [vmem:[%s6972_s7 + $0x1030] sm:$0xff] }
  0x95   : > { %728 = vst [vmem:[%s6977_s8 + $0x820] sm:$0xff] %v727_v5  ;;  %v733_v8 = vld [vmem:[%s6972_s7 + $0x1038] sm:$0xff]  ;;  %730 = vst [vmem:[%s6977_s8 + $0x828] sm:$0xff] %v729_v6  ;;  %v735_v9 = vld [vmem:[%s6972_s7 + $0x1040] sm:$0xff] }
  0x96   : > { %732 = vst [vmem:[%s6977_s8 + $0x830] sm:$0xff] %v731_v7  ;;  %734 = vst [vmem:[%s6977_s8 + $0x838] sm:$0xff] %v733_v8  ;;  %v737_v10 = vld [vmem:[%s6972_s7 + $0x1048] sm:$0xff]  ;;  %v739_v11 = vld [vmem:[%s6972_s7 + $0x1050] sm:$0xff] }
  0x97   : > { %736 = vst [vmem:[%s6977_s8 + $0x840] sm:$0xff] %v735_v9  ;;  %738 = vst [vmem:[%s6977_s8 + $0x848] sm:$0xff] %v737_v10  ;;  %v741_v12 = vld [vmem:[%s6972_s7 + $0x1058] sm:$0xff]  ;;  %v743_v13 = vld [vmem:[%s6972_s7 + $0x1060] sm:$0xff] }
  0x98   : > { %740 = vst [vmem:[%s6977_s8 + $0x850] sm:$0xff] %v739_v11  ;;  %v745_v14 = vld [vmem:[%s6972_s7 + $0x1068] sm:$0xff]  ;;  %742 = vst [vmem:[%s6977_s8 + $0x858] sm:$0xff] %v741_v12  ;;  %v747_v15 = vld [vmem:[%s6972_s7 + $0x1070] sm:$0xff] }
  0x99   : > { %744 = vst [vmem:[%s6977_s8 + $0x860] sm:$0xff] %v743_v13  ;;  %746 = vst [vmem:[%s6977_s8 + $0x868] sm:$0xff] %v745_v14  ;;  %v749_v16 = vld [vmem:[%s6972_s7 + $0x1078] sm:$0xff]  ;;  %v751_v17 = vld [vmem:[%s6972_s7 + $0x1080] sm:$0xff] }
  0x9a   : > { %748 = vst [vmem:[%s6977_s8 + $0x870] sm:$0xff] %v747_v15  ;;  %750 = vst [vmem:[%s6977_s8 + $0x878] sm:$0xff] %v749_v16  ;;  %v753_v18 = vld [vmem:[%s6972_s7 + $0x1088] sm:$0xff]  ;;  %v755_v19 = vld [vmem:[%s6972_s7 + $0x1090] sm:$0xff] }
  0x9b   : > { %752 = vst [vmem:[%s6977_s8 + $0x880] sm:$0xff] %v751_v17  ;;  %v757_v20 = vld [vmem:[%s6972_s7 + $0x1098] sm:$0xff]  ;;  %754 = vst [vmem:[%s6977_s8 + $0x888] sm:$0xff] %v753_v18  ;;  %v759_v21 = vld [vmem:[%s6972_s7 + $0x10a0] sm:$0xff] }
  0x9c   : > { %756 = vst [vmem:[%s6977_s8 + $0x890] sm:$0xff] %v755_v19  ;;  %758 = vst [vmem:[%s6977_s8 + $0x898] sm:$0xff] %v757_v20  ;;  %v761_v22 = vld [vmem:[%s6972_s7 + $0x10a8] sm:$0xff]  ;;  %v763_v23 = vld [vmem:[%s6972_s7 + $0x10b0] sm:$0xff] }
  0x9d   : > { %760 = vst [vmem:[%s6977_s8 + $0x8a0] sm:$0xff] %v759_v21  ;;  %762 = vst [vmem:[%s6977_s8 + $0x8a8] sm:$0xff] %v761_v22  ;;  %v765_v24 = vld [vmem:[%s6972_s7 + $0x10b8] sm:$0xff]  ;;  %v767_v25 = vld [vmem:[%s6972_s7 + $0x10c0] sm:$0xff] }
  0x9e   : > { %764 = vst [vmem:[%s6977_s8 + $0x8b0] sm:$0xff] %v763_v23  ;;  %v769_v26 = vld [vmem:[%s6972_s7 + $0x10c8] sm:$0xff]  ;;  %766 = vst [vmem:[%s6977_s8 + $0x8b8] sm:$0xff] %v765_v24  ;;  %v771_v27 = vld [vmem:[%s6972_s7 + $0x10d0] sm:$0xff] }
  0x9f   : > { %768 = vst [vmem:[%s6977_s8 + $0x8c0] sm:$0xff] %v767_v25  ;;  %770 = vst [vmem:[%s6977_s8 + $0x8c8] sm:$0xff] %v769_v26  ;;  %v773_v28 = vld [vmem:[%s6972_s7 + $0x10d8] sm:$0xff]  ;;  %v775_v29 = vld [vmem:[%s6972_s7 + $0x10e0] sm:$0xff] }
  0xa0   : > { %772 = vst [vmem:[%s6977_s8 + $0x8d0] sm:$0xff] %v771_v27  ;;  %774 = vst [vmem:[%s6977_s8 + $0x8d8] sm:$0xff] %v773_v28  ;;  %v777_v30 = vld [vmem:[%s6972_s7 + $0x10e8] sm:$0xff]  ;;  %v779_v31 = vld [vmem:[%s6972_s7 + $0x10f0] sm:$0xff] }
  0xa1   : > { %776 = vst [vmem:[%s6977_s8 + $0x8e0] sm:$0xff] %v775_v29  ;;  %v781_v32 = vld [vmem:[%s6972_s7 + $0x10f8] sm:$0xff]  ;;  %778 = vst [vmem:[%s6977_s8 + $0x8e8] sm:$0xff] %v777_v30  ;;  %v783_v33 = vld [vmem:[%s6972_s7 + $0x1200] sm:$0xff] }
  0xa2   : > { %780 = vst [vmem:[%s6977_s8 + $0x8f0] sm:$0xff] %v779_v31  ;;  %782 = vst [vmem:[%s6977_s8 + $0x8f8] sm:$0xff] %v781_v32  ;;  %v785_v34 = vld [vmem:[%s6972_s7 + $0x1208] sm:$0xff]  ;;  %v787_v35 = vld [vmem:[%s6972_s7 + $0x1210] sm:$0xff] }
  0xa3   : > { %784 = vst [vmem:[%s6977_s8 + $0x900] sm:$0xff] %v783_v33  ;;  %786 = vst [vmem:[%s6977_s8 + $0x908] sm:$0xff] %v785_v34  ;;  %v789_v36 = vld [vmem:[%s6972_s7 + $0x1218] sm:$0xff]  ;;  %v791_v37 = vld [vmem:[%s6972_s7 + $0x1220] sm:$0xff] }
  0xa4   : > { %788 = vst [vmem:[%s6977_s8 + $0x910] sm:$0xff] %v787_v35  ;;  %v793_v38 = vld [vmem:[%s6972_s7 + $0x1228] sm:$0xff]  ;;  %790 = vst [vmem:[%s6977_s8 + $0x918] sm:$0xff] %v789_v36  ;;  %v795_v39 = vld [vmem:[%s6972_s7 + $0x1230] sm:$0xff] }
  0xa5   : > { %792 = vst [vmem:[%s6977_s8 + $0x920] sm:$0xff] %v791_v37  ;;  %794 = vst [vmem:[%s6977_s8 + $0x928] sm:$0xff] %v793_v38  ;;  %v797_v40 = vld [vmem:[%s6972_s7 + $0x1238] sm:$0xff]  ;;  %v799_v41 = vld [vmem:[%s6972_s7 + $0x1240] sm:$0xff] }
  0xa6   : > { %796 = vst [vmem:[%s6977_s8 + $0x930] sm:$0xff] %v795_v39  ;;  %798 = vst [vmem:[%s6977_s8 + $0x938] sm:$0xff] %v797_v40  ;;  %v801_v42 = vld [vmem:[%s6972_s7 + $0x1248] sm:$0xff]  ;;  %v803_v43 = vld [vmem:[%s6972_s7 + $0x1250] sm:$0xff] }
  0xa7   : > { %800 = vst [vmem:[%s6977_s8 + $0x940] sm:$0xff] %v799_v41  ;;  %v805_v44 = vld [vmem:[%s6972_s7 + $0x1258] sm:$0xff]  ;;  %802 = vst [vmem:[%s6977_s8 + $0x948] sm:$0xff] %v801_v42  ;;  %v807_v45 = vld [vmem:[%s6972_s7 + $0x1260] sm:$0xff] }
  0xa8   : > { %804 = vst [vmem:[%s6977_s8 + $0x950] sm:$0xff] %v803_v43  ;;  %806 = vst [vmem:[%s6977_s8 + $0x958] sm:$0xff] %v805_v44  ;;  %v809_v46 = vld [vmem:[%s6972_s7 + $0x1268] sm:$0xff]  ;;  %v811_v47 = vld [vmem:[%s6972_s7 + $0x1270] sm:$0xff] }
  0xa9   : > { %808 = vst [vmem:[%s6977_s8 + $0x960] sm:$0xff] %v807_v45  ;;  %810 = vst [vmem:[%s6977_s8 + $0x968] sm:$0xff] %v809_v46  ;;  %v813_v48 = vld [vmem:[%s6972_s7 + $0x1278] sm:$0xff]  ;;  %v815_v49 = vld [vmem:[%s6972_s7 + $0x1280] sm:$0xff] }
  0xaa   : > { %812 = vst [vmem:[%s6977_s8 + $0x970] sm:$0xff] %v811_v47  ;;  %v817_v50 = vld [vmem:[%s6972_s7 + $0x1288] sm:$0xff]  ;;  %814 = vst [vmem:[%s6977_s8 + $0x978] sm:$0xff] %v813_v48  ;;  %v819_v51 = vld [vmem:[%s6972_s7 + $0x1290] sm:$0xff] }
  0xab   : > { %816 = vst [vmem:[%s6977_s8 + $0x980] sm:$0xff] %v815_v49  ;;  %818 = vst [vmem:[%s6977_s8 + $0x988] sm:$0xff] %v817_v50  ;;  %v821_v52 = vld [vmem:[%s6972_s7 + $0x1298] sm:$0xff]  ;;  %v823_v53 = vld [vmem:[%s6972_s7 + $0x12a0] sm:$0xff] }
  0xac   : > { %820 = vst [vmem:[%s6977_s8 + $0x990] sm:$0xff] %v819_v51  ;;  %822 = vst [vmem:[%s6977_s8 + $0x998] sm:$0xff] %v821_v52  ;;  %v825_v54 = vld [vmem:[%s6972_s7 + $0x12a8] sm:$0xff]  ;;  %v827_v55 = vld [vmem:[%s6972_s7 + $0x12b0] sm:$0xff] }
  0xad   : > { %824 = vst [vmem:[%s6977_s8 + $0x9a0] sm:$0xff] %v823_v53  ;;  %v829_v56 = vld [vmem:[%s6972_s7 + $0x12b8] sm:$0xff]  ;;  %826 = vst [vmem:[%s6977_s8 + $0x9a8] sm:$0xff] %v825_v54  ;;  %v831_v57 = vld [vmem:[%s6972_s7 + $0x12c0] sm:$0xff] }
  0xae   : > { %828 = vst [vmem:[%s6977_s8 + $0x9b0] sm:$0xff] %v827_v55  ;;  %830 = vst [vmem:[%s6977_s8 + $0x9b8] sm:$0xff] %v829_v56  ;;  %v833_v58 = vld [vmem:[%s6972_s7 + $0x12c8] sm:$0xff]  ;;  %v835_v59 = vld [vmem:[%s6972_s7 + $0x12d0] sm:$0xff] }
  0xaf   : > { %832 = vst [vmem:[%s6977_s8 + $0x9c0] sm:$0xff] %v831_v57  ;;  %834 = vst [vmem:[%s6977_s8 + $0x9c8] sm:$0xff] %v833_v58  ;;  %v837_v60 = vld [vmem:[%s6972_s7 + $0x12d8] sm:$0xff]  ;;  %v839_v61 = vld [vmem:[%s6972_s7 + $0x12e0] sm:$0xff] }
  0xb0   : > { %836 = vst [vmem:[%s6977_s8 + $0x9d0] sm:$0xff] %v835_v59  ;;  %v841_v62 = vld [vmem:[%s6972_s7 + $0x12e8] sm:$0xff]  ;;  %838 = vst [vmem:[%s6977_s8 + $0x9d8] sm:$0xff] %v837_v60  ;;  %v843_v63 = vld [vmem:[%s6972_s7 + $0x12f0] sm:$0xff] }
  0xb1   : > { %840 = vst [vmem:[%s6977_s8 + $0x9e0] sm:$0xff] %v839_v61  ;;  %842 = vst [vmem:[%s6977_s8 + $0x9e8] sm:$0xff] %v841_v62  ;;  %v845_v0 = vld [vmem:[%s6972_s7 + $0x12f8] sm:$0xff]  ;;  %v847_v1 = vld [vmem:[%s6972_s7 + $0x1400] sm:$0xff] }
  0xb2   : > { %844 = vst [vmem:[%s6977_s8 + $0x9f0] sm:$0xff] %v843_v63  ;;  %846 = vst [vmem:[%s6977_s8 + $0x9f8] sm:$0xff] %v845_v0  ;;  %v849_v2 = vld [vmem:[%s6972_s7 + $0x1408] sm:$0xff]  ;;  %v851_v3 = vld [vmem:[%s6972_s7 + $0x1410] sm:$0xff] }
  0xb3   : > { %848 = vst [vmem:[%s6977_s8 + $0xa00] sm:$0xff] %v847_v1  ;;  %v853_v4 = vld [vmem:[%s6972_s7 + $0x1418] sm:$0xff]  ;;  %850 = vst [vmem:[%s6977_s8 + $0xa08] sm:$0xff] %v849_v2  ;;  %v855_v5 = vld [vmem:[%s6972_s7 + $0x1420] sm:$0xff] }
  0xb4   : > { %852 = vst [vmem:[%s6977_s8 + $0xa10] sm:$0xff] %v851_v3  ;;  %854 = vst [vmem:[%s6977_s8 + $0xa18] sm:$0xff] %v853_v4  ;;  %v857_v6 = vld [vmem:[%s6972_s7 + $0x1428] sm:$0xff]  ;;  %v859_v7 = vld [vmem:[%s6972_s7 + $0x1430] sm:$0xff] }
  0xb5   : > { %856 = vst [vmem:[%s6977_s8 + $0xa20] sm:$0xff] %v855_v5  ;;  %858 = vst [vmem:[%s6977_s8 + $0xa28] sm:$0xff] %v857_v6  ;;  %v861_v8 = vld [vmem:[%s6972_s7 + $0x1438] sm:$0xff]  ;;  %v863_v9 = vld [vmem:[%s6972_s7 + $0x1440] sm:$0xff] }
  0xb6   : > { %860 = vst [vmem:[%s6977_s8 + $0xa30] sm:$0xff] %v859_v7  ;;  %v865_v10 = vld [vmem:[%s6972_s7 + $0x1448] sm:$0xff]  ;;  %862 = vst [vmem:[%s6977_s8 + $0xa38] sm:$0xff] %v861_v8  ;;  %v867_v11 = vld [vmem:[%s6972_s7 + $0x1450] sm:$0xff] }
  0xb7   : > { %864 = vst [vmem:[%s6977_s8 + $0xa40] sm:$0xff] %v863_v9  ;;  %866 = vst [vmem:[%s6977_s8 + $0xa48] sm:$0xff] %v865_v10  ;;  %v869_v12 = vld [vmem:[%s6972_s7 + $0x1458] sm:$0xff]  ;;  %v871_v13 = vld [vmem:[%s6972_s7 + $0x1460] sm:$0xff] }
  0xb8   : > { %868 = vst [vmem:[%s6977_s8 + $0xa50] sm:$0xff] %v867_v11  ;;  %870 = vst [vmem:[%s6977_s8 + $0xa58] sm:$0xff] %v869_v12  ;;  %v873_v14 = vld [vmem:[%s6972_s7 + $0x1468] sm:$0xff]  ;;  %v875_v15 = vld [vmem:[%s6972_s7 + $0x1470] sm:$0xff] }
  0xb9   : > { %872 = vst [vmem:[%s6977_s8 + $0xa60] sm:$0xff] %v871_v13  ;;  %v877_v16 = vld [vmem:[%s6972_s7 + $0x1478] sm:$0xff]  ;;  %874 = vst [vmem:[%s6977_s8 + $0xa68] sm:$0xff] %v873_v14  ;;  %v879_v17 = vld [vmem:[%s6972_s7 + $0x1480] sm:$0xff] }
  0xba   : > { %876 = vst [vmem:[%s6977_s8 + $0xa70] sm:$0xff] %v875_v15  ;;  %878 = vst [vmem:[%s6977_s8 + $0xa78] sm:$0xff] %v877_v16  ;;  %v881_v18 = vld [vmem:[%s6972_s7 + $0x1488] sm:$0xff]  ;;  %v883_v19 = vld [vmem:[%s6972_s7 + $0x1490] sm:$0xff] }
  0xbb   : > { %880 = vst [vmem:[%s6977_s8 + $0xa80] sm:$0xff] %v879_v17  ;;  %882 = vst [vmem:[%s6977_s8 + $0xa88] sm:$0xff] %v881_v18  ;;  %v885_v20 = vld [vmem:[%s6972_s7 + $0x1498] sm:$0xff]  ;;  %v887_v21 = vld [vmem:[%s6972_s7 + $0x14a0] sm:$0xff] }
  0xbc   : > { %884 = vst [vmem:[%s6977_s8 + $0xa90] sm:$0xff] %v883_v19  ;;  %v889_v22 = vld [vmem:[%s6972_s7 + $0x14a8] sm:$0xff]  ;;  %886 = vst [vmem:[%s6977_s8 + $0xa98] sm:$0xff] %v885_v20  ;;  %v891_v23 = vld [vmem:[%s6972_s7 + $0x14b0] sm:$0xff] }
  0xbd   : > { %888 = vst [vmem:[%s6977_s8 + $0xaa0] sm:$0xff] %v887_v21  ;;  %890 = vst [vmem:[%s6977_s8 + $0xaa8] sm:$0xff] %v889_v22  ;;  %v893_v24 = vld [vmem:[%s6972_s7 + $0x14b8] sm:$0xff]  ;;  %v895_v25 = vld [vmem:[%s6972_s7 + $0x14c0] sm:$0xff] }
  0xbe   : > { %892 = vst [vmem:[%s6977_s8 + $0xab0] sm:$0xff] %v891_v23  ;;  %894 = vst [vmem:[%s6977_s8 + $0xab8] sm:$0xff] %v893_v24  ;;  %v897_v26 = vld [vmem:[%s6972_s7 + $0x14c8] sm:$0xff]  ;;  %v899_v27 = vld [vmem:[%s6972_s7 + $0x14d0] sm:$0xff] }
  0xbf   : > { %896 = vst [vmem:[%s6977_s8 + $0xac0] sm:$0xff] %v895_v25  ;;  %v901_v28 = vld [vmem:[%s6972_s7 + $0x14d8] sm:$0xff]  ;;  %898 = vst [vmem:[%s6977_s8 + $0xac8] sm:$0xff] %v897_v26  ;;  %v903_v29 = vld [vmem:[%s6972_s7 + $0x14e0] sm:$0xff] }
  0xc0   : > { %900 = vst [vmem:[%s6977_s8 + $0xad0] sm:$0xff] %v899_v27  ;;  %902 = vst [vmem:[%s6977_s8 + $0xad8] sm:$0xff] %v901_v28  ;;  %v905_v30 = vld [vmem:[%s6972_s7 + $0x14e8] sm:$0xff]  ;;  %v907_v31 = vld [vmem:[%s6972_s7 + $0x14f0] sm:$0xff] }
  0xc1   : > { %904 = vst [vmem:[%s6977_s8 + $0xae0] sm:$0xff] %v903_v29  ;;  %906 = vst [vmem:[%s6977_s8 + $0xae8] sm:$0xff] %v905_v30  ;;  %v909_v32 = vld [vmem:[%s6972_s7 + $0x14f8] sm:$0xff]  ;;  %v911_v33 = vld [vmem:[%s6972_s7 + $0x1600] sm:$0xff] }
  0xc2   : > { %908 = vst [vmem:[%s6977_s8 + $0xaf0] sm:$0xff] %v907_v31  ;;  %v913_v34 = vld [vmem:[%s6972_s7 + $0x1608] sm:$0xff]  ;;  %910 = vst [vmem:[%s6977_s8 + $0xaf8] sm:$0xff] %v909_v32  ;;  %v915_v35 = vld [vmem:[%s6972_s7 + $0x1610] sm:$0xff] }
  0xc3   : > { %912 = vst [vmem:[%s6977_s8 + $0xb00] sm:$0xff] %v911_v33  ;;  %914 = vst [vmem:[%s6977_s8 + $0xb08] sm:$0xff] %v913_v34  ;;  %v917_v36 = vld [vmem:[%s6972_s7 + $0x1618] sm:$0xff]  ;;  %v919_v37 = vld [vmem:[%s6972_s7 + $0x1620] sm:$0xff] }
  0xc4   : > { %916 = vst [vmem:[%s6977_s8 + $0xb10] sm:$0xff] %v915_v35  ;;  %918 = vst [vmem:[%s6977_s8 + $0xb18] sm:$0xff] %v917_v36  ;;  %v921_v38 = vld [vmem:[%s6972_s7 + $0x1628] sm:$0xff]  ;;  %v923_v39 = vld [vmem:[%s6972_s7 + $0x1630] sm:$0xff] }
  0xc5   : > { %920 = vst [vmem:[%s6977_s8 + $0xb20] sm:$0xff] %v919_v37  ;;  %v925_v40 = vld [vmem:[%s6972_s7 + $0x1638] sm:$0xff]  ;;  %922 = vst [vmem:[%s6977_s8 + $0xb28] sm:$0xff] %v921_v38  ;;  %v927_v41 = vld [vmem:[%s6972_s7 + $0x1640] sm:$0xff] }
  0xc6   : > { %924 = vst [vmem:[%s6977_s8 + $0xb30] sm:$0xff] %v923_v39  ;;  %926 = vst [vmem:[%s6977_s8 + $0xb38] sm:$0xff] %v925_v40  ;;  %v929_v42 = vld [vmem:[%s6972_s7 + $0x1648] sm:$0xff]  ;;  %v931_v43 = vld [vmem:[%s6972_s7 + $0x1650] sm:$0xff] }
  0xc7   : > { %928 = vst [vmem:[%s6977_s8 + $0xb40] sm:$0xff] %v927_v41  ;;  %930 = vst [vmem:[%s6977_s8 + $0xb48] sm:$0xff] %v929_v42  ;;  %v933_v44 = vld [vmem:[%s6972_s7 + $0x1658] sm:$0xff]  ;;  %v935_v45 = vld [vmem:[%s6972_s7 + $0x1660] sm:$0xff] }
  0xc8   : > { %932 = vst [vmem:[%s6977_s8 + $0xb50] sm:$0xff] %v931_v43  ;;  %v937_v46 = vld [vmem:[%s6972_s7 + $0x1668] sm:$0xff]  ;;  %934 = vst [vmem:[%s6977_s8 + $0xb58] sm:$0xff] %v933_v44  ;;  %v939_v47 = vld [vmem:[%s6972_s7 + $0x1670] sm:$0xff] }
  0xc9   : > { %936 = vst [vmem:[%s6977_s8 + $0xb60] sm:$0xff] %v935_v45  ;;  %938 = vst [vmem:[%s6977_s8 + $0xb68] sm:$0xff] %v937_v46  ;;  %v941_v48 = vld [vmem:[%s6972_s7 + $0x1678] sm:$0xff]  ;;  %v943_v49 = vld [vmem:[%s6972_s7 + $0x1680] sm:$0xff] }
  0xca   : > { %940 = vst [vmem:[%s6977_s8 + $0xb70] sm:$0xff] %v939_v47  ;;  %942 = vst [vmem:[%s6977_s8 + $0xb78] sm:$0xff] %v941_v48  ;;  %v945_v50 = vld [vmem:[%s6972_s7 + $0x1688] sm:$0xff]  ;;  %v947_v51 = vld [vmem:[%s6972_s7 + $0x1690] sm:$0xff] }
  0xcb   : > { %944 = vst [vmem:[%s6977_s8 + $0xb80] sm:$0xff] %v943_v49  ;;  %v949_v52 = vld [vmem:[%s6972_s7 + $0x1698] sm:$0xff]  ;;  %946 = vst [vmem:[%s6977_s8 + $0xb88] sm:$0xff] %v945_v50  ;;  %v951_v53 = vld [vmem:[%s6972_s7 + $0x16a0] sm:$0xff] }
  0xcc   : > { %948 = vst [vmem:[%s6977_s8 + $0xb90] sm:$0xff] %v947_v51  ;;  %950 = vst [vmem:[%s6977_s8 + $0xb98] sm:$0xff] %v949_v52  ;;  %v953_v54 = vld [vmem:[%s6972_s7 + $0x16a8] sm:$0xff]  ;;  %v955_v55 = vld [vmem:[%s6972_s7 + $0x16b0] sm:$0xff] }
  0xcd   : > { %952 = vst [vmem:[%s6977_s8 + $0xba0] sm:$0xff] %v951_v53  ;;  %954 = vst [vmem:[%s6977_s8 + $0xba8] sm:$0xff] %v953_v54  ;;  %v957_v56 = vld [vmem:[%s6972_s7 + $0x16b8] sm:$0xff]  ;;  %v959_v57 = vld [vmem:[%s6972_s7 + $0x16c0] sm:$0xff] }
  0xce   : > { %956 = vst [vmem:[%s6977_s8 + $0xbb0] sm:$0xff] %v955_v55  ;;  %v961_v58 = vld [vmem:[%s6972_s7 + $0x16c8] sm:$0xff]  ;;  %958 = vst [vmem:[%s6977_s8 + $0xbb8] sm:$0xff] %v957_v56  ;;  %v963_v59 = vld [vmem:[%s6972_s7 + $0x16d0] sm:$0xff] }
  0xcf   : > { %960 = vst [vmem:[%s6977_s8 + $0xbc0] sm:$0xff] %v959_v57  ;;  %962 = vst [vmem:[%s6977_s8 + $0xbc8] sm:$0xff] %v961_v58  ;;  %v965_v60 = vld [vmem:[%s6972_s7 + $0x16d8] sm:$0xff]  ;;  %v967_v61 = vld [vmem:[%s6972_s7 + $0x16e0] sm:$0xff] }
  0xd0   : > { %964 = vst [vmem:[%s6977_s8 + $0xbd0] sm:$0xff] %v963_v59  ;;  %966 = vst [vmem:[%s6977_s8 + $0xbd8] sm:$0xff] %v965_v60  ;;  %v969_v62 = vld [vmem:[%s6972_s7 + $0x16e8] sm:$0xff]  ;;  %v971_v63 = vld [vmem:[%s6972_s7 + $0x16f0] sm:$0xff] }
  0xd1   : > { %968 = vst [vmem:[%s6977_s8 + $0xbe0] sm:$0xff] %v967_v61  ;;  %v973_v0 = vld [vmem:[%s6972_s7 + $0x16f8] sm:$0xff]  ;;  %970 = vst [vmem:[%s6977_s8 + $0xbe8] sm:$0xff] %v969_v62  ;;  %v975_v1 = vld [vmem:[%s6972_s7 + $0x1800] sm:$0xff] }
  0xd2   : > { %972 = vst [vmem:[%s6977_s8 + $0xbf0] sm:$0xff] %v971_v63  ;;  %974 = vst [vmem:[%s6977_s8 + $0xbf8] sm:$0xff] %v973_v0  ;;  %v977_v2 = vld [vmem:[%s6972_s7 + $0x1808] sm:$0xff]  ;;  %v979_v3 = vld [vmem:[%s6972_s7 + $0x1810] sm:$0xff] }
  0xd3   : > { %976 = vst [vmem:[%s6977_s8 + $0xc00] sm:$0xff] %v975_v1  ;;  %978 = vst [vmem:[%s6977_s8 + $0xc08] sm:$0xff] %v977_v2  ;;  %v981_v4 = vld [vmem:[%s6972_s7 + $0x1818] sm:$0xff]  ;;  %v983_v5 = vld [vmem:[%s6972_s7 + $0x1820] sm:$0xff] }
  0xd4   : > { %980 = vst [vmem:[%s6977_s8 + $0xc10] sm:$0xff] %v979_v3  ;;  %v985_v6 = vld [vmem:[%s6972_s7 + $0x1828] sm:$0xff]  ;;  %982 = vst [vmem:[%s6977_s8 + $0xc18] sm:$0xff] %v981_v4  ;;  %v987_v7 = vld [vmem:[%s6972_s7 + $0x1830] sm:$0xff] }
  0xd5   : > { %984 = vst [vmem:[%s6977_s8 + $0xc20] sm:$0xff] %v983_v5  ;;  %986 = vst [vmem:[%s6977_s8 + $0xc28] sm:$0xff] %v985_v6  ;;  %v989_v8 = vld [vmem:[%s6972_s7 + $0x1838] sm:$0xff]  ;;  %v991_v9 = vld [vmem:[%s6972_s7 + $0x1840] sm:$0xff] }
  0xd6   : > { %988 = vst [vmem:[%s6977_s8 + $0xc30] sm:$0xff] %v987_v7  ;;  %990 = vst [vmem:[%s6977_s8 + $0xc38] sm:$0xff] %v989_v8  ;;  %v993_v10 = vld [vmem:[%s6972_s7 + $0x1848] sm:$0xff]  ;;  %v995_v11 = vld [vmem:[%s6972_s7 + $0x1850] sm:$0xff] }
  0xd7   : > { %992 = vst [vmem:[%s6977_s8 + $0xc40] sm:$0xff] %v991_v9  ;;  %v997_v12 = vld [vmem:[%s6972_s7 + $0x1858] sm:$0xff]  ;;  %994 = vst [vmem:[%s6977_s8 + $0xc48] sm:$0xff] %v993_v10  ;;  %v999_v13 = vld [vmem:[%s6972_s7 + $0x1860] sm:$0xff] }
  0xd8   : > { %996 = vst [vmem:[%s6977_s8 + $0xc50] sm:$0xff] %v995_v11  ;;  %998 = vst [vmem:[%s6977_s8 + $0xc58] sm:$0xff] %v997_v12  ;;  %v1001_v14 = vld [vmem:[%s6972_s7 + $0x1868] sm:$0xff]  ;;  %v1003_v15 = vld [vmem:[%s6972_s7 + $0x1870] sm:$0xff] }
  0xd9   : > { %1000 = vst [vmem:[%s6977_s8 + $0xc60] sm:$0xff] %v999_v13  ;;  %1002 = vst [vmem:[%s6977_s8 + $0xc68] sm:$0xff] %v1001_v14  ;;  %v1005_v16 = vld [vmem:[%s6972_s7 + $0x1878] sm:$0xff]  ;;  %v1007_v17 = vld [vmem:[%s6972_s7 + $0x1880] sm:$0xff] }
  0xda   : > { %1004 = vst [vmem:[%s6977_s8 + $0xc70] sm:$0xff] %v1003_v15  ;;  %v1009_v18 = vld [vmem:[%s6972_s7 + $0x1888] sm:$0xff]  ;;  %1006 = vst [vmem:[%s6977_s8 + $0xc78] sm:$0xff] %v1005_v16  ;;  %v1011_v19 = vld [vmem:[%s6972_s7 + $0x1890] sm:$0xff] }
  0xdb   : > { %1008 = vst [vmem:[%s6977_s8 + $0xc80] sm:$0xff] %v1007_v17  ;;  %1010 = vst [vmem:[%s6977_s8 + $0xc88] sm:$0xff] %v1009_v18  ;;  %v1013_v20 = vld [vmem:[%s6972_s7 + $0x1898] sm:$0xff]  ;;  %v1015_v21 = vld [vmem:[%s6972_s7 + $0x18a0] sm:$0xff] }
  0xdc   : > { %1012 = vst [vmem:[%s6977_s8 + $0xc90] sm:$0xff] %v1011_v19  ;;  %1014 = vst [vmem:[%s6977_s8 + $0xc98] sm:$0xff] %v1013_v20  ;;  %v1017_v22 = vld [vmem:[%s6972_s7 + $0x18a8] sm:$0xff]  ;;  %v1019_v23 = vld [vmem:[%s6972_s7 + $0x18b0] sm:$0xff] }
  0xdd   : > { %1016 = vst [vmem:[%s6977_s8 + $0xca0] sm:$0xff] %v1015_v21  ;;  %v1021_v24 = vld [vmem:[%s6972_s7 + $0x18b8] sm:$0xff]  ;;  %1018 = vst [vmem:[%s6977_s8 + $0xca8] sm:$0xff] %v1017_v22  ;;  %v1023_v25 = vld [vmem:[%s6972_s7 + $0x18c0] sm:$0xff] }
  0xde   : > { %1020 = vst [vmem:[%s6977_s8 + $0xcb0] sm:$0xff] %v1019_v23  ;;  %1022 = vst [vmem:[%s6977_s8 + $0xcb8] sm:$0xff] %v1021_v24  ;;  %v1025_v26 = vld [vmem:[%s6972_s7 + $0x18c8] sm:$0xff]  ;;  %v1027_v27 = vld [vmem:[%s6972_s7 + $0x18d0] sm:$0xff] }
  0xdf   : > { %1024 = vst [vmem:[%s6977_s8 + $0xcc0] sm:$0xff] %v1023_v25  ;;  %1026 = vst [vmem:[%s6977_s8 + $0xcc8] sm:$0xff] %v1025_v26  ;;  %v1029_v28 = vld [vmem:[%s6972_s7 + $0x18d8] sm:$0xff]  ;;  %v1031_v29 = vld [vmem:[%s6972_s7 + $0x18e0] sm:$0xff] }
  0xe0   : > { %1028 = vst [vmem:[%s6977_s8 + $0xcd0] sm:$0xff] %v1027_v27  ;;  %v1033_v30 = vld [vmem:[%s6972_s7 + $0x18e8] sm:$0xff]  ;;  %1030 = vst [vmem:[%s6977_s8 + $0xcd8] sm:$0xff] %v1029_v28  ;;  %v1035_v31 = vld [vmem:[%s6972_s7 + $0x18f0] sm:$0xff] }
  0xe1   : > { %1032 = vst [vmem:[%s6977_s8 + $0xce0] sm:$0xff] %v1031_v29  ;;  %1034 = vst [vmem:[%s6977_s8 + $0xce8] sm:$0xff] %v1033_v30  ;;  %v1037_v32 = vld [vmem:[%s6972_s7 + $0x18f8] sm:$0xff]  ;;  %v1039_v33 = vld [vmem:[%s6972_s7 + $0x1a00] sm:$0xff] }
  0xe2   : > { %1036 = vst [vmem:[%s6977_s8 + $0xcf0] sm:$0xff] %v1035_v31  ;;  %1038 = vst [vmem:[%s6977_s8 + $0xcf8] sm:$0xff] %v1037_v32  ;;  %v1041_v34 = vld [vmem:[%s6972_s7 + $0x1a08] sm:$0xff]  ;;  %v1043_v35 = vld [vmem:[%s6972_s7 + $0x1a10] sm:$0xff] }
  0xe3   : > { %1040 = vst [vmem:[%s6977_s8 + $0xd00] sm:$0xff] %v1039_v33  ;;  %v1045_v36 = vld [vmem:[%s6972_s7 + $0x1a18] sm:$0xff]  ;;  %1042 = vst [vmem:[%s6977_s8 + $0xd08] sm:$0xff] %v1041_v34  ;;  %v1047_v37 = vld [vmem:[%s6972_s7 + $0x1a20] sm:$0xff] }
  0xe4   : > { %1044 = vst [vmem:[%s6977_s8 + $0xd10] sm:$0xff] %v1043_v35  ;;  %1046 = vst [vmem:[%s6977_s8 + $0xd18] sm:$0xff] %v1045_v36  ;;  %v1049_v38 = vld [vmem:[%s6972_s7 + $0x1a28] sm:$0xff]  ;;  %v1051_v39 = vld [vmem:[%s6972_s7 + $0x1a30] sm:$0xff] }
  0xe5   : > { %1048 = vst [vmem:[%s6977_s8 + $0xd20] sm:$0xff] %v1047_v37  ;;  %1050 = vst [vmem:[%s6977_s8 + $0xd28] sm:$0xff] %v1049_v38  ;;  %v1053_v40 = vld [vmem:[%s6972_s7 + $0x1a38] sm:$0xff]  ;;  %v1055_v41 = vld [vmem:[%s6972_s7 + $0x1a40] sm:$0xff] }
  0xe6   : > { %1052 = vst [vmem:[%s6977_s8 + $0xd30] sm:$0xff] %v1051_v39  ;;  %v1057_v42 = vld [vmem:[%s6972_s7 + $0x1a48] sm:$0xff]  ;;  %1054 = vst [vmem:[%s6977_s8 + $0xd38] sm:$0xff] %v1053_v40  ;;  %v1059_v43 = vld [vmem:[%s6972_s7 + $0x1a50] sm:$0xff] }
  0xe7   : > { %1056 = vst [vmem:[%s6977_s8 + $0xd40] sm:$0xff] %v1055_v41  ;;  %1058 = vst [vmem:[%s6977_s8 + $0xd48] sm:$0xff] %v1057_v42  ;;  %v1061_v44 = vld [vmem:[%s6972_s7 + $0x1a58] sm:$0xff]  ;;  %v1063_v45 = vld [vmem:[%s6972_s7 + $0x1a60] sm:$0xff] }
  0xe8   : > { %1060 = vst [vmem:[%s6977_s8 + $0xd50] sm:$0xff] %v1059_v43  ;;  %1062 = vst [vmem:[%s6977_s8 + $0xd58] sm:$0xff] %v1061_v44  ;;  %v1065_v46 = vld [vmem:[%s6972_s7 + $0x1a68] sm:$0xff]  ;;  %v1067_v47 = vld [vmem:[%s6972_s7 + $0x1a70] sm:$0xff] }
  0xe9   : > { %1064 = vst [vmem:[%s6977_s8 + $0xd60] sm:$0xff] %v1063_v45  ;;  %v1069_v48 = vld [vmem:[%s6972_s7 + $0x1a78] sm:$0xff]  ;;  %1066 = vst [vmem:[%s6977_s8 + $0xd68] sm:$0xff] %v1065_v46  ;;  %v1071_v49 = vld [vmem:[%s6972_s7 + $0x1a80] sm:$0xff] }
  0xea   : > { %1068 = vst [vmem:[%s6977_s8 + $0xd70] sm:$0xff] %v1067_v47  ;;  %1070 = vst [vmem:[%s6977_s8 + $0xd78] sm:$0xff] %v1069_v48  ;;  %v1073_v50 = vld [vmem:[%s6972_s7 + $0x1a88] sm:$0xff]  ;;  %v1075_v51 = vld [vmem:[%s6972_s7 + $0x1a90] sm:$0xff] }
  0xeb   : > { %1072 = vst [vmem:[%s6977_s8 + $0xd80] sm:$0xff] %v1071_v49  ;;  %1074 = vst [vmem:[%s6977_s8 + $0xd88] sm:$0xff] %v1073_v50  ;;  %v1077_v52 = vld [vmem:[%s6972_s7 + $0x1a98] sm:$0xff]  ;;  %v1079_v53 = vld [vmem:[%s6972_s7 + $0x1aa0] sm:$0xff] }
  0xec   : > { %1076 = vst [vmem:[%s6977_s8 + $0xd90] sm:$0xff] %v1075_v51  ;;  %v1081_v54 = vld [vmem:[%s6972_s7 + $0x1aa8] sm:$0xff]  ;;  %1078 = vst [vmem:[%s6977_s8 + $0xd98] sm:$0xff] %v1077_v52  ;;  %v1083_v55 = vld [vmem:[%s6972_s7 + $0x1ab0] sm:$0xff] }
  0xed   : > { %1080 = vst [vmem:[%s6977_s8 + $0xda0] sm:$0xff] %v1079_v53  ;;  %1082 = vst [vmem:[%s6977_s8 + $0xda8] sm:$0xff] %v1081_v54  ;;  %v1085_v56 = vld [vmem:[%s6972_s7 + $0x1ab8] sm:$0xff]  ;;  %v1087_v57 = vld [vmem:[%s6972_s7 + $0x1ac0] sm:$0xff] }
  0xee   : > { %1084 = vst [vmem:[%s6977_s8 + $0xdb0] sm:$0xff] %v1083_v55  ;;  %1086 = vst [vmem:[%s6977_s8 + $0xdb8] sm:$0xff] %v1085_v56  ;;  %v1089_v58 = vld [vmem:[%s6972_s7 + $0x1ac8] sm:$0xff]  ;;  %v1091_v59 = vld [vmem:[%s6972_s7 + $0x1ad0] sm:$0xff] }
  0xef   : > { %1088 = vst [vmem:[%s6977_s8 + $0xdc0] sm:$0xff] %v1087_v57  ;;  %v1093_v60 = vld [vmem:[%s6972_s7 + $0x1ad8] sm:$0xff]  ;;  %1090 = vst [vmem:[%s6977_s8 + $0xdc8] sm:$0xff] %v1089_v58  ;;  %v1095_v61 = vld [vmem:[%s6972_s7 + $0x1ae0] sm:$0xff] }
  0xf0   : > { %1092 = vst [vmem:[%s6977_s8 + $0xdd0] sm:$0xff] %v1091_v59  ;;  %1094 = vst [vmem:[%s6977_s8 + $0xdd8] sm:$0xff] %v1093_v60  ;;  %v1097_v62 = vld [vmem:[%s6972_s7 + $0x1ae8] sm:$0xff]  ;;  %v1099_v63 = vld [vmem:[%s6972_s7 + $0x1af0] sm:$0xff] }
  0xf1   : > { %1096 = vst [vmem:[%s6977_s8 + $0xde0] sm:$0xff] %v1095_v61  ;;  %1098 = vst [vmem:[%s6977_s8 + $0xde8] sm:$0xff] %v1097_v62  ;;  %v1101_v0 = vld [vmem:[%s6972_s7 + $0x1af8] sm:$0xff]  ;;  %v1103_v1 = vld [vmem:[%s6972_s7 + $0x1c00] sm:$0xff] }
  0xf2   : > { %1100 = vst [vmem:[%s6977_s8 + $0xdf0] sm:$0xff] %v1099_v63  ;;  %v1105_v2 = vld [vmem:[%s6972_s7 + $0x1c08] sm:$0xff]  ;;  %1102 = vst [vmem:[%s6977_s8 + $0xdf8] sm:$0xff] %v1101_v0  ;;  %v1107_v3 = vld [vmem:[%s6972_s7 + $0x1c10] sm:$0xff] }
  0xf3   : > { %1104 = vst [vmem:[%s6977_s8 + $0xe00] sm:$0xff] %v1103_v1  ;;  %1106 = vst [vmem:[%s6977_s8 + $0xe08] sm:$0xff] %v1105_v2  ;;  %v1109_v4 = vld [vmem:[%s6972_s7 + $0x1c18] sm:$0xff]  ;;  %v1111_v5 = vld [vmem:[%s6972_s7 + $0x1c20] sm:$0xff] }
  0xf4   : > { %1108 = vst [vmem:[%s6977_s8 + $0xe10] sm:$0xff] %v1107_v3  ;;  %1110 = vst [vmem:[%s6977_s8 + $0xe18] sm:$0xff] %v1109_v4  ;;  %v1113_v6 = vld [vmem:[%s6972_s7 + $0x1c28] sm:$0xff]  ;;  %v1115_v7 = vld [vmem:[%s6972_s7 + $0x1c30] sm:$0xff] }
  0xf5   : > { %1112 = vst [vmem:[%s6977_s8 + $0xe20] sm:$0xff] %v1111_v5  ;;  %v1117_v8 = vld [vmem:[%s6972_s7 + $0x1c38] sm:$0xff]  ;;  %1114 = vst [vmem:[%s6977_s8 + $0xe28] sm:$0xff] %v1113_v6  ;;  %v1119_v9 = vld [vmem:[%s6972_s7 + $0x1c40] sm:$0xff] }
  0xf6   : > { %1116 = vst [vmem:[%s6977_s8 + $0xe30] sm:$0xff] %v1115_v7  ;;  %1118 = vst [vmem:[%s6977_s8 + $0xe38] sm:$0xff] %v1117_v8  ;;  %v1121_v10 = vld [vmem:[%s6972_s7 + $0x1c48] sm:$0xff]  ;;  %v1123_v11 = vld [vmem:[%s6972_s7 + $0x1c50] sm:$0xff] }
  0xf7   : > { %1120 = vst [vmem:[%s6977_s8 + $0xe40] sm:$0xff] %v1119_v9  ;;  %1122 = vst [vmem:[%s6977_s8 + $0xe48] sm:$0xff] %v1121_v10  ;;  %v1125_v12 = vld [vmem:[%s6972_s7 + $0x1c58] sm:$0xff]  ;;  %v1127_v13 = vld [vmem:[%s6972_s7 + $0x1c60] sm:$0xff] }
  0xf8   : > { %1124 = vst [vmem:[%s6977_s8 + $0xe50] sm:$0xff] %v1123_v11  ;;  %v1129_v14 = vld [vmem:[%s6972_s7 + $0x1c68] sm:$0xff]  ;;  %1126 = vst [vmem:[%s6977_s8 + $0xe58] sm:$0xff] %v1125_v12  ;;  %v1131_v15 = vld [vmem:[%s6972_s7 + $0x1c70] sm:$0xff] }
  0xf9   : > { %1128 = vst [vmem:[%s6977_s8 + $0xe60] sm:$0xff] %v1127_v13  ;;  %1130 = vst [vmem:[%s6977_s8 + $0xe68] sm:$0xff] %v1129_v14  ;;  %v1133_v16 = vld [vmem:[%s6972_s7 + $0x1c78] sm:$0xff]  ;;  %v1135_v17 = vld [vmem:[%s6972_s7 + $0x1c80] sm:$0xff] }
  0xfa   : > { %1132 = vst [vmem:[%s6977_s8 + $0xe70] sm:$0xff] %v1131_v15  ;;  %1134 = vst [vmem:[%s6977_s8 + $0xe78] sm:$0xff] %v1133_v16  ;;  %v1137_v18 = vld [vmem:[%s6972_s7 + $0x1c88] sm:$0xff]  ;;  %v1139_v19 = vld [vmem:[%s6972_s7 + $0x1c90] sm:$0xff] }
  0xfb   : > { %1136 = vst [vmem:[%s6977_s8 + $0xe80] sm:$0xff] %v1135_v17  ;;  %v1141_v20 = vld [vmem:[%s6972_s7 + $0x1c98] sm:$0xff]  ;;  %1138 = vst [vmem:[%s6977_s8 + $0xe88] sm:$0xff] %v1137_v18  ;;  %v1143_v21 = vld [vmem:[%s6972_s7 + $0x1ca0] sm:$0xff] }
  0xfc   : > { %1140 = vst [vmem:[%s6977_s8 + $0xe90] sm:$0xff] %v1139_v19  ;;  %1142 = vst [vmem:[%s6977_s8 + $0xe98] sm:$0xff] %v1141_v20  ;;  %v1145_v22 = vld [vmem:[%s6972_s7 + $0x1ca8] sm:$0xff]  ;;  %v1147_v23 = vld [vmem:[%s6972_s7 + $0x1cb0] sm:$0xff] }
  0xfd   : > { %1144 = vst [vmem:[%s6977_s8 + $0xea0] sm:$0xff] %v1143_v21  ;;  %1146 = vst [vmem:[%s6977_s8 + $0xea8] sm:$0xff] %v1145_v22  ;;  %v1149_v24 = vld [vmem:[%s6972_s7 + $0x1cb8] sm:$0xff]  ;;  %v1151_v25 = vld [vmem:[%s6972_s7 + $0x1cc0] sm:$0xff] }
  0xfe   : > { %1148 = vst [vmem:[%s6977_s8 + $0xeb0] sm:$0xff] %v1147_v23  ;;  %v1153_v26 = vld [vmem:[%s6972_s7 + $0x1cc8] sm:$0xff]  ;;  %1150 = vst [vmem:[%s6977_s8 + $0xeb8] sm:$0xff] %v1149_v24  ;;  %v1155_v27 = vld [vmem:[%s6972_s7 + $0x1cd0] sm:$0xff] }
  0xff   : > { %1152 = vst [vmem:[%s6977_s8 + $0xec0] sm:$0xff] %v1151_v25  ;;  %1154 = vst [vmem:[%s6977_s8 + $0xec8] sm:$0xff] %v1153_v26  ;;  %v1157_v28 = vld [vmem:[%s6972_s7 + $0x1cd8] sm:$0xff]  ;;  %v1159_v29 = vld [vmem:[%s6972_s7 + $0x1ce0] sm:$0xff] }
 0x100   : > { %1156 = vst [vmem:[%s6977_s8 + $0xed0] sm:$0xff] %v1155_v27  ;;  %1158 = vst [vmem:[%s6977_s8 + $0xed8] sm:$0xff] %v1157_v28  ;;  %v1161_v30 = vld [vmem:[%s6972_s7 + $0x1ce8] sm:$0xff]  ;;  %v1163_v31 = vld [vmem:[%s6972_s7 + $0x1cf0] sm:$0xff] }
 0x101   : > { %1160 = vst [vmem:[%s6977_s8 + $0xee0] sm:$0xff] %v1159_v29  ;;  %v1165_v32 = vld [vmem:[%s6972_s7 + $0x1cf8] sm:$0xff]  ;;  %1162 = vst [vmem:[%s6977_s8 + $0xee8] sm:$0xff] %v1161_v30  ;;  %v1167_v33 = vld [vmem:[%s6972_s7 + $0x1e00] sm:$0xff] }
 0x102   : > { %1164 = vst [vmem:[%s6977_s8 + $0xef0] sm:$0xff] %v1163_v31  ;;  %1166 = vst [vmem:[%s6977_s8 + $0xef8] sm:$0xff] %v1165_v32  ;;  %v1169_v34 = vld [vmem:[%s6972_s7 + $0x1e08] sm:$0xff]  ;;  %v1171_v35 = vld [vmem:[%s6972_s7 + $0x1e10] sm:$0xff] }
 0x103   : > { %1168 = vst [vmem:[%s6977_s8 + $0xf00] sm:$0xff] %v1167_v33  ;;  %1170 = vst [vmem:[%s6977_s8 + $0xf08] sm:$0xff] %v1169_v34  ;;  %v1173_v36 = vld [vmem:[%s6972_s7 + $0x1e18] sm:$0xff]  ;;  %v1175_v37 = vld [vmem:[%s6972_s7 + $0x1e20] sm:$0xff] }
 0x104   : > { %1172 = vst [vmem:[%s6977_s8 + $0xf10] sm:$0xff] %v1171_v35  ;;  %v1177_v38 = vld [vmem:[%s6972_s7 + $0x1e28] sm:$0xff]  ;;  %1174 = vst [vmem:[%s6977_s8 + $0xf18] sm:$0xff] %v1173_v36  ;;  %v1179_v39 = vld [vmem:[%s6972_s7 + $0x1e30] sm:$0xff] }
 0x105   : > { %1176 = vst [vmem:[%s6977_s8 + $0xf20] sm:$0xff] %v1175_v37  ;;  %1178 = vst [vmem:[%s6977_s8 + $0xf28] sm:$0xff] %v1177_v38  ;;  %v1181_v40 = vld [vmem:[%s6972_s7 + $0x1e38] sm:$0xff]  ;;  %v1183_v41 = vld [vmem:[%s6972_s7 + $0x1e40] sm:$0xff] }
 0x106   : > { %1180 = vst [vmem:[%s6977_s8 + $0xf30] sm:$0xff] %v1179_v39  ;;  %1182 = vst [vmem:[%s6977_s8 + $0xf38] sm:$0xff] %v1181_v40  ;;  %v1185_v42 = vld [vmem:[%s6972_s7 + $0x1e48] sm:$0xff]  ;;  %v1187_v43 = vld [vmem:[%s6972_s7 + $0x1e50] sm:$0xff] }
 0x107   : > { %1184 = vst [vmem:[%s6977_s8 + $0xf40] sm:$0xff] %v1183_v41  ;;  %v1189_v44 = vld [vmem:[%s6972_s7 + $0x1e58] sm:$0xff]  ;;  %1186 = vst [vmem:[%s6977_s8 + $0xf48] sm:$0xff] %v1185_v42  ;;  %v1191_v45 = vld [vmem:[%s6972_s7 + $0x1e60] sm:$0xff] }
 0x108   : > { %1188 = vst [vmem:[%s6977_s8 + $0xf50] sm:$0xff] %v1187_v43  ;;  %1190 = vst [vmem:[%s6977_s8 + $0xf58] sm:$0xff] %v1189_v44  ;;  %v1193_v46 = vld [vmem:[%s6972_s7 + $0x1e68] sm:$0xff]  ;;  %v1195_v47 = vld [vmem:[%s6972_s7 + $0x1e70] sm:$0xff] }
 0x109   : > { %1192 = vst [vmem:[%s6977_s8 + $0xf60] sm:$0xff] %v1191_v45  ;;  %1194 = vst [vmem:[%s6977_s8 + $0xf68] sm:$0xff] %v1193_v46  ;;  %v1197_v48 = vld [vmem:[%s6972_s7 + $0x1e78] sm:$0xff]  ;;  %v1199_v49 = vld [vmem:[%s6972_s7 + $0x1e80] sm:$0xff] }
 0x10a   : > { %1196 = vst [vmem:[%s6977_s8 + $0xf70] sm:$0xff] %v1195_v47  ;;  %v1201_v50 = vld [vmem:[%s6972_s7 + $0x1e88] sm:$0xff]  ;;  %1198 = vst [vmem:[%s6977_s8 + $0xf78] sm:$0xff] %v1197_v48  ;;  %v1203_v51 = vld [vmem:[%s6972_s7 + $0x1e90] sm:$0xff] }
 0x10b   : > { %1200 = vst [vmem:[%s6977_s8 + $0xf80] sm:$0xff] %v1199_v49  ;;  %1202 = vst [vmem:[%s6977_s8 + $0xf88] sm:$0xff] %v1201_v50  ;;  %v1205_v52 = vld [vmem:[%s6972_s7 + $0x1e98] sm:$0xff]  ;;  %v1207_v53 = vld [vmem:[%s6972_s7 + $0x1ea0] sm:$0xff] }
 0x10c   : > { %1204 = vst [vmem:[%s6977_s8 + $0xf90] sm:$0xff] %v1203_v51  ;;  %1206 = vst [vmem:[%s6977_s8 + $0xf98] sm:$0xff] %v1205_v52  ;;  %v1209_v54 = vld [vmem:[%s6972_s7 + $0x1ea8] sm:$0xff]  ;;  %v1211_v55 = vld [vmem:[%s6972_s7 + $0x1eb0] sm:$0xff] }
 0x10d   : > { %1208 = vst [vmem:[%s6977_s8 + $0xfa0] sm:$0xff] %v1207_v53  ;;  %v1213_v56 = vld [vmem:[%s6972_s7 + $0x1eb8] sm:$0xff]  ;;  %1210 = vst [vmem:[%s6977_s8 + $0xfa8] sm:$0xff] %v1209_v54  ;;  %v1215_v57 = vld [vmem:[%s6972_s7 + $0x1ec0] sm:$0xff] }
 0x10e   : > { %1212 = vst [vmem:[%s6977_s8 + $0xfb0] sm:$0xff] %v1211_v55  ;;  %1214 = vst [vmem:[%s6977_s8 + $0xfb8] sm:$0xff] %v1213_v56  ;;  %v1217_v58 = vld [vmem:[%s6972_s7 + $0x1ec8] sm:$0xff]  ;;  %v1219_v59 = vld [vmem:[%s6972_s7 + $0x1ed0] sm:$0xff] }
 0x10f   : > { %1216 = vst [vmem:[%s6977_s8 + $0xfc0] sm:$0xff] %v1215_v57  ;;  %1218 = vst [vmem:[%s6977_s8 + $0xfc8] sm:$0xff] %v1217_v58  ;;  %v1221_v60 = vld [vmem:[%s6972_s7 + $0x1ed8] sm:$0xff]  ;;  %v1223_v61 = vld [vmem:[%s6972_s7 + $0x1ee0] sm:$0xff] }
 0x110   : > { %1220 = vst [vmem:[%s6977_s8 + $0xfd0] sm:$0xff] %v1219_v59  ;;  %v1225_v62 = vld [vmem:[%s6972_s7 + $0x1ee8] sm:$0xff]  ;;  %1222 = vst [vmem:[%s6977_s8 + $0xfd8] sm:$0xff] %v1221_v60  ;;  %v1227_v63 = vld [vmem:[%s6972_s7 + $0x1ef0] sm:$0xff] }
 0x111   : > { %1224 = vst [vmem:[%s6977_s8 + $0xfe0] sm:$0xff] %v1223_v61  ;;  %1226 = vst [vmem:[%s6977_s8 + $0xfe8] sm:$0xff] %v1225_v62  ;;  %v1229_v0 = vld [vmem:[%s6972_s7 + $0x1ef8] sm:$0xff] }
 0x112   : > { %1228 = vst [vmem:[%s6977_s8 + $0xff0] sm:$0xff] %v1227_v63  ;;  %1230 = vst [vmem:[%s6977_s8 + $0xff8] sm:$0xff] %v1229_v0 }
 0x113 PF: > { %p6265_p5 = scmp.ge.s32.totalorder %s6897_s22, 1  ;;  %p1235_p6 = scmp.lt.s32.totalorder %s6897_s22, 3 }
 0x115   : > { %p1236_p7 = pnand %p6265_p5, %p1235_p6 }
 0x116   : > { %s1242_s9 = sand.u32 (!%p1236_p7), 1, %s6889_s20   ;;  %s6267_s10 = sshll.u32 (!%p1236_p7), %s6952_s4, 6 }
 0x117   : > { %1239 = sbr.rel (%p1236_p7) target bundleno = 1748 (0x6d4), region = 59  ;;  %s6266_s11 = sshll.u32 (!%p1236_p7), %s1242_s9, 12 }
 0x118   : > { %p1269_p8 = scmp.lt.s32.totalorder (!%p1236_p7), %s6267_s10, 127  ;;  %s8009_s15 = scalar_lea.vmem (!%p1236_p7), [#allocation4], %s6266_s11 }
 0x119   : > { %p6268_p9 = scmp.ne.s32.totalorder (!%p1236_p7), %s6952_s4, 0 }
 0x11c   : > { %s8813_s10 = smov (!%p1269_p8, %s6267_s10), 127  ;;  %1278 = sbr.rel (%p6268_p9) target bundleno = 291 (0x123), region = 67 }
 0x11d   : > { %s8007_s14 = scalar_lea.vmem %s8803_s0, %s8813_s10 }
 0x121   : > { %v6899_v1 = vmov 0.0  }
 0x122   : > { %1279 = vst [vmem:[#allocation2] sm:$0x3] %v6899_v1 }
 0x123 PF: > { %v1737_v2 = vld [vmem:[%s8009_s15 + $0xe00] sm:$0xff]  ;;  %v1738_v4 = vld [vmem:[%s8009_s15 + $0xe08] sm:$0xff]  ;;  %v1813_v5 = vlaneseq  ;;  %v6900_v11 = vmov 1966171168   ;;  %p6781_p10 = scmp.ne.s32.totalorder %s6952_s4, 1 }
 0x124   : > { %v1769_v3 = vld [vmem:[%s8009_s15 + $0xf00] sm:$0xff]  ;;  %v1770_v7 = vld [vmem:[%s8009_s15 + $0xf08] sm:$0xff]  ;;  %v1811_v12 = vunpack.c.l.s4 %v6900_v11 }
 0x125   : > { %v6718_v6 = vcombine.high %v1737_v2, %v1769_v3  ;;  %v6717_v8 = vcombine.low %v1737_v2, %v1769_v3  ;;  %v1673_v9 = vld [vmem:[%s8009_s15 + $0xc00] sm:$0xff]  ;;  %v6720_v13 = vcombine.high %v1738_v4, %v1770_v7  ;;  %v6719_v14 = vcombine.low %v1738_v4, %v1770_v7  ;;  %v1674_v16 = vld [vmem:[%s8009_s15 + $0xc08] sm:$0xff] }
 0x126   : > { %v1705_v10 = vld [vmem:[%s8009_s15 + $0xd00] sm:$0xff]  ;;  %v1706_v17 = vld [vmem:[%s8009_s15 + $0xd08] sm:$0xff]  ;;  %v1812_v19 = vunpack.c.0.s8 %v1811_v12  ;;  %v1814_v20 = vshrl.u32 %v1813_v5, 7  ;;  %v1739_v12 = vld [vmem:[%s8009_s15 + $0xe10] sm:$0xff] }
 0x127   : > { %v6654_v15 = vcombine.high %v1673_v9, %v1705_v10  ;;  %4825 = vmatprep.subr.bf16.mxu0 %v6718_v6  ;;  %v6656_v18 = vcombine.high %v1674_v16, %v1706_v17  ;;  %4865 = vmatprep.subr.bf16.mxu1 %v6720_v13  ;;  %v1609_v21 = vld [vmem:[%s8009_s15 + $0xa00] sm:$0xff]  ;;  %v1610_v23 = vld [vmem:[%s8009_s15 + $0xa08] sm:$0xff]  ;;  %v6653_v26 = vcombine.low %v1673_v9, %v1705_v10  ;;  %v1771_v13 = vld [vmem:[%s8009_s15 + $0xf10] sm:$0xff] }
 0x128   : > { %4826 = vmatpush1.bf16.xpose.msra.mxu0 %v6717_v8  ;;  %4866 = vmatpush1.bf16.xpose.msra.mxu1 %v6719_v14  ;;  %v1641_v22 = vld [vmem:[%s8009_s15 + $0xb00] sm:$0xff]  ;;  %v1642_v24 = vld [vmem:[%s8009_s15 + $0xb08] sm:$0xff]  ;;  %v8024_v25 = vsub.s32 %v1812_v19, %v1814_v20  ;;  %v6655_v27 = vcombine.low %v1674_v16, %v1706_v17  ;;  %v1740_v14 = vld [vmem:[%s8009_s15 + $0xe18] sm:$0xff]  ;;  %v6722_v19 = vcombine.high %v1739_v12, %v1771_v13 }
 0x129   : > { %4827 = vmatprep.subr.bf16.mxu0 %v6654_v15  ;;  %4867 = vmatprep.subr.bf16.mxu1 %v6656_v18  ;;  %v6590_v28 = vcombine.high %v1609_v21, %v1641_v22  ;;  %v6592_v29 = vcombine.high %v1610_v23, %v1642_v24  ;;  %v8027_v30 = vld [vmem:[%s8007_s14] sm:$0xff]  ;;  %v1546_v35 = vld [vmem:[%s8009_s15 + $0x808] sm:$0xff]  ;;  %v6589_v38 = vcombine.low %v1609_v21, %v1641_v22 }
 0x12a   : > { %v8031_v31 = vrot.slane %v8027_v30, %v8024_v25  ;;  %v1545_v33 = vld [vmem:[%s8009_s15 + $0x800] sm:$0xff]  ;;  %v1578_v36 = vld [vmem:[%s8009_s15 + $0x908] sm:$0xff]  ;;  %v6591_v39 = vcombine.low %v1610_v23, %v1642_v24  ;;  %v1809_v11 = vcombine.high %v8027_v30, %v8027_v30  ;;  %v1772_v15 = vld [vmem:[%s8009_s15 + $0xf18] sm:$0xff]  ;;  %v6721_v30 = vcombine.low %v1739_v12, %v1771_v13 }
 0x12b   : > { %v1577_v34 = vld [vmem:[%s8009_s15 + $0x900] sm:$0xff]  ;;  %v6528_v42 = vcombine.high %v1546_v35, %v1578_v36  ;;  %v1482_v45 = vld [vmem:[%s8009_s15 + $0x608] sm:$0xff]  ;;  %v6527_v48 = vcombine.low %v1546_v35, %v1578_v36  ;;  %v6724_v20 = vcombine.high %v1740_v14, %v1772_v15  ;;  %v1675_v23 = vld [vmem:[%s8009_s15 + $0xc10] sm:$0xff] }
 0x12c   : > { %v1824_v32 = vcombine.high %v8031_v31, %v8031_v31  ;;  %v6526_v40 = vcombine.high %v1545_v33, %v1577_v34  ;;  %v1481_v43 = vld [vmem:[%s8009_s15 + $0x600] sm:$0xff]  ;;  %v1514_v46 = vld [vmem:[%s8009_s15 + $0x708] sm:$0xff]  ;;  %v6525_v47 = vcombine.low %v1545_v33, %v1577_v34  ;;  %v8063_v16 = vrot.slane %v1809_v11, %v8024_v25  ;;  %v1707_v24 = vld [vmem:[%s8009_s15 + $0xd10] sm:$0xff] }
 0x12d   : > { %v1513_v44 = vld [vmem:[%s8009_s15 + $0x700] sm:$0xff]  ;;  %v6464_v50 = vcombine.high %v1482_v45, %v1514_v46  ;;  %v1418_v53 = vld [vmem:[%s8009_s15 + $0x408] sm:$0xff]  ;;  %v6463_v56 = vcombine.low %v1482_v45, %v1514_v46  ;;  %v1832_v22 = vrot.slane %v8031_v31, %v8024_v25  ;;  %v6658_v33 = vcombine.high %v1675_v23, %v1707_v24  ;;  %v1611_v35 = vld [vmem:[%s8009_s15 + $0xa10] sm:$0xff] }
 0x12e   : > { %v1846_v37 = vrot.slane %v1824_v32, %v8024_v25  ;;  %v6462_v49 = vcombine.high %v1481_v43, %v1513_v44  ;;  %v1417_v51 = vld [vmem:[%s8009_s15 + $0x400] sm:$0xff]  ;;  %v1450_v54 = vld [vmem:[%s8009_s15 + $0x508] sm:$0xff]  ;;  %v6461_v55 = vcombine.low %v1481_v43, %v1513_v44  ;;  %v1825_v21 = vcombine.high %v8063_v16, %v8063_v16  ;;  %v1643_v36 = vld [vmem:[%s8009_s15 + $0xb10] sm:$0xff] }
 0x12f   : > { %v1449_v52 = vld [vmem:[%s8009_s15 + $0x500] sm:$0xff]  ;;  %v6400_v58 = vcombine.high %v1418_v53, %v1450_v54  ;;  %v1354_v61 = vld [vmem:[%s8009_s15 + $0x208] sm:$0xff]  ;;  %v6399_v0 = vcombine.low %v1418_v53, %v1450_v54  ;;  %v6723_v32 = vcombine.low %v1740_v14, %v1772_v15  ;;  %v1547_v43 = vld [vmem:[%s8009_s15 + $0x810] sm:$0xff] }
 0x130   : > { %4828 = vmatpush1.bf16.xpose.msra.mxu0 %v6653_v26  ;;  %4868 = vmatpush1.bf16.xpose.msra.mxu1 %v6655_v27  ;;  %v1856_v41 = vcombine.high %v1846_v37, %v1846_v37  ;;  %v6398_v57 = vcombine.high %v1417_v51, %v1449_v52  ;;  %v1353_v59 = vld [vmem:[%s8009_s15 + $0x200] sm:$0xff]  ;;  %v1386_v62 = vld [vmem:[%s8009_s15 + $0x308] sm:$0xff]  ;;  %v6397_v63 = vcombine.low %v1417_v51, %v1449_v52  ;;  %v1676_v26 = vld [vmem:[%s8009_s15 + $0xc18] sm:$0xff] }
 0x131   : > { %4829 = vmatprep.subr.bf16.mxu0 %v6590_v28  ;;  %4869 = vmatprep.subr.bf16.mxu1 %v6592_v29  ;;  %v1385_v60 = vld [vmem:[%s8009_s15 + $0x300] sm:$0xff]  ;;  %v6336_v2 = vcombine.high %v1354_v61, %v1386_v62  ;;  %v1290_v5 = vld [vmem:[%s8009_s15 + $0x8] sm:$0xff]  ;;  %v6335_v8 = vcombine.low %v1354_v61, %v1386_v62  ;;  %v1708_v27 = vld [vmem:[%s8009_s15 + $0xd18] sm:$0xff]  ;;  %v1853_v28 = vrot.slane %v1825_v21, %v8024_v25 }
 0x132   : > { %4857 = vmatprep.mubr.bf16.mxu0 %v1846_v37  ;;  %4897 = vmatprep.mubr.bf16.mxu1 %v1856_v41  ;;  %v6334_v1 = vcombine.high %v1353_v59, %v1385_v60  ;;  %v1289_v3 = vld [vmem:[%s8009_s15] sm:$0xff]  ;;  %v1322_v6 = vld [vmem:[%s8009_s15 + $0x108] sm:$0xff]  ;;  %v6333_v7 = vcombine.low %v1353_v59, %v1385_v60  ;;  %v1854_v29 = vcombine.high %v1832_v22, %v1832_v22  ;;  %v1612_v37 = vld [vmem:[%s8009_s15 + $0xa18] sm:$0xff] }
 0x133   : > { %v1321_v4 = vld [vmem:[%s8009_s15 + $0x100] sm:$0xff]  ;;  %v6272_v10 = vcombine.high %v1290_v5, %v1322_v6  ;;  %v6271_v18 = vcombine.low %v1290_v5, %v1322_v6  ;;  %v6660_v34 = vcombine.high %v1676_v26, %v1708_v27  ;;  %v1857_v31 = vcombine.high %v1853_v28, %v1853_v28  ;;  %v1579_v44 = vld [vmem:[%s8009_s15 + $0x910] sm:$0xff]  ;;  %v1548_v45 = vld [vmem:[%s8009_s15 + $0x818] sm:$0xff] }
 0x134   : > { %v6270_v9 = vcombine.high %v1289_v3, %v1321_v4  ;;  %v6269_v17 = vcombine.low %v1289_v3, %v1321_v4  ;;  %v6594_v41 = vcombine.high %v1611_v35, %v1643_v36  ;;  %v1580_v46 = vld [vmem:[%s8009_s15 + $0x918] sm:$0xff]  ;;  %v1483_v51 = vld [vmem:[%s8009_s15 + $0x610] sm:$0xff]  ;;  %v1741_v21 = vld [vmem:[%s8009_s15 + $0xe20] sm:$0xff] }
 0x135   : > { %v1515_v52 = vld [vmem:[%s8009_s15 + $0x710] sm:$0xff]  ;;  %v1484_v53 = vld [vmem:[%s8009_s15 + $0x618] sm:$0xff] }
 0x136   : > { %v1516_v54 = vld [vmem:[%s8009_s15 + $0x718] sm:$0xff]  ;;  %v1419_v59 = vld [vmem:[%s8009_s15 + $0x410] sm:$0xff] }
 0x137   : > { %v1451_v60 = vld [vmem:[%s8009_s15 + $0x510] sm:$0xff]  ;;  %v1420_v61 = vld [vmem:[%s8009_s15 + $0x418] sm:$0xff] }
 0x138   : > { %4830 = vmatpush1.bf16.xpose.msra.mxu0 %v6589_v38  ;;  %4870 = vmatpush1.bf16.xpose.msra.mxu1 %v6591_v39  ;;  %v1644_v38 = vld [vmem:[%s8009_s15 + $0xb18] sm:$0xff]  ;;  %v6657_v39 = vcombine.low %v1675_v23, %v1707_v24  ;;  %v1355_v3 = vld [vmem:[%s8009_s15 + $0x210] sm:$0xff]  ;;  %v1742_v23 = vld [vmem:[%s8009_s15 + $0xe28] sm:$0xff] }
 0x139   : > { %4831 = vmatprep.subr.bf16.mxu0 %v6526_v40  ;;  %4871 = vmatprep.subr.bf16.mxu1 %v6528_v42  ;;  %v6659_v40 = vcombine.low %v1676_v26, %v1708_v27  ;;  %v6596_v42 = vcombine.high %v1612_v37, %v1644_v38  ;;  %v1452_v62 = vld [vmem:[%s8009_s15 + $0x518] sm:$0xff]  ;;  %v1387_v4 = vld [vmem:[%s8009_s15 + $0x310] sm:$0xff]  ;;  %v1774_v24 = vld [vmem:[%s8009_s15 + $0xf28] sm:$0xff] }
 0x13a   : > { %v1356_v5 = vld [vmem:[%s8009_s15 + $0x218] sm:$0xff]  ;;  %v1291_v11 = vld [vmem:[%s8009_s15 + $0x10] sm:$0xff]  ;;  %v6337_v15 = vcombine.low %v1355_v3, %v1387_v4 }
 0x13b   : > { %v1388_v6 = vld [vmem:[%s8009_s15 + $0x318] sm:$0xff]  ;;  %v1323_v12 = vld [vmem:[%s8009_s15 + $0x110] sm:$0xff] }
 0x13c   : > { %v1292_v13 = vld [vmem:[%s8009_s15 + $0x18] sm:$0xff]  ;;  %v6273_v27 = vcombine.low %v1291_v11, %v1323_v12 }
 0x13d   : > { %v1324_v14 = vld [vmem:[%s8009_s15 + $0x118] sm:$0xff] }
 0x140   : > { %4832 = vmatpush1.bf16.xpose.msra.mxu0 %v6525_v47  ;;  %4872 = vmatpush1.bf16.xpose.msra.mxu1 %v6527_v48  ;;  %v6593_v47 = vcombine.low %v1611_v35, %v1643_v36  ;;  %v6595_v48 = vcombine.low %v1612_v37, %v1644_v38  ;;  %v1678_v35 = vld [vmem:[%s8009_s15 + $0xc28] sm:$0xff] }
 0x141   : > { %4833 = vmatprep.subr.bf16.mxu0 %v6462_v49  ;;  %4873 = vmatprep.subr.bf16.mxu1 %v6464_v50  ;;  %v6530_v49 = vcombine.high %v1547_v43, %v1579_v44  ;;  %v6532_v50 = vcombine.high %v1548_v45, %v1580_v46  ;;  %v1710_v36 = vld [vmem:[%s8009_s15 + $0xd28] sm:$0xff] }
 0x148   : > { %4834 = vmatpush1.bf16.xpose.msra.mxu0 %v6461_v55  ;;  %4874 = vmatpush1.bf16.xpose.msra.mxu1 %v6463_v56  ;;  %v6529_v55 = vcombine.low %v1547_v43, %v1579_v44  ;;  %v6531_v56 = vcombine.low %v1548_v45, %v1580_v46  ;;  %v1613_v43 = vld [vmem:[%s8009_s15 + $0xa20] sm:$0xff]  ;;  %v1614_v45 = vld [vmem:[%s8009_s15 + $0xa28] sm:$0xff] }
 0x149   : > { %4835 = vmatprep.subr.bf16.mxu0 %v6398_v57  ;;  %4875 = vmatprep.subr.bf16.mxu1 %v6400_v58  ;;  %v6466_v57 = vcombine.high %v1483_v51, %v1515_v52  ;;  %v6468_v58 = vcombine.high %v1484_v53, %v1516_v54  ;;  %v1645_v44 = vld [vmem:[%s8009_s15 + $0xb20] sm:$0xff]  ;;  %v1646_v46 = vld [vmem:[%s8009_s15 + $0xb28] sm:$0xff] }
 0x150   : > { %4836 = vmatpush1.bf16.xpose.msra.mxu0 %v6397_v63  ;;  %4876 = vmatpush1.bf16.xpose.msra.mxu1 %v6399_v0  ;;  %v6465_v63 = vcombine.low %v1483_v51, %v1515_v52  ;;  %v6467_v0 = vcombine.low %v1484_v53, %v1516_v54  ;;  %v1549_v51 = vld [vmem:[%s8009_s15 + $0x820] sm:$0xff]  ;;  %v1550_v53 = vld [vmem:[%s8009_s15 + $0x828] sm:$0xff] }
 0x151   : > { %4837 = vmatprep.subr.bf16.mxu0 %v6334_v1  ;;  %4877 = vmatprep.subr.bf16.mxu1 %v6336_v2  ;;  %v6402_v1 = vcombine.high %v1419_v59, %v1451_v60  ;;  %v6404_v2 = vcombine.high %v1420_v61, %v1452_v62  ;;  %v1581_v52 = vld [vmem:[%s8009_s15 + $0x920] sm:$0xff]  ;;  %v1582_v54 = vld [vmem:[%s8009_s15 + $0x928] sm:$0xff] }
 0x158   : > { %4838 = vmatpush1.bf16.xpose.msra.mxu0 %v6333_v7  ;;  %4878 = vmatpush1.bf16.xpose.msra.mxu1 %v6335_v8  ;;  %v6401_v7 = vcombine.low %v1419_v59, %v1451_v60  ;;  %v6403_v8 = vcombine.low %v1420_v61, %v1452_v62  ;;  %v1485_v59 = vld [vmem:[%s8009_s15 + $0x620] sm:$0xff]  ;;  %v1486_v61 = vld [vmem:[%s8009_s15 + $0x628] sm:$0xff] }
 0x159   : > { %4839 = vmatprep.subr.bf16.mxu0 %v6270_v9  ;;  %4879 = vmatprep.subr.bf16.mxu1 %v6272_v10  ;;  %v6338_v9 = vcombine.high %v1355_v3, %v1387_v4  ;;  %v6340_v10 = vcombine.high %v1356_v5, %v1388_v6  ;;  %v1517_v60 = vld [vmem:[%s8009_s15 + $0x720] sm:$0xff]  ;;  %v1518_v62 = vld [vmem:[%s8009_s15 + $0x728] sm:$0xff] }
 0x15a   : > { %v1421_v3 = vld [vmem:[%s8009_s15 + $0x420] sm:$0xff] }
 0x15b   : > { %v1453_v4 = vld [vmem:[%s8009_s15 + $0x520] sm:$0xff] }
 0x160   : > { %4840 = vmatpush1.bf16.xpose.msra.mxu0 %v6269_v17  ;;  %4880 = vmatpush1.bf16.xpose.msra.mxu1 %v6271_v18  ;;  %v6339_v17 = vcombine.low %v1356_v5, %v1388_v6  ;;  %v6274_v18 = vcombine.high %v1291_v11, %v1323_v12  ;;  %v1422_v5 = vld [vmem:[%s8009_s15 + $0x428] sm:$0xff]  ;;  %v1357_v11 = vld [vmem:[%s8009_s15 + $0x220] sm:$0xff] }
 0x161   : > { %4905 = vmatprep.subr.bf16.mxu0 %v6722_v19  ;;  %4945 = vmatprep.subr.bf16.mxu1 %v6724_v20  ;;  %v6276_v19 = vcombine.high %v1292_v13, %v1324_v14  ;;  %v8099_v20 = vld [vmem:[%s8007_s14 + $0x8] sm:$0xff] }
 0x162   : > { %v8107_v26 = vrot.slane %v8099_v20, %v8024_v25  ;;  %v1454_v6 = vld [vmem:[%s8009_s15 + $0x528] sm:$0xff]  ;;  %v1389_v12 = vld [vmem:[%s8009_s15 + $0x320] sm:$0xff] }
 0x167   : > { %4858 = vmatmul.mubr.bf16.vlgmr.msra.gmra.mxu0 %v1832_v22  ;;  %4898 = vmatmul.mubr.bf16.vlgmr.msra.gmra.mxu1 %v1854_v29  ;;  %v1773_v22 = vld [vmem:[%s8009_s15 + $0xf20] sm:$0xff] }
 0x168   : > { %4906 = vmatpush1.bf16.xpose.msra.mxu0 %v6721_v30  ;;  %4946 = vmatpush1.bf16.xpose.msra.mxu1 %v6723_v32  ;;  %v6726_v29 = vcombine.high %v1741_v21, %v1773_v22  ;;  %v6728_v30 = vcombine.high %v1742_v23, %v1774_v24  ;;  %v1873_v32 = vcombine.high %v8107_v26, %v8107_v26 }
 0x169   : > { %4907 = vmatprep.subr.bf16.mxu0 %v6658_v33  ;;  %4947 = vmatprep.subr.bf16.mxu1 %v6660_v34  ;;  %v1839_v33 = vrot.slane %v8063_v16, %v8024_v25  ;;  %v1677_v34 = vld [vmem:[%s8009_s15 + $0xc20] sm:$0xff] }
 0x16a   : > { %4937 = vmatprep.mubr.bf16.mxu0 %v1853_v28  ;;  %4977 = vmatprep.mubr.bf16.mxu1 %v1857_v31  ;;  %v6275_v28 = vcombine.low %v1292_v13, %v1324_v14  ;;  %v1709_v31 = vld [vmem:[%s8009_s15 + $0xd20] sm:$0xff]  ;;  %v1895_v37 = vrot.slane %v1873_v32, %v8024_v25  ;;  %v1358_v13 = vld [vmem:[%s8009_s15 + $0x228] sm:$0xff]  ;;  %v1858_v32 = vcombine.high %v8099_v20, %v8099_v20 }
 0x16b   : > { %v1855_v38 = vcombine.high %v1839_v33, %v1839_v33  ;;  %v1390_v14 = vld [vmem:[%s8009_s15 + $0x328] sm:$0xff] }
 0x16c   : > { %v1905_v16 = vcombine.high %v1895_v37, %v1895_v37 }
 0x170   : > { %4908 = vmatpush1.bf16.xpose.msra.mxu0 %v6657_v39  ;;  %4948 = vmatpush1.bf16.xpose.msra.mxu1 %v6659_v40  ;;  %v6725_v39 = vcombine.low %v1741_v21, %v1773_v22  ;;  %v6727_v40 = vcombine.low %v1742_v23, %v1774_v24  ;;  %v1293_v21 = vld [vmem:[%s8009_s15 + $0x20] sm:$0xff]  ;;  %v1294_v23 = vld [vmem:[%s8009_s15 + $0x28] sm:$0xff] }
 0x171   : > { %4909 = vmatprep.subr.bf16.mxu0 %v6594_v41  ;;  %4949 = vmatprep.subr.bf16.mxu1 %v6596_v42  ;;  %v6662_v41 = vcombine.high %v1677_v34, %v1709_v31  ;;  %v6664_v42 = vcombine.high %v1678_v35, %v1710_v36  ;;  %v1325_v22 = vld [vmem:[%s8009_s15 + $0x120] sm:$0xff]  ;;  %v1326_v24 = vld [vmem:[%s8009_s15 + $0x128] sm:$0xff] }
 0x178   : > { %4910 = vmatpush1.bf16.xpose.msra.mxu0 %v6593_v47  ;;  %4950 = vmatpush1.bf16.xpose.msra.mxu1 %v6595_v48  ;;  %v6661_v47 = vcombine.low %v1677_v34, %v1709_v31  ;;  %v6663_v48 = vcombine.low %v1678_v35, %v1710_v36  ;;  %v1775_v34 = vld [vmem:[%s8009_s15 + $0xf30] sm:$0xff]  ;;  %v1744_v31 = vld [vmem:[%s8009_s15 + $0xe38] sm:$0xff]  ;;  %v8149_v36 = vrot.slane %v1858_v32, %v8024_v25 }
 0x179   : > { %4911 = vmatprep.subr.bf16.mxu0 %v6530_v49  ;;  %4951 = vmatprep.subr.bf16.mxu1 %v6532_v50  ;;  %v6598_v49 = vcombine.high %v1613_v43, %v1645_v44  ;;  %v6600_v50 = vcombine.high %v1614_v45, %v1646_v46  ;;  %v1776_v35 = vld [vmem:[%s8009_s15 + $0xf38] sm:$0xff]  ;;  %v1295_v32 = vld [vmem:[%s8009_s15 + $0x30] sm:$0xff] }
 0x17a   : > { %v1874_v20 = vcombine.high %v8149_v36, %v8149_v36 }
 0x180   : > { %4912 = vmatpush1.bf16.xpose.msra.mxu0 %v6529_v55  ;;  %4952 = vmatpush1.bf16.xpose.msra.mxu1 %v6531_v56  ;;  %v6597_v55 = vcombine.low %v1613_v43, %v1645_v44  ;;  %v6599_v56 = vcombine.low %v1614_v45, %v1646_v46  ;;  %v1680_v43 = vld [vmem:[%s8009_s15 + $0xc38] sm:$0xff]  ;;  %v1902_v45 = vrot.slane %v1874_v20, %v8024_v25  ;;  %v1745_v20 = vld [vmem:[%s8009_s15 + $0xe40] sm:$0xff] }
 0x181   : > { %4913 = vmatprep.subr.bf16.mxu0 %v6466_v57  ;;  %4953 = vmatprep.subr.bf16.mxu1 %v6468_v58  ;;  %v6534_v57 = vcombine.high %v1549_v51, %v1581_v52  ;;  %v6536_v58 = vcombine.high %v1550_v53, %v1582_v54  ;;  %v1712_v44 = vld [vmem:[%s8009_s15 + $0xd38] sm:$0xff] }
 0x188   : > { %4914 = vmatpush1.bf16.xpose.msra.mxu0 %v6465_v63  ;;  %4954 = vmatpush1.bf16.xpose.msra.mxu1 %v6467_v0  ;;  %v6533_v63 = vcombine.low %v1549_v51, %v1581_v52  ;;  %v6535_v0 = vcombine.low %v1550_v53, %v1582_v54  ;;  %v1615_v51 = vld [vmem:[%s8009_s15 + $0xa30] sm:$0xff]  ;;  %v1616_v53 = vld [vmem:[%s8009_s15 + $0xa38] sm:$0xff] }
 0x189   : > { %4915 = vmatprep.subr.bf16.mxu0 %v6402_v1  ;;  %4955 = vmatprep.subr.bf16.mxu1 %v6404_v2  ;;  %v6470_v1 = vcombine.high %v1485_v59, %v1517_v60  ;;  %v6472_v2 = vcombine.high %v1486_v61, %v1518_v62  ;;  %v1647_v52 = vld [vmem:[%s8009_s15 + $0xb30] sm:$0xff]  ;;  %v1648_v54 = vld [vmem:[%s8009_s15 + $0xb38] sm:$0xff] }
 0x190   : > { %4916 = vmatpush1.bf16.xpose.msra.mxu0 %v6401_v7  ;;  %4956 = vmatpush1.bf16.xpose.msra.mxu1 %v6403_v8  ;;  %v6469_v7 = vcombine.low %v1485_v59, %v1517_v60  ;;  %v6471_v8 = vcombine.low %v1486_v61, %v1518_v62  ;;  %v1551_v59 = vld [vmem:[%s8009_s15 + $0x830] sm:$0xff]  ;;  %v1552_v61 = vld [vmem:[%s8009_s15 + $0x838] sm:$0xff] }
 0x191   : > { %4917 = vmatprep.subr.bf16.mxu0 %v6338_v9  ;;  %4957 = vmatprep.subr.bf16.mxu1 %v6340_v10  ;;  %v6406_v9 = vcombine.high %v1421_v3, %v1453_v4  ;;  %v6408_v10 = vcombine.high %v1422_v5, %v1454_v6  ;;  %v1583_v60 = vld [vmem:[%s8009_s15 + $0x930] sm:$0xff]  ;;  %v1584_v62 = vld [vmem:[%s8009_s15 + $0x938] sm:$0xff] }
 0x198   : > { %4918 = vmatpush1.bf16.xpose.msra.mxu0 %v6337_v15  ;;  %4958 = vmatpush1.bf16.xpose.msra.mxu1 %v6339_v17  ;;  %v6405_v15 = vcombine.low %v1421_v3, %v1453_v4  ;;  %v6407_v17 = vcombine.low %v1422_v5, %v1454_v6  ;;  %v1487_v3 = vld [vmem:[%s8009_s15 + $0x630] sm:$0xff]  ;;  %v1488_v5 = vld [vmem:[%s8009_s15 + $0x638] sm:$0xff] }
 0x199   : > { %4919 = vmatprep.subr.bf16.mxu0 %v6274_v18  ;;  %4959 = vmatprep.subr.bf16.mxu1 %v6276_v19  ;;  %v6342_v18 = vcombine.high %v1357_v11, %v1389_v12  ;;  %v6344_v19 = vcombine.high %v1358_v13, %v1390_v14  ;;  %v1519_v4 = vld [vmem:[%s8009_s15 + $0x730] sm:$0xff]  ;;  %v1520_v6 = vld [vmem:[%s8009_s15 + $0x738] sm:$0xff] }
 0x1a0   : > { %4920 = vmatpush1.bf16.xpose.msra.mxu0 %v6273_v27  ;;  %4960 = vmatpush1.bf16.xpose.msra.mxu1 %v6275_v28  ;;  %v6341_v27 = vcombine.low %v1357_v11, %v1389_v12  ;;  %v6343_v28 = vcombine.low %v1358_v13, %v1390_v14  ;;  %v1423_v11 = vld [vmem:[%s8009_s15 + $0x430] sm:$0xff]  ;;  %v1424_v13 = vld [vmem:[%s8009_s15 + $0x438] sm:$0xff] }
 0x1a1   : > { %4985 = vmatprep.subr.bf16.mxu0 %v6726_v29  ;;  %5025 = vmatprep.subr.bf16.mxu1 %v6728_v30  ;;  %v6278_v29 = vcombine.high %v1293_v21, %v1325_v22  ;;  %v6280_v30 = vcombine.high %v1294_v23, %v1326_v24  ;;  %v1455_v12 = vld [vmem:[%s8009_s15 + $0x530] sm:$0xff]  ;;  %v1456_v14 = vld [vmem:[%s8009_s15 + $0x538] sm:$0xff] }
 0x1a7   : > { %4938 = vmatmul.mubr.bf16.vlgmr.msra.gmra.mxu0 %v1839_v33  ;;  %4978 = vmatmul.mubr.bf16.vlgmr.msra.gmra.mxu1 %v1855_v38  ;;  %v1743_v33 = vld [vmem:[%s8009_s15 + $0xe30] sm:$0xff]  ;;  %v6279_v38 = vcombine.low %v1294_v23, %v1326_v24  ;;  %v1360_v23 = vld [vmem:[%s8009_s15 + $0x238] sm:$0xff] }
 0x1a8   : > { %4986 = vmatpush1.bf16.xpose.msra.mxu0 %v6725_v39  ;;  %5026 = vmatpush1.bf16.xpose.msra.mxu1 %v6727_v40  ;;  %v6730_v39 = vcombine.high %v1743_v33, %v1775_v34  ;;  %v6732_v40 = vcombine.high %v1744_v31, %v1776_v35  ;;  %v1392_v24 = vld [vmem:[%s8009_s15 + $0x338] sm:$0xff] }
 0x1a9   : > { %4987 = vmatprep.subr.bf16.mxu0 %v6662_v41  ;;  %5027 = vmatprep.subr.bf16.mxu1 %v6664_v42  ;;  %v1881_v41 = vrot.slane %v8107_v26, %v8024_v25  ;;  %v1679_v42 = vld [vmem:[%s8009_s15 + $0xc30] sm:$0xff]  ;;  %v1906_v26 = vcombine.high %v1902_v45, %v1902_v45 }
 0x1aa   : > { %5017 = vmatprep.mubr.bf16.mxu0 %v1895_v37  ;;  %5057 = vmatprep.mubr.bf16.mxu1 %v1905_v16  ;;  %v6277_v37 = vcombine.low %v1293_v21, %v1325_v22  ;;  %v1711_v16 = vld [vmem:[%s8009_s15 + $0xd30] sm:$0xff] }
 0x1ab   : > { %v1903_v46 = vcombine.high %v1881_v41, %v1881_v41  ;;  %v1359_v21 = vld [vmem:[%s8009_s15 + $0x230] sm:$0xff] }
 0x1ac   : > { %v1391_v22 = vld [vmem:[%s8009_s15 + $0x330] sm:$0xff] }
 0x1b0   : > { %4988 = vmatpush1.bf16.xpose.msra.mxu0 %v6661_v47  ;;  %5028 = vmatpush1.bf16.xpose.msra.mxu1 %v6663_v48  ;;  %v6729_v47 = vcombine.low %v1743_v33, %v1775_v34  ;;  %v6731_v48 = vcombine.low %v1744_v31, %v1776_v35  ;;  %v1327_v33 = vld [vmem:[%s8009_s15 + $0x130] sm:$0xff]  ;;  %v1296_v34 = vld [vmem:[%s8009_s15 + $0x38] sm:$0xff]  ;;  %v6345_v35 = vcombine.low %v1359_v21, %v1391_v22 }
 0x1b1   : > { %4989 = vmatprep.subr.bf16.mxu0 %v6598_v49  ;;  %5029 = vmatprep.subr.bf16.mxu1 %v6600_v50  ;;  %v6666_v49 = vcombine.high %v1679_v42, %v1711_v16  ;;  %v6668_v50 = vcombine.high %v1680_v43, %v1712_v44  ;;  %v1328_v31 = vld [vmem:[%s8009_s15 + $0x138] sm:$0xff] }
 0x1b8   : > { %4990 = vmatpush1.bf16.xpose.msra.mxu0 %v6597_v55  ;;  %5030 = vmatpush1.bf16.xpose.msra.mxu1 %v6599_v56  ;;  %v6665_v55 = vcombine.low %v1679_v42, %v1711_v16  ;;  %v6667_v56 = vcombine.low %v1680_v43, %v1712_v44  ;;  %v1746_v42 = vld [vmem:[%s8009_s15 + $0xe48] sm:$0xff]  ;;  %v6281_v44 = vcombine.low %v1295_v32, %v1327_v33 }
 0x1b9   : > { %4991 = vmatprep.subr.bf16.mxu0 %v6534_v57  ;;  %5031 = vmatprep.subr.bf16.mxu1 %v6536_v58  ;;  %v6602_v57 = vcombine.high %v1615_v51, %v1647_v52  ;;  %v6604_v58 = vcombine.high %v1616_v53, %v1648_v54  ;;  %v1778_v16 = vld [vmem:[%s8009_s15 + $0xf48] sm:$0xff] }
 0x1c0   : > { %4992 = vmatpush1.bf16.xpose.msra.mxu0 %v6533_v63  ;;  %5032 = vmatpush1.bf16.xpose.msra.mxu1 %v6535_v0  ;;  %v6601_v63 = vcombine.low %v1615_v51, %v1647_v52  ;;  %v6603_v0 = vcombine.low %v1616_v53, %v1648_v54  ;;  %v1682_v51 = vld [vmem:[%s8009_s15 + $0xc48] sm:$0xff] }
 0x1c1   : > { %4993 = vmatprep.subr.bf16.mxu0 %v6470_v1  ;;  %5033 = vmatprep.subr.bf16.mxu1 %v6472_v2  ;;  %v6538_v1 = vcombine.high %v1551_v59, %v1583_v60  ;;  %v6540_v2 = vcombine.high %v1552_v61, %v1584_v62  ;;  %v1714_v52 = vld [vmem:[%s8009_s15 + $0xd48] sm:$0xff] }
 0x1c8   : > { %4994 = vmatpush1.bf16.xpose.msra.mxu0 %v6469_v7  ;;  %5034 = vmatpush1.bf16.xpose.msra.mxu1 %v6471_v8  ;;  %v6537_v7 = vcombine.low %v1551_v59, %v1583_v60  ;;  %v6539_v8 = vcombine.low %v1552_v61, %v1584_v62 }
 0x1c9   : > { %4995 = vmatprep.subr.bf16.mxu0 %v6406_v9  ;;  %5035 = vmatprep.subr.bf16.mxu1 %v6408_v10  ;;  %v6474_v9 = vcombine.high %v1487_v3, %v1519_v4  ;;  %v6476_v10 = vcombine.high %v1488_v5, %v1520_v6 }
 0x1d0   : > { %4996 = vmatpush1.bf16.xpose.msra.mxu0 %v6405_v15  ;;  %5036 = vmatpush1.bf16.xpose.msra.mxu1 %v6407_v17  ;;  %v6473_v15 = vcombine.low %v1487_v3, %v1519_v4  ;;  %v6475_v17 = vcombine.low %v1488_v5, %v1520_v6  ;;  %v1618_v3 = vld [vmem:[%s8009_s15 + $0xa48] sm:$0xff] }
 0x1d1   : > { %4997 = vmatprep.subr.bf16.mxu0 %v6342_v18  ;;  %5037 = vmatprep.subr.bf16.mxu1 %v6344_v19  ;;  %v6410_v18 = vcombine.high %v1423_v11, %v1455_v12  ;;  %v6412_v19 = vcombine.high %v1424_v13, %v1456_v14  ;;  %v1650_v4 = vld [vmem:[%s8009_s15 + $0xb48] sm:$0xff] }
 0x1d8   : > { %4998 = vmatpush1.bf16.xpose.msra.mxu0 %v6341_v27  ;;  %5038 = vmatpush1.bf16.xpose.msra.mxu1 %v6343_v28  ;;  %v6409_v27 = vcombine.low %v1423_v11, %v1455_v12  ;;  %v6411_v28 = vcombine.low %v1424_v13, %v1456_v14  ;;  %v6608_v11 = vcombine.high %v1618_v3, %v1650_v4  ;;  %v1553_v12 = vld [vmem:[%s8009_s15 + $0x840] sm:$0xff]  ;;  %v1554_v14 = vld [vmem:[%s8009_s15 + $0x848] sm:$0xff] }
 0x1d9   : > { %4999 = vmatprep.subr.bf16.mxu0 %v6278_v29  ;;  %5039 = vmatprep.subr.bf16.mxu1 %v6280_v30  ;;  %v6346_v29 = vcombine.high %v1359_v21, %v1391_v22  ;;  %v6348_v30 = vcombine.high %v1360_v23, %v1392_v24  ;;  %v1585_v13 = vld [vmem:[%s8009_s15 + $0x940] sm:$0xff] }
 0x1da   : > { %v1489_v22 = vld [vmem:[%s8009_s15 + $0x640] sm:$0xff] }
 0x1e0   : > { %5000 = vmatpush1.bf16.xpose.msra.mxu0 %v6277_v37  ;;  %5040 = vmatpush1.bf16.xpose.msra.mxu1 %v6279_v38  ;;  %v6347_v37 = vcombine.low %v1360_v23, %v1392_v24  ;;  %v6282_v38 = vcombine.high %v1295_v32, %v1327_v33  ;;  %v1521_v23 = vld [vmem:[%s8009_s15 + $0x740] sm:$0xff]  ;;  %v1490_v24 = vld [vmem:[%s8009_s15 + $0x648] sm:$0xff] }
 0x1e1   : > { %5065 = vmatprep.subr.bf16.mxu0 %v6730_v39  ;;  %5105 = vmatprep.subr.bf16.mxu1 %v6732_v40  ;;  %v6284_v39 = vcombine.high %v1296_v34, %v1328_v31  ;;  %v8185_v40 = vld [vmem:[%s8007_s14 + $0x10] sm:$0xff]  ;;  %v1425_v33 = vld [vmem:[%s8009_s15 + $0x440] sm:$0xff] }
 0x1e2   : > { %v8193_v43 = vrot.slane %v8185_v40, %v8024_v25 }
 0x1e7   : > { %5018 = vmatmul.mubr.bf16.vlgmr.msra.gmra.mxu0 %v1881_v41  ;;  %5058 = vmatmul.mubr.bf16.vlgmr.msra.gmra.mxu1 %v1903_v46  ;;  %v1777_v41 = vld [vmem:[%s8009_s15 + $0xf40] sm:$0xff] }
 0x1e8   : > { %5066 = vmatpush1.bf16.xpose.msra.mxu0 %v6729_v47  ;;  %5106 = vmatpush1.bf16.xpose.msra.mxu1 %v6731_v48  ;;  %v6734_v46 = vcombine.high %v1745_v20, %v1777_v41  ;;  %v6736_v47 = vcombine.high %v1746_v42, %v1778_v16  ;;  %v1922_v48 = vcombine.high %v8193_v43, %v8193_v43 }
 0x1e9   : > { %5067 = vmatprep.subr.bf16.mxu0 %v6666_v49  ;;  %5107 = vmatprep.subr.bf16.mxu1 %v6668_v50  ;;  %v1888_v49 = vrot.slane %v8149_v36, %v8024_v25  ;;  %v1681_v50 = vld [vmem:[%s8009_s15 + $0xc40] sm:$0xff] }
 0x1ea   : > { %5097 = vmatprep.mubr.bf16.mxu0 %v1902_v45  ;;  %5137 = vmatprep.mubr.bf16.mxu1 %v1906_v26  ;;  %v6283_v45 = vcombine.low %v1296_v34, %v1328_v31  ;;  %v1713_v26 = vld [vmem:[%s8009_s15 + $0xd40] sm:$0xff]  ;;  %v1944_v53 = vrot.slane %v1922_v48, %v8024_v25  ;;  %v1426_v31 = vld [vmem:[%s8009_s15 + $0x448] sm:$0xff] }
 0x1eb   : > { %v1904_v54 = vcombine.high %v1888_v49, %v1888_v49  ;;  %v6669_v6 = vcombine.low %v1681_v50, %v1713_v26  ;;  %v1457_v34 = vld [vmem:[%s8009_s15 + $0x540] sm:$0xff] }
 0x1ec   : > { %v1954_v36 = vcombine.high %v1944_v53, %v1944_v53 }
 0x1f0   : > { %5068 = vmatpush1.bf16.xpose.msra.mxu0 %v6665_v55  ;;  %5108 = vmatpush1.bf16.xpose.msra.mxu1 %v6667_v56  ;;  %v6733_v55 = vcombine.low %v1745_v20, %v1777_v41  ;;  %v6735_v56 = vcombine.low %v1746_v42, %v1778_v16  ;;  %v1361_v41 = vld [vmem:[%s8009_s15 + $0x240] sm:$0xff]  ;;  %v1362_v16 = vld [vmem:[%s8009_s15 + $0x248] sm:$0xff] }
 0x1f1   : > { %5069 = vmatprep.subr.bf16.mxu0 %v6602_v57  ;;  %5109 = vmatprep.subr.bf16.mxu1 %v6604_v58  ;;  %v6670_v57 = vcombine.high %v1681_v50, %v1713_v26  ;;  %v6672_v58 = vcombine.high %v1682_v51, %v1714_v52  ;;  %v1393_v42 = vld [vmem:[%s8009_s15 + $0x340] sm:$0xff]  ;;  %v1298_v26 = vld [vmem:[%s8009_s15 + $0x48] sm:$0xff] }
 0x1f2   : > { %v1329_v50 = vld [vmem:[%s8009_s15 + $0x140] sm:$0xff] }
 0x1f8   : > { %5070 = vmatpush1.bf16.xpose.msra.mxu0 %v6601_v63  ;;  %5110 = vmatpush1.bf16.xpose.msra.mxu1 %v6603_v0  ;;  %v1617_v0 = vld [vmem:[%s8009_s15 + $0xa40] sm:$0xff] }
 0x1f9   : > { %5071 = vmatprep.subr.bf16.mxu0 %v6538_v1  ;;  %5111 = vmatprep.subr.bf16.mxu1 %v6540_v2  ;;  %v1649_v1 = vld [vmem:[%s8009_s15 + $0xb40] sm:$0xff] }
 0x200   : > { %5072 = vmatpush1.bf16.xpose.msra.mxu0 %v6537_v7  ;;  %5112 = vmatpush1.bf16.xpose.msra.mxu1 %v6539_v8  ;;  %v6671_v8 = vcombine.low %v1682_v51, %v1714_v52  ;;  %v1330_v51 = vld [vmem:[%s8009_s15 + $0x148] sm:$0xff]  ;;  %v6349_v52 = vcombine.low %v1361_v41, %v1393_v42 }
 0x201   : > { %5073 = vmatprep.subr.bf16.mxu0 %v6474_v9  ;;  %5113 = vmatprep.subr.bf16.mxu1 %v6476_v10  ;;  %v6606_v9 = vcombine.high %v1617_v0, %v1649_v1 }
 0x208   : > { %5074 = vmatpush1.bf16.xpose.msra.mxu0 %v6473_v15  ;;  %5114 = vmatpush1.bf16.xpose.msra.mxu1 %v6475_v17  ;;  %v1586_v15 = vld [vmem:[%s8009_s15 + $0x948] sm:$0xff]  ;;  %v6605_v17 = vcombine.low %v1617_v0, %v1649_v1 }
 0x209   : > { %5075 = vmatprep.subr.bf16.mxu0 %v6410_v18  ;;  %5115 = vmatprep.subr.bf16.mxu1 %v6412_v19  ;;  %v6607_v18 = vcombine.low %v1618_v3, %v1650_v4  ;;  %v6542_v19 = vcombine.high %v1553_v12, %v1585_v13  ;;  %v6544_v21 = vcombine.high %v1554_v14, %v1586_v15  ;;  %v1683_v3 = vld [vmem:[%s8009_s15 + $0xc50] sm:$0xff] }
 0x20a   : > { %v1715_v4 = vld [vmem:[%s8009_s15 + $0xd50] sm:$0xff] }
 0x210   : > { %5076 = vmatpush1.bf16.xpose.msra.mxu0 %v6409_v27  ;;  %5116 = vmatpush1.bf16.xpose.msra.mxu1 %v6411_v28  ;;  %v1522_v27 = vld [vmem:[%s8009_s15 + $0x748] sm:$0xff]  ;;  %v6541_v28 = vcombine.low %v1553_v12, %v1585_v13 }
 0x211   : > { %5077 = vmatprep.subr.bf16.mxu0 %v6346_v29  ;;  %5117 = vmatprep.subr.bf16.mxu1 %v6348_v30  ;;  %v6543_v29 = vcombine.low %v1554_v14, %v1586_v15  ;;  %v6478_v30 = vcombine.high %v1489_v22, %v1521_v23  ;;  %v6480_v32 = vcombine.high %v1490_v24, %v1522_v27 }
 0x218   : > { %5078 = vmatpush1.bf16.xpose.msra.mxu0 %v6345_v35  ;;  %5118 = vmatpush1.bf16.xpose.msra.mxu1 %v6347_v37  ;;  %v1458_v35 = vld [vmem:[%s8009_s15 + $0x548] sm:$0xff]  ;;  %v6477_v37 = vcombine.low %v1489_v22, %v1521_v23  ;;  %v1651_v22 = vld [vmem:[%s8009_s15 + $0xb50] sm:$0xff] }
 0x219   : > { %5079 = vmatprep.subr.bf16.mxu0 %v6282_v38  ;;  %5119 = vmatprep.subr.bf16.mxu1 %v6284_v39  ;;  %v6479_v38 = vcombine.low %v1490_v24, %v1522_v27  ;;  %v6414_v39 = vcombine.high %v1425_v33, %v1457_v34  ;;  %v6416_v20 = vcombine.high %v1426_v31, %v1458_v35  ;;  %v1620_v24 = vld [vmem:[%s8009_s15 + $0xa58] sm:$0xff] }
 0x21a   : > { %v1652_v27 = vld [vmem:[%s8009_s15 + $0xb58] sm:$0xff] }
 0x220   : > { %5080 = vmatpush1.bf16.xpose.msra.mxu0 %v6281_v44  ;;  %5120 = vmatpush1.bf16.xpose.msra.mxu1 %v6283_v45  ;;  %v1394_v44 = vld [vmem:[%s8009_s15 + $0x348] sm:$0xff]  ;;  %v6413_v45 = vcombine.low %v1425_v33, %v1457_v34  ;;  %v6612_v34 = vcombine.high %v1620_v24, %v1652_v27 }
 0x221   : > { %5145 = vmatprep.subr.bf16.mxu0 %v6734_v46  ;;  %5185 = vmatprep.subr.bf16.mxu1 %v6736_v47  ;;  %v6415_v46 = vcombine.low %v1426_v31, %v1458_v35  ;;  %v6350_v47 = vcombine.high %v1361_v41, %v1393_v42  ;;  %v6352_v48 = vcombine.high %v1362_v16, %v1394_v44  ;;  %v1555_v31 = vld [vmem:[%s8009_s15 + $0x850] sm:$0xff] }
 0x222   : > { %v1587_v35 = vld [vmem:[%s8009_s15 + $0x950] sm:$0xff] }
 0x223   : > { %v6546_v41 = vcombine.high %v1555_v31, %v1587_v35 }
 0x227   : > { %v4859_v59 = vpop.f32.mrf.mxu0  ;;  %5098 = vmatmul.mubr.bf16.vlgmr.msra.gmra.mxu0 %v1888_v49  ;;  %v4899_v60 = vpop.f32.mrf.mxu1  ;;  %5138 = vmatmul.mubr.bf16.vlgmr.msra.gmra.mxu1 %v1904_v54  ;;  %v1297_v49 = vld [vmem:[%s8009_s15 + $0x40] sm:$0xff] }
 0x228   : > { %5146 = vmatpush1.bf16.xpose.msra.mxu0 %v6733_v55  ;;  %v8204_v61 = vadd.f32 %v4899_v60, %v4859_v59  ;;  %5186 = vmatpush1.bf16.xpose.msra.mxu1 %v6735_v56  ;;  %v6286_v54 = vcombine.high %v1297_v49, %v1329_v50  ;;  %v6288_v55 = vcombine.high %v1298_v26, %v1330_v51  ;;  %v1748_v59 = vld [vmem:[%s8009_s15 + $0xe58] sm:$0xff] }
 0x229   : > { %v4861_v62 = vpop.f32.mrf.mxu0  ;;  %5147 = vmatprep.subr.bf16.mxu0 %v6670_v57  ;;  %v4901_v63 = vpop.f32.mrf.mxu1  ;;  %5187 = vmatprep.subr.bf16.mxu1 %v6672_v58  ;;  %v1907_v56 = vcombine.high %v8185_v40, %v8185_v40  ;;  %v1747_v57 = vld [vmem:[%s8009_s15 + $0xe50] sm:$0xff] }
 0x22a   : > { %5177 = vmatprep.mubr.bf16.mxu0 %v1944_v53  ;;  %5217 = vmatprep.mubr.bf16.mxu1 %v1954_v36  ;;  %v6351_v53 = vcombine.low %v1362_v16, %v1394_v44  ;;  %v1779_v58 = vld [vmem:[%s8009_s15 + $0xf50] sm:$0xff]  ;;  %v1780_v36 = vld [vmem:[%s8009_s15 + $0xf58] sm:$0xff]  ;;  %v6285_v62 = vcombine.low %v1297_v49, %v1329_v50  ;;  %v6287_v63 = vcombine.low %v1298_v26, %v1330_v51 }
 0x22b   : > { %v4862_v2 = vpop.f32.mrf.mxu0  ;;  %v4902_v5 = vpop.f32.mrf.mxu1  ;;  %v8237_v60 = vrot.slane %v1907_v56, %v8024_v25  ;;  %v6738_v0 = vcombine.high %v1747_v57, %v1779_v58  ;;  %v6740_v1 = vcombine.high %v1748_v59, %v1780_v36  ;;  %v1491_v16 = vld [vmem:[%s8009_s15 + $0x650] sm:$0xff] }
 0x22c   : > { %v1930_v2 = vrot.slane %v8193_v43, %v8024_v25  ;;  %v1684_v5 = vld [vmem:[%s8009_s15 + $0xc58] sm:$0xff]  ;;  %v1523_v44 = vld [vmem:[%s8009_s15 + $0x750] sm:$0xff] }
 0x22d   : > { %v4863_v7 = vpop.f32.mrf.mxu0  ;;  %v4903_v10 = vpop.f32.mrf.mxu1  ;;  %v1923_v40 = vcombine.high %v8237_v60, %v8237_v60  ;;  %v6482_v49 = vcombine.high %v1491_v16, %v1523_v44  ;;  %v1427_v26 = vld [vmem:[%s8009_s15 + $0x450] sm:$0xff] }
 0x22e   : > { %v6739_v10 = vcombine.low %v1748_v59, %v1780_v36  ;;  %v1459_v51 = vld [vmem:[%s8009_s15 + $0x550] sm:$0xff]  ;;  %v1364_v36 = vld [vmem:[%s8009_s15 + $0x258] sm:$0xff] }
 0x22f   : > { %v1951_v7 = vrot.slane %v1923_v40, %v8024_v25  ;;  %v6418_v56 = vcombine.high %v1427_v26, %v1459_v51  ;;  %v1395_v59 = vld [vmem:[%s8009_s15 + $0x350] sm:$0xff] }
 0x230   : > { %5148 = vmatpush1.bf16.xpose.msra.mxu0 %v6669_v6  ;;  %5188 = vmatpush1.bf16.xpose.msra.mxu1 %v6671_v8  ;;  %v1716_v6 = vld [vmem:[%s8009_s15 + $0xd58] sm:$0xff]  ;;  %v1952_v8 = vcombine.high %v1930_v2, %v1930_v2 }
 0x231   : > { %5149 = vmatprep.subr.bf16.mxu0 %v6606_v9  ;;  %5189 = vmatprep.subr.bf16.mxu1 %v6608_v11  ;;  %v6737_v9 = vcombine.low %v1747_v57, %v1779_v58  ;;  %v6674_v11 = vcombine.high %v1683_v3, %v1715_v4  ;;  %v6676_v12 = vcombine.high %v1684_v5, %v1716_v6  ;;  %v1363_v58 = vld [vmem:[%s8009_s15 + $0x250] sm:$0xff] }
 0x232   : > { %v1955_v43 = vcombine.high %v1951_v7, %v1951_v7 }
 0x238   : > { %5150 = vmatpush1.bf16.xpose.msra.mxu0 %v6605_v17  ;;  %5190 = vmatpush1.bf16.xpose.msra.mxu1 %v6607_v18 }
 0x239   : > { %5151 = vmatprep.subr.bf16.mxu0 %v6542_v19  ;;  %5191 = vmatprep.subr.bf16.mxu1 %v6544_v21  ;;  %v1619_v21 = vld [vmem:[%s8009_s15 + $0xa50] sm:$0xff] }
 0x240   : > { %5152 = vmatpush1.bf16.xpose.msra.mxu0 %v6541_v28  ;;  %5192 = vmatpush1.bf16.xpose.msra.mxu1 %v6543_v29  ;;  %v6673_v28 = vcombine.low %v1683_v3, %v1715_v4  ;;  %v1331_v3 = vld [vmem:[%s8009_s15 + $0x150] sm:$0xff]  ;;  %v1300_v4 = vld [vmem:[%s8009_s15 + $0x58] sm:$0xff] }
 0x241   : > { %5153 = vmatprep.subr.bf16.mxu0 %v6478_v30  ;;  %5193 = vmatprep.subr.bf16.mxu1 %v6480_v32  ;;  %v6675_v30 = vcombine.low %v1684_v5, %v1716_v6  ;;  %v6610_v32 = vcombine.high %v1619_v21, %v1651_v22  ;;  %v1332_v5 = vld [vmem:[%s8009_s15 + $0x158] sm:$0xff]  ;;  %v6353_v6 = vcombine.low %v1363_v58, %v1395_v59 }
 0x248   : > { %5154 = vmatpush1.bf16.xpose.msra.mxu0 %v6477_v37  ;;  %5194 = vmatpush1.bf16.xpose.msra.mxu1 %v6479_v38  ;;  %v1556_v37 = vld [vmem:[%s8009_s15 + $0x858] sm:$0xff] }
 0x249   : > { %5155 = vmatprep.subr.bf16.mxu0 %v6414_v39  ;;  %5195 = vmatprep.subr.bf16.mxu1 %v6416_v20  ;;  %v1588_v38 = vld [vmem:[%s8009_s15 + $0x958] sm:$0xff]  ;;  %v6609_v39 = vcombine.low %v1619_v21, %v1651_v22  ;;  %v6611_v20 = vcombine.low %v1620_v24, %v1652_v27  ;;  %v1685_v24 = vld [vmem:[%s8009_s15 + $0xc60] sm:$0xff] }
 0x24a   : > { %v6548_v42 = vcombine.high %v1556_v37, %v1588_v38  ;;  %v1717_v27 = vld [vmem:[%s8009_s15 + $0xd60] sm:$0xff] }
 0x250   : > { %5156 = vmatpush1.bf16.xpose.msra.mxu0 %v6413_v45  ;;  %5196 = vmatpush1.bf16.xpose.msra.mxu1 %v6415_v46  ;;  %v1492_v45 = vld [vmem:[%s8009_s15 + $0x658] sm:$0xff] }
 0x251   : > { %5157 = vmatprep.subr.bf16.mxu0 %v6350_v47  ;;  %5197 = vmatprep.subr.bf16.mxu1 %v6352_v48  ;;  %v1524_v46 = vld [vmem:[%s8009_s15 + $0x758] sm:$0xff]  ;;  %v6545_v47 = vcombine.low %v1555_v31, %v1587_v35  ;;  %v6547_v48 = vcombine.low %v1556_v37, %v1588_v38 }
 0x252   : > { %v6484_v50 = vcombine.high %v1492_v45, %v1524_v46 }
 0x258   : > { %5158 = vmatpush1.bf16.xpose.msra.mxu0 %v6349_v52  ;;  %5198 = vmatpush1.bf16.xpose.msra.mxu1 %v6351_v53  ;;  %v1428_v52 = vld [vmem:[%s8009_s15 + $0x458] sm:$0xff] }
 0x259   : > { %5159 = vmatprep.subr.bf16.mxu0 %v6286_v54  ;;  %5199 = vmatprep.subr.bf16.mxu1 %v6288_v55  ;;  %v1460_v53 = vld [vmem:[%s8009_s15 + $0x558] sm:$0xff]  ;;  %v6481_v54 = vcombine.low %v1491_v16, %v1523_v44  ;;  %v6483_v55 = vcombine.low %v1492_v45, %v1524_v46  ;;  %v1653_v16 = vld [vmem:[%s8009_s15 + $0xb60] sm:$0xff]  ;;  %v1622_v45 = vld [vmem:[%s8009_s15 + $0xa68] sm:$0xff] }
 0x25a   : > { %v6420_v57 = vcombine.high %v1428_v52, %v1460_v53  ;;  %v1654_v46 = vld [vmem:[%s8009_s15 + $0xb68] sm:$0xff] }
 0x260   : > { %5160 = vmatpush1.bf16.xpose.msra.mxu0 %v6285_v62  ;;  %5200 = vmatpush1.bf16.xpose.msra.mxu1 %v6287_v63  ;;  %v1396_v62 = vld [vmem:[%s8009_s15 + $0x358] sm:$0xff]  ;;  %v6417_v63 = vcombine.low %v1427_v26, %v1459_v51  ;;  %v6616_v51 = vcombine.high %v1622_v45, %v1654_v46 }
 0x261   : > { %5225 = vmatprep.subr.bf16.mxu0 %v6738_v0  ;;  %5265 = vmatprep.subr.bf16.mxu1 %v6740_v1  ;;  %v6419_v0 = vcombine.low %v1428_v52, %v1460_v53  ;;  %v6354_v1 = vcombine.high %v1363_v58, %v1395_v59  ;;  %v6356_v40 = vcombine.high %v1364_v36, %v1396_v62  ;;  %v1557_v52 = vld [vmem:[%s8009_s15 + $0x860] sm:$0xff] }
 0x262   : > { %v1589_v53 = vld [vmem:[%s8009_s15 + $0x960] sm:$0xff] }
 0x263   : > { %v6550_v58 = vcombine.high %v1557_v52, %v1589_v53 }
 0x267   : > { %v4939_v13 = vpop.f32.mrf.mxu0  ;;  %5178 = vmatmul.mubr.bf16.vlgmr.msra.gmra.mxu0 %v1930_v2  ;;  %v4979_v15 = vpop.f32.mrf.mxu1  ;;  %5218 = vmatmul.mubr.bf16.vlgmr.msra.gmra.mxu1 %v1952_v8  ;;  %v1299_v2 = vld [vmem:[%s8009_s15 + $0x50] sm:$0xff] }
 0x268   : > { %v4940_v14 = vadd.f32 %v4939_v13, %v8204_v61  ;;  %5226 = vmatpush1.bf16.xpose.msra.mxu0 %v6737_v9  ;;  %5266 = vmatpush1.bf16.xpose.msra.mxu1 %v6739_v10  ;;  %v6290_v8 = vcombine.high %v1299_v2, %v1331_v3  ;;  %v6292_v9 = vcombine.high %v1300_v4, %v1332_v5  ;;  %v8276_v10 = vld [vmem:[%s8007_s14 + $0x18] sm:$0xff]  ;;  %v1750_v13 = vld [vmem:[%s8009_s15 + $0xe68] sm:$0xff] }
 0x269   : > { %v4941_v17 = vpop.f32.mrf.mxu0  ;;  %5227 = vmatprep.subr.bf16.mxu0 %v6674_v11  ;;  %v4981_v19 = vpop.f32.mrf.mxu1  ;;  %5267 = vmatprep.subr.bf16.mxu1 %v6676_v12  ;;  %v1749_v11 = vld [vmem:[%s8009_s15 + $0xe60] sm:$0xff] }
 0x26a   : > { %v8249_v18 = vadd.f32 %v4979_v15, %v4940_v14  ;;  %5257 = vmatprep.mubr.bf16.mxu0 %v1951_v7  ;;  %5297 = vmatprep.mubr.bf16.mxu1 %v1955_v43  ;;  %v6355_v7 = vcombine.low %v1364_v36, %v1396_v62  ;;  %v1781_v12 = vld [vmem:[%s8009_s15 + $0xf60] sm:$0xff]  ;;  %v1782_v43 = vld [vmem:[%s8009_s15 + $0xf68] sm:$0xff]  ;;  %v8284_v14 = vrot.slane %v8276_v10, %v8024_v25 }
 0x26b   : > { %v4942_v23 = vpop.f32.mrf.mxu0  ;;  %v4982_v61 = vpop.f32.mrf.mxu1  ;;  %v6289_v15 = vcombine.low %v1299_v2, %v1331_v3  ;;  %v6291_v17 = vcombine.low %v1300_v4, %v1332_v5  ;;  %v6742_v19 = vcombine.high %v1749_v11, %v1781_v12  ;;  %v6744_v21 = vcombine.high %v1750_v13, %v1782_v43  ;;  %v1493_v36 = vld [vmem:[%s8009_s15 + $0x660] sm:$0xff] }
 0x26c   : > { %v1971_v22 = vcombine.high %v8284_v14, %v8284_v14  ;;  %v1937_v23 = vrot.slane %v8237_v60, %v8024_v25  ;;  %v1686_v61 = vld [vmem:[%s8009_s15 + $0xc68] sm:$0xff]  ;;  %v1525_v62 = vld [vmem:[%s8009_s15 + $0x760] sm:$0xff] }
 0x26d   : > { %v4943_v29 = vpop.f32.mrf.mxu0  ;;  %v4983_v33 = vpop.f32.mrf.mxu1  ;;  %v6486_v2 = vcombine.high %v1493_v36, %v1525_v62  ;;  %v1429_v4 = vld [vmem:[%s8009_s15 + $0x460] sm:$0xff] }
 0x26e   : > { %v1993_v29 = vrot.slane %v1971_v22, %v8024_v25  ;;  %v6743_v33 = vcombine.low %v1750_v13, %v1782_v43  ;;  %v1461_v5 = vld [vmem:[%s8009_s15 + $0x560] sm:$0xff] }
 0x26f   : > { %v1365_v13 = vld [vmem:[%s8009_s15 + $0x260] sm:$0xff] }
 0x270   : > { %5228 = vmatpush1.bf16.xpose.msra.mxu0 %v6673_v28  ;;  %5268 = vmatpush1.bf16.xpose.msra.mxu1 %v6675_v30  ;;  %v1718_v28 = vld [vmem:[%s8009_s15 + $0xd68] sm:$0xff]  ;;  %v1953_v30 = vcombine.high %v1937_v23, %v1937_v23  ;;  %v2003_v60 = vcombine.high %v1993_v29, %v1993_v29  ;;  %v1397_v43 = vld [vmem:[%s8009_s15 + $0x360] sm:$0xff] }
 0x271   : > { %5229 = vmatprep.subr.bf16.mxu0 %v6610_v32  ;;  %5269 = vmatprep.subr.bf16.mxu1 %v6612_v34  ;;  %v6741_v32 = vcombine.low %v1749_v11, %v1781_v12  ;;  %v6678_v34 = vcombine.high %v1685_v24, %v1717_v27  ;;  %v6680_v31 = vcombine.high %v1686_v61, %v1718_v28 }
 0x272   : > { %v6422_v11 = vcombine.high %v1429_v4, %v1461_v5  ;;  %v6358_v22 = vcombine.high %v1365_v13, %v1397_v43 }
 0x278   : > { %5230 = vmatpush1.bf16.xpose.msra.mxu0 %v6609_v39  ;;  %5270 = vmatpush1.bf16.xpose.msra.mxu1 %v6611_v20 }
 0x279   : > { %5231 = vmatprep.subr.bf16.mxu0 %v6546_v41  ;;  %5271 = vmatprep.subr.bf16.mxu1 %v6548_v42  ;;  %v1621_v42 = vld [vmem:[%s8009_s15 + $0xa60] sm:$0xff] }
 0x280   : > { %5232 = vmatpush1.bf16.xpose.msra.mxu0 %v6545_v47  ;;  %5272 = vmatpush1.bf16.xpose.msra.mxu1 %v6547_v48  ;;  %v6677_v47 = vcombine.low %v1685_v24, %v1717_v27  ;;  %v1301_v24 = vld [vmem:[%s8009_s15 + $0x60] sm:$0xff] }
 0x281   : > { %5233 = vmatprep.subr.bf16.mxu0 %v6482_v49  ;;  %5273 = vmatprep.subr.bf16.mxu1 %v6484_v50  ;;  %v6679_v49 = vcombine.low %v1686_v61, %v1718_v28  ;;  %v6614_v50 = vcombine.high %v1621_v42, %v1653_v16  ;;  %v1333_v27 = vld [vmem:[%s8009_s15 + $0x160] sm:$0xff]  ;;  %v1302_v61 = vld [vmem:[%s8009_s15 + $0x68] sm:$0xff] }
 0x282   : > { %v1334_v28 = vld [vmem:[%s8009_s15 + $0x168] sm:$0xff] }
 0x288   : > { %5234 = vmatpush1.bf16.xpose.msra.mxu0 %v6481_v54  ;;  %5274 = vmatpush1.bf16.xpose.msra.mxu1 %v6483_v55  ;;  %v1558_v54 = vld [vmem:[%s8009_s15 + $0x868] sm:$0xff] }
 0x289   : > { %5235 = vmatprep.subr.bf16.mxu0 %v6418_v56  ;;  %5275 = vmatprep.subr.bf16.mxu1 %v6420_v57  ;;  %v1590_v55 = vld [vmem:[%s8009_s15 + $0x968] sm:$0xff]  ;;  %v6613_v56 = vcombine.low %v1621_v42, %v1653_v16  ;;  %v6615_v57 = vcombine.low %v1622_v45, %v1654_v46  ;;  %v1687_v45 = vld [vmem:[%s8009_s15 + $0xc70] sm:$0xff] }
 0x28a   : > { %v6552_v59 = vcombine.high %v1558_v54, %v1590_v55  ;;  %v1719_v46 = vld [vmem:[%s8009_s15 + $0xd70] sm:$0xff] }
 0x290   : > { %5236 = vmatpush1.bf16.xpose.msra.mxu0 %v6417_v63  ;;  %5276 = vmatpush1.bf16.xpose.msra.mxu1 %v6419_v0  ;;  %v1494_v63 = vld [vmem:[%s8009_s15 + $0x668] sm:$0xff] }
 0x291   : > { %5237 = vmatprep.subr.bf16.mxu0 %v6354_v1  ;;  %5277 = vmatprep.subr.bf16.mxu1 %v6356_v40  ;;  %v1526_v0 = vld [vmem:[%s8009_s15 + $0x768] sm:$0xff]  ;;  %v6549_v1 = vcombine.low %v1557_v52, %v1589_v53  ;;  %v6551_v40 = vcombine.low %v1558_v54, %v1590_v55 }
 0x292   : > { %v6488_v3 = vcombine.high %v1494_v63, %v1526_v0 }
 0x298   : > { %5238 = vmatpush1.bf16.xpose.msra.mxu0 %v6353_v6  ;;  %5278 = vmatpush1.bf16.xpose.msra.mxu1 %v6355_v7  ;;  %v1430_v6 = vld [vmem:[%s8009_s15 + $0x468] sm:$0xff] }
 0x299   : > { %5239 = vmatprep.subr.bf16.mxu0 %v6290_v8  ;;  %5279 = vmatprep.subr.bf16.mxu1 %v6292_v9  ;;  %v1462_v7 = vld [vmem:[%s8009_s15 + $0x568] sm:$0xff]  ;;  %v6485_v8 = vcombine.low %v1493_v36, %v1525_v62  ;;  %v6487_v9 = vcombine.low %v1494_v63, %v1526_v0  ;;  %v1655_v36 = vld [vmem:[%s8009_s15 + $0xb70] sm:$0xff]  ;;  %v1624_v63 = vld [vmem:[%s8009_s15 + $0xa78] sm:$0xff] }
 0x29a   : > { %v6424_v12 = vcombine.high %v1430_v6, %v1462_v7  ;;  %v1656_v0 = vld [vmem:[%s8009_s15 + $0xb78] sm:$0xff] }
 0x2a0   : > { %5240 = vmatpush1.bf16.xpose.msra.mxu0 %v6289_v15  ;;  %5280 = vmatpush1.bf16.xpose.msra.mxu1 %v6291_v17  ;;  %v1366_v15 = vld [vmem:[%s8009_s15 + $0x268] sm:$0xff] }
 0x2a1   : > { %5305 = vmatprep.subr.bf16.mxu0 %v6742_v19  ;;  %5345 = vmatprep.subr.bf16.mxu1 %v6744_v21  ;;  %v1398_v17 = vld [vmem:[%s8009_s15 + $0x368] sm:$0xff]  ;;  %v6421_v19 = vcombine.low %v1429_v4, %v1461_v5  ;;  %v6423_v21 = vcombine.low %v1430_v6, %v1462_v7  ;;  %v6620_v5 = vcombine.high %v1624_v63, %v1656_v0  ;;  %v1559_v6 = vld [vmem:[%s8009_s15 + $0x870] sm:$0xff] }
 0x2a2   : > { %v1591_v7 = vld [vmem:[%s8009_s15 + $0x970] sm:$0xff] }
 0x2a7   : > { %v5019_v35 = vpop.f32.mrf.mxu0  ;;  %5258 = vmatmul.mubr.bf16.vlgmr.msra.gmra.mxu0 %v1937_v23  ;;  %v5059_v38 = vpop.f32.mrf.mxu1  ;;  %5298 = vmatmul.mubr.bf16.vlgmr.msra.gmra.mxu1 %v1953_v30  ;;  %v6360_v23 = vcombine.high %v1366_v15, %v1398_v17  ;;  %v6359_v30 = vcombine.low %v1366_v15, %v1398_v17  ;;  %v1495_v15 = vld [vmem:[%s8009_s15 + $0x670] sm:$0xff] }
 0x2a8   : > { %v5020_v37 = vadd.f32 %v5019_v35, %v8249_v18  ;;  %5306 = vmatpush1.bf16.xpose.msra.mxu0 %v6741_v32  ;;  %5346 = vmatpush1.bf16.xpose.msra.mxu1 %v6743_v33  ;;  %v6294_v32 = vcombine.high %v1301_v24, %v1333_v27  ;;  %v6296_v33 = vcombine.high %v1302_v61, %v1334_v28  ;;  %v1783_v35 = vld [vmem:[%s8009_s15 + $0xf70] sm:$0xff] }
 0x2a9   : > { %v5021_v39 = vpop.f32.mrf.mxu0  ;;  %5307 = vmatprep.subr.bf16.mxu0 %v6678_v34  ;;  %v5061_v41 = vpop.f32.mrf.mxu1  ;;  %5347 = vmatprep.subr.bf16.mxu1 %v6680_v31  ;;  %v1956_v34 = vcombine.high %v8276_v10, %v8276_v10  ;;  %v1751_v31 = vld [vmem:[%s8009_s15 + $0xe70] sm:$0xff] }
 0x2aa   : > { %v8296_v20 = vadd.f32 %v5059_v38, %v5020_v37  ;;  %5337 = vmatprep.mubr.bf16.mxu0 %v1993_v29  ;;  %5377 = vmatprep.mubr.bf16.mxu1 %v2003_v60  ;;  %v6357_v29 = vcombine.low %v1365_v13, %v1397_v43  ;;  %v1752_v60 = vld [vmem:[%s8009_s15 + $0xe78] sm:$0xff]  ;;  %v6293_v39 = vcombine.low %v1301_v24, %v1333_v27  ;;  %v1527_v17 = vld [vmem:[%s8009_s15 + $0x770] sm:$0xff] }
 0x2ab   : > { %v5022_v44 = vpop.f32.mrf.mxu0  ;;  %v5062_v18 = vpop.f32.mrf.mxu1  ;;  %v1784_v37 = vld [vmem:[%s8009_s15 + $0xf78] sm:$0xff]  ;;  %v8329_v38 = vrot.slane %v1956_v34, %v8024_v25  ;;  %v6295_v41 = vcombine.low %v1302_v61, %v1334_v28  ;;  %v6746_v42 = vcombine.high %v1751_v31, %v1783_v35  ;;  %v6554_v13 = vcombine.high %v1559_v6, %v1591_v7  ;;  %v1431_v61 = vld [vmem:[%s8009_s15 + $0x470] sm:$0xff] }
 0x2ac   : > { %v6748_v16 = vcombine.high %v1752_v60, %v1784_v37  ;;  %v1979_v44 = vrot.slane %v8284_v14, %v8024_v25  ;;  %v1688_v18 = vld [vmem:[%s8009_s15 + $0xc78] sm:$0xff]  ;;  %v6490_v24 = vcombine.high %v1495_v15, %v1527_v17  ;;  %v1463_v28 = vld [vmem:[%s8009_s15 + $0x570] sm:$0xff] }
 0x2ad   : > { %v5023_v48 = vpop.f32.mrf.mxu0  ;;  %v5063_v26 = vpop.f32.mrf.mxu1  ;;  %v1972_v10 = vcombine.high %v8329_v38, %v8329_v38  ;;  %v6426_v34 = vcombine.high %v1431_v61, %v1463_v28 }
 0x2ae   : > { %v6747_v26 = vcombine.low %v1752_v60, %v1784_v37  ;;  %v1399_v60 = vld [vmem:[%s8009_s15 + $0x370] sm:$0xff]  ;;  %v1368_v37 = vld [vmem:[%s8009_s15 + $0x278] sm:$0xff] }
 0x2af   : > { %v2000_v48 = vrot.slane %v1972_v10, %v8024_v25 }
 0x2b0   : > { %5308 = vmatpush1.bf16.xpose.msra.mxu0 %v6677_v47  ;;  %5348 = vmatpush1.bf16.xpose.msra.mxu1 %v6679_v49  ;;  %v1720_v47 = vld [vmem:[%s8009_s15 + $0xd78] sm:$0xff]  ;;  %v2001_v49 = vcombine.high %v1979_v44, %v1979_v44 }
 0x2b1   : > { %5309 = vmatprep.subr.bf16.mxu0 %v6614_v50  ;;  %5349 = vmatprep.subr.bf16.mxu1 %v6616_v51  ;;  %v6745_v50 = vcombine.low %v1751_v31, %v1783_v35  ;;  %v6682_v51 = vcombine.high %v1687_v45, %v1719_v46  ;;  %v6684_v52 = vcombine.high %v1688_v18, %v1720_v47  ;;  %v1367_v35 = vld [vmem:[%s8009_s15 + $0x270] sm:$0xff] }
 0x2b2   : > { %v2004_v14 = vcombine.high %v2000_v48, %v2000_v48 }
 0x2b8   : > { %5310 = vmatpush1.bf16.xpose.msra.mxu0 %v6613_v56  ;;  %5350 = vmatpush1.bf16.xpose.msra.mxu1 %v6615_v57 }
 0x2b9   : > { %5311 = vmatprep.subr.bf16.mxu0 %v6550_v58  ;;  %5351 = vmatprep.subr.bf16.mxu1 %v6552_v59  ;;  %v1623_v59 = vld [vmem:[%s8009_s15 + $0xa70] sm:$0xff] }
 0x2c0   : > { %5312 = vmatpush1.bf16.xpose.msra.mxu0 %v6549_v1  ;;  %5352 = vmatpush1.bf16.xpose.msra.mxu1 %v6551_v40  ;;  %v6681_v1 = vcombine.low %v1687_v45, %v1719_v46  ;;  %v1335_v45 = vld [vmem:[%s8009_s15 + $0x170] sm:$0xff]  ;;  %v1304_v46 = vld [vmem:[%s8009_s15 + $0x78] sm:$0xff] }
 0x2c1   : > { %5313 = vmatprep.subr.bf16.mxu0 %v6486_v2  ;;  %5353 = vmatprep.subr.bf16.mxu1 %v6488_v3  ;;  %v6683_v2 = vcombine.low %v1688_v18, %v1720_v47  ;;  %v6618_v3 = vcombine.high %v1623_v59, %v1655_v36  ;;  %v1336_v18 = vld [vmem:[%s8009_s15 + $0x178] sm:$0xff]  ;;  %v6361_v47 = vcombine.low %v1367_v35, %v1399_v60 }
 0x2c8   : > { %5314 = vmatpush1.bf16.xpose.msra.mxu0 %v6485_v8  ;;  %5354 = vmatpush1.bf16.xpose.msra.mxu1 %v6487_v9  ;;  %v1560_v8 = vld [vmem:[%s8009_s15 + $0x878] sm:$0xff] }
 0x2c9   : > { %5315 = vmatprep.subr.bf16.mxu0 %v6422_v11  ;;  %5355 = vmatprep.subr.bf16.mxu1 %v6424_v12  ;;  %v1592_v9 = vld [vmem:[%s8009_s15 + $0x978] sm:$0xff]  ;;  %v6617_v11 = vcombine.low %v1623_v59, %v1655_v36  ;;  %v6619_v12 = vcombine.low %v1624_v63, %v1656_v0  ;;  %v1689_v63 = vld [vmem:[%s8009_s15 + $0xc80] sm:$0xff] }
 0x2ca   : > { %v6556_v43 = vcombine.high %v1560_v8, %v1592_v9  ;;  %v1721_v0 = vld [vmem:[%s8009_s15 + $0xd80] sm:$0xff] }
 0x2d0   : > { %5316 = vmatpush1.bf16.xpose.msra.mxu0 %v6421_v19  ;;  %5356 = vmatpush1.bf16.xpose.msra.mxu1 %v6423_v21  ;;  %v1496_v19 = vld [vmem:[%s8009_s15 + $0x678] sm:$0xff] }
 0x2d1   : > { %5317 = vmatprep.subr.bf16.mxu0 %v6358_v22  ;;  %5357 = vmatprep.subr.bf16.mxu1 %v6360_v23  ;;  %v1528_v21 = vld [vmem:[%s8009_s15 + $0x778] sm:$0xff]  ;;  %v6553_v22 = vcombine.low %v1559_v6, %v1591_v7  ;;  %v6555_v23 = vcombine.low %v1560_v8, %v1592_v9 }
 0x2d2   : > { %v6492_v27 = vcombine.high %v1496_v19, %v1528_v21 }
 0x2d8   : > { %5318 = vmatpush1.bf16.xpose.msra.mxu0 %v6357_v29  ;;  %5358 = vmatpush1.bf16.xpose.msra.mxu1 %v6359_v30  ;;  %v1432_v29 = vld [vmem:[%s8009_s15 + $0x478] sm:$0xff] }
 0x2d9   : > { %5319 = vmatprep.subr.bf16.mxu0 %v6294_v32  ;;  %5359 = vmatprep.subr.bf16.mxu1 %v6296_v33  ;;  %v1464_v30 = vld [vmem:[%s8009_s15 + $0x578] sm:$0xff]  ;;  %v6489_v32 = vcombine.low %v1495_v15, %v1527_v17  ;;  %v6491_v33 = vcombine.low %v1496_v19, %v1528_v21  ;;  %v1657_v15 = vld [vmem:[%s8009_s15 + $0xb80] sm:$0xff]  ;;  %v1626_v19 = vld [vmem:[%s8009_s15 + $0xa88] sm:$0xff] }
 0x2da   : > { %v6428_v31 = vcombine.high %v1432_v29, %v1464_v30  ;;  %v1658_v21 = vld [vmem:[%s8009_s15 + $0xb88] sm:$0xff] }
 0x2e0   : > { %5320 = vmatpush1.bf16.xpose.msra.mxu0 %v6293_v39  ;;  %5360 = vmatpush1.bf16.xpose.msra.mxu1 %v6295_v41  ;;  %v1400_v39 = vld [vmem:[%s8009_s15 + $0x378] sm:$0xff]  ;;  %v6425_v41 = vcombine.low %v1431_v61, %v1463_v28  ;;  %v6624_v28 = vcombine.high %v1626_v19, %v1658_v21 }
 0x2e1   : > { %5385 = vmatprep.subr.bf16.mxu0 %v6746_v42  ;;  %5425 = vmatprep.subr.bf16.mxu1 %v6748_v16  ;;  %v6427_v42 = vcombine.low %v1432_v29, %v1464_v30  ;;  %v6362_v16 = vcombine.high %v1367_v35, %v1399_v60  ;;  %v6364_v10 = vcombine.high %v1368_v37, %v1400_v39  ;;  %v1561_v29 = vld [vmem:[%s8009_s15 + $0x880] sm:$0xff] }
 0x2e2   : > { %v1593_v30 = vld [vmem:[%s8009_s15 + $0x980] sm:$0xff] }
 0x2e3   : > { %v6558_v35 = vcombine.high %v1561_v29, %v1593_v30 }
 0x2e7   : > { %v5099_v53 = vpop.f32.mrf.mxu0  ;;  %5338 = vmatmul.mubr.bf16.vlgmr.msra.gmra.mxu0 %v1979_v44  ;;  %v5139_v55 = vpop.f32.mrf.mxu1  ;;  %5378 = vmatmul.mubr.bf16.vlgmr.msra.gmra.mxu1 %v2001_v49  ;;  %v1303_v44 = vld [vmem:[%s8009_s15 + $0x70] sm:$0xff] }
 0x2e8   : > { %v5100_v54 = vadd.f32 %v5099_v53, %v8296_v20  ;;  %5386 = vmatpush1.bf16.xpose.msra.mxu0 %v6745_v50  ;;  %5426 = vmatpush1.bf16.xpose.msra.mxu1 %v6747_v26  ;;  %v6298_v49 = vcombine.high %v1303_v44, %v1335_v45  ;;  %v6300_v50 = vcombine.high %v1304_v46, %v1336_v18  ;;  %v8368_v26 = vld [vmem:[%s8007_s14 + $0x20] sm:$0xff]  ;;  %v1754_v53 = vld [vmem:[%s8009_s15 + $0xe88] sm:$0xff] }
 0x2e9   : > { %v5101_v56 = vpop.f32.mrf.mxu0  ;;  %5387 = vmatprep.subr.bf16.mxu0 %v6682_v51  ;;  %v5141_v58 = vpop.f32.mrf.mxu1  ;;  %5427 = vmatprep.subr.bf16.mxu1 %v6684_v52  ;;  %v1753_v51 = vld [vmem:[%s8009_s15 + $0xe80] sm:$0xff] }
 0x2ea   : > { %v8341_v57 = vadd.f32 %v5139_v55, %v5100_v54  ;;  %5417 = vmatprep.mubr.bf16.mxu0 %v2000_v48  ;;  %5457 = vmatprep.mubr.bf16.mxu1 %v2004_v14  ;;  %v6363_v48 = vcombine.low %v1368_v37, %v1400_v39  ;;  %v1785_v52 = vld [vmem:[%s8009_s15 + $0xf80] sm:$0xff]  ;;  %v1786_v14 = vld [vmem:[%s8009_s15 + $0xf88] sm:$0xff]  ;;  %v8376_v54 = vrot.slane %v8368_v26, %v8024_v25 }
 0x2eb   : > { %v5102_v62 = vpop.f32.mrf.mxu0  ;;  %v5142_v20 = vpop.f32.mrf.mxu1  ;;  %v6297_v55 = vcombine.low %v1303_v44, %v1335_v45  ;;  %v6299_v56 = vcombine.low %v1304_v46, %v1336_v18  ;;  %v6750_v58 = vcombine.high %v1753_v51, %v1785_v52  ;;  %v6752_v59 = vcombine.high %v1754_v53, %v1786_v14  ;;  %v1497_v37 = vld [vmem:[%s8009_s15 + $0x680] sm:$0xff] }
 0x2ec   : > { %v2020_v36 = vcombine.high %v8376_v54, %v8376_v54  ;;  %v1986_v62 = vrot.slane %v8329_v38, %v8024_v25  ;;  %v1690_v20 = vld [vmem:[%s8009_s15 + $0xc88] sm:$0xff]  ;;  %v1529_v39 = vld [vmem:[%s8009_s15 + $0x780] sm:$0xff] }
 0x2ed   : > { %v5103_v40 = vpop.f32.mrf.mxu0  ;;  %v5143_v4 = vpop.f32.mrf.mxu1  ;;  %v6494_v44 = vcombine.high %v1497_v37, %v1529_v39  ;;  %v1433_v46 = vld [vmem:[%s8009_s15 + $0x480] sm:$0xff] }
 0x2ee   : > { %v2042_v40 = vrot.slane %v2020_v36, %v8024_v25  ;;  %v6751_v4 = vcombine.low %v1754_v53, %v1786_v14  ;;  %v1465_v18 = vld [vmem:[%s8009_s15 + $0x580] sm:$0xff] }
 0x2ef   : > { %v1369_v53 = vld [vmem:[%s8009_s15 + $0x280] sm:$0xff] }
 0x2f0   : > { %5388 = vmatpush1.bf16.xpose.msra.mxu0 %v6681_v1  ;;  %5428 = vmatpush1.bf16.xpose.msra.mxu1 %v6683_v2  ;;  %v1722_v1 = vld [vmem:[%s8009_s15 + $0xd88] sm:$0xff]  ;;  %v2002_v2 = vcombine.high %v1986_v62, %v1986_v62  ;;  %v2052_v38 = vcombine.high %v2042_v40, %v2042_v40  ;;  %v1401_v14 = vld [vmem:[%s8009_s15 + $0x380] sm:$0xff] }
 0x2f1   : > { %5389 = vmatprep.subr.bf16.mxu0 %v6618_v3  ;;  %5429 = vmatprep.subr.bf16.mxu1 %v6620_v5  ;;  %v6749_v3 = vcombine.low %v1753_v51, %v1785_v52  ;;  %v6686_v5 = vcombine.high %v1689_v63, %v1721_v0  ;;  %v6688_v6 = vcombine.high %v1690_v20, %v1722_v1 }
 0x2f2   : > { %v6430_v51 = vcombine.high %v1433_v46, %v1465_v18  ;;  %v6366_v36 = vcombine.high %v1369_v53, %v1401_v14 }
 0x2f8   : > { %5390 = vmatpush1.bf16.xpose.msra.mxu0 %v6617_v11  ;;  %5430 = vmatpush1.bf16.xpose.msra.mxu1 %v6619_v12 }
 0x2f9   : > { %5391 = vmatprep.subr.bf16.mxu0 %v6554_v13  ;;  %5431 = vmatprep.subr.bf16.mxu1 %v6556_v43  ;;  %v1625_v43 = vld [vmem:[%s8009_s15 + $0xa80] sm:$0xff] }
 0x300   : > { %5392 = vmatpush1.bf16.xpose.msra.mxu0 %v6553_v22  ;;  %5432 = vmatpush1.bf16.xpose.msra.mxu1 %v6555_v23  ;;  %v6685_v22 = vcombine.low %v1689_v63, %v1721_v0  ;;  %v1305_v63 = vld [vmem:[%s8009_s15 + $0x80] sm:$0xff] }
 0x301   : > { %5393 = vmatprep.subr.bf16.mxu0 %v6490_v24  ;;  %5433 = vmatprep.subr.bf16.mxu1 %v6492_v27  ;;  %v6687_v24 = vcombine.low %v1690_v20, %v1722_v1  ;;  %v6622_v27 = vcombine.high %v1625_v43, %v1657_v15  ;;  %v1337_v0 = vld [vmem:[%s8009_s15 + $0x180] sm:$0xff]  ;;  %v1306_v20 = vld [vmem:[%s8009_s15 + $0x88] sm:$0xff] }
 0x302   : > { %v1338_v1 = vld [vmem:[%s8009_s15 + $0x188] sm:$0xff] }
 0x308   : > { %5394 = vmatpush1.bf16.xpose.msra.mxu0 %v6489_v32  ;;  %5434 = vmatpush1.bf16.xpose.msra.mxu1 %v6491_v33  ;;  %v1562_v32 = vld [vmem:[%s8009_s15 + $0x888] sm:$0xff] }
 0x309   : > { %5395 = vmatprep.subr.bf16.mxu0 %v6426_v34  ;;  %5435 = vmatprep.subr.bf16.mxu1 %v6428_v31  ;;  %v1594_v33 = vld [vmem:[%s8009_s15 + $0x988] sm:$0xff]  ;;  %v6621_v34 = vcombine.low %v1625_v43, %v1657_v15  ;;  %v6623_v31 = vcombine.low %v1626_v19, %v1658_v21  ;;  %v1691_v19 = vld [vmem:[%s8009_s15 + $0xc90] sm:$0xff] }
 0x30a   : > { %v6560_v60 = vcombine.high %v1562_v32, %v1594_v33  ;;  %v1723_v21 = vld [vmem:[%s8009_s15 + $0xd90] sm:$0xff] }
 0x310   : > { %5396 = vmatpush1.bf16.xpose.msra.mxu0 %v6425_v41  ;;  %5436 = vmatpush1.bf16.xpose.msra.mxu1 %v6427_v42  ;;  %v1498_v41 = vld [vmem:[%s8009_s15 + $0x688] sm:$0xff] }
 0x311   : > { %5397 = vmatprep.subr.bf16.mxu0 %v6362_v16  ;;  %5437 = vmatprep.subr.bf16.mxu1 %v6364_v10  ;;  %v1530_v42 = vld [vmem:[%s8009_s15 + $0x788] sm:$0xff]  ;;  %v6557_v16 = vcombine.low %v1561_v29, %v1593_v30  ;;  %v6559_v10 = vcombine.low %v1562_v32, %v1594_v33 }
 0x312   : > { %v6496_v45 = vcombine.high %v1498_v41, %v1530_v42 }
 0x318   : > { %5398 = vmatpush1.bf16.xpose.msra.mxu0 %v6361_v47  ;;  %5438 = vmatpush1.bf16.xpose.msra.mxu1 %v6363_v48  ;;  %v1434_v47 = vld [vmem:[%s8009_s15 + $0x488] sm:$0xff] }
 0x319   : > { %5399 = vmatprep.subr.bf16.mxu0 %v6298_v49  ;;  %5439 = vmatprep.subr.bf16.mxu1 %v6300_v50  ;;  %v1466_v48 = vld [vmem:[%s8009_s15 + $0x588] sm:$0xff]  ;;  %v6493_v49 = vcombine.low %v1497_v37, %v1529_v39  ;;  %v6495_v50 = vcombine.low %v1498_v41, %v1530_v42  ;;  %v1659_v37 = vld [vmem:[%s8009_s15 + $0xb90] sm:$0xff]  ;;  %v1628_v41 = vld [vmem:[%s8009_s15 + $0xa98] sm:$0xff] }
 0x31a   : > { %v6432_v52 = vcombine.high %v1434_v47, %v1466_v48  ;;  %v1660_v42 = vld [vmem:[%s8009_s15 + $0xb98] sm:$0xff] }
 0x320   : > { %5400 = vmatpush1.bf16.xpose.msra.mxu0 %v6297_v55  ;;  %5440 = vmatpush1.bf16.xpose.msra.mxu1 %v6299_v56  ;;  %v1370_v55 = vld [vmem:[%s8009_s15 + $0x288] sm:$0xff] }
 0x321   : > { %5465 = vmatprep.subr.bf16.mxu0 %v6750_v58  ;;  %5505 = vmatprep.subr.bf16.mxu1 %v6752_v59  ;;  %v1402_v56 = vld [vmem:[%s8009_s15 + $0x388] sm:$0xff]  ;;  %v6429_v58 = vcombine.low %v1433_v46, %v1465_v18  ;;  %v6431_v59 = vcombine.low %v1434_v47, %v1466_v48  ;;  %v6628_v18 = vcombine.high %v1628_v41, %v1660_v42  ;;  %v1563_v47 = vld [vmem:[%s8009_s15 + $0x890] sm:$0xff] }
 0x322   : > { %v1595_v48 = vld [vmem:[%s8009_s15 + $0x990] sm:$0xff] }
 0x327   : > { %v5179_v7 = vpop.f32.mrf.mxu0  ;;  %5418 = vmatmul.mubr.bf16.vlgmr.msra.gmra.mxu0 %v1986_v62  ;;  %v5219_v9 = vpop.f32.mrf.mxu1  ;;  %5458 = vmatmul.mubr.bf16.vlgmr.msra.gmra.mxu1 %v2002_v2  ;;  %v6368_v62 = vcombine.high %v1370_v55, %v1402_v56  ;;  %v6367_v2 = vcombine.low %v1370_v55, %v1402_v56  ;;  %v1499_v55 = vld [vmem:[%s8009_s15 + $0x690] sm:$0xff] }
 0x328   : > { %v5180_v8 = vadd.f32 %v5179_v7, %v8341_v57  ;;  %5466 = vmatpush1.bf16.xpose.msra.mxu0 %v6749_v3  ;;  %5506 = vmatpush1.bf16.xpose.msra.mxu1 %v6751_v4  ;;  %v6302_v3 = vcombine.high %v1305_v63, %v1337_v0  ;;  %v6304_v4 = vcombine.high %v1306_v20, %v1338_v1  ;;  %v1787_v7 = vld [vmem:[%s8009_s15 + $0xf90] sm:$0xff] }
 0x329   : > { %v5181_v11 = vpop.f32.mrf.mxu0  ;;  %5467 = vmatprep.subr.bf16.mxu0 %v6686_v5  ;;  %v5221_v13 = vpop.f32.mrf.mxu1  ;;  %5507 = vmatprep.subr.bf16.mxu1 %v6688_v6  ;;  %v2005_v5 = vcombine.high %v8368_v26, %v8368_v26  ;;  %v1755_v6 = vld [vmem:[%s8009_s15 + $0xe90] sm:$0xff] }
 0x32a   : > { %v8388_v12 = vadd.f32 %v5219_v9, %v5180_v8  ;;  %5497 = vmatprep.mubr.bf16.mxu0 %v2042_v40  ;;  %5537 = vmatprep.mubr.bf16.mxu1 %v2052_v38  ;;  %v6365_v40 = vcombine.low %v1369_v53, %v1401_v14  ;;  %v1756_v38 = vld [vmem:[%s8009_s15 + $0xe98] sm:$0xff]  ;;  %v6301_v11 = vcombine.low %v1305_v63, %v1337_v0  ;;  %v1531_v56 = vld [vmem:[%s8009_s15 + $0x790] sm:$0xff] }
 0x32b   : > { %v5182_v17 = vpop.f32.mrf.mxu0  ;;  %v5222_v57 = vpop.f32.mrf.mxu1  ;;  %v1788_v8 = vld [vmem:[%s8009_s15 + $0xf98] sm:$0xff]  ;;  %v8421_v9 = vrot.slane %v2005_v5, %v8024_v25  ;;  %v6303_v13 = vcombine.low %v1306_v20, %v1338_v1  ;;  %v6754_v43 = vcombine.high %v1755_v6, %v1787_v7  ;;  %v6562_v53 = vcombine.high %v1563_v47, %v1595_v48  ;;  %v1435_v20 = vld [vmem:[%s8009_s15 + $0x490] sm:$0xff] }
 0x32c   : > { %v6756_v15 = vcombine.high %v1756_v38, %v1788_v8  ;;  %v2028_v17 = vrot.slane %v8376_v54, %v8024_v25  ;;  %v1692_v57 = vld [vmem:[%s8009_s15 + $0xc98] sm:$0xff]  ;;  %v6498_v63 = vcombine.high %v1499_v55, %v1531_v56  ;;  %v1467_v1 = vld [vmem:[%s8009_s15 + $0x590] sm:$0xff] }
 0x32d   : > { %v5183_v23 = vpop.f32.mrf.mxu0  ;;  %v5223_v61 = vpop.f32.mrf.mxu1  ;;  %v2021_v26 = vcombine.high %v8421_v9, %v8421_v9  ;;  %v6434_v5 = vcombine.high %v1435_v20, %v1467_v1 }
 0x32e   : > { %v6755_v61 = vcombine.low %v1756_v38, %v1788_v8  ;;  %v1403_v38 = vld [vmem:[%s8009_s15 + $0x390] sm:$0xff]  ;;  %v1372_v8 = vld [vmem:[%s8009_s15 + $0x298] sm:$0xff] }
 0x32f   : > { %v2049_v23 = vrot.slane %v2021_v26, %v8024_v25 }
 0x330   : > { %5468 = vmatpush1.bf16.xpose.msra.mxu0 %v6685_v22  ;;  %5508 = vmatpush1.bf16.xpose.msra.mxu1 %v6687_v24  ;;  %v1724_v22 = vld [vmem:[%s8009_s15 + $0xd98] sm:$0xff]  ;;  %v2050_v24 = vcombine.high %v2028_v17, %v2028_v17 }
 0x331   : > { %5469 = vmatprep.subr.bf16.mxu0 %v6622_v27  ;;  %5509 = vmatprep.subr.bf16.mxu1 %v6624_v28  ;;  %v6753_v27 = vcombine.low %v1755_v6, %v1787_v7  ;;  %v6690_v28 = vcombine.high %v1691_v19, %v1723_v21  ;;  %v6692_v29 = vcombine.high %v1692_v57, %v1724_v22  ;;  %v1371_v7 = vld [vmem:[%s8009_s15 + $0x290] sm:$0xff] }
 0x332   : > { %v2053_v54 = vcombine.high %v2049_v23, %v2049_v23 }
 0x338   : > { %5470 = vmatpush1.bf16.xpose.msra.mxu0 %v6621_v34  ;;  %5510 = vmatpush1.bf16.xpose.msra.mxu1 %v6623_v31 }
 0x339   : > { %5471 = vmatprep.subr.bf16.mxu0 %v6558_v35  ;;  %5511 = vmatprep.subr.bf16.mxu1 %v6560_v60  ;;  %v1627_v60 = vld [vmem:[%s8009_s15 + $0xa90] sm:$0xff] }
 0x340   : > { %5472 = vmatpush1.bf16.xpose.msra.mxu0 %v6557_v16  ;;  %5512 = vmatpush1.bf16.xpose.msra.mxu1 %v6559_v10  ;;  %v6689_v16 = vcombine.low %v1691_v19, %v1723_v21  ;;  %v1339_v19 = vld [vmem:[%s8009_s15 + $0x190] sm:$0xff]  ;;  %v1308_v21 = vld [vmem:[%s8009_s15 + $0x98] sm:$0xff] }
 0x341   : > { %5473 = vmatprep.subr.bf16.mxu0 %v6494_v44  ;;  %5513 = vmatprep.subr.bf16.mxu1 %v6496_v45  ;;  %v6691_v44 = vcombine.low %v1692_v57, %v1724_v22  ;;  %v6626_v45 = vcombine.high %v1627_v60, %v1659_v37  ;;  %v1340_v57 = vld [vmem:[%s8009_s15 + $0x198] sm:$0xff]  ;;  %v6369_v22 = vcombine.low %v1371_v7, %v1403_v38 }
 0x348   : > { %5474 = vmatpush1.bf16.xpose.msra.mxu0 %v6493_v49  ;;  %5514 = vmatpush1.bf16.xpose.msra.mxu1 %v6495_v50  ;;  %v1564_v49 = vld [vmem:[%s8009_s15 + $0x898] sm:$0xff] }
 0x349   : > { %5475 = vmatprep.subr.bf16.mxu0 %v6430_v51  ;;  %5515 = vmatprep.subr.bf16.mxu1 %v6432_v52  ;;  %v1596_v50 = vld [vmem:[%s8009_s15 + $0x998] sm:$0xff]  ;;  %v6625_v51 = vcombine.low %v1627_v60, %v1659_v37  ;;  %v6627_v52 = vcombine.low %v1628_v41, %v1660_v42  ;;  %v1693_v41 = vld [vmem:[%s8009_s15 + $0xca0] sm:$0xff] }
 0x34a   : > { %v6564_v14 = vcombine.high %v1564_v49, %v1596_v50  ;;  %v1725_v42 = vld [vmem:[%s8009_s15 + $0xda0] sm:$0xff] }
 0x350   : > { %5476 = vmatpush1.bf16.xpose.msra.mxu0 %v6429_v58  ;;  %5516 = vmatpush1.bf16.xpose.msra.mxu1 %v6431_v59  ;;  %v1500_v58 = vld [vmem:[%s8009_s15 + $0x698] sm:$0xff] }
 0x351   : > { %5477 = vmatprep.subr.bf16.mxu0 %v6366_v36  ;;  %5517 = vmatprep.subr.bf16.mxu1 %v6368_v62  ;;  %v1532_v59 = vld [vmem:[%s8009_s15 + $0x798] sm:$0xff]  ;;  %v6561_v36 = vcombine.low %v1563_v47, %v1595_v48  ;;  %v6563_v62 = vcombine.low %v1564_v49, %v1596_v50 }
 0x352   : > { %v6500_v0 = vcombine.high %v1500_v58, %v1532_v59 }
 0x358   : > { %5478 = vmatpush1.bf16.xpose.msra.mxu0 %v6365_v40  ;;  %5518 = vmatpush1.bf16.xpose.msra.mxu1 %v6367_v2  ;;  %v1436_v40 = vld [vmem:[%s8009_s15 + $0x498] sm:$0xff] }
 0x359   : > { %5479 = vmatprep.subr.bf16.mxu0 %v6302_v3  ;;  %5519 = vmatprep.subr.bf16.mxu1 %v6304_v4  ;;  %v1468_v2 = vld [vmem:[%s8009_s15 + $0x598] sm:$0xff]  ;;  %v6497_v3 = vcombine.low %v1499_v55, %v1531_v56  ;;  %v6499_v4 = vcombine.low %v1500_v58, %v1532_v59  ;;  %v1661_v55 = vld [vmem:[%s8009_s15 + $0xba0] sm:$0xff]  ;;  %v1630_v58 = vld [vmem:[%s8009_s15 + $0xaa8] sm:$0xff] }
 0x35a   : > { %v6436_v6 = vcombine.high %v1436_v40, %v1468_v2  ;;  %v1662_v59 = vld [vmem:[%s8009_s15 + $0xba8] sm:$0xff] }
 0x360   : > { %5480 = vmatpush1.bf16.xpose.msra.mxu0 %v6301_v11  ;;  %5520 = vmatpush1.bf16.xpose.msra.mxu1 %v6303_v13  ;;  %v1404_v11 = vld [vmem:[%s8009_s15 + $0x398] sm:$0xff]  ;;  %v6433_v13 = vcombine.low %v1435_v20, %v1467_v1  ;;  %v6632_v1 = vcombine.high %v1630_v58, %v1662_v59 }
 0x361   : > { %5545 = vmatprep.subr.bf16.mxu0 %v6754_v43  ;;  %5585 = vmatprep.subr.bf16.mxu1 %v6756_v15  ;;  %v6435_v43 = vcombine.low %v1436_v40, %v1468_v2  ;;  %v6370_v15 = vcombine.high %v1371_v7, %v1403_v38  ;;  %v6372_v26 = vcombine.high %v1372_v8, %v1404_v11  ;;  %v1565_v40 = vld [vmem:[%s8009_s15 + $0x8a0] sm:$0xff] }
 0x362   : > { %v1597_v2 = vld [vmem:[%s8009_s15 + $0x9a0] sm:$0xff] }
 0x363   : > { %v6566_v7 = vcombine.high %v1565_v40, %v1597_v2 }
 0x367   : > { %v5259_v30 = vpop.f32.mrf.mxu0  ;;  %5498 = vmatmul.mubr.bf16.vlgmr.msra.gmra.mxu0 %v2028_v17  ;;  %v5299_v33 = vpop.f32.mrf.mxu1  ;;  %5538 = vmatmul.mubr.bf16.vlgmr.msra.gmra.mxu1 %v2050_v24  ;;  %v1307_v17 = vld [vmem:[%s8009_s15 + $0x90] sm:$0xff] }
 0x368   : > { %v5260_v32 = vadd.f32 %v5259_v30, %v8388_v12  ;;  %5546 = vmatpush1.bf16.xpose.msra.mxu0 %v6753_v27  ;;  %5586 = vmatpush1.bf16.xpose.msra.mxu1 %v6755_v61  ;;  %v6306_v24 = vcombine.high %v1307_v17, %v1339_v19  ;;  %v6308_v27 = vcombine.high %v1308_v21, %v1340_v57  ;;  %v8460_v61 = vld [vmem:[%s8007_s14 + $0x28] sm:$0xff] }
 0x369   : > { %v5261_v34 = vpop.f32.mrf.mxu0  ;;  %5547 = vmatprep.subr.bf16.mxu0 %v6690_v28  ;;  %v5301_v35 = vpop.f32.mrf.mxu1  ;;  %5587 = vmatprep.subr.bf16.mxu1 %v6692_v29  ;;  %v1757_v28 = vld [vmem:[%s8009_s15 + $0xea0] sm:$0xff]  ;;  %v1758_v30 = vld [vmem:[%s8009_s15 + $0xea8] sm:$0xff] }
 0x36a   : > { %v8433_v31 = vadd.f32 %v5299_v33, %v5260_v32  ;;  %5577 = vmatprep.mubr.bf16.mxu0 %v2049_v23  ;;  %5617 = vmatprep.mubr.bf16.mxu1 %v2053_v54  ;;  %v6371_v23 = vcombine.low %v1372_v8, %v1404_v11  ;;  %v1789_v29 = vld [vmem:[%s8009_s15 + $0xfa0] sm:$0xff]  ;;  %v1790_v54 = vld [vmem:[%s8009_s15 + $0xfa8] sm:$0xff]  ;;  %v8468_v32 = vrot.slane %v8460_v61, %v8024_v25 }
 0x36b   : > { %v5262_v39 = vpop.f32.mrf.mxu0  ;;  %v5302_v12 = vpop.f32.mrf.mxu1  ;;  %v6305_v33 = vcombine.low %v1307_v17, %v1339_v19  ;;  %v6307_v34 = vcombine.low %v1308_v21, %v1340_v57  ;;  %v6758_v35 = vcombine.high %v1757_v28, %v1789_v29  ;;  %v6760_v60 = vcombine.high %v1758_v30, %v1790_v54  ;;  %v1501_v8 = vld [vmem:[%s8009_s15 + $0x6a0] sm:$0xff] }
 0x36c   : > { %v2069_v37 = vcombine.high %v8468_v32, %v8468_v32  ;;  %v2035_v39 = vrot.slane %v8421_v9, %v8024_v25  ;;  %v1694_v12 = vld [vmem:[%s8009_s15 + $0xca8] sm:$0xff]  ;;  %v1533_v11 = vld [vmem:[%s8009_s15 + $0x7a0] sm:$0xff] }
 0x36d   : > { %v5263_v10 = vpop.f32.mrf.mxu0  ;;  %v5303_v46 = vpop.f32.mrf.mxu1  ;;  %v6502_v17 = vcombine.high %v1501_v8, %v1533_v11  ;;  %v1437_v21 = vld [vmem:[%s8009_s15 + $0x4a0] sm:$0xff] }
 0x36e   : > { %v2091_v10 = vrot.slane %v2069_v37, %v8024_v25  ;;  %v6759_v46 = vcombine.low %v1758_v30, %v1790_v54  ;;  %v1469_v57 = vld [vmem:[%s8009_s15 + $0x5a0] sm:$0xff] }
 0x36f   : > { %v1373_v30 = vld [vmem:[%s8009_s15 + $0x2a0] sm:$0xff] }
 0x370   : > { %5548 = vmatpush1.bf16.xpose.msra.mxu0 %v6689_v16  ;;  %5588 = vmatpush1.bf16.xpose.msra.mxu1 %v6691_v44  ;;  %v1726_v16 = vld [vmem:[%s8009_s15 + $0xda8] sm:$0xff]  ;;  %v2051_v44 = vcombine.high %v2035_v39, %v2035_v39  ;;  %v2101_v9 = vcombine.high %v2091_v10, %v2091_v10  ;;  %v1405_v54 = vld [vmem:[%s8009_s15 + $0x3a0] sm:$0xff] }
 0x371   : > { %5549 = vmatprep.subr.bf16.mxu0 %v6626_v45  ;;  %5589 = vmatprep.subr.bf16.mxu1 %v6628_v18  ;;  %v6757_v45 = vcombine.low %v1757_v28, %v1789_v29  ;;  %v6694_v18 = vcombine.high %v1693_v41, %v1725_v42  ;;  %v6696_v47 = vcombine.high %v1694_v12, %v1726_v16 }
 0x372   : > { %v6438_v28 = vcombine.high %v1437_v21, %v1469_v57  ;;  %v6374_v37 = vcombine.high %v1373_v30, %v1405_v54 }
 0x378   : > { %5550 = vmatpush1.bf16.xpose.msra.mxu0 %v6625_v51  ;;  %5590 = vmatpush1.bf16.xpose.msra.mxu1 %v6627_v52 }
 0x379   : > { %5551 = vmatprep.subr.bf16.mxu0 %v6562_v53  ;;  %5591 = vmatprep.subr.bf16.mxu1 %v6564_v14  ;;  %v1629_v14 = vld [vmem:[%s8009_s15 + $0xaa0] sm:$0xff] }
 0x380   : > { %5552 = vmatpush1.bf16.xpose.msra.mxu0 %v6561_v36  ;;  %5592 = vmatpush1.bf16.xpose.msra.mxu1 %v6563_v62  ;;  %v6693_v36 = vcombine.low %v1693_v41, %v1725_v42  ;;  %v1309_v41 = vld [vmem:[%s8009_s15 + $0xa0] sm:$0xff] }
 0x381   : > { %5553 = vmatprep.subr.bf16.mxu0 %v6498_v63  ;;  %5593 = vmatprep.subr.bf16.mxu1 %v6500_v0  ;;  %v6695_v63 = vcombine.low %v1694_v12, %v1726_v16  ;;  %v6630_v0 = vcombine.high %v1629_v14, %v1661_v55  ;;  %v1341_v42 = vld [vmem:[%s8009_s15 + $0x1a0] sm:$0xff]  ;;  %v1310_v12 = vld [vmem:[%s8009_s15 + $0xa8] sm:$0xff] }
 0x382   : > { %v1342_v16 = vld [vmem:[%s8009_s15 + $0x1a8] sm:$0xff] }
 0x388   : > { %5554 = vmatpush1.bf16.xpose.msra.mxu0 %v6497_v3  ;;  %5594 = vmatpush1.bf16.xpose.msra.mxu1 %v6499_v4  ;;  %v1566_v3 = vld [vmem:[%s8009_s15 + $0x8a8] sm:$0xff] }
 0x389   : > { %5555 = vmatprep.subr.bf16.mxu0 %v6434_v5  ;;  %5595 = vmatprep.subr.bf16.mxu1 %v6436_v6  ;;  %v1598_v4 = vld [vmem:[%s8009_s15 + $0x9a8] sm:$0xff]  ;;  %v6629_v5 = vcombine.low %v1629_v14, %v1661_v55  ;;  %v6631_v6 = vcombine.low %v1630_v58, %v1662_v59  ;;  %v1695_v58 = vld [vmem:[%s8009_s15 + $0xcb0] sm:$0xff] }
 0x38a   : > { %v6568_v38 = vcombine.high %v1566_v3, %v1598_v4  ;;  %v1727_v59 = vld [vmem:[%s8009_s15 + $0xdb0] sm:$0xff] }
 0x390   : > { %5556 = vmatpush1.bf16.xpose.msra.mxu0 %v6433_v13  ;;  %5596 = vmatpush1.bf16.xpose.msra.mxu1 %v6435_v43  ;;  %v1502_v13 = vld [vmem:[%s8009_s15 + $0x6a8] sm:$0xff] }
 0x391   : > { %5557 = vmatprep.subr.bf16.mxu0 %v6370_v15  ;;  %5597 = vmatprep.subr.bf16.mxu1 %v6372_v26  ;;  %v1534_v43 = vld [vmem:[%s8009_s15 + $0x7a8] sm:$0xff]  ;;  %v6565_v15 = vcombine.low %v1565_v40, %v1597_v2  ;;  %v6567_v26 = vcombine.low %v1566_v3, %v1598_v4 }
 0x392   : > { %v6504_v19 = vcombine.high %v1502_v13, %v1534_v43 }
 0x398   : > { %5558 = vmatpush1.bf16.xpose.msra.mxu0 %v6369_v22  ;;  %5598 = vmatpush1.bf16.xpose.msra.mxu1 %v6371_v23  ;;  %v1438_v22 = vld [vmem:[%s8009_s15 + $0x4a8] sm:$0xff] }
 0x399   : > { %5559 = vmatprep.subr.bf16.mxu0 %v6306_v24  ;;  %5599 = vmatprep.subr.bf16.mxu1 %v6308_v27  ;;  %v1470_v23 = vld [vmem:[%s8009_s15 + $0x5a8] sm:$0xff]  ;;  %v6501_v24 = vcombine.low %v1501_v8, %v1533_v11  ;;  %v6503_v27 = vcombine.low %v1502_v13, %v1534_v43  ;;  %v1663_v8 = vld [vmem:[%s8009_s15 + $0xbb0] sm:$0xff]  ;;  %v1632_v13 = vld [vmem:[%s8009_s15 + $0xab8] sm:$0xff] }
 0x39a   : > { %v6440_v29 = vcombine.high %v1438_v22, %v1470_v23  ;;  %v1664_v43 = vld [vmem:[%s8009_s15 + $0xbb8] sm:$0xff] }
 0x3a0   : > { %5560 = vmatpush1.bf16.xpose.msra.mxu0 %v6305_v33  ;;  %5600 = vmatpush1.bf16.xpose.msra.mxu1 %v6307_v34  ;;  %v1374_v33 = vld [vmem:[%s8009_s15 + $0x2a8] sm:$0xff] }
 0x3a1   : > { %5625 = vmatprep.subr.bf16.mxu0 %v6758_v35  ;;  %5665 = vmatprep.subr.bf16.mxu1 %v6760_v60  ;;  %v1406_v34 = vld [vmem:[%s8009_s15 + $0x3a8] sm:$0xff]  ;;  %v6437_v35 = vcombine.low %v1437_v21, %v1469_v57  ;;  %v6439_v60 = vcombine.low %v1438_v22, %v1470_v23  ;;  %v6636_v57 = vcombine.high %v1632_v13, %v1664_v43  ;;  %v1567_v22 = vld [vmem:[%s8009_s15 + $0x8b0] sm:$0xff] }
 0x3a2   : > { %v1599_v23 = vld [vmem:[%s8009_s15 + $0x9b0] sm:$0xff] }
 0x3a7   : > { %v5339_v48 = vpop.f32.mrf.mxu0  ;;  %5578 = vmatmul.mubr.bf16.vlgmr.msra.gmra.mxu0 %v2035_v39  ;;  %v5379_v50 = vpop.f32.mrf.mxu1  ;;  %5618 = vmatmul.mubr.bf16.vlgmr.msra.gmra.mxu1 %v2051_v44  ;;  %v6376_v39 = vcombine.high %v1374_v33, %v1406_v34  ;;  %v6375_v44 = vcombine.low %v1374_v33, %v1406_v34  ;;  %v1503_v33 = vld [vmem:[%s8009_s15 + $0x6b0] sm:$0xff] }
 0x3a8   : > { %v5340_v49 = vadd.f32 %v5339_v48, %v8433_v31  ;;  %5626 = vmatpush1.bf16.xpose.msra.mxu0 %v6757_v45  ;;  %5666 = vmatpush1.bf16.xpose.msra.mxu1 %v6759_v46  ;;  %v6310_v45 = vcombine.high %v1309_v41, %v1341_v42  ;;  %v6312_v46 = vcombine.high %v1310_v12, %v1342_v16  ;;  %v1791_v48 = vld [vmem:[%s8009_s15 + $0xfb0] sm:$0xff] }
 0x3a9   : > { %v5341_v51 = vpop.f32.mrf.mxu0  ;;  %5627 = vmatprep.subr.bf16.mxu0 %v6694_v18  ;;  %v5381_v53 = vpop.f32.mrf.mxu1  ;;  %5667 = vmatprep.subr.bf16.mxu1 %v6696_v47  ;;  %v2054_v18 = vcombine.high %v8460_v61, %v8460_v61  ;;  %v1759_v47 = vld [vmem:[%s8009_s15 + $0xeb0] sm:$0xff] }
 0x3aa   : > { %v8480_v52 = vadd.f32 %v5379_v50, %v5340_v49  ;;  %5657 = vmatprep.mubr.bf16.mxu0 %v2091_v10  ;;  %5697 = vmatprep.mubr.bf16.mxu1 %v2101_v9  ;;  %v6373_v10 = vcombine.low %v1373_v30, %v1405_v54  ;;  %v1760_v9 = vld [vmem:[%s8009_s15 + $0xeb8] sm:$0xff]  ;;  %v6309_v51 = vcombine.low %v1309_v41, %v1341_v42  ;;  %v1535_v34 = vld [vmem:[%s8009_s15 + $0x7b0] sm:$0xff] }
 0x3ab   : > { %v5342_v56 = vpop.f32.mrf.mxu0  ;;  %v5382_v31 = vpop.f32.mrf.mxu1  ;;  %v1792_v49 = vld [vmem:[%s8009_s15 + $0xfb8] sm:$0xff]  ;;  %v8513_v50 = vrot.slane %v2054_v18, %v8024_v25  ;;  %v6311_v53 = vcombine.low %v1310_v12, %v1342_v16  ;;  %v6762_v14 = vcombine.high %v1759_v47, %v1791_v48  ;;  %v6570_v30 = vcombine.high %v1567_v22, %v1599_v23  ;;  %v1439_v12 = vld [vmem:[%s8009_s15 + $0x4b0] sm:$0xff] }
 0x3ac   : > { %v6764_v55 = vcombine.high %v1760_v9, %v1792_v49  ;;  %v2077_v56 = vrot.slane %v8468_v32, %v8024_v25  ;;  %v1696_v31 = vld [vmem:[%s8009_s15 + $0xcb8] sm:$0xff]  ;;  %v6506_v41 = vcombine.high %v1503_v33, %v1535_v34  ;;  %v1471_v16 = vld [vmem:[%s8009_s15 + $0x5b0] sm:$0xff] }
 0x3ad   : > { %v5343_v62 = vpop.f32.mrf.mxu0  ;;  %v5383_v20 = vpop.f32.mrf.mxu1  ;;  %v2070_v61 = vcombine.high %v8513_v50, %v8513_v50  ;;  %v6442_v18 = vcombine.high %v1439_v12, %v1471_v16 }
 0x3ae   : > { %v6763_v20 = vcombine.low %v1760_v9, %v1792_v49  ;;  %v1407_v9 = vld [vmem:[%s8009_s15 + $0x3b0] sm:$0xff]  ;;  %v1376_v49 = vld [vmem:[%s8009_s15 + $0x2b8] sm:$0xff] }
 0x3af   : > { %v2098_v62 = vrot.slane %v2070_v61, %v8024_v25 }
 0x3b0   : > { %5628 = vmatpush1.bf16.xpose.msra.mxu0 %v6693_v36  ;;  %5668 = vmatpush1.bf16.xpose.msra.mxu1 %v6695_v63  ;;  %v1728_v36 = vld [vmem:[%s8009_s15 + $0xdb8] sm:$0xff]  ;;  %v2099_v63 = vcombine.high %v2077_v56, %v2077_v56 }
 0x3b1   : > { %5629 = vmatprep.subr.bf16.mxu0 %v6630_v0  ;;  %5669 = vmatprep.subr.bf16.mxu1 %v6632_v1  ;;  %v6761_v0 = vcombine.low %v1759_v47, %v1791_v48  ;;  %v6698_v1 = vcombine.high %v1695_v58, %v1727_v59  ;;  %v6700_v40 = vcombine.high %v1696_v31, %v1728_v36  ;;  %v1375_v48 = vld [vmem:[%s8009_s15 + $0x2b0] sm:$0xff] }
 0x3b2   : > { %v2102_v32 = vcombine.high %v2098_v62, %v2098_v62 }
 0x3b8   : > { %5630 = vmatpush1.bf16.xpose.msra.mxu0 %v6629_v5  ;;  %5670 = vmatpush1.bf16.xpose.msra.mxu1 %v6631_v6 }
 0x3b9   : > { %5631 = vmatprep.subr.bf16.mxu0 %v6566_v7  ;;  %5671 = vmatprep.subr.bf16.mxu1 %v6568_v38  ;;  %v1631_v38 = vld [vmem:[%s8009_s15 + $0xab0] sm:$0xff] }
 0x3c0   : > { %5632 = vmatpush1.bf16.xpose.msra.mxu0 %v6565_v15  ;;  %5672 = vmatpush1.bf16.xpose.msra.mxu1 %v6567_v26  ;;  %v6697_v15 = vcombine.low %v1695_v58, %v1727_v59  ;;  %v1343_v58 = vld [vmem:[%s8009_s15 + $0x1b0] sm:$0xff]  ;;  %v1312_v59 = vld [vmem:[%s8009_s15 + $0xb8] sm:$0xff] }
 0x3c1   : > { %5633 = vmatprep.subr.bf16.mxu0 %v6502_v17  ;;  %5673 = vmatprep.subr.bf16.mxu1 %v6504_v19  ;;  %v6699_v17 = vcombine.low %v1696_v31, %v1728_v36  ;;  %v6634_v19 = vcombine.high %v1631_v38, %v1663_v8  ;;  %v1344_v31 = vld [vmem:[%s8009_s15 + $0x1b8] sm:$0xff]  ;;  %v6377_v36 = vcombine.low %v1375_v48, %v1407_v9 }
 0x3c8   : > { %5634 = vmatpush1.bf16.xpose.msra.mxu0 %v6501_v24  ;;  %5674 = vmatpush1.bf16.xpose.msra.mxu1 %v6503_v27  ;;  %v1568_v24 = vld [vmem:[%s8009_s15 + $0x8b8] sm:$0xff] }
 0x3c9   : > { %5635 = vmatprep.subr.bf16.mxu0 %v6438_v28  ;;  %5675 = vmatprep.subr.bf16.mxu1 %v6440_v29  ;;  %v1600_v27 = vld [vmem:[%s8009_s15 + $0x9b8] sm:$0xff]  ;;  %v6633_v28 = vcombine.low %v1631_v38, %v1663_v8  ;;  %v6635_v29 = vcombine.low %v1632_v13, %v1664_v43  ;;  %v1697_v13 = vld [vmem:[%s8009_s15 + $0xcc0] sm:$0xff] }
 0x3ca   : > { %v6572_v54 = vcombine.high %v1568_v24, %v1600_v27  ;;  %v1729_v43 = vld [vmem:[%s8009_s15 + $0xdc0] sm:$0xff] }
 0x3d0   : > { %5636 = vmatpush1.bf16.xpose.msra.mxu0 %v6437_v35  ;;  %5676 = vmatpush1.bf16.xpose.msra.mxu1 %v6439_v60  ;;  %v1504_v35 = vld [vmem:[%s8009_s15 + $0x6b8] sm:$0xff] }
 0x3d1   : > { %5637 = vmatprep.subr.bf16.mxu0 %v6374_v37  ;;  %5677 = vmatprep.subr.bf16.mxu1 %v6376_v39  ;;  %v1536_v60 = vld [vmem:[%s8009_s15 + $0x7b8] sm:$0xff]  ;;  %v6569_v37 = vcombine.low %v1567_v22, %v1599_v23  ;;  %v6571_v39 = vcombine.low %v1568_v24, %v1600_v27 }
 0x3d2   : > { %v6508_v42 = vcombine.high %v1504_v35, %v1536_v60 }
 0x3d8   : > { %5638 = vmatpush1.bf16.xpose.msra.mxu0 %v6373_v10  ;;  %5678 = vmatpush1.bf16.xpose.msra.mxu1 %v6375_v44  ;;  %v1440_v10 = vld [vmem:[%s8009_s15 + $0x4b8] sm:$0xff] }
 0x3d9   : > { %5639 = vmatprep.subr.bf16.mxu0 %v6310_v45  ;;  %5679 = vmatprep.subr.bf16.mxu1 %v6312_v46  ;;  %v1472_v44 = vld [vmem:[%s8009_s15 + $0x5b8] sm:$0xff]  ;;  %v6505_v45 = vcombine.low %v1503_v33, %v1535_v34  ;;  %v6507_v46 = vcombine.low %v1504_v35, %v1536_v60  ;;  %v1665_v33 = vld [vmem:[%s8009_s15 + $0xbc0] sm:$0xff]  ;;  %v1634_v35 = vld [vmem:[%s8009_s15 + $0xac8] sm:$0xff] }
 0x3da   : > { %v6444_v47 = vcombine.high %v1440_v10, %v1472_v44  ;;  %v1666_v60 = vld [vmem:[%s8009_s15 + $0xbc8] sm:$0xff] }
 0x3e0   : > { %5640 = vmatpush1.bf16.xpose.msra.mxu0 %v6309_v51  ;;  %5680 = vmatpush1.bf16.xpose.msra.mxu1 %v6311_v53  ;;  %v1408_v51 = vld [vmem:[%s8009_s15 + $0x3b8] sm:$0xff]  ;;  %v6441_v53 = vcombine.low %v1439_v12, %v1471_v16  ;;  %v6640_v16 = vcombine.high %v1634_v35, %v1666_v60 }
 0x3e1   : > { %5705 = vmatprep.subr.bf16.mxu0 %v6762_v14  ;;  %5745 = vmatprep.subr.bf16.mxu1 %v6764_v55  ;;  %v6443_v14 = vcombine.low %v1440_v10, %v1472_v44  ;;  %v6378_v55 = vcombine.high %v1375_v48, %v1407_v9  ;;  %v6380_v61 = vcombine.high %v1376_v49, %v1408_v51  ;;  %v1569_v10 = vld [vmem:[%s8009_s15 + $0x8c0] sm:$0xff] }
 0x3e2   : > { %v1601_v44 = vld [vmem:[%s8009_s15 + $0x9c0] sm:$0xff] }
 0x3e3   : > { %v6574_v48 = vcombine.high %v1569_v10, %v1601_v44 }
 0x3e7   : > { %v5419_v2 = vpop.f32.mrf.mxu0  ;;  %5658 = vmatmul.mubr.bf16.vlgmr.msra.gmra.mxu0 %v2077_v56  ;;  %v5459_v4 = vpop.f32.mrf.mxu1  ;;  %5698 = vmatmul.mubr.bf16.vlgmr.msra.gmra.mxu1 %v2099_v63  ;;  %v1311_v56 = vld [vmem:[%s8009_s15 + $0xb0] sm:$0xff] }
 0x3e8   : > { %v5420_v3 = vadd.f32 %v5419_v2, %v8480_v52  ;;  %5706 = vmatpush1.bf16.xpose.msra.mxu0 %v6761_v0  ;;  %5746 = vmatpush1.bf16.xpose.msra.mxu1 %v6763_v20  ;;  %v6314_v63 = vcombine.high %v1311_v56, %v1343_v58  ;;  %v6316_v0 = vcombine.high %v1312_v59, %v1344_v31  ;;  %v8552_v20 = vld [vmem:[%s8007_s14 + $0x30] sm:$0xff] }
 0x3e9   : > { %v5421_v5 = vpop.f32.mrf.mxu0  ;;  %5707 = vmatprep.subr.bf16.mxu0 %v6698_v1  ;;  %v5461_v7 = vpop.f32.mrf.mxu1  ;;  %5747 = vmatprep.subr.bf16.mxu1 %v6700_v40  ;;  %v1761_v1 = vld [vmem:[%s8009_s15 + $0xec0] sm:$0xff]  ;;  %v1762_v2 = vld [vmem:[%s8009_s15 + $0xec8] sm:$0xff] }
 0x3ea   : > { %v8525_v6 = vadd.f32 %v5459_v4, %v5420_v3  ;;  %5737 = vmatprep.mubr.bf16.mxu0 %v2098_v62  ;;  %5777 = vmatprep.mubr.bf16.mxu1 %v2102_v32  ;;  %v6379_v62 = vcombine.low %v1376_v49, %v1408_v51  ;;  %v1793_v40 = vld [vmem:[%s8009_s15 + $0xfc0] sm:$0xff]  ;;  %v1794_v32 = vld [vmem:[%s8009_s15 + $0xfc8] sm:$0xff]  ;;  %v8560_v3 = vrot.slane %v8552_v20, %v8024_v25 }
 0x3eb   : > { %v5422_v11 = vpop.f32.mrf.mxu0  ;;  %v5462_v52 = vpop.f32.mrf.mxu1  ;;  %v6313_v4 = vcombine.low %v1311_v56, %v1343_v58  ;;  %v6315_v5 = vcombine.low %v1312_v59, %v1344_v31  ;;  %v6766_v7 = vcombine.high %v1761_v1, %v1793_v40  ;;  %v6768_v38 = vcombine.high %v1762_v2, %v1794_v32  ;;  %v1505_v49 = vld [vmem:[%s8009_s15 + $0x6c0] sm:$0xff] }
 0x3ec   : > { %v2118_v8 = vcombine.high %v8560_v3, %v8560_v3  ;;  %v2084_v11 = vrot.slane %v8513_v50, %v8024_v25  ;;  %v1698_v52 = vld [vmem:[%s8009_s15 + $0xcc8] sm:$0xff]  ;;  %v1537_v51 = vld [vmem:[%s8009_s15 + $0x7c0] sm:$0xff] }
 0x3ed   : > { %v5423_v26 = vpop.f32.mrf.mxu0  ;;  %v5463_v21 = vpop.f32.mrf.mxu1  ;;  %v6510_v56 = vcombine.high %v1505_v49, %v1537_v51  ;;  %v1441_v59 = vld [vmem:[%s8009_s15 + $0x4c0] sm:$0xff] }
 0x3ee   : > { %v2140_v26 = vrot.slane %v2118_v8, %v8024_v25  ;;  %v6767_v21 = vcombine.low %v1762_v2, %v1794_v32  ;;  %v1473_v31 = vld [vmem:[%s8009_s15 + $0x5c0] sm:$0xff] }
 0x3ef   : > { %v1377_v2 = vld [vmem:[%s8009_s15 + $0x2c0] sm:$0xff] }
 0x3f0   : > { %5708 = vmatpush1.bf16.xpose.msra.mxu0 %v6697_v15  ;;  %5748 = vmatpush1.bf16.xpose.msra.mxu1 %v6699_v17  ;;  %v1730_v15 = vld [vmem:[%s8009_s15 + $0xdc8] sm:$0xff]  ;;  %v2100_v17 = vcombine.high %v2084_v11, %v2084_v11  ;;  %v2150_v50 = vcombine.high %v2140_v26, %v2140_v26  ;;  %v1409_v32 = vld [vmem:[%s8009_s15 + $0x3c0] sm:$0xff] }
 0x3f1   : > { %5709 = vmatprep.subr.bf16.mxu0 %v6634_v19  ;;  %5749 = vmatprep.subr.bf16.mxu1 %v6636_v57  ;;  %v6765_v19 = vcombine.low %v1761_v1, %v1793_v40  ;;  %v6702_v57 = vcombine.high %v1697_v13, %v1729_v43  ;;  %v6704_v22 = vcombine.high %v1698_v52, %v1730_v15 }
 0x3f2   : > { %v6446_v1 = vcombine.high %v1441_v59, %v1473_v31  ;;  %v6382_v8 = vcombine.high %v1377_v2, %v1409_v32 }
 0x3f8   : > { %5710 = vmatpush1.bf16.xpose.msra.mxu0 %v6633_v28  ;;  %5750 = vmatpush1.bf16.xpose.msra.mxu1 %v6635_v29 }
 0x3f9   : > { %5711 = vmatprep.subr.bf16.mxu0 %v6570_v30  ;;  %5751 = vmatprep.subr.bf16.mxu1 %v6572_v54  ;;  %v1633_v54 = vld [vmem:[%s8009_s15 + $0xac0] sm:$0xff] }
 0x400   : > { %5712 = vmatpush1.bf16.xpose.msra.mxu0 %v6569_v37  ;;  %5752 = vmatpush1.bf16.xpose.msra.mxu1 %v6571_v39  ;;  %v6701_v37 = vcombine.low %v1697_v13, %v1729_v43  ;;  %v1313_v13 = vld [vmem:[%s8009_s15 + $0xc0] sm:$0xff] }
 0x401   : > { %5713 = vmatprep.subr.bf16.mxu0 %v6506_v41  ;;  %5753 = vmatprep.subr.bf16.mxu1 %v6508_v42  ;;  %v6703_v41 = vcombine.low %v1698_v52, %v1730_v15  ;;  %v6638_v42 = vcombine.high %v1633_v54, %v1665_v33  ;;  %v1345_v43 = vld [vmem:[%s8009_s15 + $0x1c0] sm:$0xff]  ;;  %v1314_v52 = vld [vmem:[%s8009_s15 + $0xc8] sm:$0xff] }
 0x402   : > { %v1346_v15 = vld [vmem:[%s8009_s15 + $0x1c8] sm:$0xff] }
 0x408   : > { %5714 = vmatpush1.bf16.xpose.msra.mxu0 %v6505_v45  ;;  %5754 = vmatpush1.bf16.xpose.msra.mxu1 %v6507_v46  ;;  %v1570_v45 = vld [vmem:[%s8009_s15 + $0x8c8] sm:$0xff] }
 0x409   : > { %5715 = vmatprep.subr.bf16.mxu0 %v6442_v18  ;;  %5755 = vmatprep.subr.bf16.mxu1 %v6444_v47  ;;  %v1602_v46 = vld [vmem:[%s8009_s15 + $0x9c8] sm:$0xff]  ;;  %v6637_v18 = vcombine.low %v1633_v54, %v1665_v33  ;;  %v6639_v47 = vcombine.low %v1634_v35, %v1666_v60  ;;  %v1699_v35 = vld [vmem:[%s8009_s15 + $0xcd0] sm:$0xff] }
 0x40a   : > { %v6576_v9 = vcombine.high %v1570_v45, %v1602_v46  ;;  %v1731_v60 = vld [vmem:[%s8009_s15 + $0xdd0] sm:$0xff] }
 0x410   : > { %5716 = vmatpush1.bf16.xpose.msra.mxu0 %v6441_v53  ;;  %5756 = vmatpush1.bf16.xpose.msra.mxu1 %v6443_v14  ;;  %v1506_v53 = vld [vmem:[%s8009_s15 + $0x6c8] sm:$0xff] }
 0x411   : > { %5717 = vmatprep.subr.bf16.mxu0 %v6378_v55  ;;  %5757 = vmatprep.subr.bf16.mxu1 %v6380_v61  ;;  %v1538_v14 = vld [vmem:[%s8009_s15 + $0x7c8] sm:$0xff]  ;;  %v6573_v55 = vcombine.low %v1569_v10, %v1601_v44  ;;  %v6575_v61 = vcombine.low %v1570_v45, %v1602_v46 }
 0x412   : > { %v6512_v58 = vcombine.high %v1506_v53, %v1538_v14 }
 0x418   : > { %5718 = vmatpush1.bf16.xpose.msra.mxu0 %v6377_v36  ;;  %5758 = vmatpush1.bf16.xpose.msra.mxu1 %v6379_v62  ;;  %v1442_v36 = vld [vmem:[%s8009_s15 + $0x4c8] sm:$0xff] }
 0x419   : > { %5719 = vmatprep.subr.bf16.mxu0 %v6314_v63  ;;  %5759 = vmatprep.subr.bf16.mxu1 %v6316_v0  ;;  %v1474_v62 = vld [vmem:[%s8009_s15 + $0x5c8] sm:$0xff]  ;;  %v6509_v63 = vcombine.low %v1505_v49, %v1537_v51  ;;  %v6511_v0 = vcombine.low %v1506_v53, %v1538_v14  ;;  %v1667_v49 = vld [vmem:[%s8009_s15 + $0xbd0] sm:$0xff]  ;;  %v1636_v53 = vld [vmem:[%s8009_s15 + $0xad8] sm:$0xff] }
 0x41a   : > { %v6448_v40 = vcombine.high %v1442_v36, %v1474_v62  ;;  %v1668_v14 = vld [vmem:[%s8009_s15 + $0xbd8] sm:$0xff] }
 0x420   : > { %5720 = vmatpush1.bf16.xpose.msra.mxu0 %v6313_v4  ;;  %5760 = vmatpush1.bf16.xpose.msra.mxu1 %v6315_v5  ;;  %v1378_v4 = vld [vmem:[%s8009_s15 + $0x2c8] sm:$0xff] }
 0x421   : > { %5785 = vmatprep.subr.bf16.mxu0 %v6766_v7  ;;  %5825 = vmatprep.subr.bf16.mxu1 %v6768_v38  ;;  %v1410_v5 = vld [vmem:[%s8009_s15 + $0x3c8] sm:$0xff]  ;;  %v6445_v7 = vcombine.low %v1441_v59, %v1473_v31  ;;  %v6447_v38 = vcombine.low %v1442_v36, %v1474_v62  ;;  %v6644_v31 = vcombine.high %v1636_v53, %v1668_v14  ;;  %v1571_v36 = vld [vmem:[%s8009_s15 + $0x8d0] sm:$0xff] }
 0x422   : > { %v1603_v62 = vld [vmem:[%s8009_s15 + $0x9d0] sm:$0xff] }
 0x427   : > { %v5499_v23 = vpop.f32.mrf.mxu0  ;;  %5738 = vmatmul.mubr.bf16.vlgmr.msra.gmra.mxu0 %v2084_v11  ;;  %v5539_v27 = vpop.f32.mrf.mxu1  ;;  %5778 = vmatmul.mubr.bf16.vlgmr.msra.gmra.mxu1 %v2100_v17  ;;  %v6384_v11 = vcombine.high %v1378_v4, %v1410_v5  ;;  %v6383_v17 = vcombine.low %v1378_v4, %v1410_v5  ;;  %v1507_v4 = vld [vmem:[%s8009_s15 + $0x6d0] sm:$0xff] }
 0x428   : > { %v5500_v24 = vadd.f32 %v5499_v23, %v8525_v6  ;;  %5786 = vmatpush1.bf16.xpose.msra.mxu0 %v6765_v19  ;;  %5826 = vmatpush1.bf16.xpose.msra.mxu1 %v6767_v21  ;;  %v6318_v19 = vcombine.high %v1313_v13, %v1345_v43  ;;  %v6320_v21 = vcombine.high %v1314_v52, %v1346_v15  ;;  %v1795_v23 = vld [vmem:[%s8009_s15 + $0xfd0] sm:$0xff] }
 0x429   : > { %v5501_v28 = vpop.f32.mrf.mxu0  ;;  %5787 = vmatprep.subr.bf16.mxu0 %v6702_v57  ;;  %v5541_v30 = vpop.f32.mrf.mxu1  ;;  %5827 = vmatprep.subr.bf16.mxu1 %v6704_v22  ;;  %v2103_v57 = vcombine.high %v8552_v20, %v8552_v20  ;;  %v1763_v22 = vld [vmem:[%s8009_s15 + $0xed0] sm:$0xff] }
 0x42a   : > { %v8572_v29 = vadd.f32 %v5539_v27, %v5500_v24  ;;  %5817 = vmatprep.mubr.bf16.mxu0 %v2140_v26  ;;  %5857 = vmatprep.mubr.bf16.mxu1 %v2150_v50  ;;  %v6381_v26 = vcombine.low %v1377_v2, %v1409_v32  ;;  %v1764_v50 = vld [vmem:[%s8009_s15 + $0xed8] sm:$0xff]  ;;  %v6317_v28 = vcombine.low %v1313_v13, %v1345_v43  ;;  %v1539_v5 = vld [vmem:[%s8009_s15 + $0x7d0] sm:$0xff] }
 0x42b   : > { %v5502_v34 = vpop.f32.mrf.mxu0  ;;  %v5542_v6 = vpop.f32.mrf.mxu1  ;;  %v1796_v24 = vld [vmem:[%s8009_s15 + $0xfd8] sm:$0xff]  ;;  %v8605_v27 = vrot.slane %v2103_v57, %v8024_v25  ;;  %v6319_v30 = vcombine.low %v1314_v52, %v1346_v15  ;;  %v6770_v54 = vcombine.high %v1763_v22, %v1795_v23  ;;  %v6578_v2 = vcombine.high %v1571_v36, %v1603_v62  ;;  %v1443_v52 = vld [vmem:[%s8009_s15 + $0x4d0] sm:$0xff] }
 0x42c   : > { %v6772_v33 = vcombine.high %v1764_v50, %v1796_v24  ;;  %v2126_v34 = vrot.slane %v8560_v3, %v8024_v25  ;;  %v1700_v6 = vld [vmem:[%s8009_s15 + $0xcd8] sm:$0xff]  ;;  %v6514_v13 = vcombine.high %v1507_v4, %v1539_v5  ;;  %v1475_v15 = vld [vmem:[%s8009_s15 + $0x5d0] sm:$0xff] }
 0x42d   : > { %v5503_v39 = vpop.f32.mrf.mxu0  ;;  %v5543_v12 = vpop.f32.mrf.mxu1  ;;  %v2119_v20 = vcombine.high %v8605_v27, %v8605_v27  ;;  %v6450_v57 = vcombine.high %v1443_v52, %v1475_v15 }
 0x42e   : > { %v6771_v12 = vcombine.low %v1764_v50, %v1796_v24  ;;  %v1411_v50 = vld [vmem:[%s8009_s15 + $0x3d0] sm:$0xff]  ;;  %v1380_v24 = vld [vmem:[%s8009_s15 + $0x2d8] sm:$0xff] }
 0x42f   : > { %v2147_v39 = vrot.slane %v2119_v20, %v8024_v25 }
 0x430   : > { %5788 = vmatpush1.bf16.xpose.msra.mxu0 %v6701_v37  ;;  %5828 = vmatpush1.bf16.xpose.msra.mxu1 %v6703_v41  ;;  %v1732_v37 = vld [vmem:[%s8009_s15 + $0xdd8] sm:$0xff]  ;;  %v2148_v41 = vcombine.high %v2126_v34, %v2126_v34 }
 0x431   : > { %5789 = vmatprep.subr.bf16.mxu0 %v6638_v42  ;;  %5829 = vmatprep.subr.bf16.mxu1 %v6640_v16  ;;  %v6769_v42 = vcombine.low %v1763_v22, %v1795_v23  ;;  %v6706_v16 = vcombine.high %v1699_v35, %v1731_v60  ;;  %v6708_v10 = vcombine.high %v1700_v6, %v1732_v37  ;;  %v1379_v23 = vld [vmem:[%s8009_s15 + $0x2d0] sm:$0xff] }
 0x432   : > { %v2151_v3 = vcombine.high %v2147_v39, %v2147_v39 }
 0x438   : > { %5790 = vmatpush1.bf16.xpose.msra.mxu0 %v6637_v18  ;;  %5830 = vmatpush1.bf16.xpose.msra.mxu1 %v6639_v47 }
 0x439   : > { %5791 = vmatprep.subr.bf16.mxu0 %v6574_v48  ;;  %5831 = vmatprep.subr.bf16.mxu1 %v6576_v9  ;;  %v1635_v9 = vld [vmem:[%s8009_s15 + $0xad0] sm:$0xff] }
 0x440   : > { %5792 = vmatpush1.bf16.xpose.msra.mxu0 %v6573_v55  ;;  %5832 = vmatpush1.bf16.xpose.msra.mxu1 %v6575_v61  ;;  %v6705_v55 = vcombine.low %v1699_v35, %v1731_v60  ;;  %v1347_v35 = vld [vmem:[%s8009_s15 + $0x1d0] sm:$0xff]  ;;  %v1316_v60 = vld [vmem:[%s8009_s15 + $0xd8] sm:$0xff] }
 0x441   : > { %5793 = vmatprep.subr.bf16.mxu0 %v6510_v56  ;;  %5833 = vmatprep.subr.bf16.mxu1 %v6512_v58  ;;  %v6707_v56 = vcombine.low %v1700_v6, %v1732_v37  ;;  %v6642_v58 = vcombine.high %v1635_v9, %v1667_v49  ;;  %v1348_v6 = vld [vmem:[%s8009_s15 + $0x1d8] sm:$0xff]  ;;  %v6385_v37 = vcombine.low %v1379_v23, %v1411_v50 }
 0x448   : > { %5794 = vmatpush1.bf16.xpose.msra.mxu0 %v6509_v63  ;;  %5834 = vmatpush1.bf16.xpose.msra.mxu1 %v6511_v0  ;;  %v1572_v63 = vld [vmem:[%s8009_s15 + $0x8d8] sm:$0xff] }
 0x449   : > { %5795 = vmatprep.subr.bf16.mxu0 %v6446_v1  ;;  %5835 = vmatprep.subr.bf16.mxu1 %v6448_v40  ;;  %v1604_v0 = vld [vmem:[%s8009_s15 + $0x9d8] sm:$0xff]  ;;  %v6641_v1 = vcombine.low %v1635_v9, %v1667_v49  ;;  %v6643_v40 = vcombine.low %v1636_v53, %v1668_v14  ;;  %v1701_v53 = vld [vmem:[%s8009_s15 + $0xce0] sm:$0xff] }
 0x44a   : > { %v6580_v32 = vcombine.high %v1572_v63, %v1604_v0  ;;  %v1733_v14 = vld [vmem:[%s8009_s15 + $0xde0] sm:$0xff] }
 0x450   : > { %5796 = vmatpush1.bf16.xpose.msra.mxu0 %v6445_v7  ;;  %5836 = vmatpush1.bf16.xpose.msra.mxu1 %v6447_v38  ;;  %v1508_v7 = vld [vmem:[%s8009_s15 + $0x6d8] sm:$0xff] }
 0x451   : > { %5797 = vmatprep.subr.bf16.mxu0 %v6382_v8  ;;  %5837 = vmatprep.subr.bf16.mxu1 %v6384_v11  ;;  %v1540_v38 = vld [vmem:[%s8009_s15 + $0x7d8] sm:$0xff]  ;;  %v6577_v8 = vcombine.low %v1571_v36, %v1603_v62  ;;  %v6579_v11 = vcombine.low %v1572_v63, %v1604_v0 }
 0x452   : > { %v6516_v43 = vcombine.high %v1508_v7, %v1540_v38 }
 0x458   : > { %5798 = vmatpush1.bf16.xpose.msra.mxu0 %v6381_v26  ;;  %5838 = vmatpush1.bf16.xpose.msra.mxu1 %v6383_v17  ;;  %v1444_v26 = vld [vmem:[%s8009_s15 + $0x4d8] sm:$0xff] }
 0x459   : > { %5799 = vmatprep.subr.bf16.mxu0 %v6318_v19  ;;  %5839 = vmatprep.subr.bf16.mxu1 %v6320_v21  ;;  %v1476_v17 = vld [vmem:[%s8009_s15 + $0x5d8] sm:$0xff]  ;;  %v6513_v19 = vcombine.low %v1507_v4, %v1539_v5  ;;  %v6515_v21 = vcombine.low %v1508_v7, %v1540_v38  ;;  %v1669_v4 = vld [vmem:[%s8009_s15 + $0xbe0] sm:$0xff]  ;;  %v1638_v7 = vld [vmem:[%s8009_s15 + $0xae8] sm:$0xff] }
 0x45a   : > { %v6452_v22 = vcombine.high %v1444_v26, %v1476_v17  ;;  %v1670_v38 = vld [vmem:[%s8009_s15 + $0xbe8] sm:$0xff] }
 0x460   : > { %5800 = vmatpush1.bf16.xpose.msra.mxu0 %v6317_v28  ;;  %5840 = vmatpush1.bf16.xpose.msra.mxu1 %v6319_v30  ;;  %v1412_v28 = vld [vmem:[%s8009_s15 + $0x3d8] sm:$0xff]  ;;  %v6449_v30 = vcombine.low %v1443_v52, %v1475_v15  ;;  %v6648_v15 = vcombine.high %v1638_v7, %v1670_v38 }
 0x461   : > { %5865 = vmatprep.subr.bf16.mxu0 %v6770_v54  ;;  %5905 = vmatprep.subr.bf16.mxu1 %v6772_v33  ;;  %v6451_v54 = vcombine.low %v1444_v26, %v1476_v17  ;;  %v6386_v33 = vcombine.high %v1379_v23, %v1411_v50  ;;  %v6388_v20 = vcombine.high %v1380_v24, %v1412_v28  ;;  %v1573_v26 = vld [vmem:[%s8009_s15 + $0x8e0] sm:$0xff] }
 0x462   : > { %v1605_v17 = vld [vmem:[%s8009_s15 + $0x9e0] sm:$0xff] }
 0x463   : > { %v6582_v23 = vcombine.high %v1573_v26, %v1605_v17 }
 0x467   : > { %v5579_v44 = vpop.f32.mrf.mxu0  ;;  %5818 = vmatmul.mubr.bf16.vlgmr.msra.gmra.mxu0 %v2126_v34  ;;  %v5619_v46 = vpop.f32.mrf.mxu1  ;;  %5858 = vmatmul.mubr.bf16.vlgmr.msra.gmra.mxu1 %v2148_v41  ;;  %v1315_v34 = vld [vmem:[%s8009_s15 + $0xd0] sm:$0xff] }
 0x468   : > { %v5580_v45 = vadd.f32 %v5579_v44, %v8572_v29  ;;  %5866 = vmatpush1.bf16.xpose.msra.mxu0 %v6769_v42  ;;  %5906 = vmatpush1.bf16.xpose.msra.mxu1 %v6771_v12  ;;  %v6322_v41 = vcombine.high %v1315_v34, %v1347_v35  ;;  %v6324_v42 = vcombine.high %v1316_v60, %v1348_v6  ;;  %v8644_v12 = vld [vmem:[%s8007_s14 + $0x38] sm:$0xff]  ;;  %v1766_v44 = vld [vmem:[%s8009_s15 + $0xee8] sm:$0xff] }
 0x469   : > { %v5581_v18 = vpop.f32.mrf.mxu0  ;;  %5867 = vmatprep.subr.bf16.mxu0 %v6706_v16  ;;  %v5621_v48 = vpop.f32.mrf.mxu1  ;;  %5907 = vmatprep.subr.bf16.mxu1 %v6708_v10  ;;  %v1765_v16 = vld [vmem:[%s8009_s15 + $0xee0] sm:$0xff] }
 0x46a   : > { %v8617_v47 = vadd.f32 %v5619_v46, %v5580_v45  ;;  %5897 = vmatprep.mubr.bf16.mxu0 %v2147_v39  ;;  %5937 = vmatprep.mubr.bf16.mxu1 %v2151_v3  ;;  %v6387_v39 = vcombine.low %v1380_v24, %v1412_v28  ;;  %v1797_v10 = vld [vmem:[%s8009_s15 + $0xfe0] sm:$0xff]  ;;  %v1798_v3 = vld [vmem:[%s8009_s15 + $0xfe8] sm:$0xff]  ;;  %v8652_v45 = vrot.slane %v8644_v12, %v8024_v25 }
 0x46b   : > { %v5582_v51 = vpop.f32.mrf.mxu0  ;;  %v5622_v29 = vpop.f32.mrf.mxu1  ;;  %v6321_v46 = vcombine.low %v1315_v34, %v1347_v35  ;;  %v6323_v18 = vcombine.low %v1316_v60, %v1348_v6  ;;  %v6774_v48 = vcombine.high %v1765_v16, %v1797_v10  ;;  %v6776_v9 = vcombine.high %v1766_v44, %v1798_v3  ;;  %v1509_v24 = vld [vmem:[%s8009_s15 + $0x6e0] sm:$0xff] }
 0x46c   : > { %v2167_v49 = vcombine.high %v8652_v45, %v8652_v45  ;;  %v2133_v51 = vrot.slane %v8605_v27, %v8024_v25  ;;  %v1702_v29 = vld [vmem:[%s8009_s15 + $0xce8] sm:$0xff]  ;;  %v1541_v28 = vld [vmem:[%s8009_s15 + $0x7e0] sm:$0xff] }
 0x46d   : > { %v5583_v61 = vpop.f32.mrf.mxu0  ;;  %v5623_v59 = vpop.f32.mrf.mxu1  ;;  %v6518_v34 = vcombine.high %v1509_v24, %v1541_v28  ;;  %v1445_v60 = vld [vmem:[%s8009_s15 + $0x4e0] sm:$0xff] }
 0x46e   : > { %v2189_v61 = vrot.slane %v2167_v49, %v8024_v25  ;;  %v6775_v59 = vcombine.low %v1766_v44, %v1798_v3  ;;  %v1477_v6 = vld [vmem:[%s8009_s15 + $0x5e0] sm:$0xff] }
 0x46f   : > { %v1381_v44 = vld [vmem:[%s8009_s15 + $0x2e0] sm:$0xff] }
 0x470   : > { %5868 = vmatpush1.bf16.xpose.msra.mxu0 %v6705_v55  ;;  %5908 = vmatpush1.bf16.xpose.msra.mxu1 %v6707_v56  ;;  %v1734_v55 = vld [vmem:[%s8009_s15 + $0xde8] sm:$0xff]  ;;  %v2149_v56 = vcombine.high %v2133_v51, %v2133_v51  ;;  %v2199_v27 = vcombine.high %v2189_v61, %v2189_v61  ;;  %v1413_v3 = vld [vmem:[%s8009_s15 + $0x3e0] sm:$0xff] }
 0x471   : > { %5869 = vmatprep.subr.bf16.mxu0 %v6642_v58  ;;  %5909 = vmatprep.subr.bf16.mxu1 %v6644_v31  ;;  %v6773_v58 = vcombine.low %v1765_v16, %v1797_v10  ;;  %v6710_v31 = vcombine.high %v1701_v53, %v1733_v14  ;;  %v6712_v36 = vcombine.high %v1702_v29, %v1734_v55 }
 0x472   : > { %v6454_v16 = vcombine.high %v1445_v60, %v1477_v6  ;;  %v6390_v49 = vcombine.high %v1381_v44, %v1413_v3 }
 0x478   : > { %5870 = vmatpush1.bf16.xpose.msra.mxu0 %v6641_v1  ;;  %5910 = vmatpush1.bf16.xpose.msra.mxu1 %v6643_v40 }
 0x479   : > { %5871 = vmatprep.subr.bf16.mxu0 %v6578_v2  ;;  %5911 = vmatprep.subr.bf16.mxu1 %v6580_v32  ;;  %v1637_v32 = vld [vmem:[%s8009_s15 + $0xae0] sm:$0xff] }
 0x480   : > { %5872 = vmatpush1.bf16.xpose.msra.mxu0 %v6577_v8  ;;  %5912 = vmatpush1.bf16.xpose.msra.mxu1 %v6579_v11  ;;  %v6709_v8 = vcombine.low %v1701_v53, %v1733_v14  ;;  %v1317_v53 = vld [vmem:[%s8009_s15 + $0xe0] sm:$0xff] }
 0x481   : > { %5873 = vmatprep.subr.bf16.mxu0 %v6514_v13  ;;  %5913 = vmatprep.subr.bf16.mxu1 %v6516_v43  ;;  %v6711_v13 = vcombine.low %v1702_v29, %v1734_v55  ;;  %v6646_v43 = vcombine.high %v1637_v32, %v1669_v4  ;;  %v1349_v14 = vld [vmem:[%s8009_s15 + $0x1e0] sm:$0xff]  ;;  %v1318_v29 = vld [vmem:[%s8009_s15 + $0xe8] sm:$0xff] }
 0x482   : > { %v1350_v55 = vld [vmem:[%s8009_s15 + $0x1e8] sm:$0xff] }
 0x488   : > { %5874 = vmatpush1.bf16.xpose.msra.mxu0 %v6513_v19  ;;  %5914 = vmatpush1.bf16.xpose.msra.mxu1 %v6515_v21  ;;  %v1574_v19 = vld [vmem:[%s8009_s15 + $0x8e8] sm:$0xff] }
 0x489   : > { %5875 = vmatprep.subr.bf16.mxu0 %v6450_v57  ;;  %5915 = vmatprep.subr.bf16.mxu1 %v6452_v22  ;;  %v1606_v21 = vld [vmem:[%s8009_s15 + $0x9e8] sm:$0xff]  ;;  %v6645_v57 = vcombine.low %v1637_v32, %v1669_v4  ;;  %v6647_v22 = vcombine.low %v1638_v7, %v1670_v38  ;;  %v1703_v7 = vld [vmem:[%s8009_s15 + $0xcf0] sm:$0xff] }
 0x48a   : > { %v6584_v50 = vcombine.high %v1574_v19, %v1606_v21  ;;  %v1735_v38 = vld [vmem:[%s8009_s15 + $0xdf0] sm:$0xff] }
 0x490   : > { %5876 = vmatpush1.bf16.xpose.msra.mxu0 %v6449_v30  ;;  %5916 = vmatpush1.bf16.xpose.msra.mxu1 %v6451_v54  ;;  %v1510_v30 = vld [vmem:[%s8009_s15 + $0x6e8] sm:$0xff] }
 0x491   : > { %5877 = vmatprep.subr.bf16.mxu0 %v6386_v33  ;;  %5917 = vmatprep.subr.bf16.mxu1 %v6388_v20  ;;  %v1542_v54 = vld [vmem:[%s8009_s15 + $0x7e8] sm:$0xff]  ;;  %v6581_v33 = vcombine.low %v1573_v26, %v1605_v17  ;;  %v6583_v20 = vcombine.low %v1574_v19, %v1606_v21 }
 0x492   : > { %v6520_v35 = vcombine.high %v1510_v30, %v1542_v54 }
 0x498   : > { %5878 = vmatpush1.bf16.xpose.msra.mxu0 %v6385_v37  ;;  %5918 = vmatpush1.bf16.xpose.msra.mxu1 %v6387_v39  ;;  %v1446_v37 = vld [vmem:[%s8009_s15 + $0x4e8] sm:$0xff] }
 0x499   : > { %5879 = vmatprep.subr.bf16.mxu0 %v6322_v41  ;;  %5919 = vmatprep.subr.bf16.mxu1 %v6324_v42  ;;  %v1478_v39 = vld [vmem:[%s8009_s15 + $0x5e8] sm:$0xff]  ;;  %v6517_v41 = vcombine.low %v1509_v24, %v1541_v28  ;;  %v6519_v42 = vcombine.low %v1510_v30, %v1542_v54  ;;  %v1671_v24 = vld [vmem:[%s8009_s15 + $0xbf0] sm:$0xff]  ;;  %v1640_v30 = vld [vmem:[%s8009_s15 + $0xaf8] sm:$0xff] }
 0x49a   : > { %v6456_v10 = vcombine.high %v1446_v37, %v1478_v39  ;;  %v1672_v54 = vld [vmem:[%s8009_s15 + $0xbf8] sm:$0xff] }
 0x4a0   : > { %5880 = vmatpush1.bf16.xpose.msra.mxu0 %v6321_v46  ;;  %5920 = vmatpush1.bf16.xpose.msra.mxu1 %v6323_v18  ;;  %v1382_v46 = vld [vmem:[%s8009_s15 + $0x2e8] sm:$0xff] }
 0x4a1   : > { %5945 = vmatprep.subr.bf16.mxu0 %v6774_v48  ;;  %5985 = vmatprep.subr.bf16.mxu1 %v6776_v9  ;;  %v1414_v18 = vld [vmem:[%s8009_s15 + $0x3e8] sm:$0xff]  ;;  %v6453_v48 = vcombine.low %v1445_v60, %v1477_v6  ;;  %v6455_v9 = vcombine.low %v1446_v37, %v1478_v39  ;;  %v6652_v6 = vcombine.high %v1640_v30, %v1672_v54  ;;  %v1575_v37 = vld [vmem:[%s8009_s15 + $0x8f0] sm:$0xff] }
 0x4a2   : > { %v1607_v39 = vld [vmem:[%s8009_s15 + $0x9f0] sm:$0xff] }
 0x4a7   : > { %v5659_v62 = vpop.f32.mrf.mxu0  ;;  %5898 = vmatmul.mubr.bf16.vlgmr.msra.gmra.mxu0 %v2133_v51  ;;  %v5699_v0 = vpop.f32.mrf.mxu1  ;;  %5938 = vmatmul.mubr.bf16.vlgmr.msra.gmra.mxu1 %v2149_v56  ;;  %v6392_v51 = vcombine.high %v1382_v46, %v1414_v18  ;;  %v6391_v56 = vcombine.low %v1382_v46, %v1414_v18  ;;  %v1511_v46 = vld [vmem:[%s8009_s15 + $0x6f0] sm:$0xff] }
 0x4a8   : > { %v5660_v63 = vadd.f32 %v5659_v62, %v8617_v47  ;;  %5946 = vmatpush1.bf16.xpose.msra.mxu0 %v6773_v58  ;;  %5986 = vmatpush1.bf16.xpose.msra.mxu1 %v6775_v59  ;;  %v6326_v58 = vcombine.high %v1317_v53, %v1349_v14  ;;  %v6328_v59 = vcombine.high %v1318_v29, %v1350_v55  ;;  %v1799_v62 = vld [vmem:[%s8009_s15 + $0xff0] sm:$0xff] }
 0x4a9   : > { %v5661_v1 = vpop.f32.mrf.mxu0  ;;  %5947 = vmatprep.subr.bf16.mxu0 %v6710_v31  ;;  %v5701_v2 = vpop.f32.mrf.mxu1  ;;  %5987 = vmatprep.subr.bf16.mxu1 %v6712_v36  ;;  %v2152_v31 = vcombine.high %v8644_v12, %v8644_v12  ;;  %v1767_v36 = vld [vmem:[%s8009_s15 + $0xef0] sm:$0xff] }
 0x4aa   : > { %v8664_v40 = vadd.f32 %v5699_v0, %v5660_v63  ;;  %5977 = vmatprep.mubr.bf16.mxu0 %v2189_v61  ;;  %6017 = vmatprep.mubr.bf16.mxu1 %v2199_v27  ;;  %v6389_v61 = vcombine.low %v1381_v44, %v1413_v3  ;;  %v1768_v27 = vld [vmem:[%s8009_s15 + $0xef8] sm:$0xff]  ;;  %v6325_v1 = vcombine.low %v1317_v53, %v1349_v14  ;;  %v1543_v18 = vld [vmem:[%s8009_s15 + $0x7f0] sm:$0xff] }
 0x4ab   : > { %v5662_v5 = vpop.f32.mrf.mxu0  ;;  %v5702_v47 = vpop.f32.mrf.mxu1  ;;  %v1800_v63 = vld [vmem:[%s8009_s15 + $0xff8] sm:$0xff]  ;;  %v8697_v0 = vrot.slane %v2152_v31, %v8024_v25  ;;  %v6327_v2 = vcombine.low %v1318_v29, %v1350_v55  ;;  %v6778_v32 = vcombine.high %v1767_v36, %v1799_v62  ;;  %v6586_v44 = vcombine.high %v1575_v37, %v1607_v39  ;;  %v1447_v29 = vld [vmem:[%s8009_s15 + $0x4f0] sm:$0xff] }
 0x4ac   : > { %v6780_v4 = vcombine.high %v1768_v27, %v1800_v63  ;;  %v2175_v5 = vrot.slane %v8652_v45, %v8024_v25  ;;  %v1704_v47 = vld [vmem:[%s8009_s15 + $0xcf8] sm:$0xff]  ;;  %v6522_v53 = vcombine.high %v1511_v46, %v1543_v18  ;;  %v1479_v55 = vld [vmem:[%s8009_s15 + $0x5f0] sm:$0xff] }
 0x4ad   : > { %v5663_v11 = vpop.f32.mrf.mxu0  ;;  %v5703_v52 = vpop.f32.mrf.mxu1  ;;  %v2168_v12 = vcombine.high %v8697_v0, %v8697_v0  ;;  %v6458_v31 = vcombine.high %v1447_v29, %v1479_v55 }
 0x4ae   : > { %v6779_v52 = vcombine.low %v1768_v27, %v1800_v63  ;;  %v1415_v27 = vld [vmem:[%s8009_s15 + $0x3f0] sm:$0xff]  ;;  %v1384_v63 = vld [vmem:[%s8009_s15 + $0x2f8] sm:$0xff] }
 0x4af   : > { %v2196_v11 = vrot.slane %v2168_v12, %v8024_v25 }
 0x4b0   : > { %5948 = vmatpush1.bf16.xpose.msra.mxu0 %v6709_v8  ;;  %5988 = vmatpush1.bf16.xpose.msra.mxu1 %v6711_v13  ;;  %v1736_v8 = vld [vmem:[%s8009_s15 + $0xdf8] sm:$0xff]  ;;  %v2197_v13 = vcombine.high %v2175_v5, %v2175_v5 }
 0x4b1   : > { %5949 = vmatprep.subr.bf16.mxu0 %v6646_v43  ;;  %5989 = vmatprep.subr.bf16.mxu1 %v6648_v15  ;;  %v6777_v43 = vcombine.low %v1767_v36, %v1799_v62  ;;  %v6714_v15 = vcombine.high %v1703_v7, %v1735_v38  ;;  %v6716_v26 = vcombine.high %v1704_v47, %v1736_v8  ;;  %v1383_v62 = vld [vmem:[%s8009_s15 + $0x2f0] sm:$0xff] }
 0x4b2   : > { %v2200_v45 = vcombine.high %v2196_v11, %v2196_v11 }
 0x4b8   : > { %5950 = vmatpush1.bf16.xpose.msra.mxu0 %v6645_v57  ;;  %5990 = vmatpush1.bf16.xpose.msra.mxu1 %v6647_v22 }
 0x4b9   : > { %5951 = vmatprep.subr.bf16.mxu0 %v6582_v23  ;;  %5991 = vmatprep.subr.bf16.mxu1 %v6584_v50  ;;  %v1639_v50 = vld [vmem:[%s8009_s15 + $0xaf0] sm:$0xff] }
 0x4c0   : > { %5952 = vmatpush1.bf16.xpose.msra.mxu0 %v6581_v33  ;;  %5992 = vmatpush1.bf16.xpose.msra.mxu1 %v6583_v20  ;;  %v6713_v33 = vcombine.low %v1703_v7, %v1735_v38  ;;  %v1351_v7 = vld [vmem:[%s8009_s15 + $0x1f0] sm:$0xff]  ;;  %v1320_v38 = vld [vmem:[%s8009_s15 + $0xf8] sm:$0xff] }
 0x4c1   : > { %5953 = vmatprep.subr.bf16.mxu0 %v6518_v34  ;;  %5993 = vmatprep.subr.bf16.mxu1 %v6520_v35  ;;  %v6715_v34 = vcombine.low %v1704_v47, %v1736_v8  ;;  %v6650_v35 = vcombine.high %v1639_v50, %v1671_v24  ;;  %v1352_v47 = vld [vmem:[%s8009_s15 + $0x1f8] sm:$0xff]  ;;  %v6393_v8 = vcombine.low %v1383_v62, %v1415_v27 }
 0x4c8   : > { %5954 = vmatpush1.bf16.xpose.msra.mxu0 %v6517_v41  ;;  %5994 = vmatpush1.bf16.xpose.msra.mxu1 %v6519_v42  ;;  %v1576_v41 = vld [vmem:[%s8009_s15 + $0x8f8] sm:$0xff] }
 0x4c9   : > { %5955 = vmatprep.subr.bf16.mxu0 %v6454_v16  ;;  %5995 = vmatprep.subr.bf16.mxu1 %v6456_v10  ;;  %v1608_v42 = vld [vmem:[%s8009_s15 + $0x9f8] sm:$0xff]  ;;  %v6649_v16 = vcombine.low %v1639_v50, %v1671_v24  ;;  %v6651_v10 = vcombine.low %v1640_v30, %v1672_v54 }
 0x4ca   : > { %v6588_v3 = vcombine.high %v1576_v41, %v1608_v42 }
 0x4d0   : > { %5956 = vmatpush1.bf16.xpose.msra.mxu0 %v6453_v48  ;;  %5996 = vmatpush1.bf16.xpose.msra.mxu1 %v6455_v9  ;;  %v1512_v48 = vld [vmem:[%s8009_s15 + $0x6f8] sm:$0xff] }
 0x4d1   : > { %5957 = vmatprep.subr.bf16.mxu0 %v6390_v49  ;;  %5997 = vmatprep.subr.bf16.mxu1 %v6392_v51  ;;  %v1544_v9 = vld [vmem:[%s8009_s15 + $0x7f8] sm:$0xff]  ;;  %v6585_v49 = vcombine.low %v1575_v37, %v1607_v39  ;;  %v6587_v51 = vcombine.low %v1576_v41, %v1608_v42 }
 0x4d2   : > { %v6524_v14 = vcombine.high %v1512_v48, %v1544_v9 }
 0x4d8   : > { %5958 = vmatpush1.bf16.xpose.msra.mxu0 %v6389_v61  ;;  %5998 = vmatpush1.bf16.xpose.msra.mxu1 %v6391_v56  ;;  %v1448_v61 = vld [vmem:[%s8009_s15 + $0x4f8] sm:$0xff] }
 0x4d9   : > { %5959 = vmatprep.subr.bf16.mxu0 %v6326_v58  ;;  %5999 = vmatprep.subr.bf16.mxu1 %v6328_v59  ;;  %v1480_v56 = vld [vmem:[%s8009_s15 + $0x5f8] sm:$0xff]  ;;  %v6521_v58 = vcombine.low %v1511_v46, %v1543_v18  ;;  %v6523_v59 = vcombine.low %v1512_v48, %v1544_v9 }
 0x4da   : > { %v6460_v36 = vcombine.high %v1448_v61, %v1480_v56 }
 0x4e0   : > { %5960 = vmatpush1.bf16.xpose.msra.mxu0 %v6325_v1  ;;  %6000 = vmatpush1.bf16.xpose.msra.mxu1 %v6327_v2  ;;  %v1416_v1 = vld [vmem:[%s8009_s15 + $0x3f8] sm:$0xff]  ;;  %v6457_v2 = vcombine.low %v1447_v29, %v1479_v55 }
 0x4e1   : > { %6025 = vmatprep.subr.bf16.mxu0 %v6778_v32  ;;  %6065 = vmatprep.subr.bf16.mxu1 %v6780_v4  ;;  %v6459_v32 = vcombine.low %v1448_v61, %v1480_v56  ;;  %v6394_v4 = vcombine.high %v1383_v62, %v1415_v27  ;;  %v6396_v12 = vcombine.high %v1384_v63, %v1416_v1 }
 0x4e7   : > { %v5739_v17 = vpop.f32.mrf.mxu0  ;;  %5978 = vmatmul.mubr.bf16.vlgmr.msra.gmra.mxu0 %v2175_v5  ;;  %v5779_v21 = vpop.f32.mrf.mxu1  ;;  %6018 = vmatmul.mubr.bf16.vlgmr.msra.gmra.mxu1 %v2197_v13  ;;  %v1319_v5 = vld [vmem:[%s8009_s15 + $0xf0] sm:$0xff] }
 0x4e8   : > { %v5740_v19 = vadd.f32 %v5739_v17, %v8664_v40  ;;  %6026 = vmatpush1.bf16.xpose.msra.mxu0 %v6777_v43  ;;  %6066 = vmatpush1.bf16.xpose.msra.mxu1 %v6779_v52  ;;  %v6330_v13 = vcombine.high %v1319_v5, %v1351_v7  ;;  %v6332_v43 = vcombine.high %v1320_v38, %v1352_v47 }
 0x4e9   : > { %v5741_v57 = vpop.f32.mrf.mxu0  ;;  %6027 = vmatprep.subr.bf16.mxu0 %v6714_v15  ;;  %v5781_v23 = vpop.f32.mrf.mxu1  ;;  %6067 = vmatprep.subr.bf16.mxu1 %v6716_v26  ;;  %v6329_v52 = vcombine.low %v1319_v5, %v1351_v7  ;;  %v6331_v15 = vcombine.low %v1320_v38, %v1352_v47  ;;  %v2182_v26 = vrot.slane %v8697_v0, %v8024_v25 }
 0x4ea   : > { %v8709_v22 = vadd.f32 %v5779_v21, %v5740_v19  ;;  %6057 = vmatprep.mubr.bf16.mxu0 %v2196_v11  ;;  %6097 = vmatprep.mubr.bf16.mxu1 %v2200_v45  ;;  %v6395_v11 = vcombine.low %v1384_v63, %v1416_v1 }
 0x4eb   : > { %v5742_v28 = vpop.f32.mrf.mxu0  ;;  %v5782_v40 = vpop.f32.mrf.mxu1  ;;  %v2198_v17 = vcombine.high %v2182_v26, %v2182_v26 }
 0x4ed   : > { %v5743_v20 = vpop.f32.mrf.mxu0  ;;  %v5783_v60 = vpop.f32.mrf.mxu1 }
 0x4f0   : > { %6028 = vmatpush1.bf16.xpose.msra.mxu0 %v6713_v33  ;;  %6068 = vmatpush1.bf16.xpose.msra.mxu1 %v6715_v34 }
 0x4f1   : > { %6029 = vmatprep.subr.bf16.mxu0 %v6650_v35  ;;  %6069 = vmatprep.subr.bf16.mxu1 %v6652_v6 }
 0x4f8   : > { %6030 = vmatpush1.bf16.xpose.msra.mxu0 %v6649_v16  ;;  %6070 = vmatpush1.bf16.xpose.msra.mxu1 %v6651_v10 }
 0x4f9   : > { %6031 = vmatprep.subr.bf16.mxu0 %v6586_v44  ;;  %6071 = vmatprep.subr.bf16.mxu1 %v6588_v3 }
 0x500   : > { %6032 = vmatpush1.bf16.xpose.msra.mxu0 %v6585_v49  ;;  %6072 = vmatpush1.bf16.xpose.msra.mxu1 %v6587_v51  ;;  %v1280_v51 = vld [vmem:[#allocation2] sm:$0x3] }
 0x501   : > { %6033 = vmatprep.subr.bf16.mxu0 %v6522_v53  ;;  %6073 = vmatprep.subr.bf16.mxu1 %v6524_v14 }
 0x508   : > { %6034 = vmatpush1.bf16.xpose.msra.mxu0 %v6521_v58  ;;  %6074 = vmatpush1.bf16.xpose.msra.mxu1 %v6523_v59 }
 0x509   : > { %6035 = vmatprep.subr.bf16.mxu0 %v6458_v31  ;;  %6075 = vmatprep.subr.bf16.mxu1 %v6460_v36 }
 0x510   : > { %6036 = vmatpush1.bf16.xpose.msra.mxu0 %v6457_v2  ;;  %6076 = vmatpush1.bf16.xpose.msra.mxu1 %v6459_v32 }
 0x511   : > { %6037 = vmatprep.subr.bf16.mxu0 %v6394_v4  ;;  %6077 = vmatprep.subr.bf16.mxu1 %v6396_v12 }
 0x518   : > { %6038 = vmatpush1.bf16.xpose.msra.mxu0 %v6393_v8  ;;  %6078 = vmatpush1.bf16.xpose.msra.mxu1 %v6395_v11 }
 0x519   : > { %6039 = vmatprep.subr.bf16.mxu0 %v6330_v13  ;;  %6079 = vmatprep.subr.bf16.mxu1 %v6332_v43 }
 0x520   : > { %6040 = vmatpush1.bf16.xpose.msra.mxu0 %v6329_v52  ;;  %6080 = vmatpush1.bf16.xpose.msra.mxu1 %v6331_v15 }
 0x527   : > { %v5819_v45 = vpop.f32.mrf.mxu0  ;;  %6058 = vmatmul.mubr.bf16.vlgmr.msra.gmra.mxu0 %v2182_v26  ;;  %v5859_v21 = vpop.f32.mrf.mxu1  ;;  %6098 = vmatmul.mubr.bf16.vlgmr.msra.gmra.mxu1 %v2198_v17 }
 0x528   : > { %v5820_v19 = vadd.f32 %v5819_v45, %v8709_v22 }
 0x529   : > { %v5821_v57 = vpop.f32.mrf.mxu0  ;;  %v5861_v50 = vpop.f32.mrf.mxu1 }
 0x52a   : > { %v5860_v23 = vadd.f32 %v5859_v21, %v5820_v19 }
 0x52b   : > { %v5822_v24 = vpop.f32.mrf.mxu0  ;;  %v5862_v28 = vpop.f32.mrf.mxu1 }
 0x52d   : > { %v5823_v30 = vpop.f32.mrf.mxu0  ;;  %v5863_v54 = vpop.f32.mrf.mxu1 }
 0x567   : > { %v5899_v40 = vpop.f32.mrf.mxu0  ;;  %v5939_v20 = vpop.f32.mrf.mxu1 }
 0x568   : > { %v5900_v33 = vadd.f32 %v5899_v40, %v5860_v23 }
 0x569   : > { %v5901_v34 = vpop.f32.mrf.mxu0  ;;  %v5941_v0 = vpop.f32.mrf.mxu1 }
 0x56a   : > { %v5940_v25 = vadd.f32 %v5939_v20, %v5900_v33 }
 0x56b   : > { %v5902_v35 = vpop.f32.mrf.mxu0  ;;  %v5942_v60 = vpop.f32.mrf.mxu1 }
 0x56d   : > { %v5903_v6 = vpop.f32.mrf.mxu0  ;;  %v5943_v37 = vpop.f32.mrf.mxu1 }
 0x5a7   : > { %v5979_v22 = vpop.f32.mrf.mxu0  ;;  %v6019_v39 = vpop.f32.mrf.mxu1 }
 0x5a8   : > { %v5980_v46 = vadd.f32 %v5979_v22, %v5940_v25 }
 0x5a9   : > { %v5981_v41 = vpop.f32.mrf.mxu0  ;;  %v6021_v42 = vpop.f32.mrf.mxu1 }
 0x5aa   : > { %v6020_v18 = vadd.f32 %v6019_v39, %v5980_v46 }
 0x5ab   : > { %v5982_v16 = vpop.f32.mrf.mxu0  ;;  %v6022_v10 = vpop.f32.mrf.mxu1 }
 0x5ad   : > { %v5983_v44 = vpop.f32.mrf.mxu0  ;;  %v6023_v3 = vpop.f32.mrf.mxu1 }
 0x5e7   : > { %v6059_v48 = vpop.f32.mrf.mxu0  ;;  %v6099_v49 = vpop.f32.mrf.mxu1 }
 0x5e8   : > { %v6060_v9 = vadd.f32 %v6059_v48, %v6020_v18 }
 0x5e9   : > { %v6061_v53 = vpop.f32.mrf.mxu0  ;;  %v6101_v29 = vpop.f32.mrf.mxu1 }
 0x5ea   : > { %v6100_v14 = vadd.f32 %v6099_v49, %v6060_v9  ;;  %6110 = sbr.rel (%p6781_p10) target bundleno = 1748 (0x6d4), region = 71 }
 0x5eb   : > { %v6062_v55 = vpop.f32.mrf.mxu0  ;;  %v6102_v56 = vpop.f32.mrf.mxu1 }
 0x5ec   : > { %v6105_v61 = vadd.f32 %v6100_v14, %v1280_v51 }
 0x5ed   : > { %v6063_v58 = vpop.f32.mrf.mxu0  ;;  %v6103_v59 = vpop.f32.mrf.mxu1 }
 0x5ee   : > { %6106 = vst [vmem:[#allocation2] sm:$0x3] %v6105_v61 }
 0x5ef   : > { %v6136_v31 = vld [vmem:[%s8806_s3 + $0x78] sm:$0xff]  ;;  %v6901_v36 = vmov 0.0   ;;  %v6135_v62 = vld [vmem:[%s8806_s3 + $0x70] sm:$0xff]  ;;  %vm6902_vm0 = vmmov 0   ;;  %v6134_v27 = vld [vmem:[%s8806_s3 + $0x68] sm:$0xff]  ;;  %vm6214_vm1 = vcmask 1024  }
 0x5f0   : > { %6804 = vmatprep.subr.mxu0 %v6901_v36  ;;  %6836 = vmatprep.mubr.msk.f32.mxu0 %vm6902_vm0, %v6901_v36  ;;  %v6133_v63 = vld [vmem:[%s8806_s3 + $0x60] sm:$0xff]  ;;  %v6132_v1 = vld [vmem:[%s8806_s3 + $0x58] sm:$0xff]  ;;  %v6131_v2 = vld [vmem:[%s8806_s3 + $0x50] sm:$0xff] }
 0x5f1   : > { %6805 = vmatpush3.msra.mxu0 %v6136_v31  ;;  %v6130_v32 = vld [vmem:[%s8806_s3 + $0x48] sm:$0xff]  ;;  %v6129_v4 = vld [vmem:[%s8806_s3 + $0x40] sm:$0xff]  ;;  %v6128_v12 = vld [vmem:[%s8806_s3 + $0x38] sm:$0xff] }
 0x5f2   : > { %6806 = vmatprep.subr.mxu0 %v6901_v36  ;;  %v6127_v5 = vld [vmem:[%s8806_s3 + $0x30] sm:$0xff]  ;;  %v6126_v7 = vld [vmem:[%s8806_s3 + $0x28] sm:$0xff]  ;;  %v6125_v38 = vld [vmem:[%s8806_s3 + $0x20] sm:$0xff] }
 0x5f3   : > { %6807 = vmatpush3.msra.mxu0 %v6135_v62  ;;  %v6782_v8 = vld [vmem:[%s8805_s2] ss:$0 sm:$0xff]  ;;  %v6124_v11 = vld [vmem:[%s8806_s3 + $0x18] sm:$0xff]  ;;  %v6123_v13 = vld [vmem:[%s8806_s3 + $0x10] sm:$0xff] }
 0x5f4   : > { %6808 = vmatprep.subr.mxu0 %v6901_v36  ;;  %v6122_v52 = vld [vmem:[%s8806_s3 + $0x8] sm:$0xff]  ;;  %v6121_v15 = vld [vmem:[%s8806_s3] sm:$0xff] }
 0x5f5   : > { %6809 = vmatpush3.msra.mxu0 %v6134_v27  ;;  %v6111_v47 = vld [vmem:[#allocation2] sm:$0x3]  ;;  %v6783_v17 = vld [vmem:[#allocation3] ss:$0 sm:$0xff] }
 0x5f6   : > { %6810 = vmatprep.subr.mxu0 %v6901_v36  ;;  %v6119_v43 = vadd.f32 %v6782_v8, %v6111_v47 }
 0x5f7   : > { %6811 = vmatpush3.msra.mxu0 %v6133_v63 }
 0x5f8   : > { %6812 = vmatprep.subr.mxu0 %v6901_v36  ;;  %v6120_v26 = vmax.f32 %v6119_v43, 0.0 }
 0x5f9   : > { %6813 = vmatpush3.msra.mxu0 %v6132_v1 }
 0x5fa   : > { %6814 = vmatprep.subr.mxu0 %v6901_v36 }
 0x5fb   : > { %6815 = vmatpush3.msra.mxu0 %v6131_v2 }
 0x5fc   : > { %6816 = vmatprep.subr.mxu0 %v6901_v36 }
 0x5fd   : > { %6817 = vmatpush3.msra.mxu0 %v6130_v32 }
 0x5fe   : > { %6818 = vmatprep.subr.mxu0 %v6901_v36 }
 0x5ff   : > { %6819 = vmatpush3.msra.mxu0 %v6129_v4 }
 0x600   : > { %6820 = vmatprep.subr.mxu0 %v6901_v36 }
 0x601   : > { %6821 = vmatpush3.msra.mxu0 %v6128_v12 }
 0x602   : > { %6822 = vmatprep.subr.mxu0 %v6901_v36 }
 0x603   : > { %6823 = vmatpush3.msra.mxu0 %v6127_v5 }
 0x604   : > { %6824 = vmatprep.subr.mxu0 %v6901_v36 }
 0x605   : > { %6825 = vmatpush3.msra.mxu0 %v6126_v7 }
 0x606   : > { %6826 = vmatprep.subr.mxu0 %v6901_v36 }
 0x607   : > { %6827 = vmatpush3.msra.mxu0 %v6125_v38 }
 0x608   : > { %6828 = vmatprep.subr.mxu0 %v6901_v36 }
 0x609   : > { %6829 = vmatpush3.msra.mxu0 %v6124_v11 }
 0x60a   : > { %6830 = vmatprep.subr.mxu0 %v6901_v36 }
 0x60b   : > { %6831 = vmatpush3.msra.mxu0 %v6123_v13 }
 0x60c   : > { %6832 = vmatprep.subr.mxu0 %v6901_v36 }
 0x60d   : > { %6833 = vmatpush3.msra.mxu0 %v6122_v52 }
 0x60e   : > { %6834 = vmatprep.subr.mxu0 %v6901_v36 }
 0x60f   : > { %6835 = vmatpush3.msra.mxu0 %v6121_v15 }
 0x610   : > { %6837 = vmatmul.mubr.f32.vlgmr.msra.gmra.mxu0 %v6120_v26 }
 0x6d0   : > { %v6210_v45 = vpop.f32.mrf.mxu0 }
 0x6d1   : > { %v6211_v19 = vadd.f32 %v6783_v17, %v6210_v45 }
 0x6d2   : > { %v6838_v21 = vpop.f32.mrf.mxu0 }
 0x6d3   : > { %6215 = vst.msk [vmem:[%s8808_s5] sm:$0x3] %vm6214_vm1, %v6211_v19 }
 0x6d4 PF: > { %p14_p11 = scmp.ge.s32.totalorder %s6955_s23, 4   ;;  %s8809_s20 = smov %s6893_s21 }
 0x6d5   : > { %s8810_s21 = smov %s6964_s26  ;;  %s8811_s22 = smov %s6955_s23 }
 0x6d6   :  { %16 = sbr.rel (!%p14_p11) target bundleno = 5 (0x5), region = 105 }

</bundles_post_ra>
